<compile_context>
chip_gen: v7x
topology: tpu7x:2x2x1
jax: 0.10.0
libtpu: 0.0.40
codegen_flags: <defaults>
</compile_context>

<pallas_src>
import numpy as np
import jax
import jax.numpy as jnp
from jax.experimental import pallas as pl
from jax.experimental.pallas import tpu as pltpu

MATMUL_DTYPE = jnp.bfloat16          # MXU operand dtype; accumulation stays f32
_VMEM_LIMIT = 64 * 1024 * 1024       # <= physical VMEM on v5e/v6e/v7x


def _largest_divisor(n, cap, extra_pred=None):
    cap = max(1, min(n, cap))
    for d in range(cap, 0, -1):
        if n % d == 0 and (extra_pred is None or extra_pred(d)):
            return d
    return 1


# ---------------------------------------------------------------------------
# Pallas kernels
# ---------------------------------------------------------------------------

def ln_kernel(x_ref, g_ref, b_ref, o_ref):
    """Standalone LayerNorm over the channel dim (only used when padding is needed)."""
    x = x_ref[...].astype(jnp.float32)
    mean = jnp.mean(x, axis=-1, keepdims=True)
    var = jnp.mean(jnp.square(x - mean), axis=-1, keepdims=True)
    xn = (x - mean) * jax.lax.rsqrt(var + 1e-5)
    o_ref[...] = (xn * g_ref[...] + b_ref[...]).astype(o_ref.dtype)


def make_attn_kernel(num_heads, head_dim, scale, fuse_ln, has_mask):
    """Window attention over a batch of Wb windows per grid step.

    Ref order: x, [mask], rel_bias, [g1, b1], wqkv, bqkv, wp, bp, out
      x        : (Wb, N, C)
      mask     : (Wb, N, N)      (only if has_mask)
      rel_bias : (nH, N, N)
      wqkv     : (C, 3C) bf16,  bqkv: (1, 3C) f32
      wp       : (nH, hd, C) bf16,  bp: (1, C) f32
    """
    def attn_kernel(*refs):
        idx = 0
        x_ref = refs[idx]; idx += 1
        mask_ref = None
        if has_mask:
            mask_ref = refs[idx]; idx += 1
        bias_ref = refs[idx]; idx += 1
        g1_ref = b1_ref = None
        if fuse_ln:
            g1_ref = refs[idx]; idx += 1
            b1_ref = refs[idx]; idx += 1
        wqkv_ref, bqkv_ref, wp_ref, bp_ref, o_ref = refs[idx:idx + 5]

        Wb, N, C = x_ref.shape
        x = x_ref[...].astype(jnp.float32)                      # (Wb, N, C)
        if fuse_ln:                                             # fused norm1
            mean = jnp.mean(x, axis=-1, keepdims=True)
            var = jnp.mean(jnp.square(x - mean), axis=-1, keepdims=True)
            x = (x - mean) * jax.lax.rsqrt(var + 1e-5)
            x = x * g1_ref[...] + b1_ref[...]

        # One fused QKV projection with a large M dimension (Wb*N rows).
        xm = x.reshape(Wb * N, C).astype(MATMUL_DTYPE)
        qkv = jnp.dot(xm, wqkv_ref[...], preferred_element_type=jnp.float32)
        qkv = qkv + bqkv_ref[...]                               # (Wb*N, 3C) f32

        bias = bias_ref[...].astype(jnp.float32)                # (nH, N, N)
        mask = mask_ref[...].astype(jnp.float32) if has_mask else None

        # Static unroll over heads (keeps dot_general at a single batch dim for
        # robust Mosaic lowering); output projection accumulated per head -> no concat.
        y = None
        for h in range(num_heads):
            qs = h * head_dim
            ks = C + h * head_dim
            vs = 2 * C + h * head_dim
            qh = (qkv[:, qs:qs + head_dim] * scale).reshape(Wb, N, head_dim)
            kh = qkv[:, ks:ks + head_dim].reshape(Wb, N, head_dim)
            vh = qkv[:, vs:vs + head_dim].reshape(Wb, N, head_dim)

            s = jnp.einsum('wid,wjd->wij',
                           qh.astype(MATMUL_DTYPE), kh.astype(MATMUL_DTYPE),
                           preferred_element_type=jnp.float32)   # (Wb, N, N)
            s = s + bias[h][None]
            if has_mask:
                s = s + mask
            s = s - jnp.max(s, axis=-1, keepdims=True)
            e = jnp.exp(s)
            p = e * pl.reciprocal(jnp.sum(e, axis=-1, keepdims=True), approx=True)

            oh = jnp.einsum('wij,wjd->wid',
                            p.astype(MATMUL_DTYPE), vh.astype(MATMUL_DTYPE),
                            preferred_element_type=jnp.float32)  # (Wb, N, hd)
            contrib = jnp.dot(oh.reshape(Wb * N, head_dim).astype(MATMUL_DTYPE),
                              wp_ref[h], preferred_element_type=jnp.float32)
            y = contrib if y is None else y + contrib

        y = y + bp_ref[...]
        o_ref[...] = y.reshape(Wb, N, C).astype(o_ref.dtype)

    return attn_kernel


def ln_mlp_res_kernel(sc_ref, at_ref, g_ref, b_ref, w1_ref, b1_ref, w2_ref, b2_ref, o_ref):
    """Fused: x = shortcut + attn ; out = x + fc2(GELU(fc1(LN(x)))).  Block = (row_tile, C)."""
    x = sc_ref[...].astype(jnp.float32) + at_ref[...].astype(jnp.float32)   # residual 1
    mean = jnp.mean(x, axis=-1, keepdims=True)
    var = jnp.mean(jnp.square(x - mean), axis=-1, keepdims=True)
    xn = (x - mean) * jax.lax.rsqrt(var + 1e-5)
    xn = xn * g_ref[...] + b_ref[...]
    h = jnp.dot(xn.astype(MATMUL_DTYPE), w1_ref[...],
                preferred_element_type=jnp.float32) + b1_ref[...]
    h = 0.5 * h * (1.0 + jax.lax.erf(h * np.float32(1.0 / np.sqrt(2.0))))   # exact GELU
    y = jnp.dot(h.astype(MATMUL_DTYPE), w2_ref[...],
                preferred_element_type=jnp.float32) + b2_ref[...]
    o_ref[...] = (x + y).astype(o_ref.dtype)                                # residual 2


# ---------------------------------------------------------------------------
# Pallas wrappers
# ---------------------------------------------------------------------------

def layer_norm_p(x2d, gamma, beta):
    R, C = x2d.shape
    row_tile = _largest_divisor(R, 1024, lambda d: d % 8 == 0)
    if row_tile % 8 != 0:
        row_tile = R     # full-array block is always legal
    return pl.pallas_call(
        ln_kernel,
        out_shape=jax.ShapeDtypeStruct((R, C), x2d.dtype),
        grid=(R // row_tile,),
        in_specs=[pl.BlockSpec((row_tile, C), lambda i: (i, 0)),
                  pl.BlockSpec((1, C), lambda i: (0, 0)),
                  pl.BlockSpec((1, C), lambda i: (0, 0))],
        out_specs=pl.BlockSpec((row_tile, C), lambda i: (i, 0)),
        compiler_params=pltpu.CompilerParams(
            dimension_semantics=("parallel",), vmem_limit_bytes=_VMEM_LIMIT),
    )(x2d, gamma, beta)


def window_attention_p(xw, mask, rel_bias, p, fuse_ln):
    Bw, N, C = xw.shape
    nH, hd, _ = p["wp"].shape
    scale = float(hd) ** (-0.5)
    has_mask = mask is not None

    # Batch Wb windows per grid step (target ~512 rows for MXU/vreg density).
    cap_w = max(1, 512 // N)
    if has_mask:
        nW = mask.shape[0]
        Wb = _largest_divisor(Bw, cap_w, lambda d: d <= nW and nW % d == 0)
        nblk = nW // Wb
    else:
        Wb = _largest_divisor(Bw, cap_w)
        nblk = 1
    grid = (Bw // Wb,)

    kernel = make_attn_kernel(nH, hd, scale, fuse_ln, has_mask)

    in_specs = [pl.BlockSpec((Wb, N, C), lambda g: (g, 0, 0))]
    args = [xw]
    if has_mask:
        in_specs.append(pl.BlockSpec((Wb, N, N), lambda g: (g % nblk, 0, 0)))
        args.append(mask)
    in_specs.append(pl.BlockSpec((nH, N, N), lambda g: (0, 0, 0)))
    args.append(rel_bias)
    if fuse_ln:
        in_specs += [pl.BlockSpec((1, C), lambda g: (0, 0)),
                     pl.BlockSpec((1, C), lambda g: (0, 0))]
        args += [p["g1"], p["b1"]]
    in_specs += [pl.BlockSpec((C, 3 * C), lambda g: (0, 0)),
                 pl.BlockSpec((1, 3 * C), lambda g: (0, 0)),
                 pl.BlockSpec((nH, hd, C), lambda g: (0, 0, 0)),
                 pl.BlockSpec((1, C), lambda g: (0, 0))]
    args += [p["wqkv"], p["bqkv"], p["wp"], p["bp"]]

    return pl.pallas_call(
        kernel,
        out_shape=jax.ShapeDtypeStruct((Bw, N, C), xw.dtype),
        grid=grid,
        in_specs=in_specs,
        out_specs=pl.BlockSpec((Wb, N, C), lambda g: (g, 0, 0)),
        compiler_params=pltpu.CompilerParams(
            dimension_semantics=("parallel",), vmem_limit_bytes=_VMEM_LIMIT),
    )(*args)


def ln_mlp_res_p(shortcut2d, attn2d, gamma, beta, w1, b1, w2, b2):
    R, C = shortcut2d.shape
    Hd = w1.shape[1]
    row_tile = _largest_divisor(R, 512, lambda d: d % 8 == 0)
    if row_tile % 8 != 0:
        row_tile = R
    return pl.pallas_call(
        ln_mlp_res_kernel,
        out_shape=jax.ShapeDtypeStruct((R, C), shortcut2d.dtype),
        grid=(R // row_tile,),
        in_specs=[pl.BlockSpec((row_tile, C), lambda i: (i, 0)),
                  pl.BlockSpec((row_tile, C), lambda i: (i, 0)),
                  pl.BlockSpec((1, C), lambda i: (0, 0)),
                  pl.BlockSpec((1, C), lambda i: (0, 0)),
                  pl.BlockSpec((C, Hd), lambda i: (0, 0)),
                  pl.BlockSpec((1, Hd), lambda i: (0, 0)),
                  pl.BlockSpec((Hd, C), lambda i: (0, 0)),
                  pl.BlockSpec((1, C), lambda i: (0, 0))],
        out_specs=pl.BlockSpec((row_tile, C), lambda i: (i, 0)),
        compiler_params=pltpu.CompilerParams(
            dimension_semantics=("parallel",), vmem_limit_bytes=_VMEM_LIMIT),
    )(shortcut2d, attn2d, gamma, beta, w1, b1, w2, b2)


# ---------------------------------------------------------------------------
# JAX glue (window partition/reverse, roll, pad, mask & rel-pos construction)
# ---------------------------------------------------------------------------

def compute_rel_pos_index(ws):
    coords = np.stack(np.meshgrid(np.arange(ws), np.arange(ws), indexing="ij"))
    cf = coords.reshape(2, -1)
    rc = cf[:, :, None] - cf[:, None, :]
    rc = rc.transpose(1, 2, 0).astype(np.int64)
    rc[:, :, 0] += ws - 1
    rc[:, :, 1] += ws - 1
    rc[:, :, 0] *= 2 * ws - 1
    return rc.sum(-1)  # (N, N)


def create_mask_np(H, W, window_size, shift_size):
    Hp = int(np.ceil(H / window_size)) * window_size
    Wp = int(np.ceil(W / window_size)) * window_size
    img_mask = np.zeros((1, Hp, Wp, 1), dtype=np.float32)
    slices = (slice(0, -window_size),
              slice(-window_size, -shift_size),
              slice(-shift_size, None))
    cnt = 0
    for hs in slices:
        for ws_ in slices:
            img_mask[:, hs, ws_, :] = cnt
            cnt += 1
    nh, nw = Hp // window_size, Wp // window_size
    mw = img_mask.reshape(1, nh, window_size, nw, window_size, 1)
    mw = mw.transpose(0, 1, 3, 2, 4, 5).reshape(-1, window_size * window_size)
    attn_mask = mw[:, None, :] - mw[:, :, None]
    attn_mask = np.where(attn_mask != 0, -100.0, 0.0).astype(np.float32)
    return jnp.asarray(attn_mask)  # (nW, N, N)


def swin_block_forward(x, H, W, window_size, shift_size, attn_mask, p):
    B, L, C = x.shape
    ws = window_size
    N = ws * ws
    shortcut = x

    pad_r = (ws - W % ws) % ws
    pad_b = (ws - H % ws) % ws
    needs_pad = bool(pad_r or pad_b)

    if needs_pad:
        # Padded tokens must be exact zeros after norm1 (matches torch), so run LN
        # as its own Pallas pass here.
        xn = layer_norm_p(x.reshape(B * L, C), p["g1"], p["b1"]).reshape(B, H, W, C)
        xn = jnp.pad(xn, ((0, 0), (0, pad_b), (0, pad_r), (0, 0)))
        fuse_ln = False
    else:
        # LayerNorm is per-token -> commutes with roll / window partition, fuse it
        # into the attention kernel (saves one full HBM round trip of (B,L,C)).
        xn = x.reshape(B, H, W, C)
        fuse_ln = True

    Hp, Wp = H + pad_b, W + pad_r
    nh, nw = Hp // ws, Wp // ws

    if shift_size > 0:
        shifted = jnp.roll(xn, shift=(-shift_size, -shift_size), axis=(1, 2))
        mask = attn_mask                      # (nW, N, N)
    else:
        shifted = xn
        mask = None                           # mask-free kernel variant

    # TODO(synk): window partition/reverse kept as JAX reshape/transpose glue; could be
    # folded into the attention index_map over a (b, wh, ww) grid for fewer HBM passes.
    xw = shifted.reshape(B, nh, ws, nw, ws, C)
    xw = xw.transpose(0, 1, 3, 2, 4, 5).reshape(-1, N, C)

    rel_bias = p["rpbt"][p["rpi"].reshape(-1)].reshape(N, N, -1).transpose(2, 0, 1)
    rel_bias = rel_bias.astype(jnp.float32)

    attn_out = window_attention_p(xw, mask, rel_bias, p, fuse_ln)

    attn_out = attn_out.reshape(B, nh, nw, ws, ws, C)
    attn_out = attn_out.transpose(0, 1, 3, 2, 4, 5).reshape(B, Hp, Wp, C)
    if shift_size > 0:
        attn_out = jnp.roll(attn_out, shift=(shift_size, shift_size), axis=(1, 2))
    if needs_pad:
        attn_out = attn_out[:, :H, :W, :]

    # Fused: residual1 + norm2 + MLP + residual2 in one Pallas pass.
    out = ln_mlp_res_p(shortcut.reshape(B * L, C),
                       attn_out.reshape(B * L, C),
                       p["g2"], p["b2"], p["w1"], p["b1m"], p["w2"], p["b2m"])
    return out.reshape(B, L, C)


def basic_layer_forward(x, H, W, params, window_size):
    shift_size = window_size // 2
    attn_mask = create_mask_np(H, W, window_size, shift_size)
    for i, p in enumerate(params):
        ss = 0 if i % 2 == 0 else shift_size
        x = swin_block_forward(x, H, W, window_size, ss, attn_mask, p)
    # TODO(synk): downsample=None in this configuration (PatchMerging not instantiated).
    return x, H, W


# ---------------------------------------------------------------------------
# Deterministic parameter construction
# ---------------------------------------------------------------------------

def init_params(key, dim, depth, num_heads, window_size, mlp_ratio=4.0):
    hd = dim // num_heads
    hidden = int(dim * mlp_ratio)
    rpi = jnp.asarray(compute_rel_pos_index(window_size), dtype=jnp.int32)
    params = []
    for i in range(depth):
        ks = jax.random.split(jax.random.fold_in(key, i), 6)
        wqkv = 0.02 * jax.random.normal(ks[0], (dim, 3 * dim), jnp.float32)
        bqkv = 0.02 * jax.random.normal(ks[1], (1, 3 * dim), jnp.float32)
        wproj = 0.02 * jax.random.normal(ks[2], (dim, dim), jnp.float32)
        rpbt = 0.02 * jax.random.normal(
            ks[3], ((2 * window_size - 1) ** 2, num_heads), jnp.float32)
        w1 = 0.02 * jax.random.normal(ks[4], (dim, hidden), jnp.float32)
        w2 = 0.02 * jax.random.normal(ks[5], (hidden, dim), jnp.float32)
        p = dict(
            g1=jnp.ones((1, dim), jnp.float32), b1=jnp.zeros((1, dim), jnp.float32),
            wqkv=wqkv.astype(MATMUL_DTYPE),                       # (C, 3C) bf16
            bqkv=bqkv,                                            # (1, 3C) f32
            wp=wproj.reshape(num_heads, hd, dim).astype(MATMUL_DTYPE),  # (nH, hd, C) bf16
            bp=jnp.zeros((1, dim), jnp.float32),
            rpbt=rpbt, rpi=rpi,
            g2=jnp.ones((1, dim), jnp.float32), b2=jnp.zeros((1, dim), jnp.float32),
            w1=w1.astype(MATMUL_DTYPE), b1m=jnp.zeros((1, hidden), jnp.float32),
            w2=w2.astype(MATMUL_DTYPE), b2m=jnp.zeros((1, dim), jnp.float32),
        )
        params.append(p)
    return params


# ---------------------------------------------------------------------------

if __name__ == "__main__":
    B, H, W, C = 2, 8, 8, 32
    depth, num_heads, window_size = 2, 4, 4   # block 0: no shift, block 1: shift=2

    key = jax.random.PRNGKey(0)
    kx, kp = jax.random.split(key)
    x = jax.random.normal(kx, (B, H * W, C), jnp.float32)   # (B, L, C)
    params = init_params(kp, C, depth, num_heads, window_size)

    fwd = jax.jit(lambda xx: basic_layer_forward(xx, H, W, params, window_size)[0])
    out = jax.block_until_ready(fwd(x))
    assert out.shape == (B, H * W, C)
    assert bool(jnp.all(jnp.isfinite(out)))
    print("KERNEL_OK")
</pallas_src>

<mosaic_0001>
module attributes {stable_mosaic.version = 11 : i64} {
  func.func @attn_kernel(%arg0: i32, %arg1: memref<8x16x32xf32, #tpu.memory_space<vmem>>, %arg2: memref<4x16x16xf32, #tpu.memory_space<vmem>>, %arg3: memref<1x32xf32, #tpu.memory_space<vmem>>, %arg4: memref<1x32xf32, #tpu.memory_space<vmem>>, %arg5: memref<32x96xbf16, #tpu.memory_space<vmem>>, %arg6: memref<1x96xf32, #tpu.memory_space<vmem>>, %arg7: memref<4x8x32xbf16, #tpu.memory_space<vmem>>, %arg8: memref<1x32xf32, #tpu.memory_space<vmem>>, %arg9: memref<8x16x32xf32, #tpu.memory_space<vmem>>) attributes {dimension_semantics = [#tpu.dimension_semantics<parallel>], iteration_bounds = array<i64: 1>, scalar_prefetch = 0 : i64, scratch_operands = 0 : i64, tpu.core_type = #tpu.core_type<tc>, window_params = [{transform_indices = @transform_0, window_bounds = array<i64: 8, 16, 32>}, {pipeline_mode = #tpu.pipeline_mode<synchronous>, transform_indices = @transform_1, window_bounds = array<i64: 4, 16, 16>}, {pipeline_mode = #tpu.pipeline_mode<synchronous>, transform_indices = @transform_2, window_bounds = array<i64: 1, 32>}, {pipeline_mode = #tpu.pipeline_mode<synchronous>, transform_indices = @transform_3, window_bounds = array<i64: 1, 32>}, {pipeline_mode = #tpu.pipeline_mode<synchronous>, transform_indices = @transform_4, window_bounds = array<i64: 32, 96>}, {pipeline_mode = #tpu.pipeline_mode<synchronous>, transform_indices = @transform_5, window_bounds = array<i64: 1, 96>}, {pipeline_mode = #tpu.pipeline_mode<synchronous>, transform_indices = @transform_6, window_bounds = array<i64: 4, 8, 32>}, {pipeline_mode = #tpu.pipeline_mode<synchronous>, transform_indices = @transform_7, window_bounds = array<i64: 1, 32>}, {transform_indices = @transform_8, window_bounds = array<i64: 8, 16, 32>}]} {
    %c0 = arith.constant 0 : index
    %c0_0 = arith.constant 0 : index
    %c0_1 = arith.constant 0 : index
    %0 = vector.load %arg1[%c0, %c0_0, %c0_1] : memref<8x16x32xf32, #tpu.memory_space<vmem>>, vector<8x16x32xf32>
    %cst = arith.constant dense<0.000000e+00> : vector<8x16xf32>
    %1 = vector.multi_reduction <add>, %0, %cst [2] : vector<8x16x32xf32> to vector<8x16xf32>
    %2 = vector.shape_cast %1 : vector<8x16xf32> to vector<8x16x1xf32>
    %cst_2 = arith.constant 3.200000e+01 : f32
    %3 = vector.broadcast %cst_2 : f32 to vector<8x16x1xf32>
    %4 = arith.divf %2, %3 : vector<8x16x1xf32>
    %5 = vector.broadcast %4 : vector<8x16x1xf32> to vector<8x16x32xf32>
    %6 = arith.subf %0, %5 : vector<8x16x32xf32>
    %7 = arith.mulf %6, %6 : vector<8x16x32xf32>
    %cst_3 = arith.constant dense<0.000000e+00> : vector<8x16xf32>
    %8 = vector.multi_reduction <add>, %7, %cst_3 [2] : vector<8x16x32xf32> to vector<8x16xf32>
    %9 = vector.shape_cast %8 : vector<8x16xf32> to vector<8x16x1xf32>
    %cst_4 = arith.constant 3.200000e+01 : f32
    %10 = vector.broadcast %cst_4 : f32 to vector<8x16x1xf32>
    %11 = arith.divf %9, %10 : vector<8x16x1xf32>
    %12 = vector.broadcast %4 : vector<8x16x1xf32> to vector<8x16x32xf32>
    %13 = arith.subf %0, %12 : vector<8x16x32xf32>
    %cst_5 = arith.constant 9.99999974E-6 : f32
    %14 = vector.broadcast %cst_5 : f32 to vector<8x16x1xf32>
    %15 = arith.addf %11, %14 : vector<8x16x1xf32>
    %16 = math.rsqrt %15 : vector<8x16x1xf32>
    %17 = vector.broadcast %16 : vector<8x16x1xf32> to vector<8x16x32xf32>
    %18 = arith.mulf %13, %17 : vector<8x16x32xf32>
    %c0_6 = arith.constant 0 : index
    %c0_7 = arith.constant 0 : index
    %19 = vector.load %arg3[%c0_6, %c0_7] : memref<1x32xf32, #tpu.memory_space<vmem>>, vector<1x32xf32>
    %20 = vector.shape_cast %19 : vector<1x32xf32> to vector<1x1x32xf32>
    %21 = vector.broadcast %20 : vector<1x1x32xf32> to vector<8x16x32xf32>
    %22 = arith.mulf %18, %21 : vector<8x16x32xf32>
    %c0_8 = arith.constant 0 : index
    %c0_9 = arith.constant 0 : index
    %23 = vector.load %arg4[%c0_8, %c0_9] : memref<1x32xf32, #tpu.memory_space<vmem>>, vector<1x32xf32>
    %24 = vector.shape_cast %23 : vector<1x32xf32> to vector<1x1x32xf32>
    %25 = vector.broadcast %24 : vector<1x1x32xf32> to vector<8x16x32xf32>
    %26 = arith.addf %22, %25 : vector<8x16x32xf32>
    %27 = vector.shape_cast %26 : vector<8x16x32xf32> to vector<128x32xf32>
    %28 = arith.truncf %27 : vector<128x32xf32> to vector<128x32xbf16>
    %c0_10 = arith.constant 0 : index
    %c0_11 = arith.constant 0 : index
    %29 = vector.load %arg5[%c0_10, %c0_11] : memref<32x96xbf16, #tpu.memory_space<vmem>>, vector<32x96xbf16>
    %cst_12 = arith.constant dense<0.000000e+00> : vector<128x96xf32>
    %30 = tpu.matmul %28, %29, %cst_12 {dimension_numbers = #tpu.dot_dimension_numbers<[1], [0], [0], [1], [0, 0, 1, 1], [], []>} : vector<128x32xbf16>, vector<32x96xbf16>, vector<128x96xf32> -> vector<128x96xf32>
    %c0_13 = arith.constant 0 : index
    %c0_14 = arith.constant 0 : index
    %31 = vector.load %arg6[%c0_13, %c0_14] : memref<1x96xf32, #tpu.memory_space<vmem>>, vector<1x96xf32>
    %32 = vector.broadcast %31 : vector<1x96xf32> to vector<128x96xf32>
    %33 = arith.addf %30, %32 : vector<128x96xf32>
    %c0_15 = arith.constant 0 : index
    %c0_16 = arith.constant 0 : index
    %c0_17 = arith.constant 0 : index
    %34 = vector.load %arg2[%c0_15, %c0_16, %c0_17] : memref<4x16x16xf32, #tpu.memory_space<vmem>>, vector<4x16x16xf32>
    %35 = vector.extract_strided_slice %33 {offsets = [0, 0], sizes = [128, 8], strides = [1, 1]} : vector<128x96xf32> to vector<128x8xf32>
    %cst_18 = arith.constant 0.353553385 : f32
    %36 = vector.broadcast %cst_18 : f32 to vector<128x8xf32>
    %37 = arith.mulf %35, %36 : vector<128x8xf32>
    %38 = vector.shape_cast %37 : vector<128x8xf32> to vector<8x16x8xf32>
    %39 = vector.extract_strided_slice %33 {offsets = [0, 32], sizes = [128, 8], strides = [1, 1]} : vector<128x96xf32> to vector<128x8xf32>
    %40 = vector.shape_cast %39 : vector<128x8xf32> to vector<8x16x8xf32>
    %41 = vector.extract_strided_slice %33 {offsets = [0, 64], sizes = [128, 8], strides = [1, 1]} : vector<128x96xf32> to vector<128x8xf32>
    %42 = vector.shape_cast %41 : vector<128x8xf32> to vector<8x16x8xf32>
    %43 = arith.truncf %38 : vector<8x16x8xf32> to vector<8x16x8xbf16>
    %44 = arith.truncf %40 : vector<8x16x8xf32> to vector<8x16x8xbf16>
    "tpu.trace_start"() <{level = 10 : i32, message = "wid,wjd->wij"}> : () -> ()
    %cst_19 = arith.constant dense<0.000000e+00> : vector<8x16x16xf32>
    %45 = tpu.matmul %43, %44, %cst_19 {dimension_numbers = #tpu.dot_dimension_numbers<[2], [2], [1], [1], [0, 0, 0, 1, 1, 1], [0], [0]>} : vector<8x16x8xbf16>, vector<8x16x8xbf16>, vector<8x16x16xf32> -> vector<8x16x16xf32>
    "tpu.trace_stop"() : () -> ()
    %46 = vector.extract_strided_slice %34 {offsets = [0, 0, 0], sizes = [1, 16, 16], strides = [1, 1, 1]} : vector<4x16x16xf32> to vector<1x16x16xf32>
    %47 = vector.shape_cast %46 : vector<1x16x16xf32> to vector<16x16xf32>
    %48 = vector.shape_cast %47 : vector<16x16xf32> to vector<1x16x16xf32>
    %49 = vector.broadcast %48 : vector<1x16x16xf32> to vector<8x16x16xf32>
    %50 = arith.addf %45, %49 : vector<8x16x16xf32>
    %cst_20 = arith.constant dense<0xFF800000> : vector<8x16xf32>
    %51 = vector.multi_reduction <maximumf>, %50, %cst_20 [2] : vector<8x16x16xf32> to vector<8x16xf32>
    %52 = vector.shape_cast %51 : vector<8x16xf32> to vector<8x16x1xf32>
    %53 = vector.broadcast %52 : vector<8x16x1xf32> to vector<8x16x16xf32>
    %54 = arith.subf %50, %53 : vector<8x16x16xf32>
    %55 = math.exp %54 : vector<8x16x16xf32>
    %cst_21 = arith.constant dense<0.000000e+00> : vector<8x16xf32>
    %56 = vector.multi_reduction <add>, %55, %cst_21 [2] : vector<8x16x16xf32> to vector<8x16xf32>
    %57 = vector.shape_cast %56 : vector<8x16xf32> to vector<8x16x1xf32>
    %58 = tpu.reciprocal %57 {approx = true} : vector<8x16x1xf32> -> vector<8x16x1xf32>
    %59 = vector.broadcast %58 : vector<8x16x1xf32> to vector<8x16x16xf32>
    %60 = arith.mulf %55, %59 : vector<8x16x16xf32>
    %61 = arith.truncf %60 : vector<8x16x16xf32> to vector<8x16x16xbf16>
    %62 = arith.truncf %42 : vector<8x16x8xf32> to vector<8x16x8xbf16>
    "tpu.trace_start"() <{level = 10 : i32, message = "wij,wjd->wid"}> : () -> ()
    %cst_22 = arith.constant dense<0.000000e+00> : vector<8x16x8xf32>
    %63 = tpu.matmul %61, %62, %cst_22 {dimension_numbers = #tpu.dot_dimension_numbers<[2], [1], [1], [2], [0, 0, 0, 1, 1, 2], [0], [0]>} : vector<8x16x16xbf16>, vector<8x16x8xbf16>, vector<8x16x8xf32> -> vector<8x16x8xf32>
    "tpu.trace_stop"() : () -> ()
    %64 = vector.shape_cast %63 : vector<8x16x8xf32> to vector<128x8xf32>
    %65 = arith.truncf %64 : vector<128x8xf32> to vector<128x8xbf16>
    %c0_23 = arith.constant 0 : index
    %c0_24 = arith.constant 0 : index
    %c0_25 = arith.constant 0 : index
    %66 = vector.load %arg7[%c0_23, %c0_24, %c0_25] : memref<4x8x32xbf16, #tpu.memory_space<vmem>>, vector<1x8x32xbf16>
    %67 = vector.shape_cast %66 : vector<1x8x32xbf16> to vector<8x32xbf16>
    %cst_26 = arith.constant dense<0.000000e+00> : vector<128x32xf32>
    %68 = tpu.matmul %65, %67, %cst_26 {dimension_numbers = #tpu.dot_dimension_numbers<[1], [0], [0], [1], [0, 0, 1, 1], [], []>} : vector<128x8xbf16>, vector<8x32xbf16>, vector<128x32xf32> -> vector<128x32xf32>
    %69 = vector.extract_strided_slice %33 {offsets = [0, 8], sizes = [128, 8], strides = [1, 1]} : vector<128x96xf32> to vector<128x8xf32>
    %cst_27 = arith.constant 0.353553385 : f32
    %70 = vector.broadcast %cst_27 : f32 to vector<128x8xf32>
    %71 = arith.mulf %69, %70 : vector<128x8xf32>
    %72 = vector.shape_cast %71 : vector<128x8xf32> to vector<8x16x8xf32>
    %73 = vector.extract_strided_slice %33 {offsets = [0, 40], sizes = [128, 8], strides = [1, 1]} : vector<128x96xf32> to vector<128x8xf32>
    %74 = vector.shape_cast %73 : vector<128x8xf32> to vector<8x16x8xf32>
    %75 = vector.extract_strided_slice %33 {offsets = [0, 72], sizes = [128, 8], strides = [1, 1]} : vector<128x96xf32> to vector<128x8xf32>
    %76 = vector.shape_cast %75 : vector<128x8xf32> to vector<8x16x8xf32>
    %77 = arith.truncf %72 : vector<8x16x8xf32> to vector<8x16x8xbf16>
    %78 = arith.truncf %74 : vector<8x16x8xf32> to vector<8x16x8xbf16>
    "tpu.trace_start"() <{level = 10 : i32, message = "wid,wjd->wij"}> : () -> ()
    %cst_28 = arith.constant dense<0.000000e+00> : vector<8x16x16xf32>
    %79 = tpu.matmul %77, %78, %cst_28 {dimension_numbers = #tpu.dot_dimension_numbers<[2], [2], [1], [1], [0, 0, 0, 1, 1, 1], [0], [0]>} : vector<8x16x8xbf16>, vector<8x16x8xbf16>, vector<8x16x16xf32> -> vector<8x16x16xf32>
    "tpu.trace_stop"() : () -> ()
    %80 = vector.extract_strided_slice %34 {offsets = [1, 0, 0], sizes = [1, 16, 16], strides = [1, 1, 1]} : vector<4x16x16xf32> to vector<1x16x16xf32>
    %81 = vector.shape_cast %80 : vector<1x16x16xf32> to vector<16x16xf32>
    %82 = vector.shape_cast %81 : vector<16x16xf32> to vector<1x16x16xf32>
    %83 = vector.broadcast %82 : vector<1x16x16xf32> to vector<8x16x16xf32>
    %84 = arith.addf %79, %83 : vector<8x16x16xf32>
    %cst_29 = arith.constant dense<0xFF800000> : vector<8x16xf32>
    %85 = vector.multi_reduction <maximumf>, %84, %cst_29 [2] : vector<8x16x16xf32> to vector<8x16xf32>
    %86 = vector.shape_cast %85 : vector<8x16xf32> to vector<8x16x1xf32>
    %87 = vector.broadcast %86 : vector<8x16x1xf32> to vector<8x16x16xf32>
    %88 = arith.subf %84, %87 : vector<8x16x16xf32>
    %89 = math.exp %88 : vector<8x16x16xf32>
    %cst_30 = arith.constant dense<0.000000e+00> : vector<8x16xf32>
    %90 = vector.multi_reduction <add>, %89, %cst_30 [2] : vector<8x16x16xf32> to vector<8x16xf32>
    %91 = vector.shape_cast %90 : vector<8x16xf32> to vector<8x16x1xf32>
    %92 = tpu.reciprocal %91 {approx = true} : vector<8x16x1xf32> -> vector<8x16x1xf32>
    %93 = vector.broadcast %92 : vector<8x16x1xf32> to vector<8x16x16xf32>
    %94 = arith.mulf %89, %93 : vector<8x16x16xf32>
    %95 = arith.truncf %94 : vector<8x16x16xf32> to vector<8x16x16xbf16>
    %96 = arith.truncf %76 : vector<8x16x8xf32> to vector<8x16x8xbf16>
    "tpu.trace_start"() <{level = 10 : i32, message = "wij,wjd->wid"}> : () -> ()
    %cst_31 = arith.constant dense<0.000000e+00> : vector<8x16x8xf32>
    %97 = tpu.matmul %95, %96, %cst_31 {dimension_numbers = #tpu.dot_dimension_numbers<[2], [1], [1], [2], [0, 0, 0, 1, 1, 2], [0], [0]>} : vector<8x16x16xbf16>, vector<8x16x8xbf16>, vector<8x16x8xf32> -> vector<8x16x8xf32>
    "tpu.trace_stop"() : () -> ()
    %98 = vector.shape_cast %97 : vector<8x16x8xf32> to vector<128x8xf32>
    %99 = arith.truncf %98 : vector<128x8xf32> to vector<128x8xbf16>
    %c1 = arith.constant 1 : index
    %c0_32 = arith.constant 0 : index
    %c0_33 = arith.constant 0 : index
    %100 = vector.load %arg7[%c1, %c0_32, %c0_33] : memref<4x8x32xbf16, #tpu.memory_space<vmem>>, vector<1x8x32xbf16>
    %101 = vector.shape_cast %100 : vector<1x8x32xbf16> to vector<8x32xbf16>
    %cst_34 = arith.constant dense<0.000000e+00> : vector<128x32xf32>
    %102 = tpu.matmul %99, %101, %cst_34 {dimension_numbers = #tpu.dot_dimension_numbers<[1], [0], [0], [1], [0, 0, 1, 1], [], []>} : vector<128x8xbf16>, vector<8x32xbf16>, vector<128x32xf32> -> vector<128x32xf32>
    %103 = arith.addf %68, %102 : vector<128x32xf32>
    %104 = vector.extract_strided_slice %33 {offsets = [0, 16], sizes = [128, 8], strides = [1, 1]} : vector<128x96xf32> to vector<128x8xf32>
    %cst_35 = arith.constant 0.353553385 : f32
    %105 = vector.broadcast %cst_35 : f32 to vector<128x8xf32>
    %106 = arith.mulf %104, %105 : vector<128x8xf32>
    %107 = vector.shape_cast %106 : vector<128x8xf32> to vector<8x16x8xf32>
    %108 = vector.extract_strided_slice %33 {offsets = [0, 48], sizes = [128, 8], strides = [1, 1]} : vector<128x96xf32> to vector<128x8xf32>
    %109 = vector.shape_cast %108 : vector<128x8xf32> to vector<8x16x8xf32>
    %110 = vector.extract_strided_slice %33 {offsets = [0, 80], sizes = [128, 8], strides = [1, 1]} : vector<128x96xf32> to vector<128x8xf32>
    %111 = vector.shape_cast %110 : vector<128x8xf32> to vector<8x16x8xf32>
    %112 = arith.truncf %107 : vector<8x16x8xf32> to vector<8x16x8xbf16>
    %113 = arith.truncf %109 : vector<8x16x8xf32> to vector<8x16x8xbf16>
    "tpu.trace_start"() <{level = 10 : i32, message = "wid,wjd->wij"}> : () -> ()
    %cst_36 = arith.constant dense<0.000000e+00> : vector<8x16x16xf32>
    %114 = tpu.matmul %112, %113, %cst_36 {dimension_numbers = #tpu.dot_dimension_numbers<[2], [2], [1], [1], [0, 0, 0, 1, 1, 1], [0], [0]>} : vector<8x16x8xbf16>, vector<8x16x8xbf16>, vector<8x16x16xf32> -> vector<8x16x16xf32>
    "tpu.trace_stop"() : () -> ()
    %115 = vector.extract_strided_slice %34 {offsets = [2, 0, 0], sizes = [1, 16, 16], strides = [1, 1, 1]} : vector<4x16x16xf32> to vector<1x16x16xf32>
    %116 = vector.shape_cast %115 : vector<1x16x16xf32> to vector<16x16xf32>
    %117 = vector.shape_cast %116 : vector<16x16xf32> to vector<1x16x16xf32>
    %118 = vector.broadcast %117 : vector<1x16x16xf32> to vector<8x16x16xf32>
    %119 = arith.addf %114, %118 : vector<8x16x16xf32>
    %cst_37 = arith.constant dense<0xFF800000> : vector<8x16xf32>
    %120 = vector.multi_reduction <maximumf>, %119, %cst_37 [2] : vector<8x16x16xf32> to vector<8x16xf32>
    %121 = vector.shape_cast %120 : vector<8x16xf32> to vector<8x16x1xf32>
    %122 = vector.broadcast %121 : vector<8x16x1xf32> to vector<8x16x16xf32>
    %123 = arith.subf %119, %122 : vector<8x16x16xf32>
    %124 = math.exp %123 : vector<8x16x16xf32>
    %cst_38 = arith.constant dense<0.000000e+00> : vector<8x16xf32>
    %125 = vector.multi_reduction <add>, %124, %cst_38 [2] : vector<8x16x16xf32> to vector<8x16xf32>
    %126 = vector.shape_cast %125 : vector<8x16xf32> to vector<8x16x1xf32>
    %127 = tpu.reciprocal %126 {approx = true} : vector<8x16x1xf32> -> vector<8x16x1xf32>
    %128 = vector.broadcast %127 : vector<8x16x1xf32> to vector<8x16x16xf32>
    %129 = arith.mulf %124, %128 : vector<8x16x16xf32>
    %130 = arith.truncf %129 : vector<8x16x16xf32> to vector<8x16x16xbf16>
    %131 = arith.truncf %111 : vector<8x16x8xf32> to vector<8x16x8xbf16>
    "tpu.trace_start"() <{level = 10 : i32, message = "wij,wjd->wid"}> : () -> ()
    %cst_39 = arith.constant dense<0.000000e+00> : vector<8x16x8xf32>
    %132 = tpu.matmul %130, %131, %cst_39 {dimension_numbers = #tpu.dot_dimension_numbers<[2], [1], [1], [2], [0, 0, 0, 1, 1, 2], [0], [0]>} : vector<8x16x16xbf16>, vector<8x16x8xbf16>, vector<8x16x8xf32> -> vector<8x16x8xf32>
    "tpu.trace_stop"() : () -> ()
    %133 = vector.shape_cast %132 : vector<8x16x8xf32> to vector<128x8xf32>
    %134 = arith.truncf %133 : vector<128x8xf32> to vector<128x8xbf16>
    %c2 = arith.constant 2 : index
    %c0_40 = arith.constant 0 : index
    %c0_41 = arith.constant 0 : index
    %135 = vector.load %arg7[%c2, %c0_40, %c0_41] : memref<4x8x32xbf16, #tpu.memory_space<vmem>>, vector<1x8x32xbf16>
    %136 = vector.shape_cast %135 : vector<1x8x32xbf16> to vector<8x32xbf16>
    %cst_42 = arith.constant dense<0.000000e+00> : vector<128x32xf32>
    %137 = tpu.matmul %134, %136, %cst_42 {dimension_numbers = #tpu.dot_dimension_numbers<[1], [0], [0], [1], [0, 0, 1, 1], [], []>} : vector<128x8xbf16>, vector<8x32xbf16>, vector<128x32xf32> -> vector<128x32xf32>
    %138 = arith.addf %103, %137 : vector<128x32xf32>
    %139 = vector.extract_strided_slice %33 {offsets = [0, 24], sizes = [128, 8], strides = [1, 1]} : vector<128x96xf32> to vector<128x8xf32>
    %cst_43 = arith.constant 0.353553385 : f32
    %140 = vector.broadcast %cst_43 : f32 to vector<128x8xf32>
    %141 = arith.mulf %139, %140 : vector<128x8xf32>
    %142 = vector.shape_cast %141 : vector<128x8xf32> to vector<8x16x8xf32>
    %143 = vector.extract_strided_slice %33 {offsets = [0, 56], sizes = [128, 8], strides = [1, 1]} : vector<128x96xf32> to vector<128x8xf32>
    %144 = vector.shape_cast %143 : vector<128x8xf32> to vector<8x16x8xf32>
    %145 = vector.extract_strided_slice %33 {offsets = [0, 88], sizes = [128, 8], strides = [1, 1]} : vector<128x96xf32> to vector<128x8xf32>
    %146 = vector.shape_cast %145 : vector<128x8xf32> to vector<8x16x8xf32>
    %147 = arith.truncf %142 : vector<8x16x8xf32> to vector<8x16x8xbf16>
    %148 = arith.truncf %144 : vector<8x16x8xf32> to vector<8x16x8xbf16>
    "tpu.trace_start"() <{level = 10 : i32, message = "wid,wjd->wij"}> : () -> ()
    %cst_44 = arith.constant dense<0.000000e+00> : vector<8x16x16xf32>
    %149 = tpu.matmul %147, %148, %cst_44 {dimension_numbers = #tpu.dot_dimension_numbers<[2], [2], [1], [1], [0, 0, 0, 1, 1, 1], [0], [0]>} : vector<8x16x8xbf16>, vector<8x16x8xbf16>, vector<8x16x16xf32> -> vector<8x16x16xf32>
    "tpu.trace_stop"() : () -> ()
    %150 = vector.extract_strided_slice %34 {offsets = [3, 0, 0], sizes = [1, 16, 16], strides = [1, 1, 1]} : vector<4x16x16xf32> to vector<1x16x16xf32>
    %151 = vector.shape_cast %150 : vector<1x16x16xf32> to vector<16x16xf32>
    %152 = vector.shape_cast %151 : vector<16x16xf32> to vector<1x16x16xf32>
    %153 = vector.broadcast %152 : vector<1x16x16xf32> to vector<8x16x16xf32>
    %154 = arith.addf %149, %153 : vector<8x16x16xf32>
    %cst_45 = arith.constant dense<0xFF800000> : vector<8x16xf32>
    %155 = vector.multi_reduction <maximumf>, %154, %cst_45 [2] : vector<8x16x16xf32> to vector<8x16xf32>
    %156 = vector.shape_cast %155 : vector<8x16xf32> to vector<8x16x1xf32>
    %157 = vector.broadcast %156 : vector<8x16x1xf32> to vector<8x16x16xf32>
    %158 = arith.subf %154, %157 : vector<8x16x16xf32>
    %159 = math.exp %158 : vector<8x16x16xf32>
    %cst_46 = arith.constant dense<0.000000e+00> : vector<8x16xf32>
    %160 = vector.multi_reduction <add>, %159, %cst_46 [2] : vector<8x16x16xf32> to vector<8x16xf32>
    %161 = vector.shape_cast %160 : vector<8x16xf32> to vector<8x16x1xf32>
    %162 = tpu.reciprocal %161 {approx = true} : vector<8x16x1xf32> -> vector<8x16x1xf32>
    %163 = vector.broadcast %162 : vector<8x16x1xf32> to vector<8x16x16xf32>
    %164 = arith.mulf %159, %163 : vector<8x16x16xf32>
    %165 = arith.truncf %164 : vector<8x16x16xf32> to vector<8x16x16xbf16>
    %166 = arith.truncf %146 : vector<8x16x8xf32> to vector<8x16x8xbf16>
    "tpu.trace_start"() <{level = 10 : i32, message = "wij,wjd->wid"}> : () -> ()
    %cst_47 = arith.constant dense<0.000000e+00> : vector<8x16x8xf32>
    %167 = tpu.matmul %165, %166, %cst_47 {dimension_numbers = #tpu.dot_dimension_numbers<[2], [1], [1], [2], [0, 0, 0, 1, 1, 2], [0], [0]>} : vector<8x16x16xbf16>, vector<8x16x8xbf16>, vector<8x16x8xf32> -> vector<8x16x8xf32>
    "tpu.trace_stop"() : () -> ()
    %168 = vector.shape_cast %167 : vector<8x16x8xf32> to vector<128x8xf32>
    %169 = arith.truncf %168 : vector<128x8xf32> to vector<128x8xbf16>
    %c3 = arith.constant 3 : index
    %c0_48 = arith.constant 0 : index
    %c0_49 = arith.constant 0 : index
    %170 = vector.load %arg7[%c3, %c0_48, %c0_49] : memref<4x8x32xbf16, #tpu.memory_space<vmem>>, vector<1x8x32xbf16>
    %171 = vector.shape_cast %170 : vector<1x8x32xbf16> to vector<8x32xbf16>
    %cst_50 = arith.constant dense<0.000000e+00> : vector<128x32xf32>
    %172 = tpu.matmul %169, %171, %cst_50 {dimension_numbers = #tpu.dot_dimension_numbers<[1], [0], [0], [1], [0, 0, 1, 1], [], []>} : vector<128x8xbf16>, vector<8x32xbf16>, vector<128x32xf32> -> vector<128x32xf32>
    %173 = arith.addf %138, %172 : vector<128x32xf32>
    %c0_51 = arith.constant 0 : index
    %c0_52 = arith.constant 0 : index
    %174 = vector.load %arg8[%c0_51, %c0_52] : memref<1x32xf32, #tpu.memory_space<vmem>>, vector<1x32xf32>
    %175 = vector.broadcast %174 : vector<1x32xf32> to vector<128x32xf32>
    %176 = arith.addf %173, %175 : vector<128x32xf32>
    %177 = vector.shape_cast %176 : vector<128x32xf32> to vector<8x16x32xf32>
    %c0_53 = arith.constant 0 : index
    %c0_54 = arith.constant 0 : index
    %c0_55 = arith.constant 0 : index
    %178 = vector.load %arg9[%c0_53, %c0_54, %c0_55] : memref<8x16x32xf32, #tpu.memory_space<vmem>>, vector<8x16x32xf32>
    tpu.vector_store %arg9[%c0_53, %c0_54, %c0_55], %177 {strides = array<i32>} : memref<8x16x32xf32, #tpu.memory_space<vmem>>, vector<8x16x32xf32>,
    return
  }
  func.func @transform_0(%arg0: i32) -> (i32, i32, i32) {
    %c0_i32 = arith.constant 0 : i32
    %c0_i32_0 = arith.constant 0 : i32
    %c0_i32_1 = arith.constant 0 : i32
    return %arg0, %c0_i32, %c0_i32_0 : i32, i32, i32
  }
  func.func @transform_1(%arg0: i32) -> (i32, i32, i32) {
    %c0_i32 = arith.constant 0 : i32
    %c0_i32_0 = arith.constant 0 : i32
    %c0_i32_1 = arith.constant 0 : i32
    %c0_i32_2 = arith.constant 0 : i32
    return %c0_i32, %c0_i32_0, %c0_i32_1 : i32, i32, i32
  }
  func.func @transform_2(%arg0: i32) -> (i32, i32) {
    %c0_i32 = arith.constant 0 : i32
    %c0_i32_0 = arith.constant 0 : i32
    %c0_i32_1 = arith.constant 0 : i32
    return %c0_i32, %c0_i32_0 : i32, i32
  }
  func.func @transform_3(%arg0: i32) -> (i32, i32) {
    %c0_i32 = arith.constant 0 : i32
    %c0_i32_0 = arith.constant 0 : i32
    %c0_i32_1 = arith.constant 0 : i32
    return %c0_i32, %c0_i32_0 : i32, i32
  }
  func.func @transform_4(%arg0: i32) -> (i32, i32) {
    %c0_i32 = arith.constant 0 : i32
    %c0_i32_0 = arith.constant 0 : i32
    %c0_i32_1 = arith.constant 0 : i32
    return %c0_i32, %c0_i32_0 : i32, i32
  }
  func.func @transform_5(%arg0: i32) -> (i32, i32) {
    %c0_i32 = arith.constant 0 : i32
    %c0_i32_0 = arith.constant 0 : i32
    %c0_i32_1 = arith.constant 0 : i32
    return %c0_i32, %c0_i32_0 : i32, i32
  }
  func.func @transform_6(%arg0: i32) -> (i32, i32, i32) {
    %c0_i32 = arith.constant 0 : i32
    %c0_i32_0 = arith.constant 0 : i32
    %c0_i32_1 = arith.constant 0 : i32
    %c0_i32_2 = arith.constant 0 : i32
    return %c0_i32, %c0_i32_0, %c0_i32_1 : i32, i32, i32
  }
  func.func @transform_7(%arg0: i32) -> (i32, i32) {
    %c0_i32 = arith.constant 0 : i32
    %c0_i32_0 = arith.constant 0 : i32
    %c0_i32_1 = arith.constant 0 : i32
    return %c0_i32, %c0_i32_0 : i32, i32
  }
  func.func @transform_8(%arg0: i32) -> (i32, i32, i32) {
    %c0_i32 = arith.constant 0 : i32
    %c0_i32_0 = arith.constant 0 : i32
    %c0_i32_1 = arith.constant 0 : i32
    return %arg0, %c0_i32, %c0_i32_0 : i32, i32, i32
  }
}

module attributes {stable_mosaic.version = 11 : i64} {
  func.func @ln_mlp_res_kernel(%arg0: i32, %arg1: memref<128x32xf32, #tpu.memory_space<vmem>>, %arg2: memref<128x32xf32, #tpu.memory_space<vmem>>, %arg3: memref<1x32xf32, #tpu.memory_space<vmem>>, %arg4: memref<1x32xf32, #tpu.memory_space<vmem>>, %arg5: memref<32x128xbf16, #tpu.memory_space<vmem>>, %arg6: memref<1x128xf32, #tpu.memory_space<vmem>>, %arg7: memref<128x32xbf16, #tpu.memory_space<vmem>>, %arg8: memref<1x32xf32, #tpu.memory_space<vmem>>, %arg9: memref<128x32xf32, #tpu.memory_space<vmem>>) attributes {dimension_semantics = [#tpu.dimension_semantics<parallel>], iteration_bounds = array<i64: 1>, scalar_prefetch = 0 : i64, scratch_operands = 0 : i64, tpu.core_type = #tpu.core_type<tc>, window_params = [{transform_indices = @transform_0, window_bounds = array<i64: 128, 32>}, {transform_indices = @transform_1, window_bounds = array<i64: 128, 32>}, {pipeline_mode = #tpu.pipeline_mode<synchronous>, transform_indices = @transform_2, window_bounds = array<i64: 1, 32>}, {pipeline_mode = #tpu.pipeline_mode<synchronous>, transform_indices = @transform_3, window_bounds = array<i64: 1, 32>}, {pipeline_mode = #tpu.pipeline_mode<synchronous>, transform_indices = @transform_4, window_bounds = array<i64: 32, 128>}, {pipeline_mode = #tpu.pipeline_mode<synchronous>, transform_indices = @transform_5, window_bounds = array<i64: 1, 128>}, {pipeline_mode = #tpu.pipeline_mode<synchronous>, transform_indices = @transform_6, window_bounds = array<i64: 128, 32>}, {pipeline_mode = #tpu.pipeline_mode<synchronous>, transform_indices = @transform_7, window_bounds = array<i64: 1, 32>}, {transform_indices = @transform_8, window_bounds = array<i64: 128, 32>}]} {
    %c0 = arith.constant 0 : index
    %c0_0 = arith.constant 0 : index
    %0 = vector.load %arg1[%c0, %c0_0] : memref<128x32xf32, #tpu.memory_space<vmem>>, vector<128x32xf32>
    %c0_1 = arith.constant 0 : index
    %c0_2 = arith.constant 0 : index
    %1 = vector.load %arg2[%c0_1, %c0_2] : memref<128x32xf32, #tpu.memory_space<vmem>>, vector<128x32xf32>
    %2 = arith.addf %0, %1 : vector<128x32xf32>
    %cst = arith.constant dense<0.000000e+00> : vector<128xf32>
    %3 = vector.multi_reduction <add>, %2, %cst [1] : vector<128x32xf32> to vector<128xf32>
    %4 = vector.shape_cast %3 : vector<128xf32> to vector<128x1xf32>
    %cst_3 = arith.constant 3.200000e+01 : f32
    %5 = vector.broadcast %cst_3 : f32 to vector<128x1xf32>
    %6 = arith.divf %4, %5 : vector<128x1xf32>
    %7 = vector.broadcast %6 : vector<128x1xf32> to vector<128x32xf32>
    %8 = arith.subf %2, %7 : vector<128x32xf32>
    %9 = arith.mulf %8, %8 : vector<128x32xf32>
    %cst_4 = arith.constant dense<0.000000e+00> : vector<128xf32>
    %10 = vector.multi_reduction <add>, %9, %cst_4 [1] : vector<128x32xf32> to vector<128xf32>
    %11 = vector.shape_cast %10 : vector<128xf32> to vector<128x1xf32>
    %cst_5 = arith.constant 3.200000e+01 : f32
    %12 = vector.broadcast %cst_5 : f32 to vector<128x1xf32>
    %13 = arith.divf %11, %12 : vector<128x1xf32>
    %14 = vector.broadcast %6 : vector<128x1xf32> to vector<128x32xf32>
    %15 = arith.subf %2, %14 : vector<128x32xf32>
    %cst_6 = arith.constant 9.99999974E-6 : f32
    %16 = vector.broadcast %cst_6 : f32 to vector<128x1xf32>
    %17 = arith.addf %13, %16 : vector<128x1xf32>
    %18 = math.rsqrt %17 : vector<128x1xf32>
    %19 = vector.broadcast %18 : vector<128x1xf32> to vector<128x32xf32>
    %20 = arith.mulf %15, %19 : vector<128x32xf32>
    %c0_7 = arith.constant 0 : index
    %c0_8 = arith.constant 0 : index
    %21 = vector.load %arg3[%c0_7, %c0_8] : memref<1x32xf32, #tpu.memory_space<vmem>>, vector<1x32xf32>
    %22 = vector.broadcast %21 : vector<1x32xf32> to vector<128x32xf32>
    %23 = arith.mulf %20, %22 : vector<128x32xf32>
    %c0_9 = arith.constant 0 : index
    %c0_10 = arith.constant 0 : index
    %24 = vector.load %arg4[%c0_9, %c0_10] : memref<1x32xf32, #tpu.memory_space<vmem>>, vector<1x32xf32>
    %25 = vector.broadcast %24 : vector<1x32xf32> to vector<128x32xf32>
    %26 = arith.addf %23, %25 : vector<128x32xf32>
    %27 = arith.truncf %26 : vector<128x32xf32> to vector<128x32xbf16>
    %c0_11 = arith.constant 0 : index
    %c0_12 = arith.constant 0 : index
    %28 = vector.load %arg5[%c0_11, %c0_12] : memref<32x128xbf16, #tpu.memory_space<vmem>>, vector<32x128xbf16>
    %cst_13 = arith.constant dense<0.000000e+00> : vector<128x128xf32>
    %29 = tpu.matmul %27, %28, %cst_13 {dimension_numbers = #tpu.dot_dimension_numbers<[1], [0], [0], [1], [0, 0, 1, 1], [], []>} : vector<128x32xbf16>, vector<32x128xbf16>, vector<128x128xf32> -> vector<128x128xf32>
    %c0_14 = arith.constant 0 : index
    %c0_15 = arith.constant 0 : index
    %30 = vector.load %arg6[%c0_14, %c0_15] : memref<1x128xf32, #tpu.memory_space<vmem>>, vector<1x128xf32>
    %31 = vector.broadcast %30 : vector<1x128xf32> to vector<128x128xf32>
    %32 = arith.addf %29, %31 : vector<128x128xf32>
    %cst_16 = arith.constant 5.000000e-01 : f32
    %33 = vector.broadcast %cst_16 : f32 to vector<128x128xf32>
    %34 = arith.mulf %33, %32 : vector<128x128xf32>
    %cst_17 = arith.constant 0.707106769 : f32
    %35 = vector.broadcast %cst_17 : f32 to vector<128x128xf32>
    %36 = arith.mulf %32, %35 : vector<128x128xf32>
    %37 = math.erf %36 : vector<128x128xf32>
    %cst_18 = arith.constant 1.000000e+00 : f32
    %38 = vector.broadcast %cst_18 : f32 to vector<128x128xf32>
    %39 = arith.addf %38, %37 : vector<128x128xf32>
    %40 = arith.mulf %34, %39 : vector<128x128xf32>
    %41 = arith.truncf %40 : vector<128x128xf32> to vector<128x128xbf16>
    %c0_19 = arith.constant 0 : index
    %c0_20 = arith.constant 0 : index
    %42 = vector.load %arg7[%c0_19, %c0_20] : memref<128x32xbf16, #tpu.memory_space<vmem>>, vector<128x32xbf16>
    %cst_21 = arith.constant dense<0.000000e+00> : vector<128x32xf32>
    %43 = tpu.matmul %41, %42, %cst_21 {dimension_numbers = #tpu.dot_dimension_numbers<[1], [0], [0], [1], [0, 0, 1, 1], [], []>} : vector<128x128xbf16>, vector<128x32xbf16>, vector<128x32xf32> -> vector<128x32xf32>
    %c0_22 = arith.constant 0 : index
    %c0_23 = arith.constant 0 : index
    %44 = vector.load %arg8[%c0_22, %c0_23] : memref<1x32xf32, #tpu.memory_space<vmem>>, vector<1x32xf32>
    %45 = vector.broadcast %44 : vector<1x32xf32> to vector<128x32xf32>
    %46 = arith.addf %43, %45 : vector<128x32xf32>
    %47 = arith.addf %2, %46 : vector<128x32xf32>
    %c0_24 = arith.constant 0 : index
    %c0_25 = arith.constant 0 : index
    %48 = vector.load %arg9[%c0_24, %c0_25] : memref<128x32xf32, #tpu.memory_space<vmem>>, vector<128x32xf32>
    tpu.vector_store %arg9[%c0_24, %c0_25], %47 {strides = array<i32>} : memref<128x32xf32, #tpu.memory_space<vmem>>, vector<128x32xf32>,
    return
  }
  func.func @transform_0(%arg0: i32) -> (i32, i32) {
    %c0_i32 = arith.constant 0 : i32
    %c0_i32_0 = arith.constant 0 : i32
    return %arg0, %c0_i32 : i32, i32
  }
  func.func @transform_1(%arg0: i32) -> (i32, i32) {
    %c0_i32 = arith.constant 0 : i32
    %c0_i32_0 = arith.constant 0 : i32
    return %arg0, %c0_i32 : i32, i32
  }
  func.func @transform_2(%arg0: i32) -> (i32, i32) {
    %c0_i32 = arith.constant 0 : i32
    %c0_i32_0 = arith.constant 0 : i32
    %c0_i32_1 = arith.constant 0 : i32
    return %c0_i32, %c0_i32_0 : i32, i32
  }
  func.func @transform_3(%arg0: i32) -> (i32, i32) {
    %c0_i32 = arith.constant 0 : i32
    %c0_i32_0 = arith.constant 0 : i32
    %c0_i32_1 = arith.constant 0 : i32
    return %c0_i32, %c0_i32_0 : i32, i32
  }
  func.func @transform_4(%arg0: i32) -> (i32, i32) {
    %c0_i32 = arith.constant 0 : i32
    %c0_i32_0 = arith.constant 0 : i32
    %c0_i32_1 = arith.constant 0 : i32
    return %c0_i32, %c0_i32_0 : i32, i32
  }
  func.func @transform_5(%arg0: i32) -> (i32, i32) {
    %c0_i32 = arith.constant 0 : i32
    %c0_i32_0 = arith.constant 0 : i32
    %c0_i32_1 = arith.constant 0 : i32
    return %c0_i32, %c0_i32_0 : i32, i32
  }
  func.func @transform_6(%arg0: i32) -> (i32, i32) {
    %c0_i32 = arith.constant 0 : i32
    %c0_i32_0 = arith.constant 0 : i32
    %c0_i32_1 = arith.constant 0 : i32
    return %c0_i32, %c0_i32_0 : i32, i32
  }
  func.func @transform_7(%arg0: i32) -> (i32, i32) {
    %c0_i32 = arith.constant 0 : i32
    %c0_i32_0 = arith.constant 0 : i32
    %c0_i32_1 = arith.constant 0 : i32
    return %c0_i32, %c0_i32_0 : i32, i32
  }
  func.func @transform_8(%arg0: i32) -> (i32, i32) {
    %c0_i32 = arith.constant 0 : i32
    %c0_i32_0 = arith.constant 0 : i32
    return %arg0, %c0_i32 : i32, i32
  }
}

module attributes {stable_mosaic.version = 11 : i64} {
  func.func @attn_kernel(%arg0: i32, %arg1: memref<4x16x32xf32, #tpu.memory_space<vmem>>, %arg2: memref<4x16x16xf32, #tpu.memory_space<vmem>>, %arg3: memref<4x16x16xf32, #tpu.memory_space<vmem>>, %arg4: memref<1x32xf32, #tpu.memory_space<vmem>>, %arg5: memref<1x32xf32, #tpu.memory_space<vmem>>, %arg6: memref<32x96xbf16, #tpu.memory_space<vmem>>, %arg7: memref<1x96xf32, #tpu.memory_space<vmem>>, %arg8: memref<4x8x32xbf16, #tpu.memory_space<vmem>>, %arg9: memref<1x32xf32, #tpu.memory_space<vmem>>, %arg10: memref<4x16x32xf32, #tpu.memory_space<vmem>>) attributes {dimension_semantics = [#tpu.dimension_semantics<parallel>], iteration_bounds = array<i64: 2>, scalar_prefetch = 0 : i64, scratch_operands = 0 : i64, tpu.core_type = #tpu.core_type<tc>, window_params = [{transform_indices = @transform_0, window_bounds = array<i64: 4, 16, 32>}, {transform_indices = @transform_1, window_bounds = array<i64: 4, 16, 16>}, {pipeline_mode = #tpu.pipeline_mode<synchronous>, transform_indices = @transform_2, window_bounds = array<i64: 4, 16, 16>}, {pipeline_mode = #tpu.pipeline_mode<synchronous>, transform_indices = @transform_3, window_bounds = array<i64: 1, 32>}, {pipeline_mode = #tpu.pipeline_mode<synchronous>, transform_indices = @transform_4, window_bounds = array<i64: 1, 32>}, {pipeline_mode = #tpu.pipeline_mode<synchronous>, transform_indices = @transform_5, window_bounds = array<i64: 32, 96>}, {pipeline_mode = #tpu.pipeline_mode<synchronous>, transform_indices = @transform_6, window_bounds = array<i64: 1, 96>}, {pipeline_mode = #tpu.pipeline_mode<synchronous>, transform_indices = @transform_7, window_bounds = array<i64: 4, 8, 32>}, {pipeline_mode = #tpu.pipeline_mode<synchronous>, transform_indices = @transform_8, window_bounds = array<i64: 1, 32>}, {transform_indices = @transform_9, window_bounds = array<i64: 4, 16, 32>}]} {
    %c0 = arith.constant 0 : index
    %c0_0 = arith.constant 0 : index
    %c0_1 = arith.constant 0 : index
    %0 = vector.load %arg1[%c0, %c0_0, %c0_1] : memref<4x16x32xf32, #tpu.memory_space<vmem>>, vector<4x16x32xf32>
    %cst = arith.constant dense<0.000000e+00> : vector<4x16xf32>
    %1 = vector.multi_reduction <add>, %0, %cst [2] : vector<4x16x32xf32> to vector<4x16xf32>
    %2 = vector.shape_cast %1 : vector<4x16xf32> to vector<4x16x1xf32>
    %cst_2 = arith.constant 3.200000e+01 : f32
    %3 = vector.broadcast %cst_2 : f32 to vector<4x16x1xf32>
    %4 = arith.divf %2, %3 : vector<4x16x1xf32>
    %5 = vector.broadcast %4 : vector<4x16x1xf32> to vector<4x16x32xf32>
    %6 = arith.subf %0, %5 : vector<4x16x32xf32>
    %7 = arith.mulf %6, %6 : vector<4x16x32xf32>
    %cst_3 = arith.constant dense<0.000000e+00> : vector<4x16xf32>
    %8 = vector.multi_reduction <add>, %7, %cst_3 [2] : vector<4x16x32xf32> to vector<4x16xf32>
    %9 = vector.shape_cast %8 : vector<4x16xf32> to vector<4x16x1xf32>
    %cst_4 = arith.constant 3.200000e+01 : f32
    %10 = vector.broadcast %cst_4 : f32 to vector<4x16x1xf32>
    %11 = arith.divf %9, %10 : vector<4x16x1xf32>
    %12 = vector.broadcast %4 : vector<4x16x1xf32> to vector<4x16x32xf32>
    %13 = arith.subf %0, %12 : vector<4x16x32xf32>
    %cst_5 = arith.constant 9.99999974E-6 : f32
    %14 = vector.broadcast %cst_5 : f32 to vector<4x16x1xf32>
    %15 = arith.addf %11, %14 : vector<4x16x1xf32>
    %16 = math.rsqrt %15 : vector<4x16x1xf32>
    %17 = vector.broadcast %16 : vector<4x16x1xf32> to vector<4x16x32xf32>
    %18 = arith.mulf %13, %17 : vector<4x16x32xf32>
    %c0_6 = arith.constant 0 : index
    %c0_7 = arith.constant 0 : index
    %19 = vector.load %arg4[%c0_6, %c0_7] : memref<1x32xf32, #tpu.memory_space<vmem>>, vector<1x32xf32>
    %20 = vector.shape_cast %19 : vector<1x32xf32> to vector<1x1x32xf32>
    %21 = vector.broadcast %20 : vector<1x1x32xf32> to vector<4x16x32xf32>
    %22 = arith.mulf %18, %21 : vector<4x16x32xf32>
    %c0_8 = arith.constant 0 : index
    %c0_9 = arith.constant 0 : index
    %23 = vector.load %arg5[%c0_8, %c0_9] : memref<1x32xf32, #tpu.memory_space<vmem>>, vector<1x32xf32>
    %24 = vector.shape_cast %23 : vector<1x32xf32> to vector<1x1x32xf32>
    %25 = vector.broadcast %24 : vector<1x1x32xf32> to vector<4x16x32xf32>
    %26 = arith.addf %22, %25 : vector<4x16x32xf32>
    %27 = vector.shape_cast %26 : vector<4x16x32xf32> to vector<64x32xf32>
    %28 = arith.truncf %27 : vector<64x32xf32> to vector<64x32xbf16>
    %c0_10 = arith.constant 0 : index
    %c0_11 = arith.constant 0 : index
    %29 = vector.load %arg6[%c0_10, %c0_11] : memref<32x96xbf16, #tpu.memory_space<vmem>>, vector<32x96xbf16>
    %cst_12 = arith.constant dense<0.000000e+00> : vector<64x96xf32>
    %30 = tpu.matmul %28, %29, %cst_12 {dimension_numbers = #tpu.dot_dimension_numbers<[1], [0], [0], [1], [0, 0, 1, 1], [], []>} : vector<64x32xbf16>, vector<32x96xbf16>, vector<64x96xf32> -> vector<64x96xf32>
    %c0_13 = arith.constant 0 : index
    %c0_14 = arith.constant 0 : index
    %31 = vector.load %arg7[%c0_13, %c0_14] : memref<1x96xf32, #tpu.memory_space<vmem>>, vector<1x96xf32>
    %32 = vector.broadcast %31 : vector<1x96xf32> to vector<64x96xf32>
    %33 = arith.addf %30, %32 : vector<64x96xf32>
    %c0_15 = arith.constant 0 : index
    %c0_16 = arith.constant 0 : index
    %c0_17 = arith.constant 0 : index
    %34 = vector.load %arg3[%c0_15, %c0_16, %c0_17] : memref<4x16x16xf32, #tpu.memory_space<vmem>>, vector<4x16x16xf32>
    %c0_18 = arith.constant 0 : index
    %c0_19 = arith.constant 0 : index
    %c0_20 = arith.constant 0 : index
    %35 = vector.load %arg2[%c0_18, %c0_19, %c0_20] : memref<4x16x16xf32, #tpu.memory_space<vmem>>, vector<4x16x16xf32>
    %36 = vector.extract_strided_slice %33 {offsets = [0, 0], sizes = [64, 8], strides = [1, 1]} : vector<64x96xf32> to vector<64x8xf32>
    %cst_21 = arith.constant 0.353553385 : f32
    %37 = vector.broadcast %cst_21 : f32 to vector<64x8xf32>
    %38 = arith.mulf %36, %37 : vector<64x8xf32>
    %39 = vector.shape_cast %38 : vector<64x8xf32> to vector<4x16x8xf32>
    %40 = vector.extract_strided_slice %33 {offsets = [0, 32], sizes = [64, 8], strides = [1, 1]} : vector<64x96xf32> to vector<64x8xf32>
    %41 = vector.shape_cast %40 : vector<64x8xf32> to vector<4x16x8xf32>
    %42 = vector.extract_strided_slice %33 {offsets = [0, 64], sizes = [64, 8], strides = [1, 1]} : vector<64x96xf32> to vector<64x8xf32>
    %43 = vector.shape_cast %42 : vector<64x8xf32> to vector<4x16x8xf32>
    %44 = arith.truncf %39 : vector<4x16x8xf32> to vector<4x16x8xbf16>
    %45 = arith.truncf %41 : vector<4x16x8xf32> to vector<4x16x8xbf16>
    "tpu.trace_start"() <{level = 10 : i32, message = "wid,wjd->wij"}> : () -> ()
    %cst_22 = arith.constant dense<0.000000e+00> : vector<4x16x16xf32>
    %46 = tpu.matmul %44, %45, %cst_22 {dimension_numbers = #tpu.dot_dimension_numbers<[2], [2], [1], [1], [0, 0, 0, 1, 1, 1], [0], [0]>} : vector<4x16x8xbf16>, vector<4x16x8xbf16>, vector<4x16x16xf32> -> vector<4x16x16xf32>
    "tpu.trace_stop"() : () -> ()
    %47 = vector.extract_strided_slice %34 {offsets = [0, 0, 0], sizes = [1, 16, 16], strides = [1, 1, 1]} : vector<4x16x16xf32> to vector<1x16x16xf32>
    %48 = vector.shape_cast %47 : vector<1x16x16xf32> to vector<16x16xf32>
    %49 = vector.shape_cast %48 : vector<16x16xf32> to vector<1x16x16xf32>
    %50 = vector.broadcast %49 : vector<1x16x16xf32> to vector<4x16x16xf32>
    %51 = arith.addf %46, %50 : vector<4x16x16xf32>
    %52 = arith.addf %51, %35 : vector<4x16x16xf32>
    %cst_23 = arith.constant dense<0xFF800000> : vector<4x16xf32>
    %53 = vector.multi_reduction <maximumf>, %52, %cst_23 [2] : vector<4x16x16xf32> to vector<4x16xf32>
    %54 = vector.shape_cast %53 : vector<4x16xf32> to vector<4x16x1xf32>
    %55 = vector.broadcast %54 : vector<4x16x1xf32> to vector<4x16x16xf32>
    %56 = arith.subf %52, %55 : vector<4x16x16xf32>
    %57 = math.exp %56 : vector<4x16x16xf32>
    %cst_24 = arith.constant dense<0.000000e+00> : vector<4x16xf32>
    %58 = vector.multi_reduction <add>, %57, %cst_24 [2] : vector<4x16x16xf32> to vector<4x16xf32>
    %59 = vector.shape_cast %58 : vector<4x16xf32> to vector<4x16x1xf32>
    %60 = tpu.reciprocal %59 {approx = true} : vector<4x16x1xf32> -> vector<4x16x1xf32>
    %61 = vector.broadcast %60 : vector<4x16x1xf32> to vector<4x16x16xf32>
    %62 = arith.mulf %57, %61 : vector<4x16x16xf32>
    %63 = arith.truncf %62 : vector<4x16x16xf32> to vector<4x16x16xbf16>
    %64 = arith.truncf %43 : vector<4x16x8xf32> to vector<4x16x8xbf16>
    "tpu.trace_start"() <{level = 10 : i32, message = "wij,wjd->wid"}> : () -> ()
    %cst_25 = arith.constant dense<0.000000e+00> : vector<4x16x8xf32>
    %65 = tpu.matmul %63, %64, %cst_25 {dimension_numbers = #tpu.dot_dimension_numbers<[2], [1], [1], [2], [0, 0, 0, 1, 1, 2], [0], [0]>} : vector<4x16x16xbf16>, vector<4x16x8xbf16>, vector<4x16x8xf32> -> vector<4x16x8xf32>
    "tpu.trace_stop"() : () -> ()
    %66 = vector.shape_cast %65 : vector<4x16x8xf32> to vector<64x8xf32>
    %67 = arith.truncf %66 : vector<64x8xf32> to vector<64x8xbf16>
    %c0_26 = arith.constant 0 : index
    %c0_27 = arith.constant 0 : index
    %c0_28 = arith.constant 0 : index
    %68 = vector.load %arg8[%c0_26, %c0_27, %c0_28] : memref<4x8x32xbf16, #tpu.memory_space<vmem>>, vector<1x8x32xbf16>
    %69 = vector.shape_cast %68 : vector<1x8x32xbf16> to vector<8x32xbf16>
    %cst_29 = arith.constant dense<0.000000e+00> : vector<64x32xf32>
    %70 = tpu.matmul %67, %69, %cst_29 {dimension_numbers = #tpu.dot_dimension_numbers<[1], [0], [0], [1], [0, 0, 1, 1], [], []>} : vector<64x8xbf16>, vector<8x32xbf16>, vector<64x32xf32> -> vector<64x32xf32>
    %71 = vector.extract_strided_slice %33 {offsets = [0, 8], sizes = [64, 8], strides = [1, 1]} : vector<64x96xf32> to vector<64x8xf32>
    %cst_30 = arith.constant 0.353553385 : f32
    %72 = vector.broadcast %cst_30 : f32 to vector<64x8xf32>
    %73 = arith.mulf %71, %72 : vector<64x8xf32>
    %74 = vector.shape_cast %73 : vector<64x8xf32> to vector<4x16x8xf32>
    %75 = vector.extract_strided_slice %33 {offsets = [0, 40], sizes = [64, 8], strides = [1, 1]} : vector<64x96xf32> to vector<64x8xf32>
    %76 = vector.shape_cast %75 : vector<64x8xf32> to vector<4x16x8xf32>
    %77 = vector.extract_strided_slice %33 {offsets = [0, 72], sizes = [64, 8], strides = [1, 1]} : vector<64x96xf32> to vector<64x8xf32>
    %78 = vector.shape_cast %77 : vector<64x8xf32> to vector<4x16x8xf32>
    %79 = arith.truncf %74 : vector<4x16x8xf32> to vector<4x16x8xbf16>
    %80 = arith.truncf %76 : vector<4x16x8xf32> to vector<4x16x8xbf16>
    "tpu.trace_start"() <{level = 10 : i32, message = "wid,wjd->wij"}> : () -> ()
    %cst_31 = arith.constant dense<0.000000e+00> : vector<4x16x16xf32>
    %81 = tpu.matmul %79, %80, %cst_31 {dimension_numbers = #tpu.dot_dimension_numbers<[2], [2], [1], [1], [0, 0, 0, 1, 1, 1], [0], [0]>} : vector<4x16x8xbf16>, vector<4x16x8xbf16>, vector<4x16x16xf32> -> vector<4x16x16xf32>
    "tpu.trace_stop"() : () -> ()
    %82 = vector.extract_strided_slice %34 {offsets = [1, 0, 0], sizes = [1, 16, 16], strides = [1, 1, 1]} : vector<4x16x16xf32> to vector<1x16x16xf32>
    %83 = vector.shape_cast %82 : vector<1x16x16xf32> to vector<16x16xf32>
    %84 = vector.shape_cast %83 : vector<16x16xf32> to vector<1x16x16xf32>
    %85 = vector.broadcast %84 : vector<1x16x16xf32> to vector<4x16x16xf32>
    %86 = arith.addf %81, %85 : vector<4x16x16xf32>
    %87 = arith.addf %86, %35 : vector<4x16x16xf32>
    %cst_32 = arith.constant dense<0xFF800000> : vector<4x16xf32>
    %88 = vector.multi_reduction <maximumf>, %87, %cst_32 [2] : vector<4x16x16xf32> to vector<4x16xf32>
    %89 = vector.shape_cast %88 : vector<4x16xf32> to vector<4x16x1xf32>
    %90 = vector.broadcast %89 : vector<4x16x1xf32> to vector<4x16x16xf32>
    %91 = arith.subf %87, %90 : vector<4x16x16xf32>
    %92 = math.exp %91 : vector<4x16x16xf32>
    %cst_33 = arith.constant dense<0.000000e+00> : vector<4x16xf32>
    %93 = vector.multi_reduction <add>, %92, %cst_33 [2] : vector<4x16x16xf32> to vector<4x16xf32>
    %94 = vector.shape_cast %93 : vector<4x16xf32> to vector<4x16x1xf32>
    %95 = tpu.reciprocal %94 {approx = true} : vector<4x16x1xf32> -> vector<4x16x1xf32>
    %96 = vector.broadcast %95 : vector<4x16x1xf32> to vector<4x16x16xf32>
    %97 = arith.mulf %92, %96 : vector<4x16x16xf32>
    %98 = arith.truncf %97 : vector<4x16x16xf32> to vector<4x16x16xbf16>
    %99 = arith.truncf %78 : vector<4x16x8xf32> to vector<4x16x8xbf16>
    "tpu.trace_start"() <{level = 10 : i32, message = "wij,wjd->wid"}> : () -> ()
    %cst_34 = arith.constant dense<0.000000e+00> : vector<4x16x8xf32>
    %100 = tpu.matmul %98, %99, %cst_34 {dimension_numbers = #tpu.dot_dimension_numbers<[2], [1], [1], [2], [0, 0, 0, 1, 1, 2], [0], [0]>} : vector<4x16x16xbf16>, vector<4x16x8xbf16>, vector<4x16x8xf32> -> vector<4x16x8xf32>
    "tpu.trace_stop"() : () -> ()
    %101 = vector.shape_cast %100 : vector<4x16x8xf32> to vector<64x8xf32>
    %102 = arith.truncf %101 : vector<64x8xf32> to vector<64x8xbf16>
    %c1 = arith.constant 1 : index
    %c0_35 = arith.constant 0 : index
    %c0_36 = arith.constant 0 : index
    %103 = vector.load %arg8[%c1, %c0_35, %c0_36] : memref<4x8x32xbf16, #tpu.memory_space<vmem>>, vector<1x8x32xbf16>
    %104 = vector.shape_cast %103 : vector<1x8x32xbf16> to vector<8x32xbf16>
    %cst_37 = arith.constant dense<0.000000e+00> : vector<64x32xf32>
    %105 = tpu.matmul %102, %104, %cst_37 {dimension_numbers = #tpu.dot_dimension_numbers<[1], [0], [0], [1], [0, 0, 1, 1], [], []>} : vector<64x8xbf16>, vector<8x32xbf16>, vector<64x32xf32> -> vector<64x32xf32>
    %106 = arith.addf %70, %105 : vector<64x32xf32>
    %107 = vector.extract_strided_slice %33 {offsets = [0, 16], sizes = [64, 8], strides = [1, 1]} : vector<64x96xf32> to vector<64x8xf32>
    %cst_38 = arith.constant 0.353553385 : f32
    %108 = vector.broadcast %cst_38 : f32 to vector<64x8xf32>
    %109 = arith.mulf %107, %108 : vector<64x8xf32>
    %110 = vector.shape_cast %109 : vector<64x8xf32> to vector<4x16x8xf32>
    %111 = vector.extract_strided_slice %33 {offsets = [0, 48], sizes = [64, 8], strides = [1, 1]} : vector<64x96xf32> to vector<64x8xf32>
    %112 = vector.shape_cast %111 : vector<64x8xf32> to vector<4x16x8xf32>
    %113 = vector.extract_strided_slice %33 {offsets = [0, 80], sizes = [64, 8], strides = [1, 1]} : vector<64x96xf32> to vector<64x8xf32>
    %114 = vector.shape_cast %113 : vector<64x8xf32> to vector<4x16x8xf32>
    %115 = arith.truncf %110 : vector<4x16x8xf32> to vector<4x16x8xbf16>
    %116 = arith.truncf %112 : vector<4x16x8xf32> to vector<4x16x8xbf16>
    "tpu.trace_start"() <{level = 10 : i32, message = "wid,wjd->wij"}> : () -> ()
    %cst_39 = arith.constant dense<0.000000e+00> : vector<4x16x16xf32>
    %117 = tpu.matmul %115, %116, %cst_39 {dimension_numbers = #tpu.dot_dimension_numbers<[2], [2], [1], [1], [0, 0, 0, 1, 1, 1], [0], [0]>} : vector<4x16x8xbf16>, vector<4x16x8xbf16>, vector<4x16x16xf32> -> vector<4x16x16xf32>
    "tpu.trace_stop"() : () -> ()
    %118 = vector.extract_strided_slice %34 {offsets = [2, 0, 0], sizes = [1, 16, 16], strides = [1, 1, 1]} : vector<4x16x16xf32> to vector<1x16x16xf32>
    %119 = vector.shape_cast %118 : vector<1x16x16xf32> to vector<16x16xf32>
    %120 = vector.shape_cast %119 : vector<16x16xf32> to vector<1x16x16xf32>
    %121 = vector.broadcast %120 : vector<1x16x16xf32> to vector<4x16x16xf32>
    %122 = arith.addf %117, %121 : vector<4x16x16xf32>
    %123 = arith.addf %122, %35 : vector<4x16x16xf32>
    %cst_40 = arith.constant dense<0xFF800000> : vector<4x16xf32>
    %124 = vector.multi_reduction <maximumf>, %123, %cst_40 [2] : vector<4x16x16xf32> to vector<4x16xf32>
    %125 = vector.shape_cast %124 : vector<4x16xf32> to vector<4x16x1xf32>
    %126 = vector.broadcast %125 : vector<4x16x1xf32> to vector<4x16x16xf32>
    %127 = arith.subf %123, %126 : vector<4x16x16xf32>
    %128 = math.exp %127 : vector<4x16x16xf32>
    %cst_41 = arith.constant dense<0.000000e+00> : vector<4x16xf32>
    %129 = vector.multi_reduction <add>, %128, %cst_41 [2] : vector<4x16x16xf32> to vector<4x16xf32>
    %130 = vector.shape_cast %129 : vector<4x16xf32> to vector<4x16x1xf32>
    %131 = tpu.reciprocal %130 {approx = true} : vector<4x16x1xf32> -> vector<4x16x1xf32>
    %132 = vector.broadcast %131 : vector<4x16x1xf32> to vector<4x16x16xf32>
    %133 = arith.mulf %128, %132 : vector<4x16x16xf32>
    %134 = arith.truncf %133 : vector<4x16x16xf32> to vector<4x16x16xbf16>
    %135 = arith.truncf %114 : vector<4x16x8xf32> to vector<4x16x8xbf16>
    "tpu.trace_start"() <{level = 10 : i32, message = "wij,wjd->wid"}> : () -> ()
    %cst_42 = arith.constant dense<0.000000e+00> : vector<4x16x8xf32>
    %136 = tpu.matmul %134, %135, %cst_42 {dimension_numbers = #tpu.dot_dimension_numbers<[2], [1], [1], [2], [0, 0, 0, 1, 1, 2], [0], [0]>} : vector<4x16x16xbf16>, vector<4x16x8xbf16>, vector<4x16x8xf32> -> vector<4x16x8xf32>
    "tpu.trace_stop"() : () -> ()
    %137 = vector.shape_cast %136 : vector<4x16x8xf32> to vector<64x8xf32>
    %138 = arith.truncf %137 : vector<64x8xf32> to vector<64x8xbf16>
    %c2 = arith.constant 2 : index
    %c0_43 = arith.constant 0 : index
    %c0_44 = arith.constant 0 : index
    %139 = vector.load %arg8[%c2, %c0_43, %c0_44] : memref<4x8x32xbf16, #tpu.memory_space<vmem>>, vector<1x8x32xbf16>
    %140 = vector.shape_cast %139 : vector<1x8x32xbf16> to vector<8x32xbf16>
    %cst_45 = arith.constant dense<0.000000e+00> : vector<64x32xf32>
    %141 = tpu.matmul %138, %140, %cst_45 {dimension_numbers = #tpu.dot_dimension_numbers<[1], [0], [0], [1], [0, 0, 1, 1], [], []>} : vector<64x8xbf16>, vector<8x32xbf16>, vector<64x32xf32> -> vector<64x32xf32>
    %142 = arith.addf %106, %141 : vector<64x32xf32>
    %143 = vector.extract_strided_slice %33 {offsets = [0, 24], sizes = [64, 8], strides = [1, 1]} : vector<64x96xf32> to vector<64x8xf32>
    %cst_46 = arith.constant 0.353553385 : f32
    %144 = vector.broadcast %cst_46 : f32 to vector<64x8xf32>
    %145 = arith.mulf %143, %144 : vector<64x8xf32>
    %146 = vector.shape_cast %145 : vector<64x8xf32> to vector<4x16x8xf32>
    %147 = vector.extract_strided_slice %33 {offsets = [0, 56], sizes = [64, 8], strides = [1, 1]} : vector<64x96xf32> to vector<64x8xf32>
    %148 = vector.shape_cast %147 : vector<64x8xf32> to vector<4x16x8xf32>
    %149 = vector.extract_strided_slice %33 {offsets = [0, 88], sizes = [64, 8], strides = [1, 1]} : vector<64x96xf32> to vector<64x8xf32>
    %150 = vector.shape_cast %149 : vector<64x8xf32> to vector<4x16x8xf32>
    %151 = arith.truncf %146 : vector<4x16x8xf32> to vector<4x16x8xbf16>
    %152 = arith.truncf %148 : vector<4x16x8xf32> to vector<4x16x8xbf16>
    "tpu.trace_start"() <{level = 10 : i32, message = "wid,wjd->wij"}> : () -> ()
    %cst_47 = arith.constant dense<0.000000e+00> : vector<4x16x16xf32>
    %153 = tpu.matmul %151, %152, %cst_47 {dimension_numbers = #tpu.dot_dimension_numbers<[2], [2], [1], [1], [0, 0, 0, 1, 1, 1], [0], [0]>} : vector<4x16x8xbf16>, vector<4x16x8xbf16>, vector<4x16x16xf32> -> vector<4x16x16xf32>
    "tpu.trace_stop"() : () -> ()
    %154 = vector.extract_strided_slice %34 {offsets = [3, 0, 0], sizes = [1, 16, 16], strides = [1, 1, 1]} : vector<4x16x16xf32> to vector<1x16x16xf32>
    %155 = vector.shape_cast %154 : vector<1x16x16xf32> to vector<16x16xf32>
    %156 = vector.shape_cast %155 : vector<16x16xf32> to vector<1x16x16xf32>
    %157 = vector.broadcast %156 : vector<1x16x16xf32> to vector<4x16x16xf32>
    %158 = arith.addf %153, %157 : vector<4x16x16xf32>
    %159 = arith.addf %158, %35 : vector<4x16x16xf32>
    %cst_48 = arith.constant dense<0xFF800000> : vector<4x16xf32>
    %160 = vector.multi_reduction <maximumf>, %159, %cst_48 [2] : vector<4x16x16xf32> to vector<4x16xf32>
    %161 = vector.shape_cast %160 : vector<4x16xf32> to vector<4x16x1xf32>
    %162 = vector.broadcast %161 : vector<4x16x1xf32> to vector<4x16x16xf32>
    %163 = arith.subf %159, %162 : vector<4x16x16xf32>
    %164 = math.exp %163 : vector<4x16x16xf32>
    %cst_49 = arith.constant dense<0.000000e+00> : vector<4x16xf32>
    %165 = vector.multi_reduction <add>, %164, %cst_49 [2] : vector<4x16x16xf32> to vector<4x16xf32>
    %166 = vector.shape_cast %165 : vector<4x16xf32> to vector<4x16x1xf32>
    %167 = tpu.reciprocal %166 {approx = true} : vector<4x16x1xf32> -> vector<4x16x1xf32>
    %168 = vector.broadcast %167 : vector<4x16x1xf32> to vector<4x16x16xf32>
    %169 = arith.mulf %164, %168 : vector<4x16x16xf32>
    %170 = arith.truncf %169 : vector<4x16x16xf32> to vector<4x16x16xbf16>
    %171 = arith.truncf %150 : vector<4x16x8xf32> to vector<4x16x8xbf16>
    "tpu.trace_start"() <{level = 10 : i32, message = "wij,wjd->wid"}> : () -> ()
    %cst_50 = arith.constant dense<0.000000e+00> : vector<4x16x8xf32>
    %172 = tpu.matmul %170, %171, %cst_50 {dimension_numbers = #tpu.dot_dimension_numbers<[2], [1], [1], [2], [0, 0, 0, 1, 1, 2], [0], [0]>} : vector<4x16x16xbf16>, vector<4x16x8xbf16>, vector<4x16x8xf32> -> vector<4x16x8xf32>
    "tpu.trace_stop"() : () -> ()
    %173 = vector.shape_cast %172 : vector<4x16x8xf32> to vector<64x8xf32>
    %174 = arith.truncf %173 : vector<64x8xf32> to vector<64x8xbf16>
    %c3 = arith.constant 3 : index
    %c0_51 = arith.constant 0 : index
    %c0_52 = arith.constant 0 : index
    %175 = vector.load %arg8[%c3, %c0_51, %c0_52] : memref<4x8x32xbf16, #tpu.memory_space<vmem>>, vector<1x8x32xbf16>
    %176 = vector.shape_cast %175 : vector<1x8x32xbf16> to vector<8x32xbf16>
    %cst_53 = arith.constant dense<0.000000e+00> : vector<64x32xf32>
    %177 = tpu.matmul %174, %176, %cst_53 {dimension_numbers = #tpu.dot_dimension_numbers<[1], [0], [0], [1], [0, 0, 1, 1], [], []>} : vector<64x8xbf16>, vector<8x32xbf16>, vector<64x32xf32> -> vector<64x32xf32>
    %178 = arith.addf %142, %177 : vector<64x32xf32>
    %c0_54 = arith.constant 0 : index
    %c0_55 = arith.constant 0 : index
    %179 = vector.load %arg9[%c0_54, %c0_55] : memref<1x32xf32, #tpu.memory_space<vmem>>, vector<1x32xf32>
    %180 = vector.broadcast %179 : vector<1x32xf32> to vector<64x32xf32>
    %181 = arith.addf %178, %180 : vector<64x32xf32>
    %182 = vector.shape_cast %181 : vector<64x32xf32> to vector<4x16x32xf32>
    %c0_56 = arith.constant 0 : index
    %c0_57 = arith.constant 0 : index
    %c0_58 = arith.constant 0 : index
    %183 = vector.load %arg10[%c0_56, %c0_57, %c0_58] : memref<4x16x32xf32, #tpu.memory_space<vmem>>, vector<4x16x32xf32>
    tpu.vector_store %arg10[%c0_56, %c0_57, %c0_58], %182 {strides = array<i32>} : memref<4x16x32xf32, #tpu.memory_space<vmem>>, vector<4x16x32xf32>,
    return
  }
  func.func @transform_0(%arg0: i32) -> (i32, i32, i32) {
    %c0_i32 = arith.constant 0 : i32
    %c0_i32_0 = arith.constant 0 : i32
    %c0_i32_1 = arith.constant 0 : i32
    return %arg0, %c0_i32, %c0_i32_0 : i32, i32, i32
  }
  func.func @transform_1(%arg0: i32) -> (i32, i32, i32) {
    %c1_i32 = arith.constant 1 : i32
    %c0_i32 = arith.constant 0 : i32
    %0 = arith.cmpi eq, %c1_i32, %c0_i32 : i32
    %c1_i32_0 = arith.constant 1 : i32
    %1 = arith.select %0, %c1_i32_0, %c1_i32 : i32
    %2 = arith.remsi %arg0, %1 : i32
    %c0_i32_1 = arith.constant 0 : i32
    %3 = arith.cmpi ne, %2, %c0_i32_1 : i32
    %c0_i32_2 = arith.constant 0 : i32
    %4 = arith.cmpi slt, %2, %c0_i32_2 : i32
    %c0_i32_3 = arith.constant 0 : i32
    %5 = arith.cmpi slt, %1, %c0_i32_3 : i32
    %6 = arith.xori %4, %5 : i1
    %7 = arith.andi %6, %3 : i1
    %8 = arith.addi %2, %1 : i32
    %9 = arith.select %7, %8, %2 : i32
    %c0_i32_4 = arith.constant 0 : i32
    %c0_i32_5 = arith.constant 0 : i32
    %c0_i32_6 = arith.constant 0 : i32
    return %9, %c0_i32_4, %c0_i32_5 : i32, i32, i32
  }
  func.func @transform_2(%arg0: i32) -> (i32, i32, i32) {
    %c0_i32 = arith.constant 0 : i32
    %c0_i32_0 = arith.constant 0 : i32
    %c0_i32_1 = arith.constant 0 : i32
    %c0_i32_2 = arith.constant 0 : i32
    return %c0_i32, %c0_i32_0, %c0_i32_1 : i32, i32, i32
  }
  func.func @transform_3(%arg0: i32) -> (i32, i32) {
    %c0_i32 = arith.constant 0 : i32
    %c0_i32_0 = arith.constant 0 : i32
    %c0_i32_1 = arith.constant 0 : i32
    return %c0_i32, %c0_i32_0 : i32, i32
  }
  func.func @transform_4(%arg0: i32) -> (i32, i32) {
    %c0_i32 = arith.constant 0 : i32
    %c0_i32_0 = arith.constant 0 : i32
    %c0_i32_1 = arith.constant 0 : i32
    return %c0_i32, %c0_i32_0 : i32, i32
  }
  func.func @transform_5(%arg0: i32) -> (i32, i32) {
    %c0_i32 = arith.constant 0 : i32
    %c0_i32_0 = arith.constant 0 : i32
    %c0_i32_1 = arith.constant 0 : i32
    return %c0_i32, %c0_i32_0 : i32, i32
  }
  func.func @transform_6(%arg0: i32) -> (i32, i32) {
    %c0_i32 = arith.constant 0 : i32
    %c0_i32_0 = arith.constant 0 : i32
    %c0_i32_1 = arith.constant 0 : i32
    return %c0_i32, %c0_i32_0 : i32, i32
  }
  func.func @transform_7(%arg0: i32) -> (i32, i32, i32) {
    %c0_i32 = arith.constant 0 : i32
    %c0_i32_0 = arith.constant 0 : i32
    %c0_i32_1 = arith.constant 0 : i32
    %c0_i32_2 = arith.constant 0 : i32
    return %c0_i32, %c0_i32_0, %c0_i32_1 : i32, i32, i32
  }
  func.func @transform_8(%arg0: i32) -> (i32, i32) {
    %c0_i32 = arith.constant 0 : i32
    %c0_i32_0 = arith.constant 0 : i32
    %c0_i32_1 = arith.constant 0 : i32
    return %c0_i32, %c0_i32_0 : i32, i32
  }
  func.func @transform_9(%arg0: i32) -> (i32, i32, i32) {
    %c0_i32 = arith.constant 0 : i32
    %c0_i32_0 = arith.constant 0 : i32
    %c0_i32_1 = arith.constant 0 : i32
    return %arg0, %c0_i32, %c0_i32_0 : i32, i32, i32
  }
}

</mosaic_0001>

<bundles_post_ra>
// kernel: _lambda_.5
= control target key start
LH: loop header
LB: loop body
LE: loop exit
PB: predicated region body
PF: predicated region fallthrough
CT: control target
= control target key end

     0   :  { %13 = vsyncpa [#allocation3], 0  ;;  %s1801_s0 = inlined_call_operand.hbm [shape: f32[128,32], index: 0, kind: input, shape index: {}]   ;;  %s1802_s1 = inlined_call_operand.hbm [shape: f32[128,32], index: 1, kind: input, shape index: {}]   ;;  %s1803_s2 = inlined_call_operand.hbm [shape: f32[1,32], index: 2, kind: input, shape index: {}]   ;;  %s1804_s3 = inlined_call_operand.hbm [shape: f32[1,32], index: 3, kind: input, shape index: {}, may-alias: {3,7}]   ;;  %s1805_s4 = inlined_call_operand.hbm [shape: bf16[32,128], index: 4, kind: input, shape index: {}]   ;;  %s1806_s5 = inlined_call_operand.hbm [shape: f32[1,128], index: 5, kind: input, shape index: {}]   ;;  %s1807_s6 = inlined_call_operand.hbm [shape: bf16[128,32], index: 6, kind: input, shape index: {}]   ;;  %s1808_s7 = inlined_call_operand.hbm [shape: f32[1,32], index: 7, kind: input, shape index: {}, may-alias: {3,7}]   ;;  %s1809_s8 = inlined_call_operand.hbm [shape: f32[128,32], index: 8, kind: output, shape index: {}]  }
   0x1   :  { %14 = vsyncpa [#allocation6], 0 }
   0x2   :  { %15 = vsyncpa [#allocation9], 0 }
   0x3   :  { %16 = vsyncpa [#allocation12], 0 }
   0x4   :  { %17 = vsyncpa [#allocation15], 0 }
   0x5   :  { %18 = vsyncpa [#allocation4], 0  ;;  %s1310_s27 = smov [#allocation5]   ;;  %s1311_s29 = smov [#allocation8]  }
   0x6   :  { %s36_s28 = sshll.u32 %s1310_s27, 4  ;;  %s59_s30 = sshll.u32 %s1311_s29, 4  ;;  %s37_s28 = int_to_ptr.vmem [resolvable:$true] %s36_s28  ;;  %s1368_s30 = int_to_ptr.vmem [resolvable:$true] %s59_s30 }
   0x7   :  { %s1100_s11 = scalar_lea.hbm %s1802_s1, 2048 }
   0x8   :  { %p1101_p0 = scmp.ne.s32.totalorder %s1802_s1, %s1100_s11  ;;  %p1104_p1 = scmp.lt.u32.totalorder %s1100_s11, %s1802_s1 }
   0xa   :  { %p1106_p2 = pnand %p1104_p1, %p1101_p0 }
   0xc   :  { %1109 = shalt.err (!%p1106_p2)
}
   0xd   :  { %s1110_s16 = scalar_lea.vmem %s37_s28, 2048  ;;  %p1115_p4 = scmp.lt.s32.totalorder %s37_s28, %s37_s28 }
   0xe   :  { %p1111_p3 = scmp.ne.s32.totalorder %s37_s28, %s1110_s16  ;;  %p1116_p5 = scmp.lt.s32.totalorder %s1110_s16, %s1110_s16 }
  0x10   :  { %p1117_p6 = por %p1116_p5, %p1115_p4 }
  0x12   :  { %p1118_p7 = pnand %p1117_p6, %p1111_p3 }
  0x14   :  { %1121 = shalt.err (!%p1118_p7)
}
  0x15   :  { %s1312_s17 = smov 128   ;;  %s1313_s18 = smov 8  }
  0x16   :  { %42 = dma.hbm_to_vmem [thread:$0]  %s1802_s1, 2048, %s37_s28, [#allocation6], %s1312_s17, %s1312_s17, %s1313_s18  }
  0x17   :  { %s1122_s23 = scalar_lea.hbm %s1804_s3, 16 }
  0x18   :  { %p1123_p8 = scmp.ne.s32.totalorder %s1804_s3, %s1122_s23  ;;  %p1126_p9 = scmp.lt.u32.totalorder %s1122_s23, %s1804_s3 }
  0x1a   :  { %p1128_p10 = pnand %p1126_p9, %p1123_p8 }
  0x1c   :  { %1131 = shalt.err (!%p1128_p10)
}
  0x1d   :  { %s1132_s29 = scalar_lea.vmem %s1368_s30, 16  ;;  %s1136_s1 = scalar_lea.vmem %s1368_s30, 32 }
  0x1e   :  { %p1133_p11 = scmp.ne.s32.totalorder %s1368_s30, %s1132_s29  ;;  %p1137_p12 = scmp.lt.s32.totalorder %s1368_s30, %s1368_s30 }
  0x1f   :  { %p1138_p13 = scmp.lt.s32.totalorder %s1136_s1, %s1132_s29 }
  0x21   :  { %p1139_p0 = por %p1138_p13, %p1137_p12 }
  0x23   :  { %p1140_p1 = pnand %p1139_p0, %p1133_p11 }
  0x25   :  { %1143 = shalt.err (!%p1140_p1)
}
  0x26   :  { %62 = dma.hbm_to_vmem [thread:$0]  %s1804_s3, 16, %s1368_s30, [#allocation9]  }
  0x27   :  { %s1314_s10 = smov [#allocation11]   ;;  %s1315_s12 = smov [#allocation2]  }
  0x28   :  { %s81_s11 = sshll.u32 %s1314_s10, 4  ;;  %s24_s13 = sshll.u32 %s1315_s12, 4  ;;  %s82_s11 = int_to_ptr.vmem [resolvable:$true] %s81_s11  ;;  %s1403_s13 = int_to_ptr.vmem [resolvable:$true] %s24_s13 }
  0x29   :  { %s1144_s16 = scalar_lea.hbm %s1806_s5, 16 }
  0x2a   :  { %p1145_p2 = scmp.ne.s32.totalorder %s1806_s5, %s1144_s16  ;;  %p1148_p3 = scmp.lt.u32.totalorder %s1144_s16, %s1806_s5 }
  0x2c   :  { %p1150_p4 = pnand %p1148_p3, %p1145_p2 }
  0x2e   :  { %1153 = shalt.err (!%p1150_p4)
}
  0x2f   :  { %s1154_s3 = scalar_lea.vmem %s82_s11, 16  ;;  %s1158_s30 = scalar_lea.vmem %s82_s11, 32 }
  0x30   :  { %p1155_p5 = scmp.ne.s32.totalorder %s82_s11, %s1154_s3  ;;  %p1159_p6 = scmp.lt.s32.totalorder %s82_s11, %s82_s11 }
  0x31   :  { %p1160_p7 = scmp.lt.s32.totalorder %s1158_s30, %s1154_s3 }
  0x33   :  { %p1161_p8 = por %p1160_p7, %p1159_p6 }
  0x35   :  { %p1162_p9 = pnand %p1161_p8, %p1155_p5 }
  0x37   :  { %1165 = shalt.err (!%p1162_p9)
}
  0x38   :  { %84 = dma.hbm_to_vmem [thread:$0]  %s1806_s5, 16, %s82_s11, [#allocation12]  }
  0x39   :  { %s1166_s27 = scalar_lea.hbm %s1801_s0, 2048 }
  0x3a   :  { %p1167_p10 = scmp.ne.s32.totalorder %s1801_s0, %s1166_s27  ;;  %p1170_p11 = scmp.lt.u32.totalorder %s1166_s27, %s1801_s0 }
  0x3c   :  { %p1172_p12 = pnand %p1170_p11, %p1167_p10 }
  0x3e   :  { %1175 = shalt.err (!%p1172_p12)
}
  0x3f   :  { %s1176_s10 = scalar_lea.vmem %s1403_s13, 2048  ;;  %p1181_p0 = scmp.lt.s32.totalorder %s1403_s13, %s1403_s13 }
  0x40   :  { %p1177_p13 = scmp.ne.s32.totalorder %s1403_s13, %s1176_s10  ;;  %p1182_p1 = scmp.lt.s32.totalorder %s1176_s10, %s1176_s10 }
  0x42   :  { %p1183_p2 = por %p1182_p1, %p1181_p0 }
  0x44   :  { %p1184_p3 = pnand %p1183_p2, %p1177_p13 }
  0x46   :  { %1187 = shalt.err (!%p1184_p3)
}
  0x47   :  { %30 = dma.hbm_to_vmem [thread:$0]  %s1801_s0, 2048, %s1403_s13, [#allocation3], %s1312_s17, %s1312_s17, %s1313_s18  }
  0x48   :  { %s1316_s12 = smov [#allocation7]   ;;  %s1317_s15 = smov [#allocation10]  }
  0x49   :  { %s49_s14 = sshll.u32 %s1316_s12, 4  ;;  %s68_s16 = sshll.u32 %s1317_s15, 4  ;;  %s50_s14 = int_to_ptr.vmem [resolvable:$true] %s49_s14  ;;  %s1437_s16 = int_to_ptr.vmem [resolvable:$true] %s68_s16 }
  0x4a   :  { %s1188_s21 = scalar_lea.hbm %s1803_s2, 16 }
  0x4b   :  { %p1189_p4 = scmp.ne.s32.totalorder %s1803_s2, %s1188_s21  ;;  %p1192_p5 = scmp.lt.u32.totalorder %s1188_s21, %s1803_s2 }
  0x4d   :  { %p1194_p6 = pnand %p1192_p5, %p1189_p4 }
  0x4f   :  { %1197 = shalt.err (!%p1194_p6)
}
  0x50   :  { %s1198_s0 = scalar_lea.vmem %s50_s14, 16  ;;  %s1202_s13 = scalar_lea.vmem %s50_s14, 32 }
  0x51   :  { %p1199_p7 = scmp.ne.s32.totalorder %s50_s14, %s1198_s0  ;;  %p1203_p8 = scmp.lt.s32.totalorder %s50_s14, %s50_s14 }
  0x52   :  { %p1204_p9 = scmp.lt.s32.totalorder %s1202_s13, %s1198_s0 }
  0x54   :  { %p1205_p10 = por %p1204_p9, %p1203_p8 }
  0x56   :  { %p1206_p11 = pnand %p1205_p10, %p1199_p7 }
  0x58   :  { %1209 = shalt.err (!%p1206_p11)
}
  0x59   :  { %52 = dma.hbm_to_vmem [thread:$0]  %s1803_s2, 16, %s50_s14, [#allocation6]  }
  0x5a   :  { %s1210_s29 = scalar_lea.hbm %s1805_s4, 256 }
  0x5b   :  { %p1211_p12 = scmp.ne.s32.totalorder %s1805_s4, %s1210_s29  ;;  %p1214_p13 = scmp.lt.u32.totalorder %s1210_s29, %s1805_s4 }
  0x5d   :  { %p1216_p0 = pnand %p1214_p13, %p1211_p12 }
  0x5f   :  { %1219 = shalt.err (!%p1216_p0)
}
  0x60   :  { %s1220_s5 = scalar_lea.vmem %s1437_s16, 256  ;;  %p1225_p2 = scmp.lt.s32.totalorder %s1437_s16, %s1437_s16 }
  0x61   :  { %p1221_p1 = scmp.ne.s32.totalorder %s1437_s16, %s1220_s5  ;;  %p1226_p3 = scmp.lt.s32.totalorder %s1220_s5, %s1220_s5 }
  0x63   :  { %p1227_p4 = por %p1226_p3, %p1225_p2 }
  0x65   :  { %p1228_p5 = pnand %p1227_p4, %p1221_p1 }
  0x67   :  { %1231 = shalt.err (!%p1228_p5)
}
  0x68   :  { %s1318_s2 = smov 64   ;;  %s1319_s11 = smov 4  }
  0x69   :  { %74 = dma.hbm_to_vmem [thread:$0]  %s1805_s4, 256, %s1437_s16, [#allocation9], %s1318_s2, %s1318_s2, %s1319_s11  }
  0x6a   :  { %s1320_s15 = smov [#allocation13]   ;;  %s1321_s20 = smov [#allocation14]  }
  0x6b   :  { %s90_s19 = sshll.u32 %s1320_s15, 4  ;;  %s103_s21 = sshll.u32 %s1321_s20, 4  ;;  %s91_s19 = int_to_ptr.vmem [resolvable:$true] %s90_s19  ;;  %s104_s21 = int_to_ptr.vmem [resolvable:$true] %s103_s21 }
  0x6c   :  { %s1232_s30 = scalar_lea.hbm %s1807_s6, 1024 }
  0x6d   :  { %p1233_p6 = scmp.ne.s32.totalorder %s1807_s6, %s1232_s30  ;;  %p1236_p7 = scmp.lt.u32.totalorder %s1232_s30, %s1807_s6 }
  0x6f   :  { %p1238_p8 = pnand %p1236_p7, %p1233_p6 }
  0x71   :  { %1241 = shalt.err (!%p1238_p8)
}
  0x72   :  { %s1242_s4 = scalar_lea.vmem %s91_s19, 1024  ;;  %p1247_p10 = scmp.lt.s32.totalorder %s91_s19, %s91_s19 }
  0x73   :  { %p1243_p9 = scmp.ne.s32.totalorder %s91_s19, %s1242_s4  ;;  %p1248_p11 = scmp.lt.s32.totalorder %s1242_s4, %s1242_s4 }
  0x75   :  { %p1249_p12 = por %p1248_p11, %p1247_p10 }
  0x77   :  { %p1250_p13 = pnand %p1249_p12, %p1243_p9 }
  0x79   :  { %1253 = shalt.err (!%p1250_p13)
}
  0x7a   :  { %96 = dma.hbm_to_vmem [thread:$0]  %s1807_s6, 1024, %s91_s19, [#allocation12], %s1318_s2, %s1318_s2, %s1319_s11  }
  0x7b   :  { %s1254_s29 = scalar_lea.hbm %s1808_s7, 16 }
  0x7c   :  { %p1255_p0 = scmp.ne.s32.totalorder %s1808_s7, %s1254_s29  ;;  %p1258_p1 = scmp.lt.u32.totalorder %s1254_s29, %s1808_s7 }
  0x7e   :  { %p1260_p2 = pnand %p1258_p1, %p1255_p0 }
  0x80   :  { %1263 = shalt.err (!%p1260_p2)
}
  0x81   :  { %s1264_s5 = scalar_lea.vmem %s104_s21, 16  ;;  %s1268_s12 = scalar_lea.vmem %s104_s21, 32 }
  0x82   :  { %p1265_p3 = scmp.ne.s32.totalorder %s104_s21, %s1264_s5  ;;  %p1269_p4 = scmp.lt.s32.totalorder %s104_s21, %s104_s21 }
  0x83   :  { %p1270_p5 = scmp.lt.s32.totalorder %s1268_s12, %s1264_s5 }
  0x85   :  { %p1271_p6 = por %p1270_p5, %p1269_p4 }
  0x87   :  { %p1272_p7 = pnand %p1271_p6, %p1265_p3 }
  0x89   :  { %1275 = shalt.err (!%p1272_p7)
}
  0x8a   :  { %106 = dma.hbm_to_vmem [thread:$0]  %s1808_s7, 16, %s104_s21, [#allocation15]  }
  0x8b   :  { %1298 = dma.done.wait [#allocation3], 2048  }
  0x8c   :  { %1299 = vsyncadd [#allocation3], 4294965248 }
  0x8d   :  { %1300 = dma.done.wait [#allocation6], 2064  }
  0x8e   :  { %1301 = vsyncadd [#allocation6], 4294965232 }
  0x8f   :  { %1302 = dma.done.wait [#allocation9], 272  }
  0x90   :  { %1303 = vsyncadd [#allocation9], 4294967024 }
  0x91   :  { %1304 = dma.done.wait [#allocation12], 1040  }
  0x92   :  { %1305 = vsyncadd [#allocation12], 4294966256 }
  0x93   :  { %1306 = dma.done.wait [#allocation15], 16  }
  0x94   :  { %1307 = vsyncadd [#allocation15], 4294967280  ;;  %v132_v0 = vld [vmem:[#allocation2] sm:$0xff]  ;;  %vm180_vm0 = vcmask 261120   ;;  %v134_v2 = vld [vmem:[#allocation2 + $0x10] sm:$0xff]  ;;  %s1322_s7 = smov [#allocation16]  }
  0x95   :  { %v148_v1 = vld [vmem:[#allocation5] sm:$0xff]  ;;  %v150_v4 = vld [vmem:[#allocation5 + $0x10] sm:$0xff]  ;;  %v133_v5 = vld [vmem:[#allocation2 + $0x8] sm:$0xff]  ;;  %s881_s11 = sshll.u32 %s1322_s7, 4  ;;  %s882_s11 = int_to_ptr.vmem [resolvable:$true] %s881_s11 }
  0x96   :  { %v1492_v3 = vadd.f32 %v148_v1, %v132_v0  ;;  %v149_v6 = vld [vmem:[#allocation5 + $0x8] sm:$0xff]  ;;  %v1494_v7 = vadd.f32 %v150_v4, %v134_v2  ;;  %v135_v9 = vld [vmem:[#allocation2 + $0x18] sm:$0xff]  ;;  %v136_v11 = vld [vmem:[#allocation2 + $0x20] sm:$0xff]  ;;  %s1276_s14 = scalar_lea.vmem %s882_s11, 2048  ;;  %p1281_p9 = scmp.lt.s32.totalorder %s882_s11, %s882_s11 }
  0x97   :  { %v1496_v8 = vadd.f32 %v149_v6, %v133_v5  ;;  %v151_v10 = vld [vmem:[#allocation5 + $0x18] sm:$0xff]  ;;  %v152_v14 = vld [vmem:[#allocation5 + $0x20] sm:$0xff]  ;;  %v137_v15 = vld [vmem:[#allocation2 + $0x28] sm:$0xff]  ;;  %p1277_p8 = scmp.ne.s32.totalorder %s882_s11, %s1276_s14  ;;  %p1282_p10 = scmp.lt.s32.totalorder %s1276_s14, %s1276_s14 }
  0x98   :  { %v181_v12 = vsel %vm180_vm0, %v1492_v3, 0.0  ;;  %v1500_v13 = vadd.f32 %v151_v10, %v135_v9  ;;  %v153_v16 = vld [vmem:[#allocation5 + $0x28] sm:$0xff]  ;;  %v187_v17 = vsel %vm180_vm0, %v1494_v7, 0.0  ;;  %v1506_v19 = vadd.f32 %v152_v14, %v136_v11  ;;  %v138_v20 = vld [vmem:[#allocation2 + $0x30] sm:$0xff]  ;;  %v139_v22 = vld [vmem:[#allocation2 + $0x38] sm:$0xff] }
  0x99   :  { %182 = vadd.xlane.f32.xlu0 %v181_v12  ;;  %188 = vadd.xlane.f32.xlu1 %v187_v17  ;;  %v184_v18 = vsel %vm180_vm0, %v1496_v8, 0.0  ;;  %v154_v21 = vld [vmem:[#allocation5 + $0x30] sm:$0xff]  ;;  %v1510_v24 = vadd.f32 %v153_v16, %v137_v15  ;;  %v155_v25 = vld [vmem:[#allocation5 + $0x38] sm:$0xff]  ;;  %v140_v26 = vld [vmem:[#allocation2 + $0x40] sm:$0xff]  ;;  %p1283_p11 = por %p1282_p10, %p1281_p9 }
  0x9a   :  { %v190_v23 = vsel %vm180_vm0, %v1500_v13, 0.0  ;;  %v156_v27 = vld [vmem:[#allocation5 + $0x40] sm:$0xff]  ;;  %v1512_v28 = vadd.f32 %v154_v21, %v138_v20  ;;  %v193_v29 = vsel %vm180_vm0, %v1506_v19, 0.0  ;;  %v1516_v30 = vadd.f32 %v155_v25, %v139_v22  ;;  %v141_v33 = vld [vmem:[#allocation2 + $0x48] sm:$0xff]  ;;  %v142_v36 = vld [vmem:[#allocation2 + $0x50] sm:$0xff] }
  0x9b   :  { %v1518_v31 = vadd.f32 %v156_v27, %v140_v26  ;;  %v196_v32 = vsel %vm180_vm0, %v1510_v24, 0.0  ;;  %v157_v34 = vld [vmem:[#allocation5 + $0x48] sm:$0xff]  ;;  %v158_v37 = vld [vmem:[#allocation5 + $0x50] sm:$0xff]  ;;  %v143_v40 = vld [vmem:[#allocation2 + $0x58] sm:$0xff]  ;;  %p1284_p12 = pnand %p1283_p11, %p1277_p8 }
  0x9c   :  { %v199_v35 = vsel %vm180_vm0, %v1512_v28, 0.0  ;;  %v202_v38 = vsel %vm180_vm0, %v1516_v30, 0.0  ;;  %v159_v41 = vld [vmem:[#allocation5 + $0x58] sm:$0xff]  ;;  %v1528_v42 = vadd.f32 %v157_v34, %v141_v33  ;;  %v1530_v43 = vadd.f32 %v158_v37, %v142_v36  ;;  %v144_v46 = vld [vmem:[#allocation2 + $0x60] sm:$0xff]  ;;  %v145_v48 = vld [vmem:[#allocation2 + $0x68] sm:$0xff] }
  0x9d   :  { %185 = vadd.xlane.f32.xlu0 %v184_v18  ;;  %191 = vadd.xlane.f32.xlu1 %v190_v23  ;;  %v205_v39 = vsel %vm180_vm0, %v1518_v31, 0.0  ;;  %v1534_v45 = vadd.f32 %v159_v41, %v143_v40  ;;  %v160_v47 = vld [vmem:[#allocation5 + $0x60] sm:$0xff]  ;;  %v161_v49 = vld [vmem:[#allocation5 + $0x68] sm:$0xff]  ;;  %v146_v54 = vld [vmem:[#allocation2 + $0x70] sm:$0xff] }
  0x9e   :  { %v208_v44 = vsel %vm180_vm0, %v1528_v42, 0.0  ;;  %v211_v50 = vsel %vm180_vm0, %v1530_v43, 0.0  ;;  %v1538_v51 = vadd.f32 %v160_v47, %v144_v46  ;;  %v1542_v53 = vadd.f32 %v161_v49, %v145_v48  ;;  %v162_v55 = vld [vmem:[#allocation5 + $0x70] sm:$0xff]  ;;  %v147_v56 = vld [vmem:[#allocation2 + $0x78] sm:$0xff] }
  0x9f   :  { %v214_v52 = vsel %vm180_vm0, %v1534_v45, 0.0  ;;  %v163_v57 = vld [vmem:[#allocation5 + $0x78] sm:$0xff]  ;;  %v1546_v59 = vadd.f32 %v162_v55, %v146_v54 }
  0xa0   :  { %v217_v58 = vsel %vm180_vm0, %v1538_v51, 0.0  ;;  %v220_v60 = vsel %vm180_vm0, %v1542_v53, 0.0  ;;  %v1550_v61 = vadd.f32 %v163_v57, %v147_v56 }
  0xa1   :  { %194 = vadd.xlane.f32.xlu0 %v193_v29  ;;  %197 = vadd.xlane.f32.xlu1 %v196_v32  ;;  %v223_v62 = vsel %vm180_vm0, %v1546_v59, 0.0 }
  0xa2   :  { %v226_v63 = vsel %vm180_vm0, %v1550_v61, 0.0 }
  0xa5   :  { %200 = vadd.xlane.f32.xlu0 %v199_v35  ;;  %203 = vadd.xlane.f32.xlu1 %v202_v38 }
  0xa9   :  { %206 = vadd.xlane.f32.xlu0 %v205_v39  ;;  %209 = vadd.xlane.f32.xlu1 %v208_v44 }
  0xad   :  { %212 = vadd.xlane.f32.xlu0 %v211_v50  ;;  %215 = vadd.xlane.f32.xlu1 %v214_v52 }
  0xb1   :  { %218 = vadd.xlane.f32.xlu0 %v217_v58  ;;  %221 = vadd.xlane.f32.xlu1 %v220_v60 }
  0xb5   :  { %224 = vadd.xlane.f32.xlu0 %v223_v62  ;;  %227 = vadd.xlane.f32.xlu1 %v226_v63 }
 0x126   :  { %v183_v0 = vpop.xlane.xlu0 %182  ;;  %v189_v2 = vpop.xlane.xlu1 %188 }
 0x127   :  { %v230_v1 = vmul.f32 0.03125, %v183_v0  ;;  %v232_v4 = vmul.f32 0.03125, %v189_v2 }
 0x129   :  { %v1557_v5 = vsub.f32 %v1492_v3, %v230_v1  ;;  %v1560_v6 = vsub.f32 %v1494_v7, %v232_v4 }
 0x12a   :  { %v186_v9 = vpop.xlane.xlu0 %185  ;;  %v192_v11 = vpop.xlane.xlu1 %191 }
 0x12b   :  { %v231_v10 = vmul.f32 0.03125, %v186_v9  ;;  %v262_v12 = vmul.f32 %v1557_v5, %v1557_v5  ;;  %v233_v14 = vmul.f32 0.03125, %v192_v11  ;;  %v264_v15 = vmul.f32 %v1560_v6, %v1560_v6 }
 0x12d   :  { %v1567_v16 = vsub.f32 %v1496_v8, %v231_v10  ;;  %v278_v17 = vsel %vm180_vm0, %v262_v12, 0.0  ;;  %v1571_v18 = vsub.f32 %v1500_v13, %v233_v14  ;;  %v284_v23 = vsel %vm180_vm0, %v264_v15, 0.0 }
 0x12e   :  { %279 = vadd.xlane.f32.xlu0 %v278_v17  ;;  %v195_v20 = vpop.xlane.xlu0 %194  ;;  %v198_v22 = vpop.xlane.xlu1 %197 }
 0x12f   :  { %v234_v21 = vmul.f32 0.03125, %v195_v20  ;;  %v263_v25 = vmul.f32 %v1567_v16, %v1567_v16  ;;  %v235_v26 = vmul.f32 0.03125, %v198_v22  ;;  %v265_v27 = vmul.f32 %v1571_v18, %v1571_v18 }
 0x131   :  { %v1579_v29 = vsub.f32 %v1506_v19, %v234_v21  ;;  %v281_v32 = vsel %vm180_vm0, %v263_v25, 0.0  ;;  %v1583_v33 = vsub.f32 %v1510_v24, %v235_v26  ;;  %v287_v37 = vsel %vm180_vm0, %v265_v27, 0.0 }
 0x132   :  { %285 = vadd.xlane.f32.xlu0 %v284_v23  ;;  %282 = vadd.xlane.f32.xlu1 %v281_v32  ;;  %v201_v34 = vpop.xlane.xlu0 %200  ;;  %v204_v36 = vpop.xlane.xlu1 %203 }
 0x133   :  { %v236_v35 = vmul.f32 0.03125, %v201_v34  ;;  %v266_v38 = vmul.f32 %v1579_v29, %v1579_v29  ;;  %v237_v39 = vmul.f32 0.03125, %v204_v36  ;;  %v267_v40 = vmul.f32 %v1583_v33, %v1583_v33 }
 0x135   :  { %v1591_v41 = vsub.f32 %v1512_v28, %v236_v35  ;;  %v290_v44 = vsel %vm180_vm0, %v266_v38, 0.0  ;;  %v1595_v46 = vsub.f32 %v1516_v30, %v237_v39  ;;  %v293_v50 = vsel %vm180_vm0, %v267_v40, 0.0 }
 0x136   :  { %288 = vadd.xlane.f32.xlu1 %v287_v37  ;;  %291 = vadd.xlane.f32.xlu0 %v290_v44  ;;  %v207_v47 = vpop.xlane.xlu0 %206  ;;  %v210_v49 = vpop.xlane.xlu1 %209 }
 0x137   :  { %v238_v48 = vmul.f32 0.03125, %v207_v47  ;;  %v268_v52 = vmul.f32 %v1591_v41, %v1591_v41  ;;  %v239_v54 = vmul.f32 0.03125, %v210_v49  ;;  %v269_v55 = vmul.f32 %v1595_v46, %v1595_v46 }
 0x139   :  { %v1603_v56 = vsub.f32 %v1518_v31, %v238_v48  ;;  %v296_v57 = vsel %vm180_vm0, %v268_v52, 0.0  ;;  %v1607_v58 = vsub.f32 %v1528_v42, %v239_v54  ;;  %v299_v0 = vsel %vm180_vm0, %v269_v55, 0.0  ;;  %v1026_v54 = vld [vmem:[#allocation10] sm:$0xff]   ;;  %v1027_v55 = vld [vmem:[#allocation10 + $0x8] sm:$0xff]  }
 0x13a   :  { %294 = vadd.xlane.f32.xlu1 %v293_v50  ;;  %297 = vadd.xlane.f32.xlu0 %v296_v57  ;;  %v213_v60 = vpop.xlane.xlu0 %212  ;;  %v216_v63 = vpop.xlane.xlu1 %215  ;;  %v1652_v57 = vld [vmem:[#allocation13] sm:$0xff]  }
 0x13b   :  { %v240_v62 = vmul.f32 0.03125, %v213_v60  ;;  %v270_v1 = vmul.f32 %v1603_v56, %v1603_v56  ;;  %v241_v2 = vmul.f32 0.03125, %v216_v63  ;;  %v271_v4 = vmul.f32 %v1607_v58, %v1607_v58  ;;  %945 = vmatprep.subr.bf16.mxu0 %v1026_v54  ;;  %v1655_v60 = vld [vmem:[#allocation13 + $0x8] sm:$0xff]   ;;  %997 = vmatprep.subr.bf16.mxu1 %v1652_v57 }
 0x13c   :  { %946 = vmatpush3.bf16.msra.mxu0 %v1026_v54  ;;  %1005 = vmatpush3.bf16.msra.mxu1 %v1652_v57 }
 0x13d   :  { %v1615_v9 = vsub.f32 %v1530_v43, %v240_v62  ;;  %v302_v10 = vsel %vm180_vm0, %v270_v1, 0.0  ;;  %v1619_v11 = vsub.f32 %v1534_v45, %v241_v2  ;;  %v305_v17 = vsel %vm180_vm0, %v271_v4, 0.0  ;;  %947 = vmatprep.subr.bf16.mxu0 %v1027_v55  ;;  %998 = vmatprep.subr.bf16.mxu1 %v1655_v60 }
 0x13e   :  { %300 = vadd.xlane.f32.xlu1 %v299_v0  ;;  %303 = vadd.xlane.f32.xlu0 %v302_v10  ;;  %v219_v12 = vpop.xlane.xlu0 %218  ;;  %v222_v15 = vpop.xlane.xlu1 %221 }
 0x13f   :  { %v242_v14 = vmul.f32 0.03125, %v219_v12  ;;  %v272_v20 = vmul.f32 %v1615_v9, %v1615_v9  ;;  %v243_v21 = vmul.f32 0.03125, %v222_v15  ;;  %v273_v22 = vmul.f32 %v1619_v11, %v1619_v11 }
 0x140   :  { %948 = vmatpush3.bf16.msra.mxu0 %v1027_v55  ;;  %1006 = vmatpush3.bf16.msra.mxu1 %v1655_v60 }
 0x141   :  { %v1627_v23 = vsub.f32 %v1538_v51, %v242_v14  ;;  %v308_v25 = vsel %vm180_vm0, %v272_v20, 0.0  ;;  %v1631_v26 = vsub.f32 %v1542_v53, %v243_v21  ;;  %v311_v35 = vsel %vm180_vm0, %v273_v22, 0.0  ;;  %965 = vmatprep.subr.bf16.mxu0 %v1652_v57 }
 0x142   :  { %306 = vadd.xlane.f32.xlu1 %v305_v17  ;;  %309 = vadd.xlane.f32.xlu0 %v308_v25  ;;  %v225_v27 = vpop.xlane.xlu0 %224  ;;  %v228_v34 = vpop.xlane.xlu1 %227 }
 0x143   :  { %v244_v32 = vmul.f32 0.03125, %v225_v27  ;;  %v274_v36 = vmul.f32 %v1627_v23, %v1627_v23  ;;  %v245_v37 = vmul.f32 0.03125, %v228_v34  ;;  %v275_v38 = vmul.f32 %v1631_v26, %v1631_v26 }
 0x145   :  { %v1639_v39 = vsub.f32 %v1546_v59, %v244_v32  ;;  %v314_v40 = vsel %vm180_vm0, %v274_v36, 0.0  ;;  %v1643_v44 = vsub.f32 %v1550_v61, %v245_v37  ;;  %v317_v47 = vsel %vm180_vm0, %v275_v38, 0.0 }
 0x146   :  { %312 = vadd.xlane.f32.xlu1 %v311_v35  ;;  %315 = vadd.xlane.f32.xlu0 %v314_v40 }
 0x147   :  { %v276_v48 = vmul.f32 %v1639_v39, %v1639_v39  ;;  %v277_v49 = vmul.f32 %v1643_v44, %v1643_v44 }
 0x149   :  { %v320_v50 = vsel %vm180_vm0, %v276_v48, 0.0  ;;  %v323_v52 = vsel %vm180_vm0, %v277_v49, 0.0 }
 0x14a   :  { %318 = vadd.xlane.f32.xlu1 %v317_v47  ;;  %321 = vadd.xlane.f32.xlu0 %v320_v50 }
 0x14e   :  { %324 = vadd.xlane.f32.xlu1 %v323_v52  ;;  %v1662_v52 = vld [vmem:[#allocation7] ss:$0 sm:$0xff] }
 0x1bb   :  { %v280_v62 = vpop.xlane.xlu0 %279 }
 0x1bc   :  { %v326_v63 = vmul.f32 0.03125, %v280_v62 }
 0x1be   :  { %v342_v0 = vadd.f32 1e-05, %v326_v63 }
 0x1bf   :  { %v283_v1 = vpop.xlane.xlu1 %282  ;;  %v286_v2 = vpop.xlane.xlu0 %285 }
 0x1c0   :  { %1036 = vrsqrt.f32 %v342_v0  ;;  %v327_v4 = vmul.f32 0.03125, %v283_v1  ;;  %v328_v10 = vmul.f32 0.03125, %v286_v2 }
 0x1c2   :  { %v343_v12 = vadd.f32 1e-05, %v327_v4  ;;  %v344_v14 = vadd.f32 1e-05, %v328_v10 }
 0x1c3   :  { %v289_v15 = vpop.xlane.xlu1 %288  ;;  %v292_v17 = vpop.xlane.xlu0 %291 }
 0x1c4   :  { %1038 = vrsqrt.f32 %v343_v12  ;;  %v329_v20 = vmul.f32 0.03125, %v289_v15  ;;  %v330_v21 = vmul.f32 0.03125, %v292_v17 }
 0x1c5   :  { %1040 = vrsqrt.f32 %v344_v14  ;;  %v1667_v14 = vld [vmem:[#allocation8] ss:$0 sm:$0xff] }
 0x1c6   :  { %v345_v22 = vadd.f32 1e-05, %v329_v20  ;;  %v346_v25 = vadd.f32 1e-05, %v330_v21 }
 0x1c7   :  { %v295_v27 = vpop.xlane.xlu1 %294  ;;  %v298_v32 = vpop.xlane.xlu0 %297 }
 0x1c8   :  { %1042 = vrsqrt.f32 %v345_v22  ;;  %v331_v34 = vmul.f32 0.03125, %v295_v27  ;;  %v332_v35 = vmul.f32 0.03125, %v298_v32 }
 0x1c9   :  { %1044 = vrsqrt.f32 %v346_v25 }
 0x1ca   :  { %v1037_v36 = vpop.eup %1036  ;;  %v347_v37 = vadd.f32 1e-05, %v331_v34  ;;  %v348_v38 = vadd.f32 1e-05, %v332_v35 }
 0x1cb   :  { %v301_v40 = vpop.xlane.xlu1 %300  ;;  %v304_v47 = vpop.xlane.xlu0 %303  ;;  %v374_v48 = vmul.f32 %v1037_v36, %v1557_v5 }
 0x1cc   :  { %1046 = vrsqrt.f32 %v347_v37  ;;  %v333_v49 = vmul.f32 0.03125, %v301_v40  ;;  %v334_v50 = vmul.f32 0.03125, %v304_v47 }
 0x1cd   :  { %1048 = vrsqrt.f32 %v348_v38  ;;  %v397_v4 = vmul.f32 %v1662_v52, %v374_v48 }
 0x1ce   :  { %v1039_v54 = vpop.eup %1038  ;;  %v349_v55 = vadd.f32 1e-05, %v333_v49  ;;  %v350_v62 = vadd.f32 1e-05, %v334_v50 }
 0x1cf   :  { %v1041_v63 = vpop.eup %1040  ;;  %v307_v0 = vpop.xlane.xlu1 %306  ;;  %v375_v2 = vmul.f32 %v1039_v54, %v1567_v16  ;;  %v420_v32 = vadd.f32 %v1667_v14, %v397_v4 }
 0x1d0   :  { %v310_v1 = vpop.xlane.xlu0 %309  ;;  %v376_v10 = vmul.f32 %v1041_v63, %v1560_v6  ;;  %1050 = vrsqrt.f32 %v349_v55  ;;  %v335_v5 = vmul.f32 0.03125, %v307_v0 }
 0x1d1   :  { %v336_v12 = vmul.f32 0.03125, %v310_v1  ;;  %1052 = vrsqrt.f32 %v350_v62  ;;  %v398_v15 = vmul.f32 %v1662_v52, %v375_v2 }
 0x1d2   :  { %v1043_v17 = vpop.eup %1042  ;;  %v351_v20 = vadd.f32 1e-05, %v335_v5  ;;  %v399_v34 = vmul.f32 %v1662_v52, %v376_v10 }
 0x1d3   :  { %v352_v21 = vadd.f32 1e-05, %v336_v12  ;;  %v1045_v22 = vpop.eup %1044  ;;  %v377_v25 = vmul.f32 %v1043_v17, %v1571_v18  ;;  %v313_v27 = vpop.xlane.xlu1 %312  ;;  %v421_v6 = vadd.f32 %v1667_v14, %v398_v15 }
 0x1d4   :  { %v316_v16 = vpop.xlane.xlu0 %315  ;;  %v378_v35 = vmul.f32 %v1045_v22, %v1579_v29  ;;  %1054 = vrsqrt.f32 %v351_v20  ;;  %v337_v36 = vmul.f32 0.03125, %v313_v27  ;;  %v422_v62 = vadd.f32 %v1667_v14, %v399_v34 }
 0x1d5   :  { %v338_v37 = vmul.f32 0.03125, %v316_v16  ;;  %1056 = vrsqrt.f32 %v352_v21  ;;  %v436_v38 = vpack.c.bf16 %v421_v6, %v420_v32  ;;  %v400_v40 = vmul.f32 %v1662_v52, %v377_v25 }
 0x1d6   :  { %v1047_v47 = vpop.eup %1046  ;;  %v353_v48 = vadd.f32 1e-05, %v337_v36  ;;  %v401_v63 = vmul.f32 %v1662_v52, %v378_v35 }
 0x1d7   :  { %v354_v18 = vadd.f32 1e-05, %v338_v37  ;;  %v1049_v49 = vpop.eup %1048  ;;  %v379_v50 = vmul.f32 %v1047_v47, %v1583_v33  ;;  %v319_v54 = vpop.xlane.xlu1 %318  ;;  %949 = vmatprep.mubr.msk.bf16.mxu0 %vm180_vm0, %v436_v38  ;;  %v423_v29 = vadd.f32 %v1667_v14, %v400_v40 }
 0x1d8   :  { %v322_v55 = vpop.xlane.xlu0 %321  ;;  %v380_v0 = vmul.f32 %v1049_v49, %v1591_v41  ;;  %1058 = vrsqrt.f32 %v353_v48  ;;  %v339_v1 = vmul.f32 0.03125, %v319_v54  ;;  %v424_v21 = vadd.f32 %v1667_v14, %v401_v63 }
 0x1d9   :  { %v340_v2 = vmul.f32 0.03125, %v322_v55  ;;  %1060 = vrsqrt.f32 %v354_v18  ;;  %v437_v4 = vpack.c.bf16 %v423_v29, %v422_v62  ;;  %v402_v10 = vmul.f32 %v1662_v52, %v379_v50 }
 0x1da   :  { %v1051_v33 = vpop.eup %1050  ;;  %v355_v5 = vadd.f32 1e-05, %v339_v1  ;;  %v403_v22 = vmul.f32 %v1662_v52, %v380_v0 }
 0x1db   :  { %v356_v12 = vadd.f32 1e-05, %v340_v2  ;;  %v1053_v15 = vpop.eup %1052  ;;  %v381_v17 = vmul.f32 %v1051_v33, %v1595_v46  ;;  %v325_v20 = vpop.xlane.xlu1 %324  ;;  %950 = vmatmul.mubr.msk.bf16.vlgmr.msra.gmra.mrb[0].mxu0 %vm180_vm0, %v437_v4  ;;  %v425_v41 = vadd.f32 %v1667_v14, %v402_v10 }
 0x1dc   :  { %v382_v25 = vmul.f32 %v1053_v15, %v1603_v56  ;;  %1062 = vrsqrt.f32 %v355_v5  ;;  %v341_v27 = vmul.f32 0.03125, %v325_v20  ;;  %966 = vmatpush3.bf16.msra.mxu0 %v1652_v57  ;;  %v426_v36 = vadd.f32 %v1667_v14, %v403_v22  ;;  %v1035_v22 = vld [vmem:[#allocation13 + $0x38] sm:$0xff]  }
 0x1dd   :  { %1064 = vrsqrt.f32 %v356_v12  ;;  %v438_v16 = vpack.c.bf16 %v425_v41, %v424_v21  ;;  %v404_v32 = vmul.f32 %v1662_v52, %v381_v17  ;;  %967 = vmatprep.subr.bf16.mxu0 %v1655_v60  ;;  %v1031_v21 = vld [vmem:[#allocation13 + $0x18] sm:$0xff]   ;;  %v1033_v41 = vld [vmem:[#allocation13 + $0x28] sm:$0xff]  }
 0x1de   :  { %v1055_v46 = vpop.eup %1054  ;;  %v357_v6 = vadd.f32 1e-05, %v341_v27  ;;  %v405_v37 = vmul.f32 %v1662_v52, %v382_v25  ;;  %v1724_v25 = vld [vmem:[#allocation11] ss:$0 sm:$0xff] }
 0x1df   :  { %v1057_v34 = vpop.eup %1056  ;;  %v383_v35 = vmul.f32 %v1055_v46, %v1607_v58  ;;  %953 = vmatprep.mubr.msk.bf16.mxu0 %vm180_vm0, %v438_v16  ;;  %v427_v56 = vadd.f32 %v1667_v14, %v404_v32 }
 0x1e0   :  { %v384_v57 = vmul.f32 %v1057_v34, %v1615_v9  ;;  %1066 = vrsqrt.f32 %v357_v6  ;;  %968 = vmatpush3.bf16.msra.mxu0 %v1655_v60  ;;  %v428_v18 = vadd.f32 %v1667_v14, %v405_v37 }
 0x1e1   :  { %v439_v38 = vpack.c.bf16 %v427_v56, %v426_v36  ;;  %v406_v40 = vmul.f32 %v1662_v52, %v383_v35 }
 0x1e2   :  { %v1059_v47 = vpop.eup %1058  ;;  %v407_v50 = vmul.f32 %v1662_v52, %v384_v57 }
 0x1e3   :  { %v1061_v48 = vpop.eup %1060  ;;  %v385_v58 = vmul.f32 %v1059_v47, %v1619_v11  ;;  %954 = vmatmul.mubr.msk.bf16.gmra.mrb[4].mxu0 %vm180_vm0, %v439_v38  ;;  %v429_v49 = vadd.f32 %v1667_v14, %v406_v40 }
 0x1e4   :  { %v386_v9 = vmul.f32 %v1061_v48, %v1627_v23  ;;  %v430_v11 = vadd.f32 %v1667_v14, %v407_v50 }
 0x1e5   :  { %v440_v54 = vpack.c.bf16 %v429_v49, %v428_v18  ;;  %v408_v60 = vmul.f32 %v1662_v52, %v385_v58 }
 0x1e6   :  { %v1063_v55 = vpop.eup %1062  ;;  %v409_v0 = vmul.f32 %v1662_v52, %v386_v9 }
 0x1e7   :  { %v1065_v62 = vpop.eup %1064  ;;  %v387_v29 = vmul.f32 %v1063_v55, %v1631_v26  ;;  %957 = vmatprep.mubr.msk.bf16.mxu0 %vm180_vm0, %v440_v54  ;;  %v431_v63 = vadd.f32 %v1667_v14, %v408_v60 }
 0x1e8   :  { %v388_v1 = vmul.f32 %v1065_v62, %v1639_v39  ;;  %v432_v26 = vadd.f32 %v1667_v14, %v409_v0 }
 0x1e9   :  { %v441_v2 = vpack.c.bf16 %v431_v63, %v430_v11  ;;  %v410_v23 = vmul.f32 %v1662_v52, %v387_v29 }
 0x1ea   :  { %v1067_v4 = vpop.eup %1066  ;;  %v411_v5 = vmul.f32 %v1662_v52, %v388_v1 }
 0x1eb   :  { %v389_v10 = vmul.f32 %v1067_v4, %v1643_v44  ;;  %958 = vmatmul.mubr.msk.bf16.gmra.mrb[8].mxu0 %vm180_vm0, %v441_v2  ;;  %v433_v33 = vadd.f32 %v1667_v14, %v410_v23  ;;  %v1030_v44 = vld [vmem:[#allocation13 + $0x10] sm:$0xff]  }
 0x1ec   :  { %v434_v39 = vadd.f32 %v1667_v14, %v411_v5  ;;  %969 = vmatprep.subr.bf16.mxu0 %v1030_v44  ;;  %999 = vmatprep.subr.bf16.mxu1 %v1030_v44 }
 0x1ed   :  { %v442_v12 = vpack.c.bf16 %v433_v33, %v432_v26  ;;  %v412_v15 = vmul.f32 %v1662_v52, %v389_v10  ;;  %970 = vmatpush3.bf16.msra.mxu0 %v1030_v44  ;;  %1007 = vmatpush3.bf16.msra.mxu1 %v1030_v44  ;;  %v1032_v52 = vld [vmem:[#allocation13 + $0x20] sm:$0xff]  }
 0x1ee   :  { %971 = vmatprep.subr.bf16.mxu0 %v1031_v21  ;;  %1000 = vmatprep.subr.bf16.mxu1 %v1031_v21 }
 0x1ef   :  { %961 = vmatprep.mubr.msk.bf16.mxu0 %vm180_vm0, %v442_v12  ;;  %v435_v17 = vadd.f32 %v1667_v14, %v412_v15  ;;  %v1034_v14 = vld [vmem:[#allocation13 + $0x30] sm:$0xff]  }
 0x1f1   :  { %v443_v20 = vpack.c.bf16 %v435_v17, %v434_v39  ;;  %972 = vmatpush3.bf16.msra.mxu0 %v1031_v21  ;;  %1008 = vmatpush3.bf16.msra.mxu1 %v1031_v21 }
 0x1f2   :  { %973 = vmatprep.subr.bf16.mxu0 %v1032_v52  ;;  %1001 = vmatprep.subr.bf16.mxu1 %v1032_v52 }
 0x1f3   :  { %962 = vmatmul.mubr.msk.bf16.gmra.mrb[12].mxu0 %vm180_vm0, %v443_v20 }
 0x1f5   :  { %974 = vmatpush3.bf16.msra.mxu0 %v1032_v52  ;;  %1009 = vmatpush3.bf16.msra.mxu1 %v1032_v52 }
 0x1f6   :  { %975 = vmatprep.subr.bf16.mxu0 %v1033_v41  ;;  %1002 = vmatprep.subr.bf16.mxu1 %v1033_v41 }
 0x1f9   :  { %976 = vmatpush3.bf16.msra.mxu0 %v1033_v41  ;;  %1010 = vmatpush3.bf16.msra.mxu1 %v1033_v41 }
 0x1fa   :  { %977 = vmatprep.subr.bf16.mxu0 %v1034_v14  ;;  %1003 = vmatprep.subr.bf16.mxu1 %v1034_v14 }
 0x1fd   :  { %978 = vmatpush3.bf16.msra.mxu0 %v1034_v14  ;;  %1011 = vmatpush3.bf16.msra.mxu1 %v1034_v14 }
 0x1fe   :  { %979 = vmatprep.subr.bf16.mxu0 %v1035_v22  ;;  %1004 = vmatprep.subr.bf16.mxu1 %v1035_v22 }
 0x201   :  { %980 = vmatpush3.bf16.msra.mxu0 %v1035_v22  ;;  %1012 = vmatpush3.bf16.msra.mxu1 %v1035_v22 }
 0x2ae   :  { %v951_v27 = vpop.f32.mrb[0].mxu0 }
 0x2af   :  { %v534_v16 = vadd.f32 %v951_v27, %v1724_v25  ;;  %v525_v32 = vpop.f32.mrb[1].mxu0 }
 0x2b0   :  { %v526_v46 = vadd.f32 %v1724_v25, %v525_v32  ;;  %v952_v6 = vpop.f32.mrb[2].mxu0 }
 0x2b1   :  { %v606_v34 = vmul.f32 0.70710677, %v534_v16  ;;  %v537_v35 = vadd.f32 %v952_v6, %v1724_v25  ;;  %v528_v36 = vpop.f32.mrb[3].mxu0  ;;  %v590_v26 = vmul.f32 0.5, %v534_v16 }
 0x2b2   :  { %v604_v56 = vmul.f32 0.70710677, %v526_v46  ;;  %v529_v37 = vadd.f32 %v1724_v25, %v528_v36  ;;  %v588_v39 = vmul.f32 0.5, %v526_v46 }
 0x2b3   :  { %1068 = verf.f32 %v606_v34  ;;  %v607_v57 = vmul.f32 0.70710677, %v537_v35  ;;  %v591_v33 = vmul.f32 0.5, %v537_v35 }
 0x2b4   :  { %1070 = verf.f32 %v604_v56  ;;  %v605_v38 = vmul.f32 0.70710677, %v529_v37  ;;  %v589_v17 = vmul.f32 0.5, %v529_v37 }
 0x2b5   :  { %1072 = verf.f32 %v607_v57 }
 0x2b6   :  { %1074 = verf.f32 %v605_v38  ;;  %v955_v40 = vpop.f32.mrb[4].mxu0 }
 0x2b7   :  { %v550_v47 = vadd.f32 %v955_v40, %v1724_v25  ;;  %v541_v48 = vpop.f32.mrb[5].mxu0 }
 0x2b8   :  { %v542_v58 = vadd.f32 %v1724_v25, %v541_v48  ;;  %v956_v18 = vpop.f32.mrb[6].mxu0 }
 0x2b9   :  { %v610_v49 = vmul.f32 0.70710677, %v550_v47  ;;  %v553_v50 = vadd.f32 %v956_v18, %v1724_v25  ;;  %v544_v9 = vpop.f32.mrb[7].mxu0  ;;  %v594_v38 = vmul.f32 0.5, %v550_v47 }
 0x2ba   :  { %v608_v54 = vmul.f32 0.70710677, %v542_v58  ;;  %v1734_v60 = vadd.f32 %v1724_v25, %v544_v9 }
 0x2bb   :  { %1076 = verf.f32 %v610_v49  ;;  %v611_v55 = vmul.f32 0.70710677, %v553_v50  ;;  %v595_v9 = vmul.f32 0.5, %v553_v50 }
 0x2bc   :  { %1078 = verf.f32 %v608_v54  ;;  %v609_v62 = vmul.f32 0.70710677, %v1734_v60 }
 0x2bd   :  { %v1069_v29 = vpop.eup %1068  ;;  %1080 = verf.f32 %v611_v55 }
 0x2be   :  { %v1071_v11 = vpop.eup %1070  ;;  %v638_v63 = vadd.f32 1.0, %v1069_v29  ;;  %1082 = verf.f32 %v609_v62  ;;  %v959_v0 = vpop.f32.mrb[8].mxu0 }
 0x2bf   :  { %v1073_v1 = vpop.eup %1072  ;;  %v636_v2 = vadd.f32 1.0, %v1071_v11  ;;  %v1738_v23 = vadd.f32 %v959_v0, %v1724_v25  ;;  %v557_v4 = vpop.f32.mrb[9].mxu0  ;;  %v592_v11 = vmul.f32 0.5, %v542_v58 }
 0x2c0   :  { %v1075_v10 = vpop.eup %1074  ;;  %v639_v5 = vadd.f32 1.0, %v1073_v1  ;;  %v1741_v12 = vadd.f32 %v1724_v25, %v557_v4  ;;  %v960_v15 = vpop.f32.mrb[10].mxu0  ;;  %v654_v52 = vmul.f32 %v638_v63, %v590_v26  ;;  %v593_v4 = vmul.f32 0.5, %v1734_v60 }
 0x2c1   :  { %v637_v20 = vadd.f32 1.0, %v1075_v10  ;;  %v614_v44 = vmul.f32 0.70710677, %v1738_v23  ;;  %v560_v21 = vpop.f32.mrb[11].mxu0  ;;  %v569_v22 = vadd.f32 %v960_v15, %v1724_v25  ;;  %v652_v27 = vmul.f32 %v636_v2, %v588_v39 }
 0x2c2   :  { %v655_v41 = vmul.f32 %v639_v5, %v591_v33  ;;  %v612_v14 = vmul.f32 0.70710677, %v1741_v12  ;;  %v561_v32 = vadd.f32 %v1724_v25, %v560_v21 }
 0x2c3   :  { %v653_v16 = vmul.f32 %v637_v20, %v589_v17  ;;  %1084 = verf.f32 %v614_v44  ;;  %v615_v34 = vmul.f32 0.70710677, %v569_v22 }
 0x2c4   :  { %v669_v6 = vpack.c.bf16 %v655_v41, %v654_v52  ;;  %1086 = verf.f32 %v612_v14  ;;  %v613_v35 = vmul.f32 0.70710677, %v561_v32  ;;  %v599_v14 = vmul.f32 0.5, %v569_v22 }
 0x2c5   :  { %v1077_v46 = vpop.eup %1076  ;;  %v668_v36 = vpack.c.bf16 %v653_v16, %v652_v27  ;;  %1088 = verf.f32 %v615_v34  ;;  %v596_v16 = vmul.f32 0.5, %v1741_v12 }
 0x2c6   :  { %v1079_v56 = vpop.eup %1078  ;;  %v963_v37 = vpop.f32.mrb[12].mxu0  ;;  %v642_v40 = vadd.f32 1.0, %v1077_v46  ;;  %1090 = verf.f32 %v613_v35 }
 0x2c7   :  { %v1081_v57 = vpop.eup %1080  ;;  %v582_v48 = vadd.f32 %v963_v37, %v1724_v25  ;;  %v573_v18 = vpop.f32.mrb[13].mxu0  ;;  %981 = vmatprep.mubr.bf16.mxu0 %v668_v36  ;;  %v640_v29 = vadd.f32 1.0, %v1079_v56 }
 0x2c8   :  { %v1083_v49 = vpop.eup %1082  ;;  %v643_v54 = vadd.f32 1.0, %v1081_v57  ;;  %v574_v55 = vadd.f32 %v1724_v25, %v573_v18  ;;  %v964_v62 = vpop.f32.mrb[14].mxu0  ;;  %982 = vmatmul.mubr.bf16.vlgmr.msra.gmra.mrb[16].mxu0 %v669_v6  ;;  %v658_v33 = vmul.f32 %v642_v40, %v594_v38  ;;  %v597_v6 = vmul.f32 0.5, %v561_v32 }
 0x2c9   :  { %v618_v63 = vmul.f32 0.70710677, %v582_v48  ;;  %v585_v0 = vadd.f32 %v964_v62, %v1724_v25  ;;  %v576_v1 = vpop.f32.mrb[15].mxu0  ;;  %v641_v47 = vadd.f32 1.0, %v1083_v49  ;;  %v656_v15 = vmul.f32 %v640_v29, %v592_v11 }
 0x2ca   :  { %v659_v2 = vmul.f32 %v643_v54, %v595_v9  ;;  %v616_v10 = vmul.f32 0.70710677, %v574_v55  ;;  %v577_v26 = vadd.f32 %v1724_v25, %v576_v1  ;;  %v598_v25 = vmul.f32 0.5, %v1738_v23 }
 0x2cb   :  { %1092 = verf.f32 %v618_v63  ;;  %v619_v50 = vmul.f32 0.70710677, %v585_v0  ;;  %v657_v39 = vmul.f32 %v641_v47, %v593_v4  ;;  %v602_v23 = vmul.f32 0.5, %v582_v48 }
 0x2cc   :  { %1094 = verf.f32 %v616_v10  ;;  %v617_v5 = vmul.f32 0.70710677, %v577_v26  ;;  %v671_v58 = vpack.c.bf16 %v659_v2, %v658_v33  ;;  %v603_v22 = vmul.f32 0.5, %v585_v0  ;;  %v910_v10 = vld [vmem:[#allocation14] ss:$0 sm:$0xff] }
 0x2cd   :  { %v1085_v17 = vpop.eup %1084  ;;  %1096 = verf.f32 %v619_v50  ;;  %v670_v44 = vpack.c.bf16 %v657_v39, %v656_v15  ;;  %v600_v29 = vmul.f32 0.5, %v574_v55  ;;  %v601_v12 = vmul.f32 0.5, %v577_v26 }
 0x2ce   :  { %v1087_v20 = vpop.eup %1086  ;;  %1098 = verf.f32 %v617_v5  ;;  %v646_v21 = vadd.f32 1.0, %v1085_v17 }
 0x2cf   :  { %v1089_v52 = vpop.eup %1088  ;;  %v644_v41 = vadd.f32 1.0, %v1087_v20  ;;  %985 = vmatprep.mubr.bf16.mxu1 %v670_v44 }
 0x2d0   :  { %v1091_v60 = vpop.eup %1090  ;;  %v647_v27 = vadd.f32 1.0, %v1089_v52  ;;  %986 = vmatmul.mubr.bf16.vlgmr.msra.gmra.mrb[0].mxu1 %v671_v58  ;;  %v662_v46 = vmul.f32 %v646_v21, %v598_v25 }
 0x2d1   :  { %v645_v34 = vadd.f32 1.0, %v1091_v60  ;;  %v660_v36 = vmul.f32 %v644_v41, %v596_v16 }
 0x2d2   :  { %v663_v35 = vmul.f32 %v647_v27, %v599_v14 }
 0x2d3   :  { %v661_v56 = vmul.f32 %v645_v34, %v597_v6 }
 0x2d4   :  { %v673_v57 = vpack.c.bf16 %v663_v35, %v662_v46 }
 0x2d5   :  { %v1093_v37 = vpop.eup %1092  ;;  %v672_v18 = vpack.c.bf16 %v661_v56, %v660_v36 }
 0x2d6   :  { %v1095_v38 = vpop.eup %1094  ;;  %v650_v40 = vadd.f32 1.0, %v1093_v37 }
 0x2d7   :  { %v1097_v49 = vpop.eup %1096  ;;  %v648_v9 = vadd.f32 1.0, %v1095_v38  ;;  %989 = vmatprep.mubr.bf16.mxu1 %v672_v18 }
 0x2d8   :  { %v1099_v54 = vpop.eup %1098  ;;  %v651_v62 = vadd.f32 1.0, %v1097_v49  ;;  %990 = vmatmul.mubr.bf16.gmra.mrb[4].mxu1 %v673_v57  ;;  %v666_v11 = vmul.f32 %v650_v40, %v602_v23 }
 0x2d9   :  { %v649_v32 = vadd.f32 1.0, %v1099_v54  ;;  %v664_v1 = vmul.f32 %v648_v9, %v600_v29 }
 0x2da   :  { %v667_v63 = vmul.f32 %v651_v62, %v603_v22 }
 0x2db   :  { %v665_v47 = vmul.f32 %v649_v32, %v601_v12 }
 0x2dc   :  { %v675_v2 = vpack.c.bf16 %v667_v63, %v666_v11 }
 0x2dd   :  { %v674_v4 = vpack.c.bf16 %v665_v47, %v664_v1 }
 0x2df   :  { %993 = vmatprep.mubr.bf16.mxu1 %v674_v4 }
 0x2e0   :  { %994 = vmatmul.mubr.bf16.gmra.mrb[8].mxu1 %v675_v2 }
 0x39b   :  { %v983_v33 = vpop.f32.mrb[16].mxu0 }
 0x39c   :  { %v790_v50 = vadd.f32 %v983_v33, %v910_v10  ;;  %v781_v5 = vpop.f32.mrb[17].mxu0 }
 0x39d   :  { %v782_v48 = vadd.f32 %v910_v10, %v781_v5  ;;  %v984_v0 = vpop.f32.mrb[18].mxu0 }
 0x39e   :  { %v846_v15 = vadd.f32 %v790_v50, %v1494_v7  ;;  %v793_v55 = vadd.f32 %v984_v0, %v910_v10  ;;  %v784_v26 = vpop.f32.mrb[19].mxu0 }
 0x39f   :  { %v844_v39 = vadd.f32 %v782_v48, %v1492_v3  ;;  %v785_v17 = vadd.f32 %v910_v10, %v784_v26 }
 0x3a0   :  { %862 = vst.msk [vmem:[#allocation16 + $0x10] sm:$0xff] %vm180_vm0, %v846_v15  ;;  %v847_v58 = vadd.f32 %v793_v55, %v1500_v13 }
 0x3a1   :  { %860 = vst.msk [vmem:[#allocation16] sm:$0xff] %vm180_vm0, %v844_v39  ;;  %v845_v20 = vadd.f32 %v785_v17, %v1496_v8 }
 0x3a2   :  { %863 = vst.msk [vmem:[#allocation16 + $0x18] sm:$0xff] %vm180_vm0, %v847_v58 }
 0x3a3   :  { %861 = vst.msk [vmem:[#allocation16 + $0x8] sm:$0xff] %vm180_vm0, %v845_v20  ;;  %v987_v44 = vpop.f32.mrb[0].mxu1 }
 0x3a4   :  { %v806_v21 = vadd.f32 %v987_v44, %v910_v10  ;;  %v797_v7 = vpop.f32.mrb[1].mxu1 }
 0x3a5   :  { %v798_v52 = vadd.f32 %v910_v10, %v797_v7  ;;  %v988_v41 = vpop.f32.mrb[2].mxu1 }
 0x3a6   :  { %v850_v3 = vadd.f32 %v806_v21, %v1512_v28  ;;  %v809_v60 = vadd.f32 %v988_v41, %v910_v10  ;;  %v800_v25 = vpop.f32.mrb[3].mxu1 }
 0x3a7   :  { %v848_v14 = vadd.f32 %v798_v52, %v1506_v19  ;;  %v801_v13 = vadd.f32 %v910_v10, %v800_v25 }
 0x3a8   :  { %866 = vst.msk [vmem:[#allocation16 + $0x30] sm:$0xff] %vm180_vm0, %v850_v3  ;;  %v851_v8 = vadd.f32 %v809_v60, %v1516_v30 }
 0x3a9   :  { %864 = vst.msk [vmem:[#allocation16 + $0x20] sm:$0xff] %vm180_vm0, %v848_v14  ;;  %v849_v27 = vadd.f32 %v801_v13, %v1510_v24 }
 0x3aa   :  { %867 = vst.msk [vmem:[#allocation16 + $0x38] sm:$0xff] %vm180_vm0, %v851_v8 }
 0x3ab   :  { %865 = vst.msk [vmem:[#allocation16 + $0x28] sm:$0xff] %vm180_vm0, %v849_v27  ;;  %v991_v16 = vpop.f32.mrb[4].mxu1 }
 0x3ac   :  { %v822_v6 = vadd.f32 %v991_v16, %v910_v10  ;;  %v813_v28 = vpop.f32.mrb[5].mxu1 }
 0x3ad   :  { %v814_v34 = vadd.f32 %v910_v10, %v813_v28  ;;  %v992_v46 = vpop.f32.mrb[6].mxu1 }
 0x3ae   :  { %v854_v19 = vadd.f32 %v822_v6, %v1530_v43  ;;  %v825_v35 = vadd.f32 %v992_v46, %v910_v10  ;;  %v816_v36 = vpop.f32.mrb[7].mxu1 }
 0x3af   :  { %v852_v56 = vadd.f32 %v814_v34, %v1518_v31  ;;  %v817_v30 = vadd.f32 %v910_v10, %v816_v36 }
 0x3b0   :  { %870 = vst.msk [vmem:[#allocation16 + $0x50] sm:$0xff] %vm180_vm0, %v854_v19  ;;  %v855_v24 = vadd.f32 %v825_v35, %v1534_v45 }
 0x3b1   :  { %868 = vst.msk [vmem:[#allocation16 + $0x40] sm:$0xff] %vm180_vm0, %v852_v56  ;;  %v853_v37 = vadd.f32 %v817_v30, %v1528_v42 }
 0x3b2   :  { %871 = vst.msk [vmem:[#allocation16 + $0x58] sm:$0xff] %vm180_vm0, %v855_v24 }
 0x3b3   :  { %869 = vst.msk [vmem:[#allocation16 + $0x48] sm:$0xff] %vm180_vm0, %v853_v37  ;;  %v995_v57 = vpop.f32.mrb[8].mxu1 }
 0x3b4   :  { %v838_v38 = vadd.f32 %v995_v57, %v910_v10  ;;  %v829_v43 = vpop.f32.mrb[9].mxu1 }
 0x3b5   :  { %v830_v40 = vadd.f32 %v910_v10, %v829_v43  ;;  %v996_v18 = vpop.f32.mrb[10].mxu1 }
 0x3b6   :  { %v858_v31 = vadd.f32 %v838_v38, %v1546_v59  ;;  %v841_v49 = vadd.f32 %v996_v18, %v910_v10  ;;  %v832_v9 = vpop.f32.mrb[11].mxu1 }
 0x3b7   :  { %v856_v45 = vadd.f32 %v830_v40, %v1538_v51  ;;  %v833_v54 = vadd.f32 %v910_v10, %v832_v9 }
 0x3b8   :  { %874 = vst.msk [vmem:[#allocation16 + $0x70] sm:$0xff] %vm180_vm0, %v858_v31  ;;  %v859_v42 = vadd.f32 %v841_v49, %v1550_v61 }
 0x3b9   :  { %872 = vst.msk [vmem:[#allocation16 + $0x60] sm:$0xff] %vm180_vm0, %v856_v45  ;;  %v857_v23 = vadd.f32 %v833_v54, %v1542_v53 }
 0x3ba   :  { %875 = vst.msk [vmem:[#allocation16 + $0x78] sm:$0xff] %vm180_vm0, %v859_v42 }
 0x3bb   :  { %873 = vst.msk [vmem:[#allocation16 + $0x68] sm:$0xff] %vm180_vm0, %v857_v23 }
 0x3bc   :  { %1287 = shalt.err (!%p1284_p12)
}
 0x3bd   :  { %s1288_s20 = scalar_lea.hbm %s1809_s8, 2048 }
 0x3be   :  { %p1289_p13 = scmp.ne.s32.totalorder %s1809_s8, %s1288_s20  ;;  %p1292_p0 = scmp.lt.u32.totalorder %s1288_s20, %s1809_s8 }
 0x3c0   :  { %p1294_p1 = pnand %p1292_p0, %p1289_p13 }
 0x3c2   :  { %1297 = shalt.err (!%p1294_p1)
}
 0x3c3   :  { %887 = dma.vmem_to_hbm [thread:$0]  %s882_s11, 2048, %s1809_s8, [#allocation4], %s1312_s17, %s1312_s17, %s1313_s18  }
 0x3c4   :  { %1308 = dma.done.wait [#allocation4], 2048  }
 0x3c5   :  { %1309 = vsyncadd [#allocation4], 4294965248 }
 0x3c6   :  { %891 = vsyncpa [#allocation3], 1 }
 0x3c7   :  { %892 = vsyncpa [#allocation6], 1 }
 0x3c8   :  { %893 = vsyncpa [#allocation9], 1 }
 0x3c9   :  { %894 = vsyncpa [#allocation12], 1 }
 0x3ca   :  { %895 = vsyncpa [#allocation15], 1 }
 0x3cb   :  { %896 = vsyncpa [#allocation4], 1 }

// kernel: _lambda_.6
= control target key start
LH: loop header
LB: loop body
LE: loop exit
PB: predicated region body
PF: predicated region fallthrough
CT: control target
= control target key end

     0   :  { %s5412_s0 = inlined_call_operand.hbm [shape: f32[8,16,32], index: 0, kind: input, shape index: {}]   ;;  %s5413_s1 = inlined_call_operand.hbm [shape: f32[4,16,16], index: 1, kind: input, shape index: {}]   ;;  %s5414_s2 = inlined_call_operand.hbm [shape: f32[4,16,16], index: 2, kind: input, shape index: {}]   ;;  %s5415_s3 = inlined_call_operand.hbm [shape: f32[1,32], index: 3, kind: input, shape index: {}]   ;;  %s5416_s4 = inlined_call_operand.hbm [shape: f32[1,32], index: 4, kind: input, shape index: {}, may-alias: {4,8}]   ;;  %s5417_s5 = inlined_call_operand.hbm [shape: bf16[32,96], index: 5, kind: input, shape index: {}]   ;;  %s5418_s6 = inlined_call_operand.hbm [shape: f32[1,96], index: 6, kind: input, shape index: {}]   ;;  %s5419_s7 = inlined_call_operand.hbm [shape: bf16[4,8,32], index: 7, kind: input, shape index: {}]   ;;  %s5420_s8 = inlined_call_operand.hbm [shape: f32[1,32], index: 8, kind: input, shape index: {}, may-alias: {4,8}]   ;;  %s5421_s9 = inlined_call_operand.hbm [shape: f32[8,16,32], index: 9, kind: output, shape index: {}]  }
   0x1   :  { %5430 = sst [smem:[#allocation24_spill]] %s5413_s1 }
   0x2   :  { %5431 = sst [smem:[#allocation25_spill]] %s5415_s3 }
   0x3   :  { %5432 = sst [smem:[#allocation26_spill]] %s5421_s9 }
   0x4   :  { %14 = vsyncpa [#allocation3], 0 }
   0x5   :  { %16 = vsyncpa [#allocation3 + $0x1], 0 }
   0x6   :  { %17 = vsyncpa [#allocation6], 0 }
   0x7   :  { %18 = vsyncpa [#allocation9], 0 }
   0x8   :  { %19 = vsyncpa [#allocation12], 0 }
   0x9   :  { %20 = vsyncpa [#allocation15], 0 }
   0xa   :  { %21 = vsyncpa [#allocation4], 0 }
   0xb   :  { %23 = vsyncpa [#allocation4 + $0x1], 0  ;;  %s4437_s30 = smov 0   ;;  %s4439_s10 = smov 0  }
   0xc   :  { %s4441_s11 = smov 0   ;;  %s4443_s12 = smov 0  }
   0xd LB: > { %s4358_s13 = smov [#allocation5]   ;;  %s4458_s15 = sadd.s32 4294967295, %s4356_s12   ;;  %s4356_s12 = sphi %s4443_s12, %s5462_s12   ;;  %s4352_s11 = sphi %s4441_s11, %s5461_s11   ;;  %s4348_s10 = sphi %s4439_s10, %s5460_s10   ;;  %s4344_s30 = sphi %s4437_s30, %s5459_s30  }
   0xe   : > { %s266_s14 = sshll.u32 %s4358_s13, 4  ;;  %p3261_p0 = scmp.ge.s32.totalorder %s4356_s12, 1  ;;  %s4463_s14 = int_to_ptr.vmem [resolvable:$true] %s266_s14 }
   0xf   : > { %p5427_p1 = scmp.eq.s32.totalorder %s4458_s15, 0  ;;  %p254_p2 = scmp.lt.s32.totalorder %s4356_s12, 3 }
  0x10   : > { %s4359_s17 = smov [#allocation8]   ;;  %s4360_s20 = smov [#allocation11]  }
  0x11   : > { %p4465_p3 = pnand %p3261_p0, %p254_p2  ;;  %s293_s18 = sshll.u32 %s4359_s17, 4  ;;  %s4478_s18 = int_to_ptr.vmem [resolvable:$true] %s293_s18 }
  0x12   : > { %s314_s21 = sshll.u32 %s4360_s20, 4  ;;  %s5435_s1 = sld [smem:[#allocation24_spill]]  ;;  %s4480_s21 = int_to_ptr.vmem [resolvable:$true] %s314_s21 }
  0x13   : > { %s5433_s16 = scalar_select %p4465_p3, 1, 0 }
  0x14   : > { %p3756_p5 = pneg %p4465_p3 }
  0x16   : > { %p4474_p6 = pnand %p3756_p5, %p5427_p1 }
  0x18   : > { %s4020_s24 = scalar_lea.hbm %s5435_s1, 1024  ;;  %p4490_p8 = pneg %p4474_p6 }
  0x19   : > { %p4021_p7 = scmp.ne.s32.totalorder %s5435_s1, %s4020_s24  ;;  %p4027_p11 = scmp.lt.u32.totalorder %s4020_s24, %s5435_s1 }
  0x1b   : > { %p4023_p9 = pnand %p4490_p8, %p4021_p7 }
  0x1d   : > { %p4024_p10 = pneg %p4023_p9 }
  0x1f   : > { %p4029_p12 = pnand %p4027_p11, %p4024_p10 }
  0x21   : > { %4032 = shalt.err (!%p4029_p12)
}
  0x22   : > { %s4033_s13 = scalar_lea.vmem %s4463_s14, 1024  ;;  %p4041_p5 = scmp.lt.s32.totalorder %s4463_s14, %s4463_s14 }
  0x23   : > { %p4034_p13 = scmp.ne.s32.totalorder %s4463_s14, %s4033_s13  ;;  %p4042_p4 = scmp.lt.s32.totalorder %s4033_s13, %s4033_s13 }
  0x25   : > { %p4036_p0 = pnand %p4034_p13, %p4490_p8  ;;  %p4043_p7 = por %p4042_p4, %p4041_p5 }
  0x27   : > { %p4037_p2 = pneg %p4036_p0 }
  0x29   : > { %p4044_p9 = pnand %p4043_p7, %p4037_p2 }
  0x2b   : > { %4047 = shalt.err (!%p4044_p9)
}
  0x2c   : > { %s5423_s17 = smov 128   ;;  %s5425_s20 = smov 8  }
  0x2d   : > { %3759 = dma.hbm_to_vmem [thread:$0]  (!%p4474_p6), %s5435_s1, 1024, %s4463_s14, [#allocation6], %s5423_s17, %s5423_s17, %s5425_s20  }
  0x2e   : > { %s5437_s3 = sld [smem:[#allocation25_spill]] }
  0x34   : > { %s4048_s26 = scalar_lea.hbm %s5437_s3, 16 }
  0x35   : > { %p4049_p4 = scmp.ne.s32.totalorder %s5437_s3, %s4048_s26  ;;  %p4055_p12 = scmp.lt.u32.totalorder %s4048_s26, %s5437_s3 }
  0x37   : > { %p4051_p10 = pnand %p4049_p4, %p4490_p8 }
  0x39   : > { %p4052_p11 = pneg %p4051_p10 }
  0x3b   : > { %p4057_p13 = pnand %p4055_p12, %p4052_p11 }
  0x3d   : > { %4060 = shalt.err (!%p4057_p13)
}
  0x3e   : > { %s4061_s14 = scalar_lea.vmem %s4478_s18, 16  ;;  %s4068_s22 = scalar_lea.vmem %s4478_s18, 32 }
  0x3f   : > { %p4062_p0 = scmp.ne.s32.totalorder %s4478_s18, %s4061_s14  ;;  %p4069_p7 = scmp.lt.s32.totalorder %s4478_s18, %s4478_s18 }
  0x40   : > { %p4070_p9 = scmp.lt.s32.totalorder %s4068_s22, %s4061_s14 }
  0x41   : > { %p4064_p2 = pnand %p4062_p0, %p4490_p8 }
  0x42   : > { %p4071_p4 = por %p4070_p9, %p4069_p7 }
  0x43   : > { %p4065_p5 = pneg %p4064_p2 }
  0x45   : > { %p4072_p10 = pnand %p4071_p4, %p4065_p5 }
  0x47   : > { %4075 = shalt.err (!%p4072_p10)
}
  0x48   : > { %3765 = dma.hbm_to_vmem [thread:$0]  (!%p4474_p6), %s5437_s3, 16, %s4478_s18, [#allocation9]  }
  0x49   : > { %s4076_s26 = scalar_lea.hbm %s5417_s5, 256 }
  0x4a   : > { %p4077_p11 = scmp.ne.s32.totalorder %s5417_s5, %s4076_s26  ;;  %p4083_p0 = scmp.lt.u32.totalorder %s4076_s26, %s5417_s5 }
  0x4c   : > { %p4079_p12 = pnand %p4077_p11, %p4490_p8 }
  0x4e   : > { %p4080_p13 = pneg %p4079_p12 }
  0x50   : > { %p4085_p2 = pnand %p4083_p0, %p4080_p13 }
  0x52   : > { %4088 = shalt.err (!%p4085_p2)
}
  0x53   : > { %s4089_s18 = scalar_lea.vmem %s4480_s21, 256  ;;  %p4097_p4 = scmp.lt.s32.totalorder %s4480_s21, %s4480_s21 }
  0x54   : > { %p4090_p5 = scmp.ne.s32.totalorder %s4480_s21, %s4089_s18  ;;  %p4098_p10 = scmp.lt.s32.totalorder %s4089_s18, %s4089_s18 }
  0x56   : > { %p4092_p7 = pnand %p4090_p5, %p4490_p8  ;;  %p4099_p11 = por %p4098_p10, %p4097_p4 }
  0x58   : > { %p4093_p9 = pneg %p4092_p7 }
  0x5a   : > { %p4100_p12 = pnand %p4099_p11, %p4093_p9 }
  0x5c   : > { %4103 = shalt.err (!%p4100_p12)
}
  0x5d   : > { %s4363_s22 = smov 64   ;;  %s4364_s9 = smov 4  }
  0x5e   : > { %3771 = dma.hbm_to_vmem [thread:$0]  (!%p4474_p6), %s5417_s5, 256, %s4480_s21, [#allocation12], %s4363_s22, %s4363_s22, %s4364_s9  }
  0x5f   : > { %s4365_s25 = smov [#allocation14]   ;;  %s4366_s28 = smov [#allocation7]  }
  0x60   : > { %s338_s26 = sshll.u32 %s4365_s25, 4  ;;  %s279_s29 = sshll.u32 %s4366_s28, 4  ;;  %s339_s26 = int_to_ptr.vmem [resolvable:$true] %s338_s26  ;;  %s280_s29 = int_to_ptr.vmem [resolvable:$true] %s279_s29 }
  0x61   : > { %s4104_s18 = scalar_lea.hbm %s5419_s7, 256 }
  0x62   : > { %p4105_p13 = scmp.ne.s32.totalorder %s5419_s7, %s4104_s18  ;;  %p4111_p5 = scmp.lt.u32.totalorder %s4104_s18, %s5419_s7 }
  0x64   : > { %p4107_p0 = pnand %p4105_p13, %p4490_p8 }
  0x66   : > { %p4108_p2 = pneg %p4107_p0 }
  0x68   : > { %p4113_p7 = pnand %p4111_p5, %p4108_p2 }
  0x6a   : > { %4116 = shalt.err (!%p4113_p7)
}
  0x6b   : > { %s4117_s21 = scalar_lea.vmem %s339_s26, 256  ;;  %p4125_p11 = scmp.lt.s32.totalorder %s339_s26, %s339_s26 }
  0x6c   : > { %p4118_p9 = scmp.ne.s32.totalorder %s339_s26, %s4117_s21  ;;  %p4126_p12 = scmp.lt.s32.totalorder %s4117_s21, %s4117_s21 }
  0x6e   : > { %p4120_p4 = pnand %p4118_p9, %p4490_p8  ;;  %p4127_p1 = por %p4126_p12, %p4125_p11 }
  0x70   : > { %p4121_p10 = pneg %p4120_p4 }
  0x72   : > { %p4128_p3 = pnand %p4127_p1, %p4121_p10 }
  0x74   : > { %4131 = shalt.err (!%p4128_p3)
}
  0x75   : > { %3777 = dma.hbm_to_vmem [thread:$0]  (!%p4474_p6), %s5419_s7, 256, %s339_s26, [#allocation15], %s4363_s22, %s4363_s22, %s4364_s9  }
  0x76   : > { %s4132_s23 = scalar_lea.hbm %s5414_s2, 1024 }
  0x77   : > { %p4133_p13 = scmp.ne.s32.totalorder %s5414_s2, %s4132_s23  ;;  %p4139_p3 = scmp.lt.u32.totalorder %s4132_s23, %s5414_s2 }
  0x79   : > { %p4135_p0 = pnand %p4133_p13, %p4490_p8 }
  0x7b   : > { %p4136_p1 = pneg %p4135_p0 }
  0x7d   : > { %p4141_p2 = pnand %p4139_p3, %p4136_p1 }
  0x7f   : > { %4144 = shalt.err (!%p4141_p2)
}
  0x80   : > { %s4145_s14 = scalar_lea.vmem %s280_s29, 1024  ;;  %p4153_p4 = scmp.lt.s32.totalorder %s280_s29, %s280_s29 }
  0x81   : > { %p4146_p5 = scmp.ne.s32.totalorder %s280_s29, %s4145_s14  ;;  %p4154_p10 = scmp.lt.s32.totalorder %s4145_s14, %s4145_s14 }
  0x83   : > { %p4148_p7 = pnand %p4146_p5, %p4490_p8  ;;  %p4155_p11 = por %p4154_p10, %p4153_p4 }
  0x85   : > { %p4149_p9 = pneg %p4148_p7 }
  0x87   : > { %p4156_p12 = pnand %p4155_p11, %p4149_p9 }
  0x89   : > { %4159 = shalt.err (!%p4156_p12)
}
  0x8a   : > { %s5438_s22 = smov 8   ;;  %s5439_s9 = smov 128  }
  0x8b   : > { %3762 = dma.hbm_to_vmem [thread:$0]  (!%p4474_p6), %s5414_s2, 1024, %s280_s29, [#allocation6], %s5439_s9, %s5439_s9, %s5438_s22  }
  0x8c   : > { %s4367_s21 = smov [#allocation10]   ;;  %s4368_s20 = smov [#allocation13]  }
  0x8d   : > { %s304_s17 = sshll.u32 %s4367_s21, 4  ;;  %s328_s1 = sshll.u32 %s4368_s20, 4  ;;  %s305_s17 = int_to_ptr.vmem [resolvable:$true] %s304_s17  ;;  %s329_s1 = int_to_ptr.vmem [resolvable:$true] %s328_s1 }
  0x8e   : > { %s4160_s24 = scalar_lea.hbm %s5416_s4, 16 }
  0x8f   : > { %p4161_p13 = scmp.ne.s32.totalorder %s5416_s4, %s4160_s24  ;;  %p4167_p3 = scmp.lt.u32.totalorder %s4160_s24, %s5416_s4 }
  0x91   : > { %p4163_p0 = pnand %p4161_p13, %p4490_p8 }
  0x93   : > { %p4164_p1 = pneg %p4163_p0 }
  0x95   : > { %p4169_p2 = pnand %p4167_p3, %p4164_p1 }
  0x97   : > { %4172 = shalt.err (!%p4169_p2)
}
  0x98   : > { %s4173_s29 = scalar_lea.vmem %s305_s17, 16  ;;  %s4180_s26 = scalar_lea.vmem %s305_s17, 32 }
  0x99   : > { %p4174_p5 = scmp.ne.s32.totalorder %s305_s17, %s4173_s29  ;;  %p4181_p4 = scmp.lt.s32.totalorder %s305_s17, %s305_s17 }
  0x9a   : > { %p4182_p10 = scmp.lt.s32.totalorder %s4180_s26, %s4173_s29 }
  0x9b   : > { %p4176_p7 = pnand %p4174_p5, %p4490_p8 }
  0x9c   : > { %p4183_p11 = por %p4182_p10, %p4181_p4 }
  0x9d   : > { %p4177_p9 = pneg %p4176_p7 }
  0x9f   : > { %p4184_p12 = pnand %p4183_p11, %p4177_p9 }
  0xa1   : > { %4187 = shalt.err (!%p4184_p12)
}
  0xa2   : > { %3768 = dma.hbm_to_vmem [thread:$0]  (!%p4474_p6), %s5416_s4, 16, %s305_s17, [#allocation9]  }
  0xa3   : > { %s4188_s23 = scalar_lea.hbm %s5418_s6, 16 }
  0xa4   : > { %p4189_p13 = scmp.ne.s32.totalorder %s5418_s6, %s4188_s23  ;;  %p4195_p3 = scmp.lt.u32.totalorder %s4188_s23, %s5418_s6 }
  0xa6   : > { %p4191_p0 = pnand %p4189_p13, %p4490_p8 }
  0xa8   : > { %p4192_p1 = pneg %p4191_p0 }
  0xaa   : > { %p4197_p2 = pnand %p4195_p3, %p4192_p1 }
  0xac   : > { %4200 = shalt.err (!%p4197_p2)
}
  0xad   : > { %s4201_s14 = scalar_lea.vmem %s329_s1, 16  ;;  %s4208_s17 = scalar_lea.vmem %s329_s1, 32 }
  0xae   : > { %p4202_p5 = scmp.ne.s32.totalorder %s329_s1, %s4201_s14  ;;  %p4209_p4 = scmp.lt.s32.totalorder %s329_s1, %s329_s1 }
  0xaf   : > { %p4210_p10 = scmp.lt.s32.totalorder %s4208_s17, %s4201_s14 }
  0xb0   : > { %p4204_p7 = pnand %p4202_p5, %p4490_p8 }
  0xb1   : > { %p4211_p11 = por %p4210_p10, %p4209_p4 }
  0xb2   : > { %p4205_p9 = pneg %p4204_p7 }
  0xb4   : > { %p4212_p12 = pnand %p4211_p11, %p4205_p9 }
  0xb6   : > { %4215 = shalt.err (!%p4212_p12)
}
  0xb7   : > { %3774 = dma.hbm_to_vmem [thread:$0]  (!%p4474_p6), %s5418_s6, 16, %s329_s1, [#allocation12]  }
  0xb8   : > { %s4369_s18 = smov [#allocation16]   ;;  %s4216_s23 = scalar_lea.hbm %s5420_s8, 16 }
  0xb9   : > { %s352_s21 = sshll.u32 %s4369_s18, 4  ;;  %p4217_p13 = scmp.ne.s32.totalorder %s5420_s8, %s4216_s23  ;;  %s353_s21 = int_to_ptr.vmem [resolvable:$true] %s352_s21 }
  0xba   : > { %p4223_p3 = scmp.lt.u32.totalorder %s4216_s23, %s5420_s8 }
  0xbb   : > { %p4219_p0 = pnand %p4217_p13, %p4490_p8 }
  0xbd   : > { %p4220_p1 = pneg %p4219_p0 }
  0xbf   : > { %p4225_p2 = pnand %p4223_p3, %p4220_p1 }
  0xc1   : > { %4228 = shalt.err (!%p4225_p2)
}
  0xc2   : > { %s4229_s1 = scalar_lea.vmem %s353_s21, 16  ;;  %s4236_s14 = scalar_lea.vmem %s353_s21, 32 }
  0xc3   : > { %p4230_p5 = scmp.ne.s32.totalorder %s353_s21, %s4229_s1  ;;  %p4237_p4 = scmp.lt.s32.totalorder %s353_s21, %s353_s21 }
  0xc4   : > { %p4238_p10 = scmp.lt.s32.totalorder %s4236_s14, %s4229_s1 }
  0xc5   : > { %p4232_p7 = pnand %p4230_p5, %p4490_p8 }
  0xc6   : > { %p4239_p11 = por %p4238_p10, %p4237_p4 }
  0xc7   : > { %p4233_p9 = pneg %p4232_p7 }
  0xc9   : > { %p4240_p12 = pnand %p4239_p11, %p4233_p9 }
  0xcb   : > { %4243 = shalt.err (!%p4240_p12)
}
  0xcc   : > { %3780 = dma.hbm_to_vmem [thread:$0]  (!%p4474_p6), %s5420_s8, 16, %s353_s21, [#allocation15]  }
  0xcd   : > { %s3260_s27 = sadd.s32 4294967294, %s4356_s12   ;;  %s4656_s19 = sadd.s32 1, %s4356_s12  }
  0xce   : > { %s33_s26 = ssub.s32 %s4356_s12, %s4656_s19  ;;  %s36_s18 = sadd.s32 1, %s4352_s11 }
  0xcf   : > { %p34_p8 = scmp.eq.s32.totalorder %s33_s26, 0  ;;  %p43_p13 = scmp.ne.s32.totalorder %s4352_s11, %s4348_s10 }
  0xd0   : > { %p44_p0 = scmp.eq.s32.totalorder %s4356_s12, 0  ;;  %p49_p1 = scmp.ne.s32.totalorder %s4348_s10, %s4344_s30 }
  0xd1   : > { %s4667_s20 = scalar_select %p34_p8, %s4352_s11, %s36_s18  }
  0xd2   : > { %p4669_p3 = por %p44_p0, %p43_p13  ;;  %p5441_p2 = scmp.eq.s32.totalorder %s4458_s15, 0 }
  0xd3   : > { %p241_p5 = scmp.eq.s32.totalorder %s4458_s15, 1  ;;  %p247_p7 = scmp.eq.s32.totalorder %s3260_s27, 1 }
  0xd4   : > { %p4675_p6 = por %p5441_p2, %p49_p1  ;;  %p3797_p9 = scmp.lt.s32.totalorder %s4356_s12, 2 }
  0xd5   : > { %s363_s23 = sand.u32 1, %s4352_s11   ;;  %p4682_p4 = por %p241_p5, %p43_p13 }
  0xd6   : > { %p4686_p10 = por %p247_p7, %p49_p1  ;;  %s3271_s28 = sshll.u32 %s363_s23, 6 }
  0xd7   : > { %s5443_s24 = scalar_select %p4682_p4, 1, 0 }
  0xd8   : > { %s5444_s25 = scalar_select %p4686_p10, 1, 0 }
  0xd9   : > { %s3351_s13 = sshll.u32 %s4356_s12, 10  ;;  %s367_s29 = scalar_lea.vmem [#allocation2], %s3271_s28 }
  0xda   : > { %s4694_s17 = scalar_lea.hbm %s5412_s0, %s3351_s13  ;;  %s375_s27 = sshll.u32 %s367_s29, 4  ;;  %s4696_s27 = int_to_ptr.vmem [resolvable:$true] %s375_s27 }
  0xdb   : > { %p4700_p11 = pnand %p3797_p9, %p4669_p3  ;;  %s4704_s18 = scalar_lea.sflag [#allocation3], %s363_s23 }
  0xdc   : > { %s4244_s1 = scalar_lea.hbm %s4694_s17, 1024  ;;  %s4249_s3 = scalar_lea.hbm %s5412_s0, 2048 }
  0xdd   : > { %p4245_p12 = scmp.ne.s32.totalorder %s4694_s17, %s4244_s1  ;;  %p4246_p8 = pneg %p4700_p11 }
  0xde   : > { %p4250_p1 = scmp.lt.u32.totalorder %s4694_s17, %s5412_s0  ;;  %p4251_p3 = scmp.lt.u32.totalorder %s4249_s3, %s4244_s1 }
  0xdf   : > { %p4247_p13 = pnand %p4246_p8, %p4245_p12  ;;  %p4253_p5 = scmp.lt.u32.totalorder %s4244_s1, %s4694_s17 }
  0xe0   : > { %p4252_p2 = por %p4251_p3, %p4250_p1 }
  0xe1   : > { %p4248_p0 = pneg %p4247_p13 }
  0xe2   : > { %p4254_p7 = por %p4253_p5, %p4252_p2 }
  0xe4   : > { %p4255_p9 = pnand %p4254_p7, %p4248_p0 }
  0xe6   : > { %4258 = shalt.err (!%p4255_p9)
}
  0xe7   : > { %s4259_s23 = scalar_lea.vmem %s4696_s27, 1024  ;;  %s4370_s28 = smov [#allocation2]  }
  0xe8   : > { %p4260_p12 = scmp.ne.s32.totalorder %s4696_s27, %s4259_s23  ;;  %s4264_s13 = sshll.u32 %s4370_s28, 4  ;;  %s4265_s13 = int_to_ptr.vmem [resolvable:$false] %s4264_s13 }
  0xe9   : > { %s4266_s14 = scalar_lea.vmem %s4265_s13, 2048  ;;  %p4267_p4 = scmp.lt.s32.totalorder %s4696_s27, %s4265_s13 }
  0xea   : > { %p4262_p13 = pnand %p4260_p12, %p4246_p8  ;;  %p4268_p1 = scmp.lt.s32.totalorder %s4266_s14, %s4259_s23 }
  0xec   : > { %p4263_p10 = pneg %p4262_p13  ;;  %p4269_p3 = por %p4268_p1, %p4267_p4 }
  0xee   : > { %p4270_p2 = pnand %p4269_p3, %p4263_p10 }
  0xf0   : > { %4273 = shalt.err (!%p4270_p2)
}
  0xf1   : > { %3784 = dma.hbm_to_vmem [thread:$0]  (!%p4700_p11), %s4694_s17, 1024, %s4696_s27, %s4704_s18, %s5439_s9, %s5439_s9, %s5438_s22  }
  0xf2   : > { %p5446_p8 = scmp.ne.s32.totalorder %s5433_s16, 0 }
  0xf3   : > { %s4738_s1 = sand.u32 (!%p5446_p8), 1, %s4348_s10  }
  0xf4   : > { %387 = sbr.rel (%p5446_p8) target bundleno = 4004 (0xfa4), region = 56  ;;  %s3276_s3 = sshll.u32 (!%p5446_p8), %s4738_s1, 6 }
  0xf5   : > { %s390_s29 = scalar_lea.sflag (!%p5446_p8), [#allocation3], %s4738_s1  ;;  %s393_s26 = scalar_lea.vmem (!%p5446_p8), [#allocation2], %s3276_s3 }
  0xfb   : > { %4319 = dma.done.wait (%p4675_p6), %s390_s29, 1024  }
  0xfc   : > { %4321 = vsyncadd (%p4675_p6), %s390_s29, 4294966272  ;;  %p5447_p4 = scmp.eq.s32.totalorder %s4458_s15, 0 }
  0xfe   : > { %4323 = dma.done.wait (%p5447_p4), [#allocation6], 2048   ;;  %p5448_p10 = pmov %p5447_p4 }
  0xff   : > { %p5449_p11 = pmov %p5447_p4 }
 0x100   : > { %4325 = vsyncadd (%p5448_p10), [#allocation6], 4294965248 }
 0x101   : > { %4327 = dma.done.wait (%p5449_p11), [#allocation9], 32   ;;  %p5450_p0 = pmov %p5447_p4 }
 0x103   : > { %4329 = vsyncadd (%p5450_p0), [#allocation9], 4294967264  ;;  %p5451_p5 = pmov %p5450_p0 }
 0x104   : > { %p5452_p7 = pmov %p5450_p0 }
 0x105   : > { %4331 = dma.done.wait (%p5451_p5), [#allocation12], 272  }
 0x106   : > { %4333 = vsyncadd (%p5452_p7), [#allocation12], 4294967024  ;;  %p5453_p6 = pmov %p5450_p0 }
 0x107   : > { %p5454_p9 = pmov %p5450_p0 }
 0x108   : > { %4335 = dma.done.wait (%p5453_p6), [#allocation15], 272  }
 0x109   : > { %4337 = vsyncadd (%p5454_p9), [#allocation15], 4294967024  ;;  %vm471_vm0 = vcmask 261120   ;;  %v463_v0 = vld [vmem:[%s393_s26] sm:$0xff]  ;;  %v465_v1 = vld [vmem:[%s393_s26 + $0x10] sm:$0xff]  ;;  %vm4372_vm1 = vmmov 0  }
 0x10a   : > { %v464_v2 = vld [vmem:[%s393_s26 + $0x8] sm:$0xff]  ;;  %v472_v3 = vsel %vm471_vm0, %v463_v0, 0.0  ;;  %v478_v4 = vsel %vm471_vm0, %v465_v1, 0.0  ;;  %v466_v5 = vld [vmem:[%s393_s26 + $0x18] sm:$0xff]  ;;  %v467_v8 = vld [vmem:[%s393_s26 + $0x20] sm:$0xff]  ;;  %s4373_s16 = smov 96  }
 0x10b   : > { %473 = vadd.xlane.f32.xlu0 %v472_v3  ;;  %479 = vadd.xlane.f32.xlu1 %v478_v4  ;;  %v475_v6 = vsel %vm471_vm0, %v464_v2, 0.0  ;;  %v481_v7 = vsel %vm471_vm0, %v466_v5, 0.0  ;;  %v468_v9 = vld [vmem:[%s393_s26 + $0x28] sm:$0xff]  ;;  %v484_v10 = vsel %vm471_vm0, %v467_v8, 0.0  ;;  %v469_v12 = vld [vmem:[%s393_s26 + $0x30] sm:$0xff]  ;;  %v470_v13 = vld [vmem:[%s393_s26 + $0x38] sm:$0xff] }
 0x10c   : > { %v487_v11 = vsel %vm471_vm0, %v468_v9, 0.0  ;;  %v490_v14 = vsel %vm471_vm0, %v469_v12, 0.0  ;;  %v493_v15 = vsel %vm471_vm0, %v470_v13, 0.0  ;;  %v3866_v56 = vld [vmem:[#allocation11] sm:$0xff]   ;;  %v3867_v57 = vld [vmem:[#allocation11 + $0x8] sm:$0xff]   ;;  %vm746_vm2 = vcmask 64512  }
 0x10d   : > { %3444 = vmatprep.subr.bf16.mxu0 %v3866_v56  ;;  %3688 = vmatprep.subr.bf16.mxu1 %v3866_v56  ;;  %vm952_vm3 = vcmask 130048   ;;  %s4374_s22 = smov 64   ;;  %s4375_s9 = smov 88   ;;  %vm1752_vm4 = vcmask 1043456  }
 0x10e   : > { %3445 = vmatpush3.bf16.msra.mxu0 %v3866_v56  ;;  %3690 = vmatpush3.bf16.msra.mxu1 %v3866_v56  ;;  %s4376_s21 = smov 120   ;;  %s4377_s17 = smov 56  }
 0x10f   : > { %476 = vadd.xlane.f32.xlu0 %v475_v6  ;;  %482 = vadd.xlane.f32.xlu1 %v481_v7  ;;  %s4378_s27 = smov 80   ;;  %s4379_s18 = smov 112  }
 0x110   : > { %3446 = vmatprep.subr.bf16.mxu0 %v3867_v57  ;;  %3689 = vmatprep.subr.bf16.mxu1 %v3867_v57  ;;  %s4380_s23 = smov 48   ;;  %s4381_s28 = smov 72  }
 0x111   : > { %s4382_s13 = smov 104   ;;  %s4383_s14 = smov 40  }
 0x112   : > { %3447 = vmatpush3.bf16.msra.mxu0 %v3867_v57  ;;  %3691 = vmatpush3.bf16.msra.mxu1 %v3867_v57  ;;  %s459_s29 = scalar_lea.vmem [#allocation17], %s3276_s3  ;;  %s3353_s26 = sshll.u32 %s4458_s15, 10 }
 0x113   : > { %485 = vadd.xlane.f32.xlu0 %v484_v10  ;;  %488 = vadd.xlane.f32.xlu1 %v487_v11  ;;  %s3097_s15 = scalar_lea.sflag [#allocation4], %s4738_s1  ;;  %p5456_p13 = scmp.ne.s32.totalorder %s5443_s24, 0 }
 0x117   : > { %491 = vadd.xlane.f32.xlu0 %v490_v14  ;;  %494 = vadd.xlane.f32.xlu1 %v493_v15 }
 0x198   : > { %v474_v16 = vpop.xlane.xlu0 %473  ;;  %v480_v17 = vpop.xlane.xlu1 %479 }
 0x199   : > { %v497_v18 = vmul.f32 0.03125, %v474_v16  ;;  %v499_v19 = vmul.f32 0.03125, %v480_v17 }
 0x19b   : > { %v4772_v20 = vsub.f32 %v463_v0, %v497_v18  ;;  %v4774_v21 = vsub.f32 %v465_v1, %v499_v19  ;;  %v3286_v19 = vld [vmem:[#allocation8] ss:$0 sm:$0xff] }
 0x19c   : > { %v477_v22 = vpop.xlane.xlu0 %476  ;;  %v483_v23 = vpop.xlane.xlu1 %482 }
 0x19d   : > { %v498_v24 = vmul.f32 0.03125, %v477_v22  ;;  %v500_v25 = vmul.f32 0.03125, %v483_v23  ;;  %v513_v26 = vmul.f32 %v4772_v20, %v4772_v20  ;;  %v515_v27 = vmul.f32 %v4774_v21, %v4774_v21 }
 0x19f   : > { %v4780_v28 = vsub.f32 %v464_v2, %v498_v24  ;;  %v4782_v29 = vsub.f32 %v466_v5, %v500_v25  ;;  %v521_v30 = vsel %vm471_vm0, %v513_v26, 0.0  ;;  %v527_v33 = vsel %vm471_vm0, %v515_v27, 0.0  ;;  %v3287_v27 = vld [vmem:[#allocation10] ss:$0 sm:$0xff] }
 0x1a0   : > { %522 = vadd.xlane.f32.xlu0 %v521_v30  ;;  %v486_v31 = vpop.xlane.xlu0 %485  ;;  %v489_v32 = vpop.xlane.xlu1 %488 }
 0x1a1   : > { %v501_v34 = vmul.f32 0.03125, %v486_v31  ;;  %v502_v35 = vmul.f32 0.03125, %v489_v32  ;;  %v514_v36 = vmul.f32 %v4780_v28, %v4780_v28  ;;  %v516_v37 = vmul.f32 %v4782_v29, %v4782_v29 }
 0x1a3   : > { %v4790_v38 = vsub.f32 %v467_v8, %v501_v34  ;;  %v4792_v39 = vsub.f32 %v468_v9, %v502_v35  ;;  %v524_v40 = vsel %vm471_vm0, %v514_v36, 0.0  ;;  %v530_v43 = vsel %vm471_vm0, %v516_v37, 0.0 }
 0x1a4   : > { %528 = vadd.xlane.f32.xlu0 %v527_v33  ;;  %525 = vadd.xlane.f32.xlu1 %v524_v40  ;;  %v492_v41 = vpop.xlane.xlu0 %491  ;;  %v495_v42 = vpop.xlane.xlu1 %494 }
 0x1a5   : > { %v503_v44 = vmul.f32 0.03125, %v492_v41  ;;  %v504_v45 = vmul.f32 0.03125, %v495_v42  ;;  %v517_v46 = vmul.f32 %v4790_v38, %v4790_v38  ;;  %v518_v47 = vmul.f32 %v4792_v39, %v4792_v39 }
 0x1a7   : > { %v4800_v48 = vsub.f32 %v469_v12, %v503_v44  ;;  %v4802_v49 = vsub.f32 %v470_v13, %v504_v45  ;;  %v533_v50 = vsel %vm471_vm0, %v517_v46, 0.0  ;;  %v536_v51 = vsel %vm471_vm0, %v518_v47, 0.0 }
 0x1a8   : > { %531 = vadd.xlane.f32.xlu1 %v530_v43  ;;  %534 = vadd.xlane.f32.xlu0 %v533_v50 }
 0x1a9   : > { %v519_v52 = vmul.f32 %v4800_v48, %v4800_v48  ;;  %v520_v53 = vmul.f32 %v4802_v49, %v4802_v49 }
 0x1ab   : > { %v539_v54 = vsel %vm471_vm0, %v519_v52, 0.0  ;;  %v542_v55 = vsel %vm471_vm0, %v520_v53, 0.0 }
 0x1ac   : > { %537 = vadd.xlane.f32.xlu1 %v536_v51  ;;  %540 = vadd.xlane.f32.xlu0 %v539_v54 }
 0x1b0   : > { %543 = vadd.xlane.f32.xlu1 %v542_v55 }
 0x22d   : > { %v523_v58 = vpop.xlane.xlu0 %522 }
 0x22e   : > { %v545_v59 = vmul.f32 0.03125, %v523_v58  ;;  %v3288_v58 = vld [vmem:[#allocation13] ss:$0 sm:$0xff] }
 0x230   : > { %v553_v60 = vadd.f32 1e-05, %v545_v59 }
 0x231   : > { %v526_v61 = vpop.xlane.xlu1 %525  ;;  %v529_v62 = vpop.xlane.xlu0 %528 }
 0x232   : > { %3868 = vrsqrt.f32 %v553_v60  ;;  %v546_v63 = vmul.f32 0.03125, %v526_v61  ;;  %v547_v0 = vmul.f32 0.03125, %v529_v62 }
 0x234   : > { %v554_v1 = vadd.f32 1e-05, %v546_v63  ;;  %v555_v2 = vadd.f32 1e-05, %v547_v0 }
 0x235   : > { %v532_v3 = vpop.xlane.xlu1 %531  ;;  %v535_v4 = vpop.xlane.xlu0 %534 }
 0x236   : > { %3870 = vrsqrt.f32 %v554_v1  ;;  %v548_v5 = vmul.f32 0.03125, %v532_v3  ;;  %v549_v6 = vmul.f32 0.03125, %v535_v4 }
 0x237   : > { %3872 = vrsqrt.f32 %v555_v2 }
 0x238   : > { %v556_v7 = vadd.f32 1e-05, %v548_v5  ;;  %v557_v8 = vadd.f32 1e-05, %v549_v6 }
 0x239   : > { %v538_v9 = vpop.xlane.xlu1 %537  ;;  %v541_v10 = vpop.xlane.xlu0 %540 }
 0x23a   : > { %3874 = vrsqrt.f32 %v556_v7  ;;  %v550_v11 = vmul.f32 0.03125, %v538_v9  ;;  %v551_v12 = vmul.f32 0.03125, %v541_v10 }
 0x23b   : > { %3876 = vrsqrt.f32 %v557_v8 }
 0x23c   : > { %v3869_v13 = vpop.eup %3868  ;;  %v558_v14 = vadd.f32 1e-05, %v550_v11  ;;  %v559_v15 = vadd.f32 1e-05, %v551_v12 }
 0x23d   : > { %v544_v16 = vpop.xlane.xlu1 %543  ;;  %v569_v17 = vmul.f32 %v3869_v13, %v4772_v20 }
 0x23e   : > { %3878 = vrsqrt.f32 %v558_v14  ;;  %v552_v18 = vmul.f32 0.03125, %v544_v16 }
 0x23f   : > { %3880 = vrsqrt.f32 %v559_v15  ;;  %v584_v26 = vmul.f32 %v3286_v19, %v569_v17 }
 0x240   : > { %v3871_v22 = vpop.eup %3870  ;;  %v560_v23 = vadd.f32 1e-05, %v552_v18 }
 0x241   : > { %v3873_v24 = vpop.eup %3872  ;;  %v570_v25 = vmul.f32 %v3871_v22, %v4780_v28  ;;  %v599_v34 = vadd.f32 %v3287_v27, %v584_v26 }
 0x242   : > { %3882 = vrsqrt.f32 %v560_v23  ;;  %v571_v30 = vmul.f32 %v3873_v24, %v4774_v21 }
 0x243   : > { %v585_v31 = vmul.f32 %v3286_v19, %v570_v25 }
 0x244   : > { %v3875_v32 = vpop.eup %3874  ;;  %v586_v36 = vmul.f32 %v3286_v19, %v571_v30 }
 0x245   : > { %v3877_v33 = vpop.eup %3876  ;;  %v600_v35 = vadd.f32 %v3287_v27, %v585_v31  ;;  %v572_v20 = vmul.f32 %v3875_v32, %v4782_v29 }
 0x246   : > { %v573_v37 = vmul.f32 %v3877_v33, %v4790_v38  ;;  %v601_v28 = vadd.f32 %v3287_v27, %v586_v36 }
 0x247   : > { %v607_v40 = vpack.c.bf16 %v600_v35, %v599_v34  ;;  %v587_v41 = vmul.f32 %v3286_v19, %v572_v20 }
 0x248   : > { %v3879_v42 = vpop.eup %3878  ;;  %v588_v45 = vmul.f32 %v3286_v19, %v573_v37  ;;  %v711_v37 = vld [vmem:[#allocation7] sm:$0xff] }
 0x249   : > { %v3881_v43 = vpop.eup %3880  ;;  %3448 = vmatprep.mubr.msk.bf16.mxu0 %vm471_vm0, %v607_v40  ;;  %v602_v44 = vadd.f32 %v3287_v27, %v587_v41  ;;  %v574_v21 = vmul.f32 %v3879_v42, %v4792_v39  ;;  %v712_v41 = vld [vmem:[#allocation7 + $0x8] sm:$0xff] }
 0x24a   : > { %v575_v46 = vmul.f32 %v3881_v43, %v4800_v48  ;;  %v603_v29 = vadd.f32 %v3287_v27, %v588_v45  ;;  %v4371_v48 = vmov 0.0  }
 0x24b   : > { %v608_v47 = vpack.c.bf16 %v602_v44, %v601_v28  ;;  %v589_v50 = vmul.f32 %v3286_v19, %v574_v21  ;;  %3456 = vmatprep.subr.bf16.mxu1 %v4371_v48  ;;  %3468 = vmatprep.subr.bf16.mxu0 %v4371_v48 }
 0x24c   : > { %v3883_v51 = vpop.eup %3882  ;;  %v590_v53 = vmul.f32 %v3286_v19, %v575_v46  ;;  %v4878_v46 = vld [vmem:[#allocation5 + $0x10] sm:$0xff] }
 0x24d   : > { %3449 = vmatmul.mubr.msk.bf16.vlgmr.msra.gmra.mrb[0].mxu0 %vm471_vm0, %v608_v47  ;;  %v604_v38 = vadd.f32 %v3287_v27, %v589_v50  ;;  %v576_v52 = vmul.f32 %v3883_v51, %v4802_v49 }
 0x24e   : > { %v605_v56 = vadd.f32 %v3287_v27, %v590_v53  ;;  %3470 = vmatprep.mubr.msk.bf16.mxu0 %vm4372_vm1, %v4371_v48 }
 0x24f   : > { %v609_v54 = vpack.c.bf16 %v604_v38, %v603_v29  ;;  %v591_v55 = vmul.f32 %v3286_v19, %v576_v52  ;;  %v4880_v29 = vld [vmem:[#allocation5 + $0x18] sm:$0xff] }
 0x251   : > { %3452 = vmatprep.mubr.msk.bf16.mxu1 %vm471_vm0, %v609_v54  ;;  %v606_v57 = vadd.f32 %v3287_v27, %v591_v55 }
 0x253   : > { %v610_v39 = vpack.c.bf16 %v606_v57, %v605_v56 }
 0x255   : > { %3453 = vmatmul.mubr.msk.bf16.vlgmr.msra.gmra.mrb[0].mxu1 %vm471_vm0, %v610_v39 }
 0x256   : > { %3458 = vmatprep.mubr.msk.bf16.mxu1 %vm4372_vm1, %v4371_v48 }
 0x320   : > { %v3450_v59 = vpop.f32.mrb[0].mxu0 }
 0x321   : > { %v689_v60 = vadd.f32 %v3450_v59, %v3288_v58  ;;  %v680_v61 = vpop.f32.mrb[1].mxu0 }
 0x322   : > { %v681_v49 = vadd.f32 %v3288_v58, %v680_v61  ;;  %v3451_v62 = vpop.f32.mrb[2].mxu0 }
 0x323   : > { %v692_v63 = vadd.f32 %v3451_v62, %v3288_v58  ;;  %v683_v0 = vpop.f32.mrb[3].mxu0  ;;  %v729_v2 = vmul.f32 0.35355338, %v689_v60  ;;  %v4886_v62 = vld [vmem:[#allocation5 + $0x30] sm:$0xff] }
 0x324   : > { %v684_v1 = vadd.f32 %v3288_v58, %v683_v0  ;;  %v727_v5 = vmul.f32 0.35355338, %v681_v49 }
 0x325   : > { %v730_v3 = vmul.f32 0.35355338, %v692_v63  ;;  %v4830_v4 = vpack.c.bf16 %v692_v63, %v689_v60 }
 0x326   : > { %v728_v6 = vmul.f32 0.35355338, %v684_v1  ;;  %v4832_v7 = vpack.c.bf16 %v684_v1, %v681_v49 }
 0x327   : > { %v4834_v8 = vpack.c.bf16 %v730_v3, %v729_v2  ;;  %795 = vrot.lane.b32.xlu1 %v4830_v4, %s4373_s16  ;;  %v4888_v2 = vld [vmem:[#allocation5 + $0x38] sm:$0xff] }
 0x328   : > { %v4837_v9 = vpack.c.bf16 %v728_v6, %v727_v5  ;;  %744 = vrot.lane.b32.xlu0 %v4832_v7, %s4373_s16  ;;  %v3454_v10 = vpop.f32.mrb[0].mxu1 }
 0x329   : > { %v705_v11 = vadd.f32 %v3454_v10, %v3288_v58  ;;  %v696_v12 = vpop.f32.mrb[1].mxu1 }
 0x32a   : > { %v697_v13 = vadd.f32 %v3288_v58, %v696_v12  ;;  %v3455_v14 = vpop.f32.mrb[2].mxu1 }
 0x32b   : > { %v708_v15 = vadd.f32 %v3455_v14, %v3288_v58  ;;  %v699_v16 = vpop.f32.mrb[3].mxu1  ;;  %v733_v18 = vmul.f32 0.35355338, %v705_v11 }
 0x32c   : > { %v700_v17 = vadd.f32 %v3288_v58, %v699_v16  ;;  %v731_v23 = vmul.f32 0.35355338, %v697_v13 }
 0x32d   : > { %v734_v19 = vmul.f32 0.35355338, %v708_v15  ;;  %v4840_v22 = vpack.c.bf16 %v708_v15, %v705_v11 }
 0x32e   : > { %v732_v24 = vmul.f32 0.35355338, %v700_v17  ;;  %v4842_v25 = vpack.c.bf16 %v700_v17, %v697_v13 }
 0x32f   : > { %v4844_v26 = vpack.c.bf16 %v734_v19, %v733_v18  ;;  %895 = vrot.lane.b32.xlu1 %v4840_v22, %s4373_s16 }
 0x330   : > { %v4847_v27 = vpack.c.bf16 %v732_v24, %v731_v23 }
 0x333   : > { %845 = vrot.lane.b32.xlu1 %v4842_v25, %s4373_s16  ;;  %s3111_s16 = sshll.u32 %s459_s29, 4  ;;  %s5365_s16 = int_to_ptr.vmem [resolvable:$true] %s3111_s16 }
 0x399   : > { %v796_v32 = vpop.permute.xlu1 %795 }
 0x39a   : > { %v745_v30 = vpop.permute.xlu0 %744  ;;  %v801_v34 = vsel %vm746_vm2, %v796_v32, 0 }
 0x39b   : > { %v751_v31 = vsel %vm746_vm2, %v745_v30, 0 }
 0x39c   : > { %3457 = vmatpush3.bf16.xpose.msra.mxu1 %v751_v31 }
 0x39d   : > { %3462 = vmatprep.subr.bf16.mxu1 %v4371_v48 }
 0x3a1   : > { %v896_v33 = vpop.permute.xlu1 %895 }
 0x3a2   : > { %v901_v36 = vsel %vm746_vm2, %v896_v33, 0 }
 0x3a3   : > { %3459 = vmatmul.mubr.msk.bf16.vlgmr.msra.gmra.mrb[4].mxu1 %vm746_vm2, %v4837_v9 }
 0x3a4   : > { %3463 = vmatpush3.bf16.xpose.msra.mxu1 %v801_v34  ;;  %3464 = vmatprep.mubr.msk.bf16.mxu1 %vm4372_vm1, %v4371_v48 }
 0x3a5   : > { %v846_v35 = vpop.permute.xlu1 %845  ;;  %3474 = vmatprep.subr.bf16.mxu1 %v4371_v48 }
 0x3a6   : > { %v851_v20 = vsel %vm746_vm2, %v846_v35, 0 }
 0x3a7   : > { %3469 = vmatpush3.bf16.xpose.msra.mxu0 %v851_v20 }
 0x3a8   : > { %3480 = vmatprep.subr.bf16.mxu0 %v4371_v48 }
 0x3ab   : > { %3465 = vmatmul.mubr.msk.bf16.vlgmr.msra.gmra.mrb[8].mxu1 %vm746_vm2, %v4834_v8 }
 0x3ac   : > { %3475 = vmatpush3.bf16.xpose.msra.mxu1 %v901_v36  ;;  %3476 = vmatprep.mubr.msk.bf16.mxu1 %vm4372_vm1, %v4371_v48 }
 0x3ad   : > { %3486 = vmatprep.subr.bf16.mxu1 %v4371_v48 }
 0x3ae   : > { %3471 = vmatmul.mubr.msk.bf16.vlgmr.msra.gmra.mrb[4].mxu0 %vm746_vm2, %v4847_v27 }
 0x3af   : > { %3482 = vmatprep.mubr.msk.bf16.mxu0 %vm4372_vm1, %v4371_v48 }
 0x3b3   : > { %3477 = vmatmul.mubr.msk.bf16.vlgmr.msra.gmra.mrb[12].mxu1 %vm746_vm2, %v4844_v26 }
 0x3b4   : > { %3488 = vmatprep.mubr.msk.bf16.mxu1 %vm4372_vm1, %v4371_v48 }
 0x476   : > { %v787_v40 = vpop.f32.mrb[4].mxu1 }
 0x477   : > { %v4874_v42 = vadd.f32 %v787_v40, %v711_v37  ;;  %v3460_v43 = vpop.f32.mrb[5].mxu1 }
 0x478   : > { %v790_v28 = vpop.f32.mrb[6].mxu1  ;;  %v4904_v43 = vld [vmem:[#allocation5] sm:$0xff] }
 0x479   : > { %v4876_v44 = vadd.f32 %v790_v28, %v712_v41  ;;  %v3461_v21 = vpop.f32.mrb[7].mxu1  ;;  %v944_v28 = vadd.f32 %v4874_v42, %v4904_v43 }
 0x47a   : > { %v4908_v21 = vld [vmem:[#allocation5 + $0x20] sm:$0xff] }
 0x47e   : > { %v837_v45 = vpop.f32.mrb[8].mxu1 }
 0x47f   : > { %v838_v47 = vadd.f32 %v837_v45, %v711_v37  ;;  %v3466_v50 = vpop.f32.mrb[9].mxu1  ;;  %v953_v45 = vsel %vm952_vm3, %v944_v28, -inf }
 0x480   : > { %v840_v51 = vpop.f32.mrb[10].mxu1  ;;  %v4912_v50 = vld [vmem:[#allocation5 + $0x28] sm:$0xff] }
 0x481   : > { %v841_v38 = vadd.f32 %v840_v51, %v712_v41  ;;  %v3467_v52 = vpop.f32.mrb[11].mxu1  ;;  %v887_v53 = vpop.f32.mrb[4].mxu0  ;;  %v946_v54 = vadd.f32 %v838_v47, %v4878_v46 }
 0x482   : > { %v888_v55 = vadd.f32 %v887_v53, %v711_v37  ;;  %v3472_v56 = vpop.f32.mrb[5].mxu0  ;;  %v4926_v52 = vld [vmem:[#allocation5 + $0x8] sm:$0xff] }
 0x483   : > { %v890_v57 = vpop.f32.mrb[6].mxu0  ;;  %v959_v39 = vsel %vm952_vm3, %v946_v54, -inf  ;;  %v947_v58 = vadd.f32 %v841_v38, %v4880_v29  ;;  %v4930_v53 = vadd.f32 %v4876_v44, %v4926_v52 }
 0x484   : > { %v891_v59 = vadd.f32 %v890_v57, %v712_v41  ;;  %v3473_v60 = vpop.f32.mrb[7].mxu0  ;;  %960 = vmax.xlane.f32.xlu0 %v959_v39  ;;  %v948_v47 = vadd.f32 %v888_v55, %v4908_v21 }
 0x485   : > { %v962_v61 = vsel %vm952_vm3, %v947_v58, -inf }
 0x486   : > { %963 = vmax.xlane.f32.xlu1 %v962_v61  ;;  %v937_v49 = vpop.f32.mrb[12].mxu1  ;;  %v965_v51 = vsel %vm952_vm3, %v948_v47, -inf  ;;  %v4916_v38 = vadd.f32 %v891_v59, %v4912_v50 }
 0x487   : > { %v938_v63 = vadd.f32 %v937_v49, %v711_v37  ;;  %v3478_v0 = vpop.f32.mrb[13].mxu1 }
 0x488   : > { %v940_v1 = vpop.f32.mrb[14].mxu1  ;;  %v968_v42 = vsel %vm952_vm3, %v4916_v38, -inf }
 0x489   : > { %v941_v3 = vadd.f32 %v940_v1, %v712_v41  ;;  %v3479_v5 = vpop.f32.mrb[15].mxu1  ;;  %v950_v6 = vadd.f32 %v938_v63, %v4886_v62 }
 0x48b   : > { %v971_v10 = vsel %vm952_vm3, %v950_v6, -inf  ;;  %v951_v11 = vadd.f32 %v941_v3, %v4888_v2 }
 0x48c   : > { %972 = vmax.xlane.f32.xlu0 %v971_v10 }
 0x48d   : > { %v974_v12 = vsel %vm952_vm3, %v951_v11, -inf }
 0x490   : > { %975 = vmax.xlane.f32.xlu0 %v974_v12 }
 0x511   : > { %v961_v13 = vpop.xlane.xlu0 %960 }
 0x512   : > { %v979_v14 = vsub.f32 %v946_v54, %v961_v13  ;;  %v956_v54 = vsel %vm952_vm3, %v4930_v53, -inf }
 0x513   : > { %v964_v15 = vpop.xlane.xlu1 %963 }
 0x514   : > { %v989_v16 = vmul.f32 1.442695, %v979_v14  ;;  %v980_v17 = vsub.f32 %v947_v58, %v964_v15 }
 0x516   : > { %3884 = vpow2.f32 %v989_v16  ;;  %v991_v18 = vmul.f32 1.442695, %v980_v17 }
 0x518   : > { %3886 = vpow2.f32 %v991_v18 }
 0x519   : > { %v973_v19 = vpop.xlane.xlu0 %972 }
 0x51a   : > { %v983_v23 = vsub.f32 %v950_v6, %v973_v19 }
 0x51c   : > { %v997_v24 = vmul.f32 1.442695, %v983_v23 }
 0x51d   : > { %v976_v20 = vpop.xlane.xlu0 %975 }
 0x51e   : > { %3888 = vpow2.f32 %v997_v24  ;;  %v984_v36 = vsub.f32 %v951_v11, %v976_v20 }
 0x520   : > { %v3885_v30 = vpop.eup %3884  ;;  %v999_v37 = vmul.f32 1.442695, %v984_v36 }
 0x521   : > { %v1007_v31 = vsel %vm952_vm3, %v3885_v30, 0.0 }
 0x522   : > { %v3887_v32 = vpop.eup %3886  ;;  %1008 = vadd.xlane.f32.xlu0 %v1007_v31  ;;  %3890 = vpow2.f32 %v999_v37 }
 0x523   : > { %v1010_v33 = vsel %vm952_vm3, %v3887_v32, 0.0 }
 0x524   : > { %1011 = vadd.xlane.f32.xlu1 %v1010_v33 }
 0x528   : > { %v3889_v34 = vpop.eup %3888 }
 0x529   : > { %v1019_v35 = vsel %vm952_vm3, %v3889_v34, 0.0 }
 0x52a   : > { %1020 = vadd.xlane.f32.xlu0 %v1019_v35 }
 0x52c   : > { %v3891_v40 = vpop.eup %3890 }
 0x52d   : > { %v1022_v41 = vsel %vm952_vm3, %v3891_v40, 0.0 }
 0x535   : > { %1186 = vrot.lane.b32.xlu1 %v4840_v22, %s4374_s22 }
 0x540   : > { %1092 = vrot.lane.b32.xlu0 %v4830_v4, %s4374_s22 }
 0x544   : > { %1397 = vrot.lane.b32.xlu0 %v4840_v22, %s4375_s9 }
 0x559   : > { %1023 = vadd.xlane.f32.xlu1 %v1022_v41 }
 0x563   : > { %954 = vmax.xlane.f32.xlu0 %v953_v45 }
 0x567   : > { %966 = vmax.xlane.f32.xlu0 %v965_v51 }
 0x56a   : > { %1293 = vrot.lane.b32.xlu1 %v4830_v4, %s4375_s9 }
 0x56b   : > { %969 = vmax.xlane.f32.xlu0 %v968_v42 }
 0x56e   : > { %1291 = vrot.lane.b32.xlu1 %v4834_v8, %s4376_s21 }
 0x572   : > { %1395 = vrot.lane.b32.xlu1 %v4844_v26, %s4376_s21 }
 0x596   : > { %957 = vmax.xlane.f32.xlu1 %v956_v54 }
 0x5af   : > { %v1009_v55 = vpop.xlane.xlu0 %1008 }
 0x5b0   : > { %3892 = vrcp.f32 %v1009_v55 }
 0x5b1   : > { %v1012_v56 = vpop.xlane.xlu1 %1011 }
 0x5b2   : > { %3894 = vrcp.f32 %v1012_v56 }
 0x5b5   : > { %v1187_v44 = vpop.permute.xlu1 %1186 }
 0x5b7   : > { %v1021_v57 = vpop.xlane.xlu0 %1020 }
 0x5b8   : > { %3896 = vrcp.f32 %v1021_v57 }
 0x5ba   : > { %v3893_v39 = vpop.eup %3892 }
 0x5bb   : > { %v1093_v58 = vpop.permute.xlu0 %1092  ;;  %v1035_v60 = vmul.f32 %v3893_v39, %v3885_v30 }
 0x5bc   : > { %v3895_v59 = vpop.eup %3894  ;;  %3487 = vmatpush3.bf16.msra.mxu1 %v1093_v58 }
 0x5bd   : > { %v1036_v61 = vmul.f32 %v3895_v59, %v3887_v32  ;;  %3498 = vmatprep.subr.bf16.mxu1 %v4371_v48 }
 0x5bf   : > { %v1042_v49 = vpack.c.bf16 %v1036_v61, %v1035_v60  ;;  %v1398_v0 = vpop.permute.xlu0 %1397 }
 0x5c0   : > { %v1403_v23 = vsel %vm746_vm2, %v1398_v0, 0 }
 0x5c1   : > { %3489 = vmatmul.mubr.msk.bf16.vlgmr.msra.gmra.mrb[16].mxu1 %vm952_vm3, %v1042_v49 }
 0x5c2   : > { %3499 = vmatpush3.bf16.msra.mxu1 %v1187_v44  ;;  %3500 = vmatprep.mubr.msk.bf16.mxu1 %vm4372_vm1, %v4371_v48  ;;  %v3897_v1 = vpop.eup %3896 }
 0x5c3   : > { %3510 = vmatprep.subr.bf16.mxu1 %v4371_v48  ;;  %v1039_v10 = vmul.f32 %v3897_v1, %v3889_v34 }
 0x5e6   : > { %v1024_v63 = vpop.xlane.xlu1 %1023 }
 0x5e7   : > { %3898 = vrcp.f32 %v1024_v63 }
 0x5ea   : > { %v1294_v12 = vpop.permute.xlu1 %1293 }
 0x5eb   : > { %v1299_v17 = vsel %vm746_vm2, %v1294_v12, 0 }
 0x5ee   : > { %v1292_v19 = vpop.permute.xlu1 %1291 }
 0x5f0   : > { %v955_v3 = vpop.xlane.xlu0 %954 }
 0x5f1   : > { %v3899_v5 = vpop.eup %3898  ;;  %v977_v6 = vsub.f32 %v944_v28, %v955_v3 }
 0x5f2   : > { %v1040_v11 = vmul.f32 %v3899_v5, %v3891_v40  ;;  %v1396_v33 = vpop.permute.xlu1 %1395 }
 0x5f3   : > { %v985_v13 = vmul.f32 1.442695, %v977_v6  ;;  %v4986_v6 = vld [vmem:[#allocation7 + $0x10] sm:$0xff] }
 0x5f4   : > { %v967_v14 = vpop.xlane.xlu0 %966  ;;  %v1044_v15 = vpack.c.bf16 %v1040_v11, %v1039_v10 }
 0x5f5   : > { %3900 = vpow2.f32 %v985_v13  ;;  %v981_v16 = vsub.f32 %v948_v47, %v967_v14  ;;  %v4989_v13 = vld [vmem:[#allocation7 + $0x18] sm:$0xff] }
 0x5f6   : > { %3501 = vmatmul.mubr.msk.bf16.vlgmr.msra.gmra.mrb[20].mxu1 %vm952_vm3, %v1044_v15 }
 0x5f7   : > { %v993_v18 = vmul.f32 1.442695, %v981_v16  ;;  %3511 = vmatpush3.bf16.xpose.msra.mxu1 %v1299_v17  ;;  %3512 = vmatprep.mubr.msk.bf16.mxu1 %vm4372_vm1, %v4371_v48 }
 0x5f8   : > { %3522 = vmatprep.subr.bf16.mxu1 %v4371_v48  ;;  %v970_v34 = vpop.xlane.xlu0 %969 }
 0x5f9   : > { %3902 = vpow2.f32 %v993_v18  ;;  %v982_v35 = vsub.f32 %v4916_v38, %v970_v34 }
 0x5fb   : > { %v995_v37 = vmul.f32 1.442695, %v982_v35 }
 0x5fe   : > { %3513 = vmatmul.mubr.msk.bf16.vlgmr.msra.gmra.mrb[24].mxu1 %vm746_vm2, %v1292_v19 }
 0x5ff   : > { %v3901_v24 = vpop.eup %3900  ;;  %3523 = vmatpush3.bf16.xpose.msra.mxu1 %v1403_v23  ;;  %3524 = vmatprep.mubr.msk.bf16.mxu1 %vm4372_vm1, %v4371_v48 }
 0x600   : > { %v1001_v30 = vsel %vm952_vm3, %v3901_v24, 0.0  ;;  %3534 = vmatprep.subr.bf16.mxu1 %v4371_v48 }
 0x601   : > { %1002 = vadd.xlane.f32.xlu0 %v1001_v30 }
 0x603   : > { %v4950_v31 = vpop.eup %3902 }
 0x604   : > { %v1013_v32 = vsel %vm952_vm3, %v4950_v31, 0.0 }
 0x605   : > { %1014 = vadd.xlane.f32.xlu0 %v1013_v32 }
 0x606   : > { %3525 = vmatmul.mubr.msk.bf16.vlgmr.msra.gmra.mrb[28].mxu1 %vm746_vm2, %v1396_v33 }
 0x607   : > { %3536 = vmatprep.mubr.msk.bf16.mxu1 %vm4372_vm1, %v4371_v48 }
 0x61b   : > { %1045 = vrot.lane.b32.xlu0 %v4832_v7, %s4374_s22 }
 0x61f   : > { %1345 = vrot.lane.b32.xlu0 %v4842_v25, %s4375_s9 }
 0x623   : > { %v958_v20 = vpop.xlane.xlu1 %957 }
 0x624   : > { %v978_v36 = vsub.f32 %v4930_v53, %v958_v20 }
 0x626   : > { %v987_v40 = vmul.f32 1.442695, %v978_v36 }
 0x628   : > { %3904 = vpow2.f32 %v987_v40 }
 0x629   : > { %3906 = vpow2.f32 %v995_v37 }
 0x632   : > { %v3905_v41 = vpop.eup %3904 }
 0x633   : > { %v1004_v28 = vsel %vm952_vm3, %v3905_v41, 0.0  ;;  %v3907_v45 = vpop.eup %3906 }
 0x634   : > { %1005 = vadd.xlane.f32.xlu1 %v1004_v28  ;;  %v1016_v47 = vsel %vm952_vm3, %v3907_v45, 0.0 }
 0x638   : > { %1017 = vadd.xlane.f32.xlu1 %v1016_v47 }
 0x649   : > { %1139 = vrot.lane.b32.xlu1 %v4842_v25, %s4374_s22 }
 0x64d   : > { %1241 = vrot.lane.b32.xlu1 %v4832_v7, %s4375_s9  ;;  %s5455_s9 = sld [smem:[#allocation26_spill]] }
 0x651   : > { %1239 = vrot.lane.b32.xlu1 %v4837_v9, %s4376_s21 }
 0x655   : > { %1343 = vrot.lane.b32.xlu1 %v4847_v27, %s4376_s21  ;;  %s5363_s21 = scalar_lea.hbm %s5455_s9, %s3353_s26 }
 0x68e   : > { %v1003_v51 = vpop.xlane.xlu0 %1002 }
 0x68f   : > { %3908 = vrcp.f32 %v1003_v51 }
 0x692   : > { %v1015_v38 = vpop.xlane.xlu0 %1014 }
 0x694   : > { %v4973_v42 = vpop.f32.mrb[16].mxu1 }
 0x695   : > { %v3490_v53 = vpop.f32.mrb[17].mxu1 }
 0x696   : > { %v1046_v54 = vpop.permute.xlu0 %1045  ;;  %v4975_v55 = vpop.f32.mrb[18].mxu1 }
 0x697   : > { %v1234_v56 = vpack.c.bf16 %v4975_v55, %v4973_v42  ;;  %3481 = vmatpush3.bf16.msra.mxu0 %v1046_v54  ;;  %v3491_v57 = vpop.f32.mrb[19].mxu1 }
 0x698   : > { %3492 = vmatprep.subr.bf16.mxu0 %v4371_v48 }
 0x699   : > { %v3909_v60 = vpop.eup %3908 }
 0x69a   : > { %v1033_v1 = vmul.f32 %v3909_v60, %v3901_v24  ;;  %v1346_v53 = vpop.permute.xlu0 %1345 }
 0x69b   : > { %v1351_v57 = vsel %vm746_vm2, %v1346_v53, 0 }
 0x6c1   : > { %v1006_v39 = vpop.xlane.xlu1 %1005 }
 0x6c2   : > { %3910 = vrcp.f32 %v1006_v39 }
 0x6c5   : > { %v1018_v58 = vpop.xlane.xlu1 %1017 }
 0x6c6   : > { %3912 = vrcp.f32 %v1018_v58 }
 0x6c7   : > { %3914 = vrcp.f32 %v1015_v38 }
 0x6c9   : > { %v4980_v59 = vpop.f32.mrb[20].mxu1  ;;  %v1140_v11 = vpop.permute.xlu1 %1139 }
 0x6ca   : > { %v3502_v61 = vpop.f32.mrb[21].mxu1 }
 0x6cb   : > { %v4982_v49 = vpop.f32.mrb[22].mxu1 }
 0x6cc   : > { %v3911_v44 = vpop.eup %3910  ;;  %v1236_v63 = vpack.c.bf16 %v4982_v49, %v4980_v59  ;;  %v3503_v0 = vpop.f32.mrb[23].mxu1 }
 0x6cd   : > { %v1034_v3 = vmul.f32 %v3911_v44, %v3905_v41  ;;  %v1242_v34 = vpop.permute.xlu1 %1241 }
 0x6ce   : > { %v1247_v37 = vsel %vm746_vm2, %v1242_v34, 0 }
 0x6cf   : > { %v1041_v5 = vpack.c.bf16 %v1034_v3, %v1033_v1 }
 0x6d0   : > { %v3913_v10 = vpop.eup %3912 }
 0x6d1   : > { %3483 = vmatmul.mubr.msk.bf16.vlgmr.msra.gmra.mrb[8].mxu0 %vm952_vm3, %v1041_v5  ;;  %v1335_v12 = vpop.f32.mrb[24].mxu1  ;;  %v3915_v14 = vpop.eup %3914  ;;  %v1038_v17 = vmul.f32 %v3913_v10, %v3907_v45 }
 0x6d2   : > { %3493 = vmatpush3.bf16.msra.mxu0 %v1140_v11  ;;  %v1336_v15 = vadd.f32 %v1335_v12, %v4986_v6  ;;  %v3514_v16 = vpop.f32.mrb[25].mxu1  ;;  %3494 = vmatprep.mubr.msk.bf16.mxu0 %vm4372_vm1, %v4371_v48  ;;  %v1037_v30 = vmul.f32 %v3915_v14, %v4950_v31  ;;  %v1240_v54 = vpop.permute.xlu1 %1239 }
 0x6d3   : > { %v1338_v18 = vpop.f32.mrb[26].mxu1  ;;  %3504 = vmatprep.subr.bf16.mxu0 %v4371_v48 }
 0x6d4   : > { %v1339_v19 = vadd.f32 %v1338_v18, %v4989_v13  ;;  %v3515_v23 = vpop.f32.mrb[27].mxu1  ;;  %v1448_v24 = vadd.f32 %v1336_v15, %v4878_v46  ;;  %v1043_v35 = vpack.c.bf16 %v1038_v17, %v1037_v30 }
 0x6d6   : > { %v1460_v32 = vsel %vm952_vm3, %v1448_v24, -inf  ;;  %v1449_v33 = vadd.f32 %v1339_v19, %v4880_v29  ;;  %v1344_v58 = vpop.permute.xlu1 %1343 }
 0x6d7   : > { %1461 = vmax.xlane.f32.xlu0 %v1460_v32 }
 0x6d8   : > { %v1463_v20 = vsel %vm952_vm3, %v1449_v33, -inf }
 0x6d9   : > { %3495 = vmatmul.mubr.msk.bf16.vlgmr.msra.gmra.mrb[12].mxu0 %vm952_vm3, %v1043_v35  ;;  %1464 = vmax.xlane.f32.xlu1 %v1463_v20  ;;  %v1439_v36 = vpop.f32.mrb[28].mxu1 }
 0x6da   : > { %v1440_v40 = vadd.f32 %v1439_v36, %v4986_v6  ;;  %v3526_v41 = vpop.f32.mrb[29].mxu1  ;;  %3506 = vmatprep.mubr.msk.bf16.mxu0 %vm4372_vm1, %v4371_v48 }
 0x6db   : > { %3505 = vmatpush3.bf16.xpose.msra.mxu0 %v1247_v37  ;;  %v1442_v31 = vpop.f32.mrb[30].mxu1 }
 0x6dc   : > { %v1443_v28 = vadd.f32 %v1442_v31, %v4989_v13  ;;  %v3527_v45 = vpop.f32.mrb[31].mxu1  ;;  %v1452_v47 = vadd.f32 %v1440_v40, %v4886_v62  ;;  %3516 = vmatprep.subr.bf16.mxu0 %v4371_v48 }
 0x6de   : > { %v1472_v51 = vsel %vm952_vm3, %v1452_v47, -inf  ;;  %v1453_v38 = vadd.f32 %v1443_v28, %v4888_v2 }
 0x6df   : > { %1473 = vmax.xlane.f32.xlu0 %v1472_v51 }
 0x6e0   : > { %v1475_v39 = vsel %vm952_vm3, %v1453_v38, -inf }
 0x6e2   : > { %3507 = vmatmul.mubr.msk.bf16.vlgmr.msra.gmra.mrb[16].mxu0 %vm746_vm2, %v1240_v54 }
 0x6e3   : > { %3517 = vmatpush3.bf16.xpose.msra.mxu0 %v1351_v57  ;;  %1476 = vmax.xlane.f32.xlu0 %v1475_v39 }
 0x6e4   : > { %3518 = vmatprep.mubr.msk.bf16.mxu0 %vm4372_vm1, %v4371_v48  ;;  %3528 = vmatprep.subr.bf16.mxu0 %v4371_v48 }
 0x6ea   : > { %3519 = vmatmul.mubr.msk.bf16.vlgmr.msra.gmra.mrb[20].mxu0 %vm746_vm2, %v1344_v58 }
 0x6eb   : > { %3530 = vmatprep.mubr.msk.bf16.mxu0 %vm4372_vm1, %v4371_v48 }
 0x764   : > { %v1462_v60 = vpop.xlane.xlu0 %1461 }
 0x765   : > { %v1480_v61 = vsub.f32 %v1448_v24, %v1462_v60 }
 0x766   : > { %v1465_v44 = vpop.xlane.xlu1 %1464 }
 0x767   : > { %v1490_v0 = vmul.f32 1.442695, %v1480_v61  ;;  %v1481_v1 = vsub.f32 %v1449_v33, %v1465_v44 }
 0x769   : > { %3916 = vpow2.f32 %v1490_v0  ;;  %v1492_v3 = vmul.f32 1.442695, %v1481_v1 }
 0x76b   : > { %3918 = vpow2.f32 %v1492_v3 }
 0x76c   : > { %v1474_v5 = vpop.xlane.xlu0 %1473 }
 0x76d   : > { %v1484_v10 = vsub.f32 %v1452_v47, %v1474_v5 }
 0x76f   : > { %v1498_v11 = vmul.f32 1.442695, %v1484_v10 }
 0x770   : > { %v1477_v19 = vpop.xlane.xlu0 %1476 }
 0x771   : > { %3920 = vpow2.f32 %v1498_v11  ;;  %v1485_v23 = vsub.f32 %v1453_v38, %v1477_v19 }
 0x773   : > { %v5020_v12 = vpop.eup %3916  ;;  %v1500_v24 = vmul.f32 1.442695, %v1485_v23 }
 0x774   : > { %v1508_v14 = vsel %vm952_vm3, %v5020_v12, 0.0 }
 0x775   : > { %v5024_v15 = vpop.eup %3918  ;;  %1509 = vadd.xlane.f32.xlu0 %v1508_v14  ;;  %3922 = vpow2.f32 %v1500_v24 }
 0x776   : > { %v1511_v16 = vsel %vm952_vm3, %v5024_v15, 0.0 }
 0x777   : > { %1512 = vadd.xlane.f32.xlu1 %v1511_v16 }
 0x77b   : > { %v5028_v17 = vpop.eup %3920 }
 0x77c   : > { %v1520_v18 = vsel %vm952_vm3, %v5028_v17, 0.0 }
 0x77d   : > { %1521 = vadd.xlane.f32.xlu0 %v1520_v18 }
 0x77f   : > { %v5045_v20 = vpop.eup %3922 }
 0x780   : > { %v1523_v36 = vsel %vm952_vm3, %v5045_v20, 0.0 }
 0x788   : > { %1687 = vrot.lane.b32.xlu1 %v4840_v22, %s4377_s17 }
 0x793   : > { %1593 = vrot.lane.b32.xlu0 %v4830_v4, %s4377_s17 }
 0x797   : > { %1954 = vrot.lane.b32.xlu0 %v4830_v4, %s4378_s27 }
 0x79b   : > { %2005 = vrot.lane.b32.xlu0 %v4842_v25, %s4378_s27 }
 0x79f   : > { %2056 = vrot.lane.b32.xlu0 %v4840_v22, %s4378_s27 }
 0x7a4   : > { %v5039_v30 = vpop.f32.mrb[8].mxu0 }
 0x7a5   : > { %v3484_v32 = vpop.f32.mrb[9].mxu0 }
 0x7a6   : > { %v5041_v33 = vpop.f32.mrb[10].mxu0 }
 0x7a7   : > { %v1233_v34 = vpack.c.bf16 %v5041_v33, %v5039_v30  ;;  %v3485_v35 = vpop.f32.mrb[11].mxu0 }
 0x7ac   : > { %v5049_v37 = vpop.f32.mrb[12].mxu0  ;;  %1524 = vadd.xlane.f32.xlu1 %v1523_v36 }
 0x7ad   : > { %v3496_v40 = vpop.f32.mrb[13].mxu0 }
 0x7ae   : > { %v5051_v41 = vpop.f32.mrb[14].mxu0 }
 0x7af   : > { %v1235_v31 = vpack.c.bf16 %v5051_v41, %v5049_v37  ;;  %v3497_v28 = vpop.f32.mrb[15].mxu0 }
 0x7b5   : > { %v1283_v45 = vpop.f32.mrb[16].mxu0 }
 0x7b6   : > { %v1284_v47 = vadd.f32 %v1283_v45, %v4986_v6  ;;  %v3508_v51 = vpop.f32.mrb[17].mxu0 }
 0x7b7   : > { %v1286_v38 = vpop.f32.mrb[18].mxu0 }
 0x7b8   : > { %v3509_v53 = vpop.f32.mrb[19].mxu0  ;;  %v1446_v54 = vadd.f32 %v1284_v47, %v4904_v43  ;;  %v1287_v10 = vadd.f32 %v1286_v38, %v4989_v13 }
 0x7ba   : > { %v1454_v39 = vsel %vm952_vm3, %v1446_v54, -inf  ;;  %v5074_v11 = vadd.f32 %v1287_v10, %v4926_v52 }
 0x7bc   : > { %v1457_v14 = vsel %vm952_vm3, %v5074_v11, -inf }
 0x7bd   : > { %v1387_v57 = vpop.f32.mrb[20].mxu0  ;;  %1903 = vrot.lane.b32.xlu1 %v4832_v7, %s4378_s27  ;;  %s4384_s27 = smov [#allocation17]  }
 0x7be   : > { %v1388_v58 = vadd.f32 %v1387_v57, %v4986_v6  ;;  %v3520_v60 = vpop.f32.mrb[21].mxu0  ;;  %1455 = vmax.xlane.f32.xlu0 %v1454_v39 }
 0x7bf   : > { %v1390_v61 = vpop.f32.mrb[22].mxu0 }
 0x7c0   : > { %v1391_v44 = vadd.f32 %v1390_v61, %v4989_v13  ;;  %v3521_v0 = vpop.f32.mrb[23].mxu0  ;;  %v1450_v1 = vadd.f32 %v1388_v58, %v4908_v21 }
 0x7c1   : > { %1901 = vrot.lane.b32.xlu1 %v4837_v9, %s4379_s18 }
 0x7c2   : > { %v1466_v3 = vsel %vm952_vm3, %v1450_v1, -inf  ;;  %v5065_v5 = vadd.f32 %v1391_v44, %v4912_v50 }
 0x7c3   : > { %1467 = vmax.xlane.f32.xlu0 %v1466_v3 }
 0x7c4   : > { %v1469_v6 = vsel %vm952_vm3, %v5065_v5, -inf }
 0x7c5   : > { %1952 = vrot.lane.b32.xlu1 %v4834_v8, %s4379_s18 }
 0x7c7   : > { %1470 = vmax.xlane.f32.xlu0 %v1469_v6 }
 0x7c9   : > { %2003 = vrot.lane.b32.xlu1 %v4847_v27, %s4379_s18 }
 0x7cd   : > { %2054 = vrot.lane.b32.xlu1 %v4844_v26, %s4379_s18  ;;  %s4278_s18 = sshll.u32 %s4384_s27, 4  ;;  %s4279_s18 = int_to_ptr.vmem [resolvable:$false] %s4278_s18 }
 0x7ce   : > { %p4281_p2 = scmp.lt.s32.totalorder %s5365_s16, %s4279_s18 }
 0x7f1   : > { %1458 = vmax.xlane.f32.xlu1 %v1457_v14 }
 0x802   : > { %v1510_v16 = vpop.xlane.xlu0 %1509 }
 0x803   : > { %3924 = vrcp.f32 %v1510_v16 }
 0x804   : > { %v1513_v18 = vpop.xlane.xlu1 %1512 }
 0x805   : > { %3926 = vrcp.f32 %v1513_v18 }
 0x808   : > { %v1688_v40 = vpop.permute.xlu1 %1687 }
 0x80a   : > { %v1522_v19 = vpop.xlane.xlu0 %1521 }
 0x80b   : > { %3928 = vrcp.f32 %v1522_v19 }
 0x80d   : > { %v3925_v23 = vpop.eup %3924 }
 0x80e   : > { %v1594_v24 = vpop.permute.xlu0 %1593  ;;  %v1536_v35 = vmul.f32 %v3925_v23, %v5020_v12 }
 0x80f   : > { %v3927_v32 = vpop.eup %3926  ;;  %3535 = vmatpush3.bf16.msra.mxu1 %v1594_v24 }
 0x810   : > { %v1537_v13 = vmul.f32 %v3927_v32, %v5024_v15  ;;  %3546 = vmatprep.subr.bf16.mxu1 %v4371_v48 }
 0x812   : > { %v1543_v36 = vpack.c.bf16 %v1537_v13, %v1536_v35  ;;  %v1955_v45 = vpop.permute.xlu0 %1954 }
 0x814   : > { %3537 = vmatmul.mubr.msk.bf16.vlgmr.msra.gmra.mrb[32].mxu1 %vm952_vm3, %v1543_v36 }
 0x815   : > { %3547 = vmatpush3.bf16.msra.mxu1 %v1688_v40  ;;  %3548 = vmatprep.mubr.msk.bf16.mxu1 %vm4372_vm1, %v4371_v48  ;;  %v3929_v12 = vpop.eup %3928 }
 0x816   : > { %3572 = vmatprep.subr.bf16.mxu1 %v4371_v48  ;;  %v2006_v47 = vpop.permute.xlu0 %2005  ;;  %v1540_v15 = vmul.f32 %v3929_v12, %v5028_v17 }
 0x81a   : > { %v2057_v57 = vpop.permute.xlu0 %2056 }
 0x81b   : > { %v2062_v23 = vsel %vm746_vm2, %v2057_v57, 0 }
 0x839   : > { %v1525_v28 = vpop.xlane.xlu1 %1524 }
 0x83a   : > { %3930 = vrcp.f32 %v1525_v28 }
 0x83d   : > { %v1904_v53 = vpop.permute.xlu1 %1903 }
 0x83e   : > { %v1909_v58 = vsel %vm746_vm2, %v1904_v53, 0 }
 0x841   : > { %v1902_v0 = vpop.permute.xlu1 %1901 }
 0x844   : > { %v3931_v51 = vpop.eup %3930 }
 0x845   : > { %v1541_v38 = vmul.f32 %v3931_v51, %v5045_v20  ;;  %v1960_v20 = vsel %vm746_vm2, %v1955_v45, 0  ;;  %v1953_v10 = vpop.permute.xlu1 %1952 }
 0x847   : > { %v1545_v39 = vpack.c.bf16 %v1541_v38, %v1540_v15 }
 0x849   : > { %3549 = vmatmul.mubr.msk.bf16.vlgmr.msra.gmra.mrb[36].mxu1 %vm952_vm3, %v1545_v39  ;;  %v2004_v18 = vpop.permute.xlu1 %2003 }
 0x84a   : > { %3573 = vmatpush3.bf16.xpose.msra.mxu1 %v1909_v58  ;;  %3574 = vmatprep.mubr.msk.bf16.mxu1 %vm4372_vm1, %v4371_v48 }
 0x84b   : > { %v1456_v60 = vpop.xlane.xlu0 %1455  ;;  %3578 = vmatprep.subr.bf16.mxu1 %v4371_v48 }
 0x84c   : > { %v1478_v61 = vsub.f32 %v1446_v54, %v1456_v60  ;;  %v2011_v54 = vsel %vm746_vm2, %v2006_v47, 0 }
 0x84d   : > { %v2055_v24 = vpop.permute.xlu1 %2054 }
 0x84e   : > { %v1486_v44 = vmul.f32 1.442695, %v1478_v61 }
 0x850   : > { %3932 = vpow2.f32 %v1486_v44  ;;  %v1468_v17 = vpop.xlane.xlu0 %1467 }
 0x851   : > { %v1482_v3 = vsub.f32 %v1450_v1, %v1468_v17  ;;  %3575 = vmatmul.mubr.msk.bf16.vlgmr.msra.gmra.mrb[40].mxu1 %vm746_vm2, %v1902_v0 }
 0x852   : > { %3579 = vmatpush3.bf16.xpose.msra.mxu1 %v1960_v20  ;;  %3580 = vmatprep.mubr.msk.bf16.mxu1 %vm4372_vm1, %v4371_v48 }
 0x853   : > { %v1494_v6 = vmul.f32 1.442695, %v1482_v3  ;;  %3584 = vmatprep.subr.bf16.mxu1 %v4371_v48 }
 0x854   : > { %v1471_v32 = vpop.xlane.xlu0 %1470 }
 0x855   : > { %3934 = vpow2.f32 %v1494_v6  ;;  %v1483_v35 = vsub.f32 %v5065_v5, %v1471_v32  ;;  %v715_v6 = vld [vmem:[#allocation7 + $0x20] sm:$0xff] }
 0x857   : > { %v1496_v40 = vmul.f32 1.442695, %v1483_v35 }
 0x859   : > { %3581 = vmatmul.mubr.msk.bf16.vlgmr.msra.gmra.mrb[44].mxu1 %vm746_vm2, %v1953_v10 }
 0x85a   : > { %v5099_v14 = vpop.eup %3932  ;;  %3585 = vmatpush3.bf16.xpose.msra.mxu1 %v2011_v54  ;;  %3586 = vmatprep.mubr.msk.bf16.mxu1 %vm4372_vm1, %v4371_v48  ;;  %v716_v54 = vld [vmem:[#allocation7 + $0x28] sm:$0xff] }
 0x85b   : > { %v1502_v1 = vsel %vm952_vm3, %v5099_v14, 0.0  ;;  %3590 = vmatprep.subr.bf16.mxu1 %v4371_v48 }
 0x85c   : > { %1503 = vadd.xlane.f32.xlu0 %v1502_v1 }
 0x85f   : > { %v5106_v16 = vpop.eup %3934 }
 0x860   : > { %v1514_v19 = vsel %vm952_vm3, %v5106_v16, 0.0 }
 0x861   : > { %1515 = vadd.xlane.f32.xlu0 %v1514_v19  ;;  %3587 = vmatmul.mubr.msk.bf16.vlgmr.msra.gmra.mrb[48].mxu1 %vm746_vm2, %v2004_v18 }
 0x862   : > { %3591 = vmatpush3.bf16.xpose.msra.mxu1 %v2062_v23  ;;  %3592 = vmatprep.mubr.msk.bf16.mxu1 %vm4372_vm1, %v4371_v48 }
 0x863   : > { %3602 = vmatprep.subr.bf16.mxu1 %v4371_v48 }
 0x869   : > { %3593 = vmatmul.mubr.msk.bf16.vlgmr.msra.gmra.mrb[52].mxu1 %vm746_vm2, %v2055_v24 }
 0x86a   : > { %3604 = vmatprep.mubr.msk.bf16.mxu1 %vm4372_vm1, %v4371_v48 }
 0x877   : > { %1546 = vrot.lane.b32.xlu0 %v4832_v7, %s4377_s17 }
 0x87e   : > { %v1459_v13 = vpop.xlane.xlu1 %1458 }
 0x87f   : > { %v1479_v36 = vsub.f32 %v5074_v11, %v1459_v13 }
 0x881   : > { %v1488_v28 = vmul.f32 1.442695, %v1479_v36 }
 0x883   : > { %3936 = vpow2.f32 %v1488_v28 }
 0x884   : > { %3938 = vpow2.f32 %v1496_v40 }
 0x88d   : > { %v3937_v45 = vpop.eup %3936 }
 0x88e   : > { %v1505_v47 = vsel %vm952_vm3, %v3937_v45, 0.0  ;;  %v3939_v12 = vpop.eup %3938 }
 0x88f   : > { %1506 = vadd.xlane.f32.xlu1 %v1505_v47  ;;  %v1517_v51 = vsel %vm952_vm3, %v3939_v12, 0.0 }
 0x893   : > { %1518 = vadd.xlane.f32.xlu1 %v1517_v51 }
 0x8a4   : > { %1640 = vrot.lane.b32.xlu1 %v4842_v25, %s4377_s17  ;;  %s4274_s17 = scalar_lea.vmem %s5365_s16, 1024 }
 0x8a5   : > { %p4275_p12 = scmp.ne.s32.totalorder %s5365_s16, %s4274_s17 }
 0x8a7   : > { %p4276_p1 = pnand %p4275_p12, %p5456_p13 }
 0x8a9   : > { %p4277_p3 = pneg %p4276_p1 }
 0x8e7   : > { %v5126_v15 = vpop.f32.mrb[32].mxu1 }
 0x8e8   : > { %v3538_v5 = vpop.f32.mrb[33].mxu1 }
 0x8e9   : > { %v1504_v38 = vpop.xlane.xlu0 %1503  ;;  %v5128_v11 = vpop.f32.mrb[34].mxu1 }
 0x8ea   : > { %v1735_v53 = vpack.c.bf16 %v5128_v11, %v5126_v15  ;;  %v3539_v57 = vpop.f32.mrb[35].mxu1  ;;  %3940 = vrcp.f32 %v1504_v38 }
 0x8ee   : > { %v1516_v39 = vpop.xlane.xlu0 %1515 }
 0x8f2   : > { %v1547_v58 = vpop.permute.xlu0 %1546 }
 0x8f3   : > { %3529 = vmatpush3.bf16.msra.mxu0 %v1547_v58 }
 0x8f4   : > { %3540 = vmatprep.subr.bf16.mxu0 %v4371_v48  ;;  %v3941_v1 = vpop.eup %3940 }
 0x8f5   : > { %v1534_v36 = vmul.f32 %v3941_v1, %v5099_v14 }
 0x91c   : > { %v1507_v60 = vpop.xlane.xlu1 %1506  ;;  %v5133_v61 = vpop.f32.mrb[36].mxu1 }
 0x91d   : > { %3942 = vrcp.f32 %v1507_v60  ;;  %v3550_v44 = vpop.f32.mrb[37].mxu1 }
 0x91e   : > { %v5135_v0 = vpop.f32.mrb[38].mxu1 }
 0x91f   : > { %v1737_v17 = vpack.c.bf16 %v5135_v0, %v5133_v61  ;;  %v3551_v20 = vpop.f32.mrb[39].mxu1 }
 0x920   : > { %v1519_v3 = vpop.xlane.xlu1 %1518 }
 0x921   : > { %3944 = vrcp.f32 %v1519_v3 }
 0x922   : > { %3946 = vrcp.f32 %v1516_v39 }
 0x924   : > { %v1945_v10 = vpop.f32.mrb[40].mxu1  ;;  %v1641_v57 = vpop.permute.xlu1 %1640 }
 0x925   : > { %v1946_v18 = vadd.f32 %v1945_v10, %v715_v6  ;;  %v3576_v19 = vpop.f32.mrb[41].mxu1 }
 0x926   : > { %v1948_v23 = vpop.f32.mrb[42].mxu1 }
 0x927   : > { %v3943_v24 = vpop.eup %3942  ;;  %v1949_v32 = vadd.f32 %v1948_v23, %v716_v54  ;;  %v3577_v35 = vpop.f32.mrb[43].mxu1  ;;  %v5140_v13 = vadd.f32 %v1946_v18, %v4904_v43 }
 0x928   : > { %v1535_v40 = vmul.f32 %v3943_v24, %v3937_v45 }
 0x929   : > { %v2113_v28 = vsel %vm952_vm3, %v5140_v13, -inf  ;;  %v5146_v47 = vadd.f32 %v1949_v32, %v4926_v52 }
 0x92a   : > { %2114 = vmax.xlane.f32.xlu1 %v2113_v28  ;;  %v1542_v51 = vpack.c.bf16 %v1535_v40, %v1534_v36 }
 0x92b   : > { %v3945_v5 = vpop.eup %3944  ;;  %v2116_v38 = vsel %vm952_vm3, %v5146_v47, -inf }
 0x92c   : > { %3531 = vmatmul.mubr.msk.bf16.vlgmr.msra.gmra.mrb[24].mxu0 %vm952_vm3, %v1542_v51  ;;  %2117 = vmax.xlane.f32.xlu0 %v2116_v38  ;;  %v1996_v43 = vpop.f32.mrb[44].mxu1  ;;  %v3947_v39 = vpop.eup %3946  ;;  %v1539_v52 = vmul.f32 %v3945_v5, %v3939_v12 }
 0x92d   : > { %3541 = vmatpush3.bf16.msra.mxu0 %v1641_v57  ;;  %v1997_v14 = vadd.f32 %v1996_v43, %v715_v6  ;;  %v3582_v45 = vpop.f32.mrb[45].mxu1  ;;  %3542 = vmatprep.mubr.msk.bf16.mxu0 %vm4372_vm1, %v4371_v48  ;;  %v1538_v3 = vmul.f32 %v3947_v39, %v5106_v16 }
 0x92e   : > { %v1999_v58 = vpop.f32.mrb[46].mxu1  ;;  %v1739_v45 = vld [vmem:[#allocation14 + $0x4] sm:$0xf] }
 0x92f   : > { %v2000_v60 = vadd.f32 %v1999_v58, %v716_v54  ;;  %v3583_v44 = vpop.f32.mrb[47].mxu1  ;;  %v2107_v20 = vadd.f32 %v1997_v14, %v4878_v46  ;;  %v1544_v18 = vpack.c.bf16 %v1539_v52, %v1538_v3  ;;  %3716 = vmatprep.subr.msk.bf16.mxu0 %vm1752_vm4, %v1739_v45 }
 0x931   : > { %v2119_v10 = vsel %vm952_vm3, %v2107_v20, -inf  ;;  %v2108_v1 = vadd.f32 %v2000_v60, %v4880_v29 }
 0x932   : > { %2120 = vmax.xlane.f32.xlu0 %v2119_v10 }
 0x933   : > { %v2122_v19 = vsel %vm952_vm3, %v2108_v1, -inf }
 0x934   : > { %3543 = vmatmul.mubr.msk.bf16.vlgmr.msra.gmra.mrb[28].mxu0 %vm952_vm3, %v1544_v18  ;;  %2123 = vmax.xlane.f32.xlu1 %v2122_v19  ;;  %v2047_v23 = vpop.f32.mrb[48].mxu1 }
 0x935   : > { %v2048_v12 = vadd.f32 %v2047_v23, %v715_v6  ;;  %v3588_v24 = vpop.f32.mrb[49].mxu1 }
 0x936   : > { %v2050_v32 = vpop.f32.mrb[50].mxu1 }
 0x937   : > { %v2051_v35 = vadd.f32 %v2050_v32, %v716_v54  ;;  %v3589_v36 = vpop.f32.mrb[51].mxu1  ;;  %v2109_v46 = vadd.f32 %v2048_v12, %v4908_v21 }
 0x939   : > { %v2125_v16 = vsel %vm952_vm3, %v2109_v46, -inf  ;;  %v2110_v40 = vadd.f32 %v2051_v35, %v4912_v50 }
 0x93a   : > { %2126 = vmax.xlane.f32.xlu0 %v2125_v16 }
 0x93b   : > { %v2128_v29 = vsel %vm952_vm3, %v2110_v40, -inf }
 0x93c   : > { %2129 = vmax.xlane.f32.xlu1 %v2128_v29  ;;  %v2098_v28 = vpop.f32.mrb[52].mxu1 }
 0x93d   : > { %v2099_v51 = vadd.f32 %v2098_v28, %v715_v6  ;;  %v3594_v5 = vpop.f32.mrb[53].mxu1  ;;  %v1754_v6 = vsel %vm1752_vm4, %v1739_v45, 0 }
 0x93e   : > { %v2101_v38 = vpop.f32.mrb[54].mxu1  ;;  %3553 = vmatpush3.bf16.msra.mxu0 %v1754_v6 }
 0x93f   : > { %v2102_v57 = vadd.f32 %v2101_v38, %v716_v54  ;;  %v3595_v43 = vpop.f32.mrb[55].mxu1  ;;  %v2111_v39 = vadd.f32 %v2099_v51, %v4886_v62  ;;  %v5172_v54 = vld [vmem:[#allocation14] sm:$0xf] }
 0x940   : > { %3717 = vmatprep.subr.msk.bf16.mxu0 %vm1752_vm4, %v5172_v54 }
 0x941   : > { %v2131_v14 = vsel %vm952_vm3, %v2111_v39, -inf  ;;  %v5166_v21 = vadd.f32 %v2102_v57, %v4888_v2 }
 0x942   : > { %2132 = vmax.xlane.f32.xlu0 %v2131_v14 }
 0x943   : > { %v2134_v50 = vsel %vm952_vm3, %v5166_v21, -inf }
 0x944   : > { %2135 = vmax.xlane.f32.xlu1 %v2134_v50 }
 0x9b7   : > { %v2115_v62 = vpop.xlane.xlu1 %2114 }
 0x9b8   : > { %v2137_v2 = vsub.f32 %v5140_v13, %v2115_v62 }
 0x9b9   : > { %v2118_v52 = vpop.xlane.xlu0 %2117 }
 0x9ba   : > { %v2145_v58 = vmul.f32 1.442695, %v2137_v2  ;;  %v2138_v60 = vsub.f32 %v5146_v47, %v2118_v52 }
 0x9bc   : > { %3948 = vpow2.f32 %v2145_v58  ;;  %v2147_v44 = vmul.f32 1.442695, %v2138_v60 }
 0x9be   : > { %3950 = vpow2.f32 %v2147_v44 }
 0x9bf   : > { %v2121_v3 = vpop.xlane.xlu0 %2120 }
 0x9c0   : > { %v2139_v10 = vsub.f32 %v2107_v20, %v2121_v3 }
 0x9c1   : > { %v2124_v18 = vpop.xlane.xlu1 %2123 }
 0x9c2   : > { %v2149_v19 = vmul.f32 1.442695, %v2139_v10  ;;  %v2140_v23 = vsub.f32 %v2108_v1, %v2124_v18  ;;  %v1834_v18 = vsel %vm1752_vm4, %v5172_v54, 0 }
 0x9c4   : > { %3952 = vpow2.f32 %v2149_v19  ;;  %v2151_v12 = vmul.f32 1.442695, %v2140_v23 }
 0x9c6   : > { %v5178_v24 = vpop.eup %3948  ;;  %3954 = vpow2.f32 %v2151_v12 }
 0x9c7   : > { %v2127_v32 = vpop.xlane.xlu0 %2126  ;;  %v2161_v13 = vsel %vm952_vm3, %v5178_v24, 0.0 }
 0x9c8   : > { %v5182_v35 = vpop.eup %3950  ;;  %v2141_v47 = vsub.f32 %v2109_v46, %v2127_v32  ;;  %2162 = vadd.xlane.f32.xlu0 %v2161_v13 }
 0x9c9   : > { %v2130_v36 = vpop.xlane.xlu1 %2129  ;;  %v2164_v20 = vsel %vm952_vm3, %v5182_v35, 0.0 }
 0x9ca   : > { %v2153_v16 = vmul.f32 1.442695, %v2141_v47  ;;  %v2142_v29 = vsub.f32 %v2110_v40, %v2130_v36  ;;  %2165 = vadd.xlane.f32.xlu1 %v2164_v20 }
 0x9cc   : > { %3956 = vpow2.f32 %v2153_v16  ;;  %v2155_v1 = vmul.f32 1.442695, %v2142_v29 }
 0x9ce   : > { %v5186_v28 = vpop.eup %3952  ;;  %3958 = vpow2.f32 %v2155_v1 }
 0x9cf   : > { %v2133_v51 = vpop.xlane.xlu0 %2132  ;;  %v2167_v5 = vsel %vm952_vm3, %v5186_v28, 0.0 }
 0x9d0   : > { %v5190_v38 = vpop.eup %3954  ;;  %v2143_v46 = vsub.f32 %v2111_v39, %v2133_v51  ;;  %2168 = vadd.xlane.f32.xlu0 %v2167_v5 }
 0x9d1   : > { %v2170_v57 = vsel %vm952_vm3, %v5190_v38, 0.0  ;;  %v2136_v62 = vpop.xlane.xlu1 %2135 }
 0x9d2   : > { %v2157_v43 = vmul.f32 1.442695, %v2143_v46  ;;  %2171 = vadd.xlane.f32.xlu1 %v2170_v57  ;;  %v2144_v2 = vsub.f32 %v5166_v21, %v2136_v62 }
 0x9d4   : > { %3960 = vpow2.f32 %v2157_v43  ;;  %v2159_v60 = vmul.f32 1.442695, %v2144_v2 }
 0x9d6   : > { %v5194_v40 = vpop.eup %3956  ;;  %3962 = vpow2.f32 %v2159_v60 }
 0x9d7   : > { %v2173_v14 = vsel %vm952_vm3, %v5194_v40, 0.0 }
 0x9d8   : > { %v5198_v50 = vpop.eup %3958  ;;  %2174 = vadd.xlane.f32.xlu0 %v2173_v14 }
 0x9d9   : > { %v2176_v45 = vsel %vm952_vm3, %v5198_v50, 0.0 }
 0x9da   : > { %2177 = vadd.xlane.f32.xlu1 %v2176_v45 }
 0x9de   : > { %v5202_v39 = vpop.eup %3960 }
 0x9df   : > { %v2179_v6 = vsel %vm952_vm3, %v5202_v39, 0.0 }
 0x9e0   : > { %2180 = vadd.xlane.f32.xlu0 %v2179_v6 }
 0x9eb   : > { %2252 = vrot.lane.b32.xlu1 %v4830_v4, %s4380_s23 }
 0x9ef   : > { %2299 = vrot.lane.b32.xlu1 %v4842_v25, %s4380_s23 }
 0x9f6   : > { %2205 = vrot.lane.b32.xlu0 %v4832_v7, %s4380_s23 }
 0x9fa   : > { %2489 = vrot.lane.b32.xlu0 %v4832_v7, %s4381_s28 }
 0x9fe   : > { %2540 = vrot.lane.b32.xlu0 %v4830_v4, %s4381_s28 }
 0x9ff   : > { %v1586_v52 = vpop.f32.mrb[24].mxu0 }
 0xa00   : > { %v3532_v58 = vpop.f32.mrb[25].mxu0 }
 0xa01   : > { %v1589_v44 = vpop.f32.mrb[26].mxu0 }
 0xa02   : > { %v1734_v3 = vpack.c.bf16 %v1589_v44, %v1586_v52  ;;  %v3533_v10 = vpop.f32.mrb[27].mxu0  ;;  %2538 = vrot.lane.b32.xlu0 %v4834_v8, %s4382_s13 }
 0xa04   : > { %3554 = vmatprep.mubr.msk.bf16.mxu0 %vm746_vm2, %v1734_v3 }
 0xa05   : > { %3555 = vmatmul.mubr.msk.bf16.vlgmr.msra.gmra.mrb[32].mxu0 %vm746_vm2, %v1735_v53 }
 0xa06   : > { %2589 = vrot.lane.b32.xlu0 %v4847_v27, %s4382_s13  ;;  %3563 = vmatpush3.bf16.msra.mxu0 %v1834_v18  ;;  %v3963_v27 = vpop.eup %3962 }
 0xa07   : > { %v1680_v21 = vpop.f32.mrb[28].mxu0  ;;  %3596 = vmatprep.subr.bf16.mxu0 %v4371_v48  ;;  %v2182_v15 = vsel %vm952_vm3, %v3963_v27, 0.0 }
 0xa08   : > { %v3544_v19 = vpop.f32.mrb[29].mxu0 }
 0xa09   : > { %v1683_v23 = vpop.f32.mrb[30].mxu0 }
 0xa0a   : > { %v1736_v8 = vpack.c.bf16 %v1683_v23, %v1680_v21  ;;  %v3545_v12 = vpop.f32.mrb[31].mxu0 }
 0xa0c   : > { %3558 = vmatprep.mubr.msk.bf16.mxu0 %vm746_vm2, %v1736_v8 }
 0xa0d   : > { %3559 = vmatmul.mubr.msk.bf16.gmra.mrb[36].mxu0 %vm746_vm2, %v1737_v17 }
 0xa0e   : > { %3564 = vmatprep.mubr.msk.bf16.mxu0 %vm746_vm2, %v1233_v34 }
 0xa13   : > { %2183 = vadd.xlane.f32.xlu1 %v2182_v15 }
 0xa15   : > { %3565 = vmatmul.mubr.msk.bf16.vlgmr.msra.gmra.mrb[32].mxu0 %vm746_vm2, %v1234_v56 }
 0xa16   : > { %3568 = vmatprep.mubr.msk.bf16.mxu0 %vm746_vm2, %v1235_v31 }
 0xa1d   : > { %3569 = vmatmul.mubr.msk.bf16.gmra.mrb[36].mxu0 %vm746_vm2, %v1236_v63 }
 0xa1e   : > { %3598 = vmatprep.mubr.msk.bf16.mxu0 %vm4372_vm1, %v4371_v48 }
 0xa24   : > { %2346 = vrot.lane.b32.xlu1 %v4840_v22, %s4380_s23  ;;  %s4280_s23 = scalar_lea.vmem %s4279_s18, 2048 }
 0xa25   : > { %p4282_p8 = scmp.lt.s32.totalorder %s4280_s23, %s4274_s17 }
 0xa27   : > { %p4283_p4 = por %p4282_p8, %p4281_p2 }
 0xa28   : > { %2487 = vrot.lane.b32.xlu1 %v4837_v9, %s4382_s13 }
 0xa29   : > { %p4284_p10 = pnand %p4283_p4, %p4277_p3 }
 0xa2c   : > { %2591 = vrot.lane.b32.xlu1 %v4842_v25, %s4381_s28 }
 0xa30   : > { %2642 = vrot.lane.b32.xlu1 %v4840_v22, %s4381_s28 }
 0xa34   : > { %2640 = vrot.lane.b32.xlu1 %v4844_v26, %s4382_s13 }
 0xa55   : > { %v2163_v42 = vpop.xlane.xlu0 %2162 }
 0xa57   : > { %v2166_v55 = vpop.xlane.xlu1 %2165 }
 0xa5d   : > { %v2169_v56 = vpop.xlane.xlu0 %2168 }
 0xa5e   : > { %3964 = vrcp.f32 %v2169_v56 }
 0xa5f   : > { %v2172_v59 = vpop.xlane.xlu1 %2171 }
 0xa60   : > { %3966 = vrcp.f32 %v2172_v59 }
 0xa61   : > { %3968 = vrcp.f32 %v2166_v55 }
 0xa62   : > { %3970 = vrcp.f32 %v2163_v42 }
 0xa65   : > { %v2175_v30 = vpop.xlane.xlu0 %2174 }
 0xa67   : > { %v2178_v49 = vpop.xlane.xlu1 %2177 }
 0xa68   : > { %v3965_v63 = vpop.eup %3964  ;;  %3972 = vrcp.f32 %v2178_v49 }
 0xa69   : > { %v2195_v33 = vmul.f32 %v3965_v63, %v5186_v28  ;;  %3974 = vrcp.f32 %v2175_v30  ;;  %v717_v30 = vld [vmem:[#allocation7 + $0x30] sm:$0xff] }
 0xa6a   : > { %v3967_v9 = vpop.eup %3966 }
 0xa6b   : > { %v2196_v34 = vmul.f32 %v3967_v9, %v5190_v38  ;;  %v2253_v37 = vpop.permute.xlu1 %2252  ;;  %v3969_v41 = vpop.eup %3968 }
 0xa6c   : > { %3603 = vmatpush3.bf16.msra.mxu1 %v2253_v37  ;;  %v3971_v11 = vpop.eup %3970  ;;  %v2194_v53 = vmul.f32 %v3969_v41, %v5182_v35 }
 0xa6d   : > { %v2181_v26 = vpop.xlane.xlu0 %2180  ;;  %v2202_v31 = vpack.c.bf16 %v2196_v34, %v2195_v33  ;;  %3614 = vmatprep.subr.bf16.mxu1 %v4371_v48  ;;  %v2193_v61 = vmul.f32 %v3971_v11, %v5178_v24  ;;  %v718_v33 = vld [vmem:[#allocation7 + $0x38] sm:$0xff] }
 0xa6e   : > { %3976 = vrcp.f32 %v2181_v26  ;;  %v4012_v26 = vld [vmem:[#allocation5] sm:$0xff] }
 0xa6f   : > { %3605 = vmatmul.mubr.msk.bf16.vlgmr.msra.gmra.mrb[56].mxu1 %vm952_vm3, %v2202_v31  ;;  %v2201_v17 = vpack.c.bf16 %v2194_v53, %v2193_v61  ;;  %v2300_v32 = vpop.permute.xlu1 %2299 }
 0xa70   : > { %3616 = vmatprep.mubr.msk.bf16.mxu1 %vm4372_vm1, %v4371_v48 }
 0xa71   : > { %v2206_v0 = vpop.permute.xlu0 %2205 }
 0xa72   : > { %3597 = vmatpush3.bf16.msra.mxu0 %v2206_v0  ;;  %v3973_v54 = vpop.eup %3972  ;;  %v4013_v0 = vld [vmem:[#allocation5 + $0x8] sm:$0xff] }
 0xa73   : > { %3608 = vmatprep.subr.bf16.mxu0 %v4371_v48  ;;  %v3975_v13 = vpop.eup %3974  ;;  %v2198_v35 = vmul.f32 %v3973_v54, %v5198_v50 }
 0xa74   : > { %v2197_v47 = vmul.f32 %v3975_v13, %v5194_v40 }
 0xa75   : > { %3599 = vmatmul.mubr.msk.bf16.vlgmr.msra.gmra.mrb[40].mxu0 %vm952_vm3, %v2201_v17  ;;  %v2490_v51 = vpop.permute.xlu0 %2489 }
 0xa76   : > { %3609 = vmatpush3.bf16.msra.mxu0 %v2300_v32  ;;  %3610 = vmatprep.mubr.msk.bf16.mxu0 %vm4372_vm1, %v4371_v48  ;;  %v2203_v36 = vpack.c.bf16 %v2198_v35, %v2197_v47  ;;  %v2495_v38 = vsel %vm746_vm2, %v2490_v51, 0 }
 0xa78   : > { %v3977_v16 = vpop.eup %3976 }
 0xa79   : > { %v2199_v1 = vmul.f32 %v3977_v16, %v5202_v39  ;;  %v2541_v57 = vpop.permute.xlu0 %2540  ;;  %v2398_v39 = vld [vmem:[#allocation14 + $0x8] sm:$0xf] }
 0xa7a   : > { %v2546_v40 = vsel %vm746_vm2, %v2541_v57, 0  ;;  %3718 = vmatprep.subr.msk.bf16.mxu0 %vm1752_vm4, %v2398_v39  ;;  %v2412_v6 = vsel %vm1752_vm4, %v2398_v39, 0 }
 0xa7d   : > { %3611 = vmatmul.mubr.msk.bf16.vlgmr.msra.gmra.mrb[44].mxu0 %vm952_vm3, %v2203_v36  ;;  %v2539_v50 = vpop.permute.xlu0 %2538 }
 0xa7e   : > { %3621 = vmatpush3.bf16.msra.mxu0 %v2412_v6 }
 0xa7f   : > { %3642 = vmatprep.subr.bf16.mxu0 %v4371_v48 }
 0xa81   : > { %v2590_v61 = vpop.permute.xlu0 %2589 }
 0xaa0   : > { %v2184_v24 = vpop.xlane.xlu1 %2183 }
 0xaa1   : > { %3978 = vrcp.f32 %v2184_v24  ;;  %v4014_v24 = vld [vmem:[#allocation5 + $0x10] sm:$0xff] }
 0xaa4   : > { %v2347_v20 = vpop.permute.xlu1 %2346 }
 0xaa5   : > { %3615 = vmatpush3.bf16.msra.mxu1 %v2347_v20 }
 0xaa6   : > { %3630 = vmatprep.subr.bf16.mxu1 %v4371_v48 }
 0xaa8   : > { %v2488_v46 = vpop.permute.xlu1 %2487 }
 0xaab   : > { %v3979_v29 = vpop.eup %3978 }
 0xaac   : > { %v2200_v28 = vmul.f32 %v3979_v29, %v3963_v27  ;;  %v2592_v43 = vpop.permute.xlu1 %2591 }
 0xaad   : > { %v2597_v23 = vsel %vm746_vm2, %v2592_v43, 0 }
 0xaae   : > { %v2204_v5 = vpack.c.bf16 %v2200_v28, %v2199_v1  ;;  %v4015_v1 = vld [vmem:[#allocation5 + $0x18] sm:$0xff] }
 0xab0   : > { %3617 = vmatmul.mubr.msk.bf16.vlgmr.msra.gmra.mrb[60].mxu1 %vm952_vm3, %v2204_v5  ;;  %v2643_v14 = vpop.permute.xlu1 %2642 }
 0xab1   : > { %3631 = vmatpush3.bf16.xpose.msra.mxu1 %v2495_v38  ;;  %3632 = vmatprep.mubr.msk.bf16.mxu1 %vm4372_vm1, %v4371_v48  ;;  %v2648_v45 = vsel %vm746_vm2, %v2643_v14, 0 }
 0xab2   : > { %3636 = vmatprep.subr.bf16.mxu1 %v4371_v48 }
 0xab4   : > { %v2641_v62 = vpop.permute.xlu1 %2640 }
 0xab8   : > { %3633 = vmatmul.mubr.msk.bf16.vlgmr.msra.gmra.mrb[64].mxu1 %vm746_vm2, %v2488_v46 }
 0xab9   : > { %3637 = vmatpush3.bf16.xpose.msra.mxu1 %v2546_v40  ;;  %3638 = vmatprep.mubr.msk.bf16.mxu1 %vm4372_vm1, %v4371_v48 }
 0xaba   : > { %3648 = vmatprep.subr.bf16.mxu1 %v4371_v48 }
 0xac0   : > { %3639 = vmatmul.mubr.msk.bf16.vlgmr.msra.gmra.mrb[68].mxu1 %vm746_vm2, %v2539_v50 }
 0xac1   : > { %3649 = vmatpush3.bf16.xpose.msra.mxu1 %v2648_v45  ;;  %3650 = vmatprep.mubr.msk.bf16.mxu1 %vm4372_vm1, %v4371_v48 }
 0xac2   : > { %3660 = vmatprep.subr.bf16.mxu1 %v4371_v48 }
 0xac8   : > { %3651 = vmatmul.mubr.msk.bf16.vlgmr.msra.gmra.mrb[72].mxu1 %vm746_vm2, %v2641_v62 }
 0xac9   : > { %3662 = vmatprep.mubr.msk.bf16.mxu1 %vm4372_vm1, %v4371_v48 }
 0xb42   : > { %v2292_v2 = vpop.f32.mrb[56].mxu1 }
 0xb43   : > { %v3606_v52 = vpop.f32.mrb[57].mxu1 }
 0xb44   : > { %v2295_v58 = vpop.f32.mrb[58].mxu1 }
 0xb45   : > { %v2394_v60 = vpack.c.bf16 %v2295_v58, %v2292_v2  ;;  %v3607_v44 = vpop.f32.mrb[59].mxu1 }
 0xb48   : > { %v2245_v3 = vpop.f32.mrb[40].mxu0 }
 0xb49   : > { %v3600_v10 = vpop.f32.mrb[41].mxu0 }
 0xb4a   : > { %v2248_v18 = vpop.f32.mrb[42].mxu0 }
 0xb4b   : > { %v2393_v21 = vpack.c.bf16 %v2248_v18, %v2245_v3  ;;  %v3601_v19 = vpop.f32.mrb[43].mxu0 }
 0xb4d   : > { %3622 = vmatprep.mubr.msk.bf16.mxu0 %vm746_vm2, %v2393_v21 }
 0xb4e   : > { %3623 = vmatmul.mubr.msk.bf16.vlgmr.msra.gmra.mrb[32].mxu0 %vm746_vm2, %v2394_v60 }
 0xb4f   : > { %3643 = vmatpush3.bf16.xpose.msra.mxu0 %v2597_v23 }
 0xb50   : > { %v2339_v8 = vpop.f32.mrb[44].mxu0  ;;  %3654 = vmatprep.subr.bf16.mxu0 %v4371_v48 }
 0xb51   : > { %v3612_v12 = vpop.f32.mrb[45].mxu0 }
 0xb52   : > { %v2342_v27 = vpop.f32.mrb[46].mxu0 }
 0xb53   : > { %v2395_v15 = vpack.c.bf16 %v2342_v27, %v2339_v8  ;;  %v3613_v42 = vpop.f32.mrb[47].mxu0  ;;  %v4016_v8 = vld [vmem:[#allocation5 + $0x20] sm:$0xff] }
 0xb54   : > { %v4017_v42 = vld [vmem:[#allocation5 + $0x30] sm:$0xff] }
 0xb55   : > { %3626 = vmatprep.mubr.msk.bf16.mxu0 %vm746_vm2, %v2395_v15 }
 0xb83   : > { %v2386_v55 = vpop.f32.mrb[60].mxu1 }
 0xb84   : > { %v3618_v56 = vpop.f32.mrb[61].mxu1 }
 0xb85   : > { %v2389_v59 = vpop.f32.mrb[62].mxu1  ;;  %v4018_v56 = vld [vmem:[#allocation5 + $0x28] sm:$0xff] }
 0xb86   : > { %v2396_v49 = vpack.c.bf16 %v2389_v59, %v2386_v55  ;;  %v3619_v63 = vpop.f32.mrb[63].mxu1 }
 0xb87   : > { %v4019_v63 = vld [vmem:[#allocation5 + $0x38] sm:$0xff] }
 0xb88   : > { %3627 = vmatmul.mubr.msk.bf16.gmra.mrb[36].mxu0 %vm746_vm2, %v2396_v49 }
 0xb89   : > { %3644 = vmatprep.mubr.msk.bf16.mxu0 %vm4372_vm1, %v4371_v48 }
 0xb8b   : > { %v2531_v9 = vpop.f32.mrb[64].mxu1 }
 0xb8c   : > { %v2532_v34 = vadd.f32 %v2531_v9, %v717_v30  ;;  %v3634_v37 = vpop.f32.mrb[65].mxu1 }
 0xb8d   : > { %v2534_v41 = vpop.f32.mrb[66].mxu1 }
 0xb8e   : > { %v2691_v31 = vadd.f32 %v4012_v26, %v2532_v34  ;;  %v2535_v11 = vadd.f32 %v2534_v41, %v718_v33  ;;  %v3635_v53 = vpop.f32.mrb[67].mxu1 }
 0xb90   : > { %v2692_v17 = vadd.f32 %v4013_v0, %v2535_v11  ;;  %3645 = vmatmul.mubr.msk.bf16.vlgmr.msra.gmra.mrb[48].mxu0 %vm746_vm2, %v2590_v61  ;;  %v2699_v54 = vsel %vm952_vm3, %v2691_v31, -inf }
 0xb91   : > { %2700 = vmax.xlane.f32.xlu0 %v2699_v54  ;;  %3656 = vmatprep.mubr.msk.bf16.mxu0 %vm4372_vm1, %v4371_v48 }
 0xb92   : > { %v2702_v32 = vsel %vm952_vm3, %v2692_v17, -inf }
 0xb93   : > { %2703 = vmax.xlane.f32.xlu1 %v2702_v32  ;;  %v2582_v13 = vpop.f32.mrb[68].mxu1 }
 0xb94   : > { %v2583_v35 = vadd.f32 %v2582_v13, %v717_v30  ;;  %v3640_v47 = vpop.f32.mrb[69].mxu1 }
 0xb95   : > { %v2585_v36 = vpop.f32.mrb[70].mxu1 }
 0xb96   : > { %v2693_v20 = vadd.f32 %v4014_v24, %v2583_v35  ;;  %v2586_v16 = vadd.f32 %v2585_v36, %v718_v33  ;;  %v3641_v29 = vpop.f32.mrb[71].mxu1 }
 0xb98   : > { %v2694_v28 = vadd.f32 %v4015_v1, %v2586_v16  ;;  %v2705_v51 = vsel %vm952_vm3, %v2693_v20, -inf }
 0xb99   : > { %2706 = vmax.xlane.f32.xlu0 %v2705_v51 }
 0xb9a   : > { %v2708_v46 = vsel %vm952_vm3, %v2694_v28, -inf }
 0xb9b   : > { %v2684_v5 = vpop.f32.mrb[72].mxu1 }
 0xb9c   : > { %v3652_v38 = vpop.f32.mrb[73].mxu1  ;;  %v2685_v3 = vadd.f32 %v2684_v5, %v717_v30 }
 0xb9d   : > { %2709 = vmax.xlane.f32.xlu0 %v2708_v46  ;;  %v2687_v57 = vpop.f32.mrb[74].mxu1 }
 0xb9e   : > { %v3653_v43 = vpop.f32.mrb[75].mxu1  ;;  %v2688_v23 = vadd.f32 %v2687_v57, %v718_v33  ;;  %v2697_v55 = vadd.f32 %v4017_v42, %v2685_v3 }
 0xba0   : > { %v2717_v34 = vsel %vm952_vm3, %v2697_v55, -inf }
 0xc1e   : > { %v2701_v40 = vpop.xlane.xlu0 %2700 }
 0xc1f   : > { %v2723_v45 = vsub.f32 %v2691_v31, %v2701_v40 }
 0xc20   : > { %v2704_v50 = vpop.xlane.xlu1 %2703 }
 0xc21   : > { %v2724_v39 = vsub.f32 %v2692_v17, %v2704_v50  ;;  %v2731_v62 = vmul.f32 1.442695, %v2723_v45 }
 0xc23   : > { %v2733_v52 = vmul.f32 1.442695, %v2724_v39  ;;  %3980 = vpow2.f32 %v2731_v62 }
 0xc25   : > { %3982 = vpow2.f32 %v2733_v52 }
 0xc26   : > { %v2707_v14 = vpop.xlane.xlu0 %2706 }
 0xc27   : > { %v2725_v2 = vsub.f32 %v2693_v20, %v2707_v14 }
 0xc29   : > { %v2735_v60 = vmul.f32 1.442695, %v2725_v2 }
 0xc2a   : > { %v2710_v6 = vpop.xlane.xlu0 %2709 }
 0xc2b   : > { %v2726_v58 = vsub.f32 %v2694_v28, %v2710_v6  ;;  %3984 = vpow2.f32 %v2735_v60 }
 0xc2d   : > { %v2737_v21 = vmul.f32 1.442695, %v2726_v58  ;;  %v5315_v37 = vpop.eup %3980 }
 0xc2e   : > { %v2747_v26 = vsel %vm952_vm3, %v5315_v37, 0.0 }
 0xc2f   : > { %3986 = vpow2.f32 %v2737_v21  ;;  %v3983_v41 = vpop.eup %3982 }
 0xc30   : > { %v2750_v11 = vsel %vm952_vm3, %v3983_v41, 0.0 }
 0xc35   : > { %v3985_v31 = vpop.eup %3984 }
 0xc36   : > { %v2753_v61 = vsel %vm952_vm3, %v3985_v31, 0.0 }
 0xc39   : > { %v3987_v53 = vpop.eup %3986 }
 0xc3a   : > { %v2756_v0 = vsel %vm952_vm3, %v3987_v53, 0.0 }
 0xc63   : > { %v2633_v44 = vpop.f32.mrb[48].mxu0 }
 0xc64   : > { %v2634_v10 = vadd.f32 %v2633_v44, %v717_v30  ;;  %v3646_v18 = vpop.f32.mrb[49].mxu0  ;;  %v2698_v30 = vadd.f32 %v4019_v63, %v2688_v23 }
 0xc65   : > { %v2636_v19 = vpop.f32.mrb[50].mxu0 }
 0xc66   : > { %v2695_v12 = vadd.f32 %v4016_v8, %v2634_v10  ;;  %v2637_v27 = vadd.f32 %v2636_v19, %v718_v33  ;;  %v3647_v15 = vpop.f32.mrb[51].mxu0  ;;  %v2720_v33 = vsel %vm952_vm3, %v2698_v30, -inf }
 0xc68   : > { %v2696_v59 = vadd.f32 %v4018_v56, %v2637_v27  ;;  %v2711_v49 = vsel %vm952_vm3, %v2695_v12, -inf }
 0xc69   : > { %2712 = vmax.xlane.f32.xlu0 %v2711_v49 }
 0xc6a   : > { %v2714_v9 = vsel %vm952_vm3, %v2696_v59, -inf }
 0xc6b   : > { %2715 = vmax.xlane.f32.xlu1 %v2714_v9 }
 0xc6d   : > { %2718 = vmax.xlane.f32.xlu0 %v2717_v34 }
 0xc6f   : > { %2721 = vmax.xlane.f32.xlu1 %v2720_v33 }
 0xc71   : > { %2748 = vadd.xlane.f32.xlu0 %v2747_v26 }
 0xc73   : > { %2751 = vadd.xlane.f32.xlu1 %v2750_v11 }
 0xc75   : > { %2754 = vadd.xlane.f32.xlu0 %v2753_v61 }
 0xc77   : > { %2757 = vadd.xlane.f32.xlu1 %v2756_v0 }
 0xcf6   : > { %v2713_v17 = vpop.xlane.xlu0 %2712 }
 0xcf7   : > { %v2727_v54 = vsub.f32 %v2695_v12, %v2713_v17 }
 0xcf8   : > { %v2716_v32 = vpop.xlane.xlu1 %2715 }
 0xcf9   : > { %v2739_v47 = vmul.f32 1.442695, %v2727_v54  ;;  %v2728_v46 = vsub.f32 %v2696_v59, %v2716_v32 }
 0xcfa   : > { %v2719_v13 = vpop.xlane.xlu0 %2718 }
 0xcfb   : > { %v2729_v35 = vsub.f32 %v2697_v55, %v2719_v13  ;;  %v2741_v57 = vmul.f32 1.442695, %v2728_v46 }
 0xcfc   : > { %v2722_v36 = vpop.xlane.xlu1 %2721 }
 0xcfd   : > { %v2743_v24 = vmul.f32 1.442695, %v2729_v35  ;;  %v2730_v20 = vsub.f32 %v2698_v30, %v2722_v36  ;;  %v2984_v30 = vld [vmem:[#allocation14 + $0xc] sm:$0xf] }
 0xcfe   : > { %v2749_v50 = vpop.xlane.xlu0 %2748  ;;  %v2998_v9 = vsel %vm1752_vm4, %v2984_v30, 0 }
 0xcff   : > { %3988 = vpow2.f32 %v2743_v24  ;;  %v2745_v16 = vmul.f32 1.442695, %v2730_v20 }
 0xd00   : > { %3990 = vpow2.f32 %v2739_v47  ;;  %v2752_v14 = vpop.xlane.xlu1 %2751 }
 0xd01   : > { %3992 = vpow2.f32 %v2745_v16 }
 0xd02   : > { %3994 = vpow2.f32 %v2741_v57  ;;  %v2755_v39 = vpop.xlane.xlu0 %2754 }
 0xd04   : > { %v2758_v45 = vpop.xlane.xlu1 %2757 }
 0xd05   : > { %3996 = vrcp.f32 %v2758_v45 }
 0xd06   : > { %3998 = vrcp.f32 %v2752_v14 }
 0xd07   : > { %4000 = vrcp.f32 %v2755_v39 }
 0xd08   : > { %4002 = vrcp.f32 %v2749_v50 }
 0xd09   : > { %v3989_v29 = vpop.eup %3988 }
 0xd0a   : > { %v5323_v1 = vpop.eup %3990  ;;  %v2765_v28 = vsel %vm952_vm3, %v3989_v29, 0.0 }
 0xd0b   : > { %v3993_v51 = vpop.eup %3992  ;;  %2766 = vadd.xlane.f32.xlu0 %v2765_v28  ;;  %v2759_v38 = vsel %vm952_vm3, %v5323_v1, 0.0 }
 0xd0c   : > { %v2768_v5 = vsel %vm952_vm3, %v3993_v51, 0.0  ;;  %v3995_v43 = vpop.eup %3994 }
 0xd0d   : > { %2769 = vadd.xlane.f32.xlu1 %v2768_v5  ;;  %v2762_v40 = vsel %vm952_vm3, %v3995_v43, 0.0 }
 0xd0f   : > { %2760 = vadd.xlane.f32.xlu0 %v2759_v38 }
 0xd1e   : > { %2838 = vrot.lane.b32.xlu1 %v4830_v4, %s4383_s14 }
 0xd22   : > { %2885 = vrot.lane.b32.xlu1 %v4842_v25, %s4383_s14  ;;  %v3997_v25 = vpop.eup %3996 }
 0xd23   : > { %v2782_v2 = vmul.f32 %v3997_v25, %v3987_v53 }
 0xd25   : > { %2791 = vrot.lane.b32.xlu0 %v4832_v7, %s4383_s14  ;;  %v3999_v7 = vpop.eup %3998 }
 0xd26   : > { %v4001_v62 = vpop.eup %4000  ;;  %v2780_v60 = vmul.f32 %v3999_v7, %v3983_v41 }
 0xd27   : > { %v4003_v58 = vpop.eup %4002  ;;  %v2781_v44 = vmul.f32 %v4001_v62, %v3985_v31 }
 0xd29   : > { %v2788_v18 = vpack.c.bf16 %v2782_v2, %v2781_v44 }
 0xd46   : > { %2763 = vadd.xlane.f32.xlu1 %v2762_v40 }
 0xd57   : > { %2932 = vrot.lane.b32.xlu1 %v4840_v22, %s4383_s14  ;;  %v2779_v22 = vmul.f32 %v4003_v58, %v5315_v37 }
 0xd59   : > { %v2787_v21 = vpack.c.bf16 %v2780_v60, %v2779_v22 }
 0xd98   : > { %v2767_v4 = vpop.xlane.xlu0 %2766 }
 0xd9a   : > { %v2770_v6 = vpop.xlane.xlu1 %2769 }
 0xd9b   : > { %4004 = vrcp.f32 %v2770_v6 }
 0xd9c   : > { %v2761_v52 = vpop.xlane.xlu0 %2760  ;;  %4006 = vrcp.f32 %v2767_v4 }
 0xd9d   : > { %4008 = vrcp.f32 %v2761_v52 }
 0xd9e   : > { %v2839_v3 = vpop.permute.xlu1 %2838 }
 0xd9f   : > { %3661 = vmatpush3.bf16.msra.mxu1 %v2839_v3 }
 0xda0   : > { %v2792_v10 = vpop.permute.xlu0 %2791  ;;  %3672 = vmatprep.subr.bf16.mxu1 %v4371_v48 }
 0xda1   : > { %3655 = vmatpush3.bf16.msra.mxu0 %v2792_v10 }
 0xda2   : > { %3663 = vmatmul.mubr.msk.bf16.vlgmr.msra.gmra.mrb[76].mxu1 %vm952_vm3, %v2788_v18  ;;  %3666 = vmatprep.subr.bf16.mxu0 %v4371_v48  ;;  %v2886_v19 = vpop.permute.xlu1 %2885 }
 0xda3   : > { %3674 = vmatprep.mubr.msk.bf16.mxu1 %vm4372_vm1, %v4371_v48 }
 0xda4   : > { %3657 = vmatmul.mubr.msk.bf16.vlgmr.msra.gmra.mrb[52].mxu0 %vm952_vm3, %v2787_v21 }
 0xda5   : > { %3667 = vmatpush3.bf16.msra.mxu0 %v2886_v19  ;;  %3668 = vmatprep.mubr.msk.bf16.mxu0 %vm4372_vm1, %v4371_v48  ;;  %v4005_v23 = vpop.eup %4004 }
 0xda6   : > { %v4007_v12 = vpop.eup %4006  ;;  %v2786_v27 = vmul.f32 %v4005_v23, %v3993_v51  ;;  %3719 = vmatprep.subr.msk.bf16.mxu0 %vm1752_vm4, %v2984_v30 }
 0xda7   : > { %v2785_v15 = vmul.f32 %v4007_v12, %v3989_v29  ;;  %v4009_v56 = vpop.eup %4008  ;;  %v3343_v29 = vld [vmem:[#allocation16] ss:$0 sm:$0xff] }
 0xda8   : > { %v2783_v49 = vmul.f32 %v4009_v56, %v5323_v1 }
 0xda9   : > { %v2790_v55 = vpack.c.bf16 %v2786_v27, %v2785_v15 }
 0xdd3   : > { %v2764_v8 = vpop.xlane.xlu1 %2763 }
 0xdd4   : > { %4010 = vrcp.f32 %v2764_v8 }
 0xdd7   : > { %v2933_v42 = vpop.permute.xlu1 %2932 }
 0xdd8   : > { %3673 = vmatpush3.bf16.msra.mxu1 %v2933_v42 }
 0xddb   : > { %3675 = vmatmul.mubr.msk.bf16.vlgmr.msra.gmra.mrb[80].mxu1 %vm952_vm3, %v2790_v55 }
 0xdde   : > { %v4011_v59 = vpop.eup %4010 }
 0xddf   : > { %v2784_v63 = vmul.f32 %v4011_v59, %v3995_v43 }
 0xde1   : > { %v2789_v48 = vpack.c.bf16 %v2784_v63, %v2783_v49 }
 0xde3   : > { %3669 = vmatmul.mubr.msk.bf16.vlgmr.msra.gmra.mrb[56].mxu0 %vm952_vm3, %v2789_v48 }
 0xde4   : > { %3679 = vmatpush3.bf16.msra.mxu0 %v2998_v9 }
 0xe75   : > { %v2878_v34 = vpop.f32.mrb[76].mxu1 }
 0xe76   : > { %v3664_v37 = vpop.f32.mrb[77].mxu1 }
 0xe77   : > { %v2831_v33 = vpop.f32.mrb[52].mxu0  ;;  %v2881_v41 = vpop.f32.mrb[78].mxu1 }
 0xe78   : > { %v2980_v26 = vpack.c.bf16 %v2881_v41, %v2878_v34  ;;  %v3658_v31 = vpop.f32.mrb[53].mxu0  ;;  %v3665_v11 = vpop.f32.mrb[79].mxu1 }
 0xe79   : > { %v2834_v53 = vpop.f32.mrb[54].mxu0 }
 0xe7a   : > { %v2979_v61 = vpack.c.bf16 %v2834_v53, %v2831_v33  ;;  %v3659_v0 = vpop.f32.mrb[55].mxu0 }
 0xe7c   : > { %3680 = vmatprep.mubr.msk.bf16.mxu0 %vm746_vm2, %v2979_v61 }
 0xe7d   : > { %3681 = vmatmul.mubr.msk.bf16.vlgmr.msra.gmra.mrb[32].mxu0 %vm746_vm2, %v2980_v26 }
 0xeae   : > { %v2972_v17 = vpop.f32.mrb[80].mxu1 }
 0xeaf   : > { %v3676_v54 = vpop.f32.mrb[81].mxu1 }
 0xeb0   : > { %v2975_v32 = vpop.f32.mrb[82].mxu1 }
 0xeb1   : > { %v2982_v13 = vpack.c.bf16 %v2975_v32, %v2972_v17  ;;  %v3677_v35 = vpop.f32.mrb[83].mxu1 }
 0xeb6   : > { %v2925_v47 = vpop.f32.mrb[56].mxu0 }
 0xeb7   : > { %v3670_v36 = vpop.f32.mrb[57].mxu0 }
 0xeb8   : > { %v2928_v24 = vpop.f32.mrb[58].mxu0 }
 0xeb9   : > { %v2981_v20 = vpack.c.bf16 %v2928_v24, %v2925_v47  ;;  %v3671_v16 = vpop.f32.mrb[59].mxu0 }
 0xebb   : > { %3684 = vmatprep.mubr.msk.bf16.mxu0 %vm746_vm2, %v2981_v20 }
 0xebc   : > { %3685 = vmatmul.mubr.msk.bf16.gmra.mrb[36].mxu0 %vm746_vm2, %v2982_v13 }
 0xf50   : > { %v3682_v1 = vpop.f32.mrb[32].mxu0 }
 0xf51   : > { %v3082_v28 = vadd.f32 %v3682_v1, %v3343_v29  ;;  %v3034_v51 = vpop.f32.mrb[33].mxu0 }
 0xf52   : > { %v3080_v5 = vadd.f32 %v3343_v29, %v3034_v51  ;;  %v3683_v38 = vpop.f32.mrb[34].mxu0 }
 0xf53   : > { %3090 = vst.msk [vmem:[%s459_s29 + $0x10] sm:$0xff] %vm471_vm0, %v3082_v28  ;;  %v3083_v46 = vadd.f32 %v3683_v38, %v3343_v29  ;;  %v3037_v57 = vpop.f32.mrb[35].mxu0 }
 0xf54   : > { %3088 = vst.msk [vmem:[%s459_s29] sm:$0xff] %vm471_vm0, %v3080_v5  ;;  %v3081_v43 = vadd.f32 %v3343_v29, %v3037_v57 }
 0xf55   : > { %3091 = vst.msk [vmem:[%s459_s29 + $0x18] sm:$0xff] %vm471_vm0, %v3083_v46 }
 0xf56   : > { %3089 = vst.msk [vmem:[%s459_s29 + $0x8] sm:$0xff] %vm471_vm0, %v3081_v43 }
 0xf8f   : > { %v3686_v40 = vpop.f32.mrb[36].mxu0 }
 0xf90   : > { %v3086_v14 = vadd.f32 %v3686_v40, %v3343_v29  ;;  %v3050_v50 = vpop.f32.mrb[37].mxu0 }
 0xf91   : > { %v3084_v45 = vadd.f32 %v3343_v29, %v3050_v50  ;;  %v3687_v39 = vpop.f32.mrb[38].mxu0 }
 0xf92   : > { %3094 = vst.msk [vmem:[%s459_s29 + $0x30] sm:$0xff] %vm471_vm0, %v3086_v14  ;;  %v3087_v4 = vadd.f32 %v3687_v39, %v3343_v29  ;;  %v3053_v25 = vpop.f32.mrb[39].mxu0 }
 0xf93   : > { %3092 = vst.msk [vmem:[%s459_s29 + $0x20] sm:$0xff] %vm471_vm0, %v3084_v45  ;;  %v3085_v7 = vadd.f32 %v3343_v29, %v3053_v25 }
 0xf94   : > { %3095 = vst.msk [vmem:[%s459_s29 + $0x38] sm:$0xff] %vm471_vm0, %v3087_v4 }
 0xf95   : > { %3093 = vst.msk [vmem:[%s459_s29 + $0x28] sm:$0xff] %vm471_vm0, %v3085_v7 }
 0xf96   : > { %4287 = shalt.err (!%p4284_p10)
}
 0xf97   : > { %s4288_s28 = scalar_lea.hbm %s5363_s21, 1024  ;;  %s4292_s29 = scalar_lea.hbm %s5455_s9, 2048 }
 0xf98   : > { %p4289_p11 = scmp.ne.s32.totalorder %s5363_s21, %s4288_s28  ;;  %p4293_p7 = scmp.lt.u32.totalorder %s5363_s21, %s5455_s9 }
 0xf99   : > { %p4294_p6 = scmp.lt.u32.totalorder %s4292_s29, %s4288_s28  ;;  %p4296_p12 = scmp.lt.u32.totalorder %s4288_s28, %s5363_s21 }
 0xf9a   : > { %p4290_p0 = pnand %p4289_p11, %p5456_p13 }
 0xf9b   : > { %p4295_p9 = por %p4294_p6, %p4293_p7 }
 0xf9c   : > { %p4291_p5 = pneg %p4290_p0 }
 0xf9d   : > { %p4297_p1 = por %p4296_p12, %p4295_p9 }
 0xf9f   : > { %p4298_p3 = pnand %p4297_p1, %p4291_p5 }
 0xfa1   : > { %4301 = shalt.err (!%p4298_p3)
}
 0xfa2   : > { %s4385_s22 = smov 128   ;;  %s4386_s17 = smov 8  }
 0xfa3   : > { %3754 = dma.vmem_to_hbm [thread:$0]  (%p5456_p13), %s5365_s16, 1024, %s5363_s21, %s3097_s15, %s4385_s22, %s4385_s22, %s4386_s17  }
 0xfa4 PF: > { %s3126_s27 = sand.u32 1, %s4344_s30   ;;  %p5457_p2 = scmp.ne.s32.totalorder %s5444_s25, 0 }
 0xfa5   : > { %p5458_p8 = scmp.ge.s32.totalorder %s4356_s12, 2  ;;  %s3127_s18 = scalar_lea.sflag [#allocation4], %s3126_s27 }
 0xfa7   : > { %p3786_p4 = pnand %p5458_p8, %p5457_p2 }
 0xfa9   : > { %4339 = dma.done.wait (!%p3786_p4), %s3127_s18, 1024  }
 0xfaa   : > { %4341 = vsyncadd (!%p3786_p4), %s3127_s18, 4294966272  ;;  %p26_p10 = scmp.ge.s32.totalorder %s4656_s19, 4   ;;  %s5459_s30 = smov %s4348_s10 }
 0xfab   : > { %s5460_s10 = smov %s4352_s11  ;;  %s5461_s11 = smov %s4667_s20 }
 0xfac   : > { %s5462_s12 = smov %s4656_s19  ;;  %28 = sbr.rel (!%p26_p10) target bundleno = 13 (0xd), region = 136 }
 0xfb3   :  { %3132 = vsyncpa [#allocation3], 1 }
 0xfb4   :  { %3134 = vsyncpa [#allocation3 + $0x1], 1 }
 0xfb5   :  { %3135 = vsyncpa [#allocation6], 1 }
 0xfb6   :  { %3136 = vsyncpa [#allocation9], 1 }
 0xfb7   :  { %3137 = vsyncpa [#allocation12], 1 }
 0xfb8   :  { %3138 = vsyncpa [#allocation15], 1 }
 0xfb9   :  { %3139 = vsyncpa [#allocation4], 1 }
 0xfba   :  { %3141 = vsyncpa [#allocation4 + $0x1], 1 }

// kernel: _lambda_.4
= control target key start
LH: loop header
LB: loop body
LE: loop exit
PB: predicated region body
PF: predicated region fallthrough
CT: control target
= control target key end

     0   :  { %13 = vsyncpa [#allocation3], 0  ;;  %s8293_s0 = inlined_call_operand.hbm [shape: f32[8,16,32], index: 0, kind: input, shape index: {}]   ;;  %s8294_s1 = inlined_call_operand.hbm [shape: f32[4,16,16], index: 1, kind: input, shape index: {}]   ;;  %s8295_s2 = inlined_call_operand.hbm [shape: f32[1,32], index: 2, kind: input, shape index: {}]   ;;  %s8296_s3 = inlined_call_operand.hbm [shape: f32[1,32], index: 3, kind: input, shape index: {}, may-alias: {3,7}]   ;;  %s8297_s4 = inlined_call_operand.hbm [shape: bf16[32,96], index: 4, kind: input, shape index: {}]   ;;  %s8298_s5 = inlined_call_operand.hbm [shape: f32[1,96], index: 5, kind: input, shape index: {}]   ;;  %s8299_s6 = inlined_call_operand.hbm [shape: bf16[4,8,32], index: 6, kind: input, shape index: {}]   ;;  %s8300_s7 = inlined_call_operand.hbm [shape: f32[1,32], index: 7, kind: input, shape index: {}, may-alias: {3,7}]   ;;  %s8301_s8 = inlined_call_operand.hbm [shape: f32[8,16,32], index: 8, kind: output, shape index: {}]  }
   0x1   :  { %14 = vsyncpa [#allocation6], 0 }
   0x2   :  { %15 = vsyncpa [#allocation9], 0 }
   0x3   :  { %16 = vsyncpa [#allocation12], 0 }
   0x4   :  { %17 = vsyncpa [#allocation15], 0 }
   0x5   :  { %18 = vsyncpa [#allocation4], 0  ;;  %s6439_s27 = smov [#allocation5]   ;;  %s6440_s29 = smov [#allocation8]  }
   0x6   :  { %s36_s28 = sshll.u32 %s6439_s27, 4  ;;  %s59_s30 = sshll.u32 %s6440_s29, 4  ;;  %s37_s28 = int_to_ptr.vmem [resolvable:$true] %s36_s28  ;;  %s6509_s30 = int_to_ptr.vmem [resolvable:$true] %s59_s30 }
   0x7   :  { %s6229_s11 = scalar_lea.hbm %s8294_s1, 1024 }
   0x8   :  { %p6230_p0 = scmp.ne.s32.totalorder %s8294_s1, %s6229_s11  ;;  %p6233_p1 = scmp.lt.u32.totalorder %s6229_s11, %s8294_s1 }
   0xa   :  { %p6235_p2 = pnand %p6233_p1, %p6230_p0 }
   0xc   :  { %6238 = shalt.err (!%p6235_p2)
}
   0xd   :  { %s6239_s16 = scalar_lea.vmem %s37_s28, 1024  ;;  %p6244_p4 = scmp.lt.s32.totalorder %s37_s28, %s37_s28 }
   0xe   :  { %p6240_p3 = scmp.ne.s32.totalorder %s37_s28, %s6239_s16  ;;  %p6245_p5 = scmp.lt.s32.totalorder %s6239_s16, %s6239_s16 }
  0x10   :  { %p6246_p6 = por %p6245_p5, %p6244_p4 }
  0x12   :  { %p6247_p7 = pnand %p6246_p6, %p6240_p3 }
  0x14   :  { %6250 = shalt.err (!%p6247_p7)
}
  0x15   :  { %s6441_s17 = smov 128   ;;  %s6442_s18 = smov 8  }
  0x16   :  { %42 = dma.hbm_to_vmem [thread:$0]  %s8294_s1, 1024, %s37_s28, [#allocation6], %s6441_s17, %s6441_s17, %s6442_s18  }
  0x17   :  { %s6251_s23 = scalar_lea.hbm %s8296_s3, 16 }
  0x18   :  { %p6252_p8 = scmp.ne.s32.totalorder %s8296_s3, %s6251_s23  ;;  %p6255_p9 = scmp.lt.u32.totalorder %s6251_s23, %s8296_s3 }
  0x1a   :  { %p6257_p10 = pnand %p6255_p9, %p6252_p8 }
  0x1c   :  { %6260 = shalt.err (!%p6257_p10)
}
  0x1d   :  { %s6261_s29 = scalar_lea.vmem %s6509_s30, 16  ;;  %s6265_s1 = scalar_lea.vmem %s6509_s30, 32 }
  0x1e   :  { %p6262_p11 = scmp.ne.s32.totalorder %s6509_s30, %s6261_s29  ;;  %p6266_p12 = scmp.lt.s32.totalorder %s6509_s30, %s6509_s30 }
  0x1f   :  { %p6267_p13 = scmp.lt.s32.totalorder %s6265_s1, %s6261_s29 }
  0x21   :  { %p6268_p0 = por %p6267_p13, %p6266_p12 }
  0x23   :  { %p6269_p1 = pnand %p6268_p0, %p6262_p11 }
  0x25   :  { %6272 = shalt.err (!%p6269_p1)
}
  0x26   :  { %62 = dma.hbm_to_vmem [thread:$0]  %s8296_s3, 16, %s6509_s30, [#allocation9]  }
  0x27   :  { %s6443_s10 = smov [#allocation11]   ;;  %s6444_s12 = smov [#allocation2]  }
  0x28   :  { %s81_s11 = sshll.u32 %s6443_s10, 4  ;;  %s24_s13 = sshll.u32 %s6444_s12, 4  ;;  %s82_s11 = int_to_ptr.vmem [resolvable:$true] %s81_s11  ;;  %s6544_s13 = int_to_ptr.vmem [resolvable:$true] %s24_s13 }
  0x29   :  { %s6273_s16 = scalar_lea.hbm %s8298_s5, 16 }
  0x2a   :  { %p6274_p2 = scmp.ne.s32.totalorder %s8298_s5, %s6273_s16  ;;  %p6277_p3 = scmp.lt.u32.totalorder %s6273_s16, %s8298_s5 }
  0x2c   :  { %p6279_p4 = pnand %p6277_p3, %p6274_p2 }
  0x2e   :  { %6282 = shalt.err (!%p6279_p4)
}
  0x2f   :  { %s6283_s3 = scalar_lea.vmem %s82_s11, 16  ;;  %s6287_s30 = scalar_lea.vmem %s82_s11, 32 }
  0x30   :  { %p6284_p5 = scmp.ne.s32.totalorder %s82_s11, %s6283_s3  ;;  %p6288_p6 = scmp.lt.s32.totalorder %s82_s11, %s82_s11 }
  0x31   :  { %p6289_p7 = scmp.lt.s32.totalorder %s6287_s30, %s6283_s3 }
  0x33   :  { %p6290_p8 = por %p6289_p7, %p6288_p6 }
  0x35   :  { %p6291_p9 = pnand %p6290_p8, %p6284_p5 }
  0x37   :  { %6294 = shalt.err (!%p6291_p9)
}
  0x38   :  { %84 = dma.hbm_to_vmem [thread:$0]  %s8298_s5, 16, %s82_s11, [#allocation12]  }
  0x39   :  { %s6295_s27 = scalar_lea.hbm %s8293_s0, 2048 }
  0x3a   :  { %p6296_p10 = scmp.ne.s32.totalorder %s8293_s0, %s6295_s27  ;;  %p6299_p11 = scmp.lt.u32.totalorder %s6295_s27, %s8293_s0 }
  0x3c   :  { %p6301_p12 = pnand %p6299_p11, %p6296_p10 }
  0x3e   :  { %6304 = shalt.err (!%p6301_p12)
}
  0x3f   :  { %s6305_s10 = scalar_lea.vmem %s6544_s13, 2048  ;;  %p6310_p0 = scmp.lt.s32.totalorder %s6544_s13, %s6544_s13 }
  0x40   :  { %p6306_p13 = scmp.ne.s32.totalorder %s6544_s13, %s6305_s10  ;;  %p6311_p1 = scmp.lt.s32.totalorder %s6305_s10, %s6305_s10 }
  0x42   :  { %p6312_p2 = por %p6311_p1, %p6310_p0 }
  0x44   :  { %p6313_p3 = pnand %p6312_p2, %p6306_p13 }
  0x46   :  { %6316 = shalt.err (!%p6313_p3)
}
  0x47   :  { %30 = dma.hbm_to_vmem [thread:$0]  %s8293_s0, 2048, %s6544_s13, [#allocation3], %s6441_s17, %s6441_s17, %s6442_s18  }
  0x48   :  { %s6445_s12 = smov [#allocation7]   ;;  %s6446_s15 = smov [#allocation10]  }
  0x49   :  { %s49_s14 = sshll.u32 %s6445_s12, 4  ;;  %s68_s16 = sshll.u32 %s6446_s15, 4  ;;  %s50_s14 = int_to_ptr.vmem [resolvable:$true] %s49_s14  ;;  %s6578_s16 = int_to_ptr.vmem [resolvable:$true] %s68_s16 }
  0x4a   :  { %s6317_s21 = scalar_lea.hbm %s8295_s2, 16 }
  0x4b   :  { %p6318_p4 = scmp.ne.s32.totalorder %s8295_s2, %s6317_s21  ;;  %p6321_p5 = scmp.lt.u32.totalorder %s6317_s21, %s8295_s2 }
  0x4d   :  { %p6323_p6 = pnand %p6321_p5, %p6318_p4 }
  0x4f   :  { %6326 = shalt.err (!%p6323_p6)
}
  0x50   :  { %s6327_s0 = scalar_lea.vmem %s50_s14, 16  ;;  %s6331_s13 = scalar_lea.vmem %s50_s14, 32 }
  0x51   :  { %p6328_p7 = scmp.ne.s32.totalorder %s50_s14, %s6327_s0  ;;  %p6332_p8 = scmp.lt.s32.totalorder %s50_s14, %s50_s14 }
  0x52   :  { %p6333_p9 = scmp.lt.s32.totalorder %s6331_s13, %s6327_s0 }
  0x54   :  { %p6334_p10 = por %p6333_p9, %p6332_p8 }
  0x56   :  { %p6335_p11 = pnand %p6334_p10, %p6328_p7 }
  0x58   :  { %6338 = shalt.err (!%p6335_p11)
}
  0x59   :  { %52 = dma.hbm_to_vmem [thread:$0]  %s8295_s2, 16, %s50_s14, [#allocation6]  }
  0x5a   :  { %s6339_s29 = scalar_lea.hbm %s8297_s4, 256 }
  0x5b   :  { %p6340_p12 = scmp.ne.s32.totalorder %s8297_s4, %s6339_s29  ;;  %p6343_p13 = scmp.lt.u32.totalorder %s6339_s29, %s8297_s4 }
  0x5d   :  { %p6345_p0 = pnand %p6343_p13, %p6340_p12 }
  0x5f   :  { %6348 = shalt.err (!%p6345_p0)
}
  0x60   :  { %s6349_s5 = scalar_lea.vmem %s6578_s16, 256  ;;  %p6354_p2 = scmp.lt.s32.totalorder %s6578_s16, %s6578_s16 }
  0x61   :  { %p6350_p1 = scmp.ne.s32.totalorder %s6578_s16, %s6349_s5  ;;  %p6355_p3 = scmp.lt.s32.totalorder %s6349_s5, %s6349_s5 }
  0x63   :  { %p6356_p4 = por %p6355_p3, %p6354_p2 }
  0x65   :  { %p6357_p5 = pnand %p6356_p4, %p6350_p1 }
  0x67   :  { %6360 = shalt.err (!%p6357_p5)
}
  0x68   :  { %s6447_s2 = smov 64   ;;  %s6448_s11 = smov 4  }
  0x69   :  { %74 = dma.hbm_to_vmem [thread:$0]  %s8297_s4, 256, %s6578_s16, [#allocation9], %s6447_s2, %s6447_s2, %s6448_s11  }
  0x6a   :  { %s6449_s15 = smov [#allocation13]   ;;  %s6450_s20 = smov [#allocation14]  }
  0x6b   :  { %s90_s19 = sshll.u32 %s6449_s15, 4  ;;  %s103_s21 = sshll.u32 %s6450_s20, 4  ;;  %s91_s19 = int_to_ptr.vmem [resolvable:$true] %s90_s19  ;;  %s104_s21 = int_to_ptr.vmem [resolvable:$true] %s103_s21 }
  0x6c   :  { %s6361_s30 = scalar_lea.hbm %s8299_s6, 256 }
  0x6d   :  { %p6362_p6 = scmp.ne.s32.totalorder %s8299_s6, %s6361_s30  ;;  %p6365_p7 = scmp.lt.u32.totalorder %s6361_s30, %s8299_s6 }
  0x6f   :  { %p6367_p8 = pnand %p6365_p7, %p6362_p6 }
  0x71   :  { %6370 = shalt.err (!%p6367_p8)
}
  0x72   :  { %s6371_s4 = scalar_lea.vmem %s91_s19, 256  ;;  %p6376_p10 = scmp.lt.s32.totalorder %s91_s19, %s91_s19 }
  0x73   :  { %p6372_p9 = scmp.ne.s32.totalorder %s91_s19, %s6371_s4  ;;  %p6377_p11 = scmp.lt.s32.totalorder %s6371_s4, %s6371_s4 }
  0x75   :  { %p6378_p12 = por %p6377_p11, %p6376_p10 }
  0x77   :  { %p6379_p13 = pnand %p6378_p12, %p6372_p9 }
  0x79   :  { %6382 = shalt.err (!%p6379_p13)
}
  0x7a   :  { %96 = dma.hbm_to_vmem [thread:$0]  %s8299_s6, 256, %s91_s19, [#allocation12], %s6447_s2, %s6447_s2, %s6448_s11  }
  0x7b   :  { %s6383_s29 = scalar_lea.hbm %s8300_s7, 16 }
  0x7c   :  { %p6384_p0 = scmp.ne.s32.totalorder %s8300_s7, %s6383_s29  ;;  %p6387_p1 = scmp.lt.u32.totalorder %s6383_s29, %s8300_s7 }
  0x7e   :  { %p6389_p2 = pnand %p6387_p1, %p6384_p0 }
  0x80   :  { %6392 = shalt.err (!%p6389_p2)
}
  0x81   :  { %s6393_s5 = scalar_lea.vmem %s104_s21, 16  ;;  %s6397_s12 = scalar_lea.vmem %s104_s21, 32 }
  0x82   :  { %p6394_p3 = scmp.ne.s32.totalorder %s104_s21, %s6393_s5  ;;  %p6398_p4 = scmp.lt.s32.totalorder %s104_s21, %s104_s21 }
  0x83   :  { %p6399_p5 = scmp.lt.s32.totalorder %s6397_s12, %s6393_s5 }
  0x85   :  { %p6400_p6 = por %p6399_p5, %p6398_p4 }
  0x87   :  { %p6401_p7 = pnand %p6400_p6, %p6394_p3 }
  0x89   :  { %6404 = shalt.err (!%p6401_p7)
}
  0x8a   :  { %106 = dma.hbm_to_vmem [thread:$0]  %s8300_s7, 16, %s104_s21, [#allocation15]  }
  0x8b   :  { %6427 = dma.done.wait [#allocation3], 2048  }
  0x8c   :  { %6428 = vsyncadd [#allocation3], 4294965248 }
  0x8d   :  { %6429 = dma.done.wait [#allocation6], 1040  }
  0x8e   :  { %6430 = vsyncadd [#allocation6], 4294966256 }
  0x8f   :  { %6431 = dma.done.wait [#allocation9], 272  }
  0x90   :  { %6432 = vsyncadd [#allocation9], 4294967024 }
  0x91   :  { %6433 = dma.done.wait [#allocation12], 272  }
  0x92   :  { %6434 = vsyncadd [#allocation12], 4294967024 }
  0x93   :  { %6435 = dma.done.wait [#allocation15], 16  }
  0x94   :  { %6436 = vsyncadd [#allocation15], 4294967280  ;;  %vm148_vm0 = vcmask 261120   ;;  %v132_v0 = vld [vmem:[#allocation2] sm:$0xff]  ;;  %v134_v1 = vld [vmem:[#allocation2 + $0x10] sm:$0xff]  ;;  %vm6452_vm1 = vmmov 0  }
  0x95   :  { %v133_v2 = vld [vmem:[#allocation2 + $0x8] sm:$0xff]  ;;  %v149_v3 = vsel %vm148_vm0, %v132_v0, 0.0  ;;  %v155_v4 = vsel %vm148_vm0, %v134_v1, 0.0  ;;  %v135_v5 = vld [vmem:[#allocation2 + $0x18] sm:$0xff]  ;;  %v136_v8 = vld [vmem:[#allocation2 + $0x20] sm:$0xff]  ;;  %s6453_s7 = smov 96  }
  0x96   :  { %150 = vadd.xlane.f32.xlu0 %v149_v3  ;;  %156 = vadd.xlane.f32.xlu1 %v155_v4  ;;  %v152_v6 = vsel %vm148_vm0, %v133_v2, 0.0  ;;  %v158_v7 = vsel %vm148_vm0, %v135_v5, 0.0  ;;  %v137_v9 = vld [vmem:[#allocation2 + $0x28] sm:$0xff]  ;;  %v161_v10 = vsel %vm148_vm0, %v136_v8, 0.0  ;;  %v6643_v12 = vld [vmem:[#allocation2 + $0x30] sm:$0xff]  ;;  %v6645_v13 = vld [vmem:[#allocation2 + $0x38] sm:$0xff] }
  0x97   :  { %v164_v11 = vsel %vm148_vm0, %v137_v9, 0.0  ;;  %v167_v14 = vsel %vm148_vm0, %v6643_v12, 0.0  ;;  %v170_v15 = vsel %vm148_vm0, %v6645_v13, 0.0  ;;  %v6651_v16 = vld [vmem:[#allocation2 + $0x40] sm:$0xff]  ;;  %v6653_v17 = vld [vmem:[#allocation2 + $0x48] sm:$0xff]  ;;  %v6659_v20 = vld [vmem:[#allocation2 + $0x50] sm:$0xff] }
  0x98   :  { %v173_v18 = vsel %vm148_vm0, %v6651_v16, 0.0  ;;  %v176_v19 = vsel %vm148_vm0, %v6653_v17, 0.0  ;;  %v6661_v21 = vld [vmem:[#allocation2 + $0x58] sm:$0xff]  ;;  %v179_v22 = vsel %vm148_vm0, %v6659_v20, 0.0  ;;  %v6667_v24 = vld [vmem:[#allocation2 + $0x60] sm:$0xff]  ;;  %v6669_v25 = vld [vmem:[#allocation2 + $0x68] sm:$0xff] }
  0x99   :  { %v182_v23 = vsel %vm148_vm0, %v6661_v21, 0.0  ;;  %v185_v26 = vsel %vm148_vm0, %v6667_v24, 0.0  ;;  %v188_v27 = vsel %vm148_vm0, %v6669_v25, 0.0  ;;  %v6675_v28 = vld [vmem:[#allocation2 + $0x70] sm:$0xff]  ;;  %v6677_v29 = vld [vmem:[#allocation2 + $0x78] sm:$0xff]  ;;  %vm599_vm2 = vcmask 64512  }
  0x9a   :  { %153 = vadd.xlane.f32.xlu0 %v152_v6  ;;  %159 = vadd.xlane.f32.xlu1 %v158_v7  ;;  %v191_v30 = vsel %vm148_vm0, %v6675_v28, 0.0  ;;  %v194_v31 = vsel %vm148_vm0, %v6677_v29, 0.0  ;;  %vm997_vm3 = vcmask 130048   ;;  %s6454_s14 = smov 88   ;;  %s6455_s15 = smov 120   ;;  %vm2577_vm4 = vcmask 1043456  }
  0x9b   :  { %s6456_s19 = smov 56   ;;  %s6457_s20 = smov 80  }
  0x9c   :  { %s6459_s21 = smov 48   ;;  %s6460_s22 = smov 72  }
  0x9d   :  { %s6461_s3 = smov 104   ;;  %s6462_s30 = smov 40  }
  0x9e   :  { %162 = vadd.xlane.f32.xlu0 %v161_v10  ;;  %165 = vadd.xlane.f32.xlu1 %v164_v11  ;;  %s6463_s23 = smov [#allocation16]  }
  0x9f   :  { %s5082_s0 = sshll.u32 %s6463_s23, 4  ;;  %s5083_s0 = int_to_ptr.vmem [resolvable:$true] %s5082_s0 }
  0xa0   :  { %s6405_s13 = scalar_lea.vmem %s5083_s0, 2048  ;;  %p6410_p9 = scmp.lt.s32.totalorder %s5083_s0, %s5083_s0 }
  0xa1   :  { %p6406_p8 = scmp.ne.s32.totalorder %s5083_s0, %s6405_s13  ;;  %p6411_p10 = scmp.lt.s32.totalorder %s6405_s13, %s6405_s13 }
  0xa2   :  { %168 = vadd.xlane.f32.xlu0 %v167_v14  ;;  %171 = vadd.xlane.f32.xlu1 %v170_v15 }
  0xa3   :  { %p6412_p11 = por %p6411_p10, %p6410_p9 }
  0xa5   :  { %p6413_p12 = pnand %p6412_p11, %p6406_p8 }
  0xa6   :  { %174 = vadd.xlane.f32.xlu0 %v173_v18  ;;  %177 = vadd.xlane.f32.xlu1 %v176_v19 }
  0xaa   :  { %180 = vadd.xlane.f32.xlu0 %v179_v22  ;;  %183 = vadd.xlane.f32.xlu1 %v182_v23 }
  0xae   :  { %186 = vadd.xlane.f32.xlu0 %v185_v26  ;;  %189 = vadd.xlane.f32.xlu1 %v188_v27 }
  0xb2   :  { %192 = vadd.xlane.f32.xlu0 %v191_v30  ;;  %195 = vadd.xlane.f32.xlu1 %v194_v31 }
 0x123   :  { %v151_v32 = vpop.xlane.xlu0 %150  ;;  %v157_v33 = vpop.xlane.xlu1 %156 }
 0x124   :  { %v198_v34 = vmul.f32 0.03125, %v151_v32  ;;  %v200_v35 = vmul.f32 0.03125, %v157_v33 }
 0x126   :  { %v6683_v36 = vsub.f32 %v132_v0, %v198_v34  ;;  %v6685_v37 = vsub.f32 %v134_v1, %v200_v35 }
 0x127   :  { %v154_v38 = vpop.xlane.xlu0 %153  ;;  %v160_v39 = vpop.xlane.xlu1 %159 }
 0x128   :  { %v199_v40 = vmul.f32 0.03125, %v154_v38  ;;  %v201_v41 = vmul.f32 0.03125, %v160_v39  ;;  %v230_v42 = vmul.f32 %v6683_v36, %v6683_v36  ;;  %v232_v43 = vmul.f32 %v6685_v37, %v6685_v37 }
 0x12a   :  { %v6691_v44 = vsub.f32 %v133_v2, %v199_v40  ;;  %v6693_v45 = vsub.f32 %v135_v5, %v201_v41  ;;  %v246_v46 = vsel %vm148_vm0, %v230_v42, 0.0  ;;  %v252_v49 = vsel %vm148_vm0, %v232_v43, 0.0 }
 0x12b   :  { %247 = vadd.xlane.f32.xlu0 %v246_v46  ;;  %v163_v47 = vpop.xlane.xlu0 %162  ;;  %v166_v48 = vpop.xlane.xlu1 %165 }
 0x12c   :  { %v202_v50 = vmul.f32 0.03125, %v163_v47  ;;  %v203_v51 = vmul.f32 0.03125, %v166_v48  ;;  %v231_v52 = vmul.f32 %v6691_v44, %v6691_v44  ;;  %v233_v53 = vmul.f32 %v6693_v45, %v6693_v45 }
 0x12e   :  { %v6701_v54 = vsub.f32 %v136_v8, %v202_v50  ;;  %v6703_v55 = vsub.f32 %v137_v9, %v203_v51  ;;  %v249_v56 = vsel %vm148_vm0, %v231_v52, 0.0  ;;  %v255_v59 = vsel %vm148_vm0, %v233_v53, 0.0  ;;  %v5940_v53 = vld [vmem:[#allocation10 + $0x8] sm:$0xff]  }
 0x12f   :  { %253 = vadd.xlane.f32.xlu0 %v252_v49  ;;  %250 = vadd.xlane.f32.xlu1 %v249_v56  ;;  %v169_v57 = vpop.xlane.xlu0 %168  ;;  %v172_v58 = vpop.xlane.xlu1 %171 }
 0x130   :  { %v204_v60 = vmul.f32 0.03125, %v169_v57  ;;  %v205_v61 = vmul.f32 0.03125, %v172_v58  ;;  %v234_v62 = vmul.f32 %v6701_v54, %v6701_v54  ;;  %v235_v63 = vmul.f32 %v6703_v55, %v6703_v55 }
 0x132   :  { %v6712_v0 = vsub.f32 %v6643_v12, %v204_v60  ;;  %v6715_v1 = vsub.f32 %v6645_v13, %v205_v61  ;;  %v258_v2 = vsel %vm148_vm0, %v234_v62, 0.0  ;;  %v261_v5 = vsel %vm148_vm0, %v235_v63, 0.0 }
 0x133   :  { %256 = vadd.xlane.f32.xlu1 %v255_v59  ;;  %259 = vadd.xlane.f32.xlu0 %v258_v2  ;;  %v175_v3 = vpop.xlane.xlu0 %174  ;;  %v178_v4 = vpop.xlane.xlu1 %177 }
 0x134   :  { %v206_v6 = vmul.f32 0.03125, %v175_v3  ;;  %v207_v7 = vmul.f32 0.03125, %v178_v4  ;;  %v236_v8 = vmul.f32 %v6712_v0, %v6712_v0  ;;  %v237_v9 = vmul.f32 %v6715_v1, %v6715_v1 }
 0x136   :  { %v6724_v10 = vsub.f32 %v6651_v16, %v206_v6  ;;  %v6727_v11 = vsub.f32 %v6653_v17, %v207_v7  ;;  %v264_v12 = vsel %vm148_vm0, %v236_v8, 0.0  ;;  %v267_v15 = vsel %vm148_vm0, %v237_v9, 0.0 }
 0x137   :  { %262 = vadd.xlane.f32.xlu1 %v261_v5  ;;  %265 = vadd.xlane.f32.xlu0 %v264_v12  ;;  %v181_v13 = vpop.xlane.xlu0 %180  ;;  %v184_v14 = vpop.xlane.xlu1 %183 }
 0x138   :  { %v208_v18 = vmul.f32 0.03125, %v181_v13  ;;  %v209_v19 = vmul.f32 0.03125, %v184_v14  ;;  %v238_v22 = vmul.f32 %v6724_v10, %v6724_v10  ;;  %v239_v16 = vmul.f32 %v6727_v11, %v6727_v11 }
 0x13a   :  { %v6736_v23 = vsub.f32 %v6659_v20, %v208_v18  ;;  %v6739_v17 = vsub.f32 %v6661_v21, %v209_v19  ;;  %v270_v26 = vsel %vm148_vm0, %v238_v22, 0.0  ;;  %v273_v31 = vsel %vm148_vm0, %v239_v16, 0.0 }
 0x13b   :  { %268 = vadd.xlane.f32.xlu1 %v267_v15  ;;  %271 = vadd.xlane.f32.xlu0 %v270_v26  ;;  %v187_v27 = vpop.xlane.xlu0 %186  ;;  %v190_v30 = vpop.xlane.xlu1 %189 }
 0x13c   :  { %v210_v32 = vmul.f32 0.03125, %v187_v27  ;;  %v211_v33 = vmul.f32 0.03125, %v190_v30  ;;  %v240_v34 = vmul.f32 %v6736_v23, %v6736_v23  ;;  %v241_v20 = vmul.f32 %v6739_v17, %v6739_v17 }
 0x13e   :  { %v6748_v35 = vsub.f32 %v6667_v24, %v210_v32  ;;  %v6751_v21 = vsub.f32 %v6669_v25, %v211_v33  ;;  %v276_v38 = vsel %vm148_vm0, %v240_v34, 0.0  ;;  %v279_v41 = vsel %vm148_vm0, %v241_v20, 0.0 }
 0x13f   :  { %274 = vadd.xlane.f32.xlu1 %v273_v31  ;;  %277 = vadd.xlane.f32.xlu0 %v276_v38  ;;  %v193_v39 = vpop.xlane.xlu0 %192  ;;  %v196_v40 = vpop.xlane.xlu1 %195  ;;  %v6774_v31 = vld [vmem:[#allocation7] ss:$0 sm:$0xff] }
 0x140   :  { %v212_v42 = vmul.f32 0.03125, %v193_v39  ;;  %v213_v43 = vmul.f32 0.03125, %v196_v40  ;;  %v242_v46 = vmul.f32 %v6748_v35, %v6748_v35  ;;  %v243_v24 = vmul.f32 %v6751_v21, %v6751_v21 }
 0x142   :  { %v6760_v47 = vsub.f32 %v6675_v28, %v212_v42  ;;  %v6763_v25 = vsub.f32 %v6677_v29, %v213_v43  ;;  %v282_v48 = vsel %vm148_vm0, %v242_v46, 0.0  ;;  %v285_v49 = vsel %vm148_vm0, %v243_v24, 0.0  ;;  %v5939_v29 = vld [vmem:[#allocation10] sm:$0xff]  }
 0x143   :  { %280 = vadd.xlane.f32.xlu1 %v279_v41  ;;  %283 = vadd.xlane.f32.xlu0 %v282_v48 }
 0x144   :  { %v244_v50 = vmul.f32 %v6760_v47, %v6760_v47  ;;  %v245_v51 = vmul.f32 %v6763_v25, %v6763_v25  ;;  %5382 = vmatprep.subr.bf16.mxu0 %v5939_v29  ;;  %5858 = vmatprep.subr.bf16.mxu1 %v5939_v29 }
 0x145   :  { %5383 = vmatpush3.bf16.msra.mxu0 %v5939_v29  ;;  %5860 = vmatpush3.bf16.msra.mxu1 %v5939_v29 }
 0x146   :  { %v288_v52 = vsel %vm148_vm0, %v244_v50, 0.0  ;;  %v291_v28 = vsel %vm148_vm0, %v245_v51, 0.0  ;;  %5384 = vmatprep.subr.bf16.mxu0 %v5940_v53  ;;  %5859 = vmatprep.subr.bf16.mxu1 %v5940_v53 }
 0x147   :  { %286 = vadd.xlane.f32.xlu1 %v285_v49  ;;  %289 = vadd.xlane.f32.xlu0 %v288_v52 }
 0x149   :  { %5385 = vmatpush3.bf16.msra.mxu0 %v5940_v53  ;;  %5861 = vmatpush3.bf16.msra.mxu1 %v5940_v53 }
 0x14b   :  { %292 = vadd.xlane.f32.xlu1 %v291_v28 }
 0x1b8   :  { %v248_v56 = vpop.xlane.xlu0 %247 }
 0x1b9   :  { %v294_v57 = vmul.f32 0.03125, %v248_v56 }
 0x1bb   :  { %v310_v58 = vadd.f32 1e-05, %v294_v57 }
 0x1bc   :  { %v251_v59 = vpop.xlane.xlu1 %250  ;;  %v254_v60 = vpop.xlane.xlu0 %253 }
 0x1bd   :  { %5941 = vrsqrt.f32 %v310_v58  ;;  %v295_v61 = vmul.f32 0.03125, %v251_v59  ;;  %v296_v62 = vmul.f32 0.03125, %v254_v60 }
 0x1bf   :  { %v311_v63 = vadd.f32 1e-05, %v295_v61  ;;  %v312_v2 = vadd.f32 1e-05, %v296_v62 }
 0x1c0   :  { %v257_v3 = vpop.xlane.xlu1 %256  ;;  %v260_v4 = vpop.xlane.xlu0 %259 }
 0x1c1   :  { %5943 = vrsqrt.f32 %v311_v63  ;;  %v297_v5 = vmul.f32 0.03125, %v257_v3  ;;  %v298_v6 = vmul.f32 0.03125, %v260_v4 }
 0x1c2   :  { %5945 = vrsqrt.f32 %v312_v2 }
 0x1c3   :  { %v313_v7 = vadd.f32 1e-05, %v297_v5  ;;  %v314_v8 = vadd.f32 1e-05, %v298_v6 }
 0x1c4   :  { %v263_v9 = vpop.xlane.xlu1 %262  ;;  %v266_v12 = vpop.xlane.xlu0 %265 }
 0x1c5   :  { %5947 = vrsqrt.f32 %v313_v7  ;;  %v299_v13 = vmul.f32 0.03125, %v263_v9  ;;  %v300_v14 = vmul.f32 0.03125, %v266_v12 }
 0x1c6   :  { %5949 = vrsqrt.f32 %v314_v8 }
 0x1c7   :  { %v5942_v15 = vpop.eup %5941  ;;  %v315_v18 = vadd.f32 1e-05, %v299_v13  ;;  %v316_v19 = vadd.f32 1e-05, %v300_v14 }
 0x1c8   :  { %v269_v22 = vpop.xlane.xlu1 %268  ;;  %v272_v16 = vpop.xlane.xlu0 %271  ;;  %v342_v26 = vmul.f32 %v5942_v15, %v6683_v36  ;;  %v6778_v36 = vld [vmem:[#allocation8] ss:$0 sm:$0xff] }
 0x1c9   :  { %5951 = vrsqrt.f32 %v315_v18  ;;  %v301_v27 = vmul.f32 0.03125, %v269_v22  ;;  %v302_v30 = vmul.f32 0.03125, %v272_v16 }
 0x1ca   :  { %5953 = vrsqrt.f32 %v316_v19  ;;  %v365_v41 = vmul.f32 %v6774_v31, %v342_v26 }
 0x1cb   :  { %v5944_v32 = vpop.eup %5943  ;;  %v317_v33 = vadd.f32 1e-05, %v301_v27  ;;  %v318_v34 = vadd.f32 1e-05, %v302_v30 }
 0x1cc   :  { %v5946_v20 = vpop.eup %5945  ;;  %v275_v38 = vpop.xlane.xlu1 %274  ;;  %v343_v40 = vmul.f32 %v5944_v32, %v6691_v44  ;;  %v388_v44 = vadd.f32 %v6778_v36, %v365_v41 }
 0x1cd   :  { %v278_v39 = vpop.xlane.xlu0 %277  ;;  %5955 = vrsqrt.f32 %v317_v33  ;;  %v303_v42 = vmul.f32 0.03125, %v275_v38  ;;  %v344_v46 = vmul.f32 %v5946_v20, %v6685_v37 }
 0x1ce   :  { %v304_v43 = vmul.f32 0.03125, %v278_v39  ;;  %5957 = vrsqrt.f32 %v318_v34  ;;  %v366_v24 = vmul.f32 %v6774_v31, %v343_v40 }
 0x1cf   :  { %v5948_v48 = vpop.eup %5947  ;;  %v319_v49 = vadd.f32 1e-05, %v303_v42  ;;  %v367_v56 = vmul.f32 %v6774_v31, %v344_v46 }
 0x1d0   :  { %v320_v50 = vadd.f32 1e-05, %v304_v43  ;;  %v5950_v51 = vpop.eup %5949  ;;  %v281_v52 = vpop.xlane.xlu1 %280  ;;  %v389_v29 = vadd.f32 %v6778_v36, %v366_v24  ;;  %v345_v53 = vmul.f32 %v5948_v48, %v6693_v45 }
 0x1d1   :  { %v284_v28 = vpop.xlane.xlu0 %283  ;;  %5959 = vrsqrt.f32 %v319_v49  ;;  %v305_v57 = vmul.f32 0.03125, %v281_v52  ;;  %v346_v60 = vmul.f32 %v5950_v51, %v6701_v54  ;;  %v390_v45 = vadd.f32 %v6778_v36, %v367_v56 }
 0x1d2   :  { %v306_v37 = vmul.f32 0.03125, %v284_v28  ;;  %5961 = vrsqrt.f32 %v320_v50  ;;  %v404_v58 = vpack.c.bf16 %v389_v29, %v388_v44  ;;  %v368_v59 = vmul.f32 %v6774_v31, %v345_v53 }
 0x1d3   :  { %v5952_v61 = vpop.eup %5951  ;;  %v321_v62 = vadd.f32 1e-05, %v305_v57  ;;  %v369_v7 = vmul.f32 %v6774_v31, %v346_v60 }
 0x1d4   :  { %v322_v63 = vadd.f32 1e-05, %v306_v37  ;;  %v5954_v2 = vpop.eup %5953  ;;  %v287_v3 = vpop.xlane.xlu1 %286  ;;  %5386 = vmatprep.mubr.msk.bf16.mxu0 %vm148_vm0, %v404_v58  ;;  %v391_v5 = vadd.f32 %v6778_v36, %v368_v59  ;;  %v347_v6 = vmul.f32 %v5952_v61, %v6703_v55 }
 0x1d5   :  { %v290_v4 = vpop.xlane.xlu0 %289  ;;  %5963 = vrsqrt.f32 %v321_v62  ;;  %v307_v8 = vmul.f32 0.03125, %v287_v3  ;;  %v348_v54 = vmul.f32 %v5954_v2, %v6712_v0  ;;  %v392_v55 = vadd.f32 %v6778_v36, %v369_v7 }
 0x1d6   :  { %v308_v9 = vmul.f32 0.03125, %v290_v4  ;;  %5965 = vrsqrt.f32 %v322_v63  ;;  %v405_v12 = vpack.c.bf16 %v391_v5, %v390_v45  ;;  %v370_v13 = vmul.f32 %v6774_v31, %v347_v6 }
 0x1d7   :  { %v5956_v14 = vpop.eup %5955  ;;  %v323_v15 = vadd.f32 1e-05, %v307_v8  ;;  %v371_v27 = vmul.f32 %v6774_v31, %v348_v54  ;;  %v8302_v4 = vmov 0.0  }
 0x1d8   :  { %v324_v18 = vadd.f32 1e-05, %v308_v9  ;;  %v5958_v19 = vpop.eup %5957  ;;  %v293_v22 = vpop.xlane.xlu1 %292  ;;  %5387 = vmatmul.mubr.msk.bf16.vlgmr.msra.gmra.mrb[0].mxu0 %vm148_vm0, %v405_v12  ;;  %v393_v16 = vadd.f32 %v6778_v36, %v370_v13  ;;  %v349_v26 = vmul.f32 %v5956_v14, %v6715_v1  ;;  %5402 = vmatprep.subr.bf16.mxu1 %v8302_v4 }
 0x1d9   :  { %5967 = vrsqrt.f32 %v323_v15  ;;  %v309_v0 = vmul.f32 0.03125, %v293_v22  ;;  %v350_v30 = vmul.f32 %v5958_v19, %v6724_v10  ;;  %v394_v39 = vadd.f32 %v6778_v36, %v371_v27  ;;  %5426 = vmatprep.subr.bf16.mxu0 %v8302_v4 }
 0x1da   :  { %5969 = vrsqrt.f32 %v324_v18  ;;  %v406_v32 = vpack.c.bf16 %v393_v16, %v392_v55  ;;  %v372_v33 = vmul.f32 %v6774_v31, %v349_v26 }
 0x1db   :  { %v5960_v34 = vpop.eup %5959  ;;  %v325_v20 = vadd.f32 1e-05, %v309_v0  ;;  %v373_v41 = vmul.f32 %v6774_v31, %v350_v30 }
 0x1dc   :  { %v5962_v38 = vpop.eup %5961  ;;  %5390 = vmatprep.mubr.msk.bf16.mxu0 %vm148_vm0, %v406_v32  ;;  %v395_v40 = vadd.f32 %v6778_v36, %v372_v33  ;;  %v351_v1 = vmul.f32 %v5960_v34, %v6727_v11 }
 0x1dd   :  { %5971 = vrsqrt.f32 %v325_v20  ;;  %v352_v10 = vmul.f32 %v5962_v38, %v6736_v23  ;;  %v396_v48 = vadd.f32 %v6778_v36, %v373_v41 }
 0x1de   :  { %v407_v42 = vpack.c.bf16 %v395_v40, %v394_v39  ;;  %v374_v43 = vmul.f32 %v6774_v31, %v351_v1 }
 0x1df   :  { %v5964_v46 = vpop.eup %5963  ;;  %v375_v11 = vmul.f32 %v6774_v31, %v352_v10 }
 0x1e0   :  { %v5966_v24 = vpop.eup %5965  ;;  %5391 = vmatmul.mubr.msk.bf16.gmra.mrb[4].mxu0 %vm148_vm0, %v407_v42  ;;  %v397_v49 = vadd.f32 %v6778_v36, %v374_v43  ;;  %v353_v50 = vmul.f32 %v5964_v46, %v6739_v17 }
 0x1e1   :  { %v354_v51 = vmul.f32 %v5966_v24, %v6748_v35  ;;  %v398_v29 = vadd.f32 %v6778_v36, %v375_v11  ;;  %5428 = vmatprep.mubr.msk.bf16.mxu0 %vm6452_vm1, %v8302_v4 }
 0x1e2   :  { %v408_v52 = vpack.c.bf16 %v397_v49, %v396_v48  ;;  %v376_v23 = vmul.f32 %v6774_v31, %v353_v50 }
 0x1e3   :  { %v5968_v28 = vpop.eup %5967  ;;  %v377_v57 = vmul.f32 %v6774_v31, %v354_v51 }
 0x1e4   :  { %v5970_v44 = vpop.eup %5969  ;;  %5394 = vmatprep.mubr.msk.bf16.mxu1 %vm148_vm0, %v408_v52  ;;  %v399_v53 = vadd.f32 %v6778_v36, %v376_v23  ;;  %v355_v56 = vmul.f32 %v5968_v28, %v6751_v21 }
 0x1e5   :  { %v356_v17 = vmul.f32 %v5970_v44, %v6760_v47  ;;  %v400_v59 = vadd.f32 %v6778_v36, %v377_v57 }
 0x1e6   :  { %v409_v37 = vpack.c.bf16 %v399_v53, %v398_v29  ;;  %v378_v35 = vmul.f32 %v6774_v31, %v355_v56 }
 0x1e7   :  { %v5972_v58 = vpop.eup %5971  ;;  %v379_v62 = vmul.f32 %v6774_v31, %v356_v17 }
 0x1e8   :  { %5395 = vmatmul.mubr.msk.bf16.vlgmr.msra.gmra.mrb[0].mxu1 %vm148_vm0, %v409_v37  ;;  %v401_v60 = vadd.f32 %v6778_v36, %v378_v35  ;;  %v357_v61 = vmul.f32 %v5972_v58, %v6763_v25  ;;  %v6835_v25 = vld [vmem:[#allocation11] ss:$0 sm:$0xff] }
 0x1e9   :  { %v402_v47 = vadd.f32 %v6778_v36, %v379_v62 }
 0x1ea   :  { %v410_v63 = vpack.c.bf16 %v401_v60, %v400_v59  ;;  %v380_v21 = vmul.f32 %v6774_v31, %v357_v61 }
 0x1ec   :  { %5398 = vmatprep.mubr.msk.bf16.mxu1 %vm148_vm0, %v410_v63  ;;  %v403_v2 = vadd.f32 %v6778_v36, %v380_v21 }
 0x1ee   :  { %v411_v3 = vpack.c.bf16 %v403_v2, %v402_v47 }
 0x1f0   :  { %5399 = vmatmul.mubr.msk.bf16.gmra.mrb[4].mxu1 %vm148_vm0, %v411_v3 }
 0x1f1   :  { %5404 = vmatprep.mubr.msk.bf16.mxu1 %vm6452_vm1, %v8302_v4 }
 0x2ab   :  { %v5388_v45 = vpop.f32.mrb[0].mxu0 }
 0x2ac   :  { %v502_v5 = vadd.f32 %v5388_v45, %v6835_v25  ;;  %v493_v31 = vpop.f32.mrb[1].mxu0 }
 0x2ad   :  { %v494_v6 = vadd.f32 %v6835_v25, %v493_v31  ;;  %v5389_v7 = vpop.f32.mrb[2].mxu0 }
 0x2ae   :  { %v505_v8 = vadd.f32 %v5389_v7, %v6835_v25  ;;  %v496_v36 = vpop.f32.mrb[3].mxu0  ;;  %v566_v54 = vmul.f32 0.35355338, %v502_v5 }
 0x2af   :  { %v497_v9 = vadd.f32 %v6835_v25, %v496_v36  ;;  %v564_v14 = vmul.f32 0.35355338, %v494_v6 }
 0x2b0   :  { %v567_v12 = vmul.f32 0.35355338, %v505_v8  ;;  %v6845_v13 = vpack.c.bf16 %v505_v8, %v502_v5 }
 0x2b1   :  { %v565_v15 = vmul.f32 0.35355338, %v497_v9  ;;  %v6847_v18 = vpack.c.bf16 %v497_v9, %v494_v6 }
 0x2b2   :  { %v6849_v19 = vpack.c.bf16 %v567_v12, %v566_v54  ;;  %648 = vrot.lane.b32.xlu1 %v6845_v13, %s6453_s7 }
 0x2b3   :  { %v6853_v22 = vpack.c.bf16 %v565_v15, %v564_v14  ;;  %597 = vrot.lane.b32.xlu0 %v6847_v18, %s6453_s7  ;;  %v5392_v55 = vpop.f32.mrb[4].mxu0 }
 0x2b4   :  { %v518_v16 = vadd.f32 %v5392_v55, %v6835_v25  ;;  %v509_v26 = vpop.f32.mrb[5].mxu0 }
 0x2b5   :  { %v510_v27 = vadd.f32 %v6835_v25, %v509_v26  ;;  %v5393_v0 = vpop.f32.mrb[6].mxu0 }
 0x2b6   :  { %v521_v30 = vadd.f32 %v5393_v0, %v6835_v25  ;;  %v512_v32 = vpop.f32.mrb[7].mxu0  ;;  %v570_v34 = vmul.f32 0.35355338, %v518_v16 }
 0x2b7   :  { %v513_v33 = vadd.f32 %v6835_v25, %v512_v32  ;;  %v568_v39 = vmul.f32 0.35355338, %v510_v27 }
 0x2b8   :  { %v571_v20 = vmul.f32 0.35355338, %v521_v30  ;;  %v6861_v38 = vpack.c.bf16 %v521_v30, %v518_v16  ;;  %v556_v30 = vld [vmem:[#allocation5] sm:$0xff] }
 0x2b9   :  { %v569_v40 = vmul.f32 0.35355338, %v513_v33  ;;  %v6863_v1 = vpack.c.bf16 %v513_v33, %v510_v27  ;;  %v557_v33 = vld [vmem:[#allocation5 + $0x8] sm:$0xff] }
 0x2ba   :  { %v6865_v41 = vpack.c.bf16 %v571_v20, %v570_v34 }
 0x2bb   :  { %v6867_v10 = vpack.c.bf16 %v569_v40, %v568_v39  ;;  %698 = vrot.lane.b32.xlu1 %v6863_v1, %s6453_s7  ;;  %v5396_v42 = vpop.f32.mrb[0].mxu1 }
 0x2bc   :  { %8320 = vst [vmem:[#allocation23_spill] sm:$0xff] %v6865_v41  ;;  %v534_v43 = vadd.f32 %v5396_v42, %v6835_v25  ;;  %v525_v46 = vpop.f32.mrb[1].mxu1 }
 0x2bd   :  { %v526_v24 = vadd.f32 %v6835_v25, %v525_v46  ;;  %v5397_v48 = vpop.f32.mrb[2].mxu1 }
 0x2be   :  { %v537_v49 = vadd.f32 %v5397_v48, %v6835_v25  ;;  %v528_v50 = vpop.f32.mrb[3].mxu1  ;;  %v574_v51 = vmul.f32 0.35355338, %v534_v43 }
 0x2bf   :  { %v529_v11 = vadd.f32 %v6835_v25, %v528_v50  ;;  %748 = vrot.lane.b32.xlu1 %v6861_v38, %s6453_s7  ;;  %v572_v28 = vmul.f32 0.35355338, %v526_v24 }
 0x2c0   :  { %v575_v52 = vmul.f32 0.35355338, %v537_v49  ;;  %v6877_v23 = vpack.c.bf16 %v537_v49, %v534_v43 }
 0x2c1   :  { %v573_v44 = vmul.f32 0.35355338, %v529_v11  ;;  %v6879_v29 = vpack.c.bf16 %v529_v11, %v526_v24 }
 0x2c2   :  { %v6881_v53 = vpack.c.bf16 %v575_v52, %v574_v51  ;;  %848 = vrot.lane.b32.xlu0 %v6877_v23, %s6453_s7 }
 0x2c3   :  { %v6885_v56 = vpack.c.bf16 %v573_v44, %v572_v28  ;;  %v5400_v57 = vpop.f32.mrb[4].mxu1 }
 0x2c4   :  { %8321 = vst [vmem:[#allocation24_spill] sm:$0xff] %v6881_v53  ;;  %v550_v17 = vadd.f32 %v5400_v57, %v6835_v25  ;;  %v541_v37 = vpop.f32.mrb[5].mxu1 }
 0x2c5   :  { %8322 = vst [vmem:[#allocation25_spill] sm:$0xff] %v6885_v56  ;;  %v542_v35 = vadd.f32 %v6835_v25, %v541_v37  ;;  %v5401_v58 = vpop.f32.mrb[6].mxu1 }
 0x2c6   :  { %v553_v59 = vadd.f32 %v5401_v58, %v6835_v25  ;;  %798 = vrot.lane.b32.xlu0 %v6879_v29, %s6453_s7  ;;  %v544_v60 = vpop.f32.mrb[7].mxu1  ;;  %v578_v62 = vmul.f32 0.35355338, %v550_v17 }
 0x2c7   :  { %v545_v61 = vadd.f32 %v6835_v25, %v544_v60  ;;  %v576_v47 = vmul.f32 0.35355338, %v542_v35 }
 0x2c8   :  { %v579_v63 = vmul.f32 0.35355338, %v553_v59  ;;  %v6893_v21 = vpack.c.bf16 %v553_v59, %v550_v17 }
 0x2c9   :  { %v577_v2 = vmul.f32 0.35355338, %v545_v61  ;;  %v6895_v3 = vpack.c.bf16 %v545_v61, %v542_v35 }
 0x2ca   :  { %v6897_v45 = vpack.c.bf16 %v579_v63, %v578_v62  ;;  %948 = vrot.lane.b32.xlu1 %v6893_v21, %s6453_s7 }
 0x2cb   :  { %v6901_v5 = vpack.c.bf16 %v577_v2, %v576_v47 }
 0x2ce   :  { %898 = vrot.lane.b32.xlu1 %v6895_v3, %s6453_s7 }
 0x324   :  { %v649_v6 = vpop.permute.xlu1 %648 }
 0x325   :  { %v598_v25 = vpop.permute.xlu0 %597  ;;  %v654_v7 = vsel %vm599_vm2, %v649_v6, 0 }
 0x326   :  { %v604_v31 = vsel %vm599_vm2, %v598_v25, 0 }
 0x327   :  { %5403 = vmatpush3.bf16.xpose.msra.mxu1 %v604_v31 }
 0x328   :  { %5408 = vmatprep.subr.bf16.mxu1 %v8302_v4 }
 0x32d   :  { %v699_v8 = vpop.permute.xlu1 %698 }
 0x32e   :  { %5405 = vmatmul.mubr.msk.bf16.vlgmr.msra.gmra.mrb[8].mxu1 %vm599_vm2, %v6853_v22  ;;  %v704_v9 = vsel %vm599_vm2, %v699_v8, 0 }
 0x32f   :  { %5409 = vmatpush3.bf16.xpose.msra.mxu1 %v654_v7  ;;  %5410 = vmatprep.mubr.msk.bf16.mxu1 %vm6452_vm1, %v8302_v4 }
 0x330   :  { %5414 = vmatprep.subr.bf16.mxu1 %v8302_v4 }
 0x331   :  { %v749_v54 = vpop.permute.xlu1 %748 }
 0x332   :  { %v754_v55 = vsel %vm599_vm2, %v749_v54, 0 }
 0x334   :  { %v849_v36 = vpop.permute.xlu0 %848 }
 0x335   :  { %v854_v27 = vsel %vm599_vm2, %v849_v36, 0 }
 0x336   :  { %5411 = vmatmul.mubr.msk.bf16.vlgmr.msra.gmra.mrb[12].mxu1 %vm599_vm2, %v6849_v19 }
 0x337   :  { %5415 = vmatpush3.bf16.xpose.msra.mxu1 %v704_v9  ;;  %5416 = vmatprep.mubr.msk.bf16.mxu1 %vm6452_vm1, %v8302_v4 }
 0x338   :  { %v799_v12 = vpop.permute.xlu0 %798  ;;  %5420 = vmatprep.subr.bf16.mxu1 %v8302_v4 }
 0x339   :  { %v804_v14 = vsel %vm599_vm2, %v799_v12, 0 }
 0x33a   :  { %5427 = vmatpush3.bf16.xpose.msra.mxu0 %v804_v14 }
 0x33b   :  { %5438 = vmatprep.subr.bf16.mxu0 %v8302_v4 }
 0x33c   :  { %v949_v15 = vpop.permute.xlu1 %948 }
 0x33d   :  { %v954_v0 = vsel %vm599_vm2, %v949_v15, 0 }
 0x33e   :  { %5417 = vmatmul.mubr.msk.bf16.vlgmr.msra.gmra.mrb[16].mxu1 %vm599_vm2, %v6867_v10 }
 0x33f   :  { %5421 = vmatpush3.bf16.xpose.msra.mxu1 %v754_v55  ;;  %5422 = vmatprep.mubr.msk.bf16.mxu1 %vm6452_vm1, %v8302_v4 }
 0x340   :  { %v899_v16 = vpop.permute.xlu1 %898  ;;  %5432 = vmatprep.subr.bf16.mxu1 %v8302_v4 }
 0x341   :  { %v904_v26 = vsel %vm599_vm2, %v899_v16, 0  ;;  %5429 = vmatmul.mubr.msk.bf16.vlgmr.msra.gmra.mrb[8].mxu0 %vm599_vm2, %v6885_v56 }
 0x342   :  { %5439 = vmatpush3.bf16.xpose.msra.mxu0 %v904_v26  ;;  %5440 = vmatprep.mubr.msk.bf16.mxu0 %vm6452_vm1, %v8302_v4 }
 0x343   :  { %5450 = vmatprep.subr.bf16.mxu0 %v8302_v4 }
 0x346   :  { %5423 = vmatmul.mubr.msk.bf16.vlgmr.msra.gmra.mrb[20].mxu1 %vm599_vm2, %v6865_v41 }
 0x347   :  { %5433 = vmatpush3.bf16.xpose.msra.mxu1 %v854_v27  ;;  %5434 = vmatprep.mubr.msk.bf16.mxu1 %vm6452_vm1, %v8302_v4 }
 0x348   :  { %5444 = vmatprep.subr.bf16.mxu1 %v8302_v4 }
 0x349   :  { %5441 = vmatmul.mubr.msk.bf16.vlgmr.msra.gmra.mrb[12].mxu0 %vm599_vm2, %v6901_v5 }
 0x34a   :  { %5452 = vmatprep.mubr.msk.bf16.mxu0 %vm6452_vm1, %v8302_v4 }
 0x34e   :  { %5435 = vmatmul.mubr.msk.bf16.vlgmr.msra.gmra.mrb[24].mxu1 %vm599_vm2, %v6881_v53 }
 0x34f   :  { %5445 = vmatpush3.bf16.xpose.msra.mxu1 %v954_v0  ;;  %5446 = vmatprep.mubr.msk.bf16.mxu1 %vm6452_vm1, %v8302_v4 }
 0x350   :  { %5456 = vmatprep.subr.bf16.mxu1 %v8302_v4 }
 0x356   :  { %5447 = vmatmul.mubr.msk.bf16.vlgmr.msra.gmra.mrb[28].mxu1 %vm599_vm2, %v6897_v45 }
 0x357   :  { %5458 = vmatprep.mubr.msk.bf16.mxu1 %vm6452_vm1, %v8302_v4 }
 0x401   :  { %v640_v32 = vpop.f32.mrb[8].mxu1 }
 0x402   :  { %v6953_v34 = vadd.f32 %v640_v32, %v556_v30  ;;  %v5406_v20 = vpop.f32.mrb[9].mxu1 }
 0x403   :  { %v643_v39 = vpop.f32.mrb[10].mxu1 }
 0x404   :  { %v6955_v40 = vadd.f32 %v643_v39, %v557_v33  ;;  %v5407_v42 = vpop.f32.mrb[11].mxu1 }
 0x409   :  { %v690_v43 = vpop.f32.mrb[12].mxu1 }
 0x40a   :  { %v691_v46 = vadd.f32 %v690_v43, %v556_v30  ;;  %v5412_v24 = vpop.f32.mrb[13].mxu1 }
 0x40b   :  { %v693_v48 = vpop.f32.mrb[14].mxu1 }
 0x40c   :  { %v694_v49 = vadd.f32 %v693_v48, %v557_v33  ;;  %v5413_v50 = vpop.f32.mrb[15].mxu1  ;;  %v1004_v11 = vsel %vm997_vm3, %v691_v46, -inf }
 0x40d   :  { %1005 = vmax.xlane.f32.xlu0 %v1004_v11 }
 0x40e   :  { %v1007_v51 = vsel %vm997_vm3, %v694_v49, -inf }
 0x40f   :  { %1008 = vmax.xlane.f32.xlu1 %v1007_v51 }
 0x411   :  { %v740_v52 = vpop.f32.mrb[16].mxu1 }
 0x412   :  { %v6959_v28 = vadd.f32 %v740_v52, %v556_v30  ;;  %v5418_v44 = vpop.f32.mrb[17].mxu1 }
 0x413   :  { %v743_v57 = vpop.f32.mrb[18].mxu1 }
 0x414   :  { %v6961_v17 = vadd.f32 %v743_v57, %v557_v33  ;;  %v5419_v37 = vpop.f32.mrb[19].mxu1  ;;  %v840_v35 = vpop.f32.mrb[8].mxu0 }
 0x415   :  { %v6963_v58 = vadd.f32 %v840_v35, %v556_v30  ;;  %v5430_v59 = vpop.f32.mrb[9].mxu0 }
 0x416   :  { %v843_v60 = vpop.f32.mrb[10].mxu0 }
 0x417   :  { %v6965_v61 = vadd.f32 %v843_v60, %v557_v33  ;;  %v5431_v62 = vpop.f32.mrb[11].mxu0 }
 0x419   :  { %v790_v63 = vpop.f32.mrb[20].mxu1 }
 0x41a   :  { %v791_v47 = vadd.f32 %v790_v63, %v556_v30  ;;  %v5424_v2 = vpop.f32.mrb[21].mxu1 }
 0x41b   :  { %v793_v25 = vpop.f32.mrb[22].mxu1 }
 0x41c   :  { %v794_v31 = vadd.f32 %v793_v25, %v557_v33  ;;  %v5425_v6 = vpop.f32.mrb[23].mxu1  ;;  %v940_v7 = vpop.f32.mrb[12].mxu0  ;;  %v1016_v8 = vsel %vm997_vm3, %v791_v47, -inf }
 0x41d   :  { %v6968_v36 = vadd.f32 %v940_v7, %v556_v30  ;;  %1017 = vmax.xlane.f32.xlu0 %v1016_v8  ;;  %v5442_v9 = vpop.f32.mrb[13].mxu0 }
 0x41e   :  { %v943_v54 = vpop.f32.mrb[14].mxu0  ;;  %v1019_v15 = vsel %vm997_vm3, %v794_v31, -inf }
 0x41f   :  { %v6970_v12 = vadd.f32 %v943_v54, %v557_v33  ;;  %v5443_v14 = vpop.f32.mrb[15].mxu0 }
 0x421   :  { %1020 = vmax.xlane.f32.xlu0 %v1019_v15  ;;  %v890_v55 = vpop.f32.mrb[24].mxu1 }
 0x422   :  { %v891_v16 = vadd.f32 %v890_v55, %v556_v30  ;;  %v5436_v26 = vpop.f32.mrb[25].mxu1 }
 0x423   :  { %v893_v27 = vpop.f32.mrb[26].mxu1 }
 0x424   :  { %v894_v0 = vadd.f32 %v893_v27, %v557_v33  ;;  %v5437_v32 = vpop.f32.mrb[27].mxu1  ;;  %v1028_v20 = vsel %vm997_vm3, %v891_v16, -inf }
 0x425   :  { %1029 = vmax.xlane.f32.xlu0 %v1028_v20 }
 0x426   :  { %v1031_v39 = vsel %vm997_vm3, %v894_v0, -inf }
 0x427   :  { %1032 = vmax.xlane.f32.xlu1 %v1031_v39 }
 0x429   :  { %v990_v42 = vpop.f32.mrb[28].mxu1 }
 0x42a   :  { %v991_v43 = vadd.f32 %v990_v42, %v556_v30  ;;  %v5448_v24 = vpop.f32.mrb[29].mxu1 }
 0x42b   :  { %v993_v48 = vpop.f32.mrb[30].mxu1 }
 0x42c   :  { %v6975_v50 = vadd.f32 %v993_v48, %v557_v33  ;;  %v5449_v11 = vpop.f32.mrb[31].mxu1  ;;  %v1040_v51 = vsel %vm997_vm3, %v991_v43, -inf }
 0x42d   :  { %1041 = vmax.xlane.f32.xlu0 %v1040_v51 }
 0x42e   :  { %v1043_v52 = vsel %vm997_vm3, %v6975_v50, -inf }
 0x42f   :  { %1044 = vmax.xlane.f32.xlu1 %v1043_v52 }
 0x49a   :  { %v1006_v44 = vpop.xlane.xlu0 %1005 }
 0x49b   :  { %v1048_v57 = vsub.f32 %v691_v46, %v1006_v44 }
 0x49c   :  { %v1009_v37 = vpop.xlane.xlu1 %1008 }
 0x49d   :  { %v1066_v35 = vmul.f32 1.442695, %v1048_v57  ;;  %v1049_v59 = vsub.f32 %v694_v49, %v1009_v37  ;;  %v998_v37 = vsel %vm997_vm3, %v6953_v34, -inf }
 0x49f   :  { %5973 = vpow2.f32 %v1066_v35  ;;  %v1068_v60 = vmul.f32 1.442695, %v1049_v59  ;;  %v1010_v35 = vsel %vm997_vm3, %v6959_v28, -inf }
 0x4a1   :  { %5975 = vpow2.f32 %v1068_v60 }
 0x4a9   :  { %v6980_v30 = vpop.eup %5973 }
 0x4aa   :  { %v1018_v33 = vpop.xlane.xlu0 %1017  ;;  %v1100_v62 = vsel %vm997_vm3, %v6980_v30, 0.0 }
 0x4ab   :  { %v6984_v63 = vpop.eup %5975  ;;  %v1052_v2 = vsub.f32 %v791_v47, %v1018_v33  ;;  %1101 = vadd.xlane.f32.xlu0 %v1100_v62  ;;  %v1022_v33 = vsel %vm997_vm3, %v6963_v58, -inf  ;;  %v1034_v62 = vsel %vm997_vm3, %v6968_v36, -inf }
 0x4ac   :  { %v1103_v25 = vsel %vm997_vm3, %v6984_v63, 0.0 }
 0x4ad   :  { %v1074_v46 = vmul.f32 1.442695, %v1052_v2  ;;  %1104 = vadd.xlane.f32.xlu1 %v1103_v25 }
 0x4ae   :  { %v1021_v6 = vpop.xlane.xlu0 %1020 }
 0x4af   :  { %5977 = vpow2.f32 %v1074_v46  ;;  %v1053_v49 = vsub.f32 %v794_v31, %v1021_v6 }
 0x4b1   :  { %v1076_v7 = vmul.f32 1.442695, %v1053_v49 }
 0x4b2   :  { %v1030_v8 = vpop.xlane.xlu0 %1029 }
 0x4b3   :  { %5979 = vpow2.f32 %v1076_v7  ;;  %v1056_v9 = vsub.f32 %v891_v16, %v1030_v8 }
 0x4b4   :  { %v1033_v16 = vpop.xlane.xlu1 %1032 }
 0x4b5   :  { %v1082_v54 = vmul.f32 1.442695, %v1056_v9  ;;  %v1057_v32 = vsub.f32 %v894_v0, %v1033_v16 }
 0x4b7   :  { %5981 = vpow2.f32 %v1082_v54  ;;  %v1084_v39 = vmul.f32 1.442695, %v1057_v32  ;;  %v1001_v32 = vsel %vm997_vm3, %v6955_v40, -inf }
 0x4b9   :  { %v6988_v14 = vpop.eup %5977  ;;  %5983 = vpow2.f32 %v1084_v39 }
 0x4ba   :  { %v1112_v47 = vsel %vm997_vm3, %v6988_v14, 0.0  ;;  %v1042_v27 = vpop.xlane.xlu0 %1041 }
 0x4bb   :  { %1113 = vadd.xlane.f32.xlu0 %v1112_v47  ;;  %v1060_v20 = vsub.f32 %v991_v43, %v1042_v27 }
 0x4bc   :  { %v1045_v0 = vpop.xlane.xlu1 %1044 }
 0x4bd   :  { %v6992_v15 = vpop.eup %5979  ;;  %v1090_v42 = vmul.f32 1.442695, %v1060_v20  ;;  %v1061_v43 = vsub.f32 %v6975_v50, %v1045_v0  ;;  %v1013_v50 = vsel %vm997_vm3, %v6961_v17, -inf }
 0x4be   :  { %v1115_v55 = vsel %vm997_vm3, %v6992_v15, 0.0 }
 0x4bf   :  { %1116 = vadd.xlane.f32.xlu1 %v1115_v55  ;;  %5985 = vpow2.f32 %v1090_v42  ;;  %v1092_v52 = vmul.f32 1.442695, %v1061_v43 }
 0x4c1   :  { %v6996_v26 = vpop.eup %5981  ;;  %5987 = vpow2.f32 %v1092_v52 }
 0x4c2   :  { %v1124_v31 = vsel %vm997_vm3, %v6996_v26, 0.0 }
 0x4c3   :  { %1125 = vadd.xlane.f32.xlu0 %v1124_v31  ;;  %v7006_v24 = vpop.eup %5983 }
 0x4c4   :  { %v1127_v11 = vsel %vm997_vm3, %v7006_v24, 0.0 }
 0x4c9   :  { %v7008_v48 = vpop.eup %5985 }
 0x4ca   :  { %v1136_v51 = vsel %vm997_vm3, %v7008_v48, 0.0 }
 0x4cb   :  { %v7025_v44 = vpop.eup %5987 }
 0x4cc   :  { %v1139_v57 = vsel %vm997_vm3, %v7025_v44, 0.0 }
 0x4d0   :  { %1323 = vrot.lane.b32.xlu1 %v6861_v38, %s6447_s2 }
 0x4d4   :  { %1417 = vrot.lane.b32.xlu1 %v6877_v23, %s6447_s2 }
 0x4d9   :  { %1229 = vrot.lane.b32.xlu0 %v6845_v13, %s6447_s2 }
 0x4f8   :  { %1128 = vadd.xlane.f32.xlu1 %v1127_v11  ;;  %1137 = vadd.xlane.f32.xlu0 %v1136_v51 }
 0x509   :  { %1511 = vrot.lane.b32.xlu1 %v6893_v21, %s6447_s2 }
 0x50e   :  { %1622 = vrot.lane.b32.xlu0 %v6845_v13, %s6454_s14 }
 0x512   :  { %1726 = vrot.lane.b32.xlu0 %v6861_v38, %s6454_s14 }
 0x516   :  { %1830 = vrot.lane.b32.xlu0 %v6877_v23, %s6454_s14 }
 0x51a   :  { %1934 = vrot.lane.b32.xlu0 %v6893_v21, %s6454_s14 }
 0x52d   :  { %1140 = vadd.xlane.f32.xlu1 %v1139_v57 }
 0x538   :  { %v1102_v60 = vpop.xlane.xlu0 %1101 }
 0x539   :  { %999 = vmax.xlane.f32.xlu0 %v998_v37 }
 0x53a   :  { %v1105_v59 = vpop.xlane.xlu1 %1104 }
 0x53b   :  { %5989 = vrcp.f32 %v1105_v59 }
 0x53c   :  { %5991 = vrcp.f32 %v1102_v60 }
 0x53d   :  { %1011 = vmax.xlane.f32.xlu0 %v1010_v35 }
 0x53e   :  { %1620 = vrot.lane.b32.xlu1 %v6849_v19, %s6455_s15 }
 0x541   :  { %1014 = vmax.xlane.f32.xlu0 %v1013_v50 }
 0x542   :  { %1724 = vrot.lane.b32.xlu1 %v6865_v41, %s6455_s15 }
 0x545   :  { %1023 = vmax.xlane.f32.xlu0 %v1022_v33  ;;  %v5990_v46 = vpop.eup %5989 }
 0x546   :  { %1828 = vrot.lane.b32.xlu1 %v6881_v53, %s6455_s15  ;;  %v5992_v49 = vpop.eup %5991  ;;  %v1161_v7 = vmul.f32 %v5990_v46, %v6984_v63 }
 0x547   :  { %v1160_v8 = vmul.f32 %v5992_v49, %v6980_v30 }
 0x548   :  { %v1114_v2 = vpop.xlane.xlu0 %1113 }
 0x549   :  { %1035 = vmax.xlane.f32.xlu0 %v1034_v62  ;;  %v1175_v54 = vpack.c.bf16 %v1161_v7, %v1160_v8 }
 0x54a   :  { %1932 = vrot.lane.b32.xlu1 %v6897_v45, %s6455_s15 }
 0x54c   :  { %v1117_v25 = vpop.xlane.xlu1 %1116 }
 0x54d   :  { %5993 = vrcp.f32 %v1117_v25 }
 0x54e   :  { %5995 = vrcp.f32 %v1114_v2 }
 0x550   :  { %v1126_v6 = vpop.xlane.xlu0 %1125  ;;  %v1324_v55 = vpop.permute.xlu1 %1323 }
 0x551   :  { %5997 = vrcp.f32 %v1126_v6 }
 0x554   :  { %v1230_v9 = vpop.permute.xlu0 %1229  ;;  %v1418_v27 = vpop.permute.xlu1 %1417 }
 0x555   :  { %5457 = vmatpush3.bf16.msra.mxu1 %v1230_v9 }
 0x556   :  { %5468 = vmatprep.subr.bf16.mxu1 %v8302_v4 }
 0x557   :  { %v5994_v47 = vpop.eup %5993 }
 0x558   :  { %5459 = vmatmul.mubr.msk.bf16.vlgmr.msra.gmra.mrb[32].mxu1 %vm997_vm3, %v1175_v54  ;;  %v5996_v31 = vpop.eup %5995  ;;  %v1165_v16 = vmul.f32 %v5994_v47, %v6992_v15  ;;  %v1025_v15 = vsel %vm997_vm3, %v6965_v61, -inf }
 0x559   :  { %5469 = vmatpush3.bf16.msra.mxu1 %v1324_v55  ;;  %5470 = vmatprep.mubr.msk.bf16.mxu1 %vm6452_vm1, %v8302_v4  ;;  %v1164_v30 = vmul.f32 %v5996_v31, %v6988_v14  ;;  %v1037_v14 = vsel %vm997_vm3, %v6970_v12, -inf }
 0x55a   :  { %5480 = vmatprep.subr.bf16.mxu1 %v8302_v4 }
 0x55b   :  { %v1177_v63 = vpack.c.bf16 %v1165_v16, %v1164_v30  ;;  %v5998_v39 = vpop.eup %5997 }
 0x55c   :  { %v1168_v11 = vmul.f32 %v5998_v39, %v6996_v26 }
 0x560   :  { %5471 = vmatmul.mubr.msk.bf16.vlgmr.msra.gmra.mrb[36].mxu1 %vm997_vm3, %v1177_v63 }
 0x561   :  { %5481 = vmatpush3.bf16.msra.mxu1 %v1418_v27  ;;  %5482 = vmatprep.mubr.msk.bf16.mxu1 %vm6452_vm1, %v8302_v4 }
 0x562   :  { %5492 = vmatprep.subr.bf16.mxu1 %v8302_v4 }
 0x56e   :  { %1002 = vmax.xlane.f32.xlu1 %v1001_v32 }
 0x572   :  { %1026 = vmax.xlane.f32.xlu1 %v1025_v15 }
 0x576   :  { %1038 = vmax.xlane.f32.xlu1 %v1037_v14 }
 0x585   :  { %v1129_v20 = vpop.xlane.xlu1 %1128  ;;  %v1138_v52 = vpop.xlane.xlu0 %1137 }
 0x586   :  { %5999 = vrcp.f32 %v1129_v20 }
 0x587   :  { %6001 = vrcp.f32 %v1138_v52 }
 0x589   :  { %v1512_v43 = vpop.permute.xlu1 %1511  ;;  %v1623_v57 = vpop.permute.xlu0 %1622 }
 0x58a   :  { %v1628_v6 = vsel %vm599_vm2, %v1623_v57, 0 }
 0x58d   :  { %v1727_v37 = vpop.permute.xlu0 %1726 }
 0x58e   :  { %v1732_v8 = vsel %vm599_vm2, %v1727_v37, 0 }
 0x590   :  { %v6000_v42 = vpop.eup %5999 }
 0x591   :  { %v1169_v51 = vmul.f32 %v6000_v42, %v7006_v24  ;;  %v1831_v50 = vpop.permute.xlu0 %1830  ;;  %v6002_v59 = vpop.eup %6001 }
 0x592   :  { %v1172_v60 = vmul.f32 %v6002_v59, %v7008_v48  ;;  %v1836_v27 = vsel %vm599_vm2, %v1831_v50, 0 }
 0x593   :  { %v1179_v0 = vpack.c.bf16 %v1169_v51, %v1168_v11 }
 0x595   :  { %5483 = vmatmul.mubr.msk.bf16.vlgmr.msra.gmra.mrb[40].mxu1 %vm997_vm3, %v1179_v0  ;;  %v1935_v26 = vpop.permute.xlu0 %1934 }
 0x596   :  { %5493 = vmatpush3.bf16.msra.mxu1 %v1512_v43  ;;  %5494 = vmatprep.mubr.msk.bf16.mxu1 %vm6452_vm1, %v8302_v4  ;;  %v1940_v14 = vsel %vm599_vm2, %v1935_v26, 0 }
 0x597   :  { %5504 = vmatprep.subr.bf16.mxu1 %v8302_v4 }
 0x5ba   :  { %v1141_v35 = vpop.xlane.xlu1 %1140 }
 0x5bb   :  { %6003 = vrcp.f32 %v1141_v35 }
 0x5c5   :  { %v6004_v24 = vpop.eup %6003 }
 0x5c6   :  { %v1173_v33 = vmul.f32 %v6004_v24, %v7025_v44  ;;  %v1000_v62 = vpop.xlane.xlu0 %999 }
 0x5c7   :  { %v1046_v2 = vsub.f32 %v6953_v34, %v1000_v62  ;;  %v1621_v34 = vpop.permute.xlu1 %1620 }
 0x5c8   :  { %v1181_v25 = vpack.c.bf16 %v1173_v33, %v1172_v60 }
 0x5c9   :  { %v1062_v46 = vmul.f32 1.442695, %v1046_v2 }
 0x5ca   :  { %5495 = vmatmul.mubr.msk.bf16.vlgmr.msra.gmra.mrb[44].mxu1 %vm997_vm3, %v1181_v25  ;;  %v1012_v49 = vpop.xlane.xlu0 %1011 }
 0x5cb   :  { %6005 = vpow2.f32 %v1062_v46  ;;  %5505 = vmatpush3.bf16.xpose.msra.mxu1 %v1628_v6  ;;  %v1050_v7 = vsub.f32 %v6959_v28, %v1012_v49  ;;  %5506 = vmatprep.mubr.msk.bf16.mxu1 %vm6452_vm1, %v8302_v4  ;;  %v1725_v63 = vpop.permute.xlu1 %1724 }
 0x5cc   :  { %5516 = vmatprep.subr.bf16.mxu1 %v8302_v4 }
 0x5cd   :  { %v1070_v48 = vmul.f32 1.442695, %v1050_v7 }
 0x5ce   :  { %v1015_v44 = vpop.xlane.xlu0 %1014 }
 0x5cf   :  { %6007 = vpow2.f32 %v1070_v48  ;;  %v1829_v15 = vpop.permute.xlu1 %1828  ;;  %v1051_v51 = vsub.f32 %v6961_v17, %v1015_v44 }
 0x5d1   :  { %v1072_v52 = vmul.f32 1.442695, %v1051_v51 }
 0x5d2   :  { %5507 = vmatmul.mubr.msk.bf16.vlgmr.msra.gmra.mrb[48].mxu1 %vm599_vm2, %v1621_v34  ;;  %v1024_v9 = vpop.xlane.xlu0 %1023 }
 0x5d3   :  { %5517 = vmatpush3.bf16.xpose.msra.mxu1 %v1732_v8  ;;  %v1054_v54 = vsub.f32 %v6963_v58, %v1024_v9  ;;  %5518 = vmatprep.mubr.msk.bf16.mxu1 %vm6452_vm1, %v8302_v4  ;;  %v1933_v11 = vpop.permute.xlu1 %1932 }
 0x5d4   :  { %5528 = vmatprep.subr.bf16.mxu1 %v8302_v4 }
 0x5d5   :  { %v7087_v28 = vpop.eup %6005  ;;  %v1078_v47 = vmul.f32 1.442695, %v1054_v54 }
 0x5d6   :  { %v1036_v55 = vpop.xlane.xlu0 %1035  ;;  %v1094_v31 = vsel %vm997_vm3, %v7087_v28, 0.0 }
 0x5d7   :  { %6009 = vpow2.f32 %v1078_v47  ;;  %v1058_v16 = vsub.f32 %v6968_v36, %v1036_v55  ;;  %1095 = vadd.xlane.f32.xlu0 %v1094_v31 }
 0x5d9   :  { %v7092_v30 = vpop.eup %6007  ;;  %v1086_v58 = vmul.f32 1.442695, %v1058_v16 }
 0x5da   :  { %5519 = vmatmul.mubr.msk.bf16.vlgmr.msra.gmra.mrb[52].mxu1 %vm599_vm2, %v1725_v63  ;;  %v1106_v32 = vsel %vm997_vm3, %v7092_v30, 0.0 }
 0x5db   :  { %6011 = vpow2.f32 %v1086_v58  ;;  %5529 = vmatpush3.bf16.xpose.msra.mxu1 %v1836_v27  ;;  %1107 = vadd.xlane.f32.xlu0 %v1106_v32 }
 0x5dc   :  { %5530 = vmatprep.mubr.msk.bf16.mxu1 %vm6452_vm1, %v8302_v4  ;;  %5540 = vmatprep.subr.bf16.mxu1 %v8302_v4 }
 0x5e1   :  { %v7101_v36 = vpop.eup %6009 }
 0x5e2   :  { %5531 = vmatmul.mubr.msk.bf16.vlgmr.msra.gmra.mrb[56].mxu1 %vm599_vm2, %v1829_v15  ;;  %v1118_v20 = vsel %vm997_vm3, %v7101_v36, 0.0 }
 0x5e3   :  { %5541 = vmatpush3.bf16.xpose.msra.mxu1 %v1940_v14  ;;  %1119 = vadd.xlane.f32.xlu0 %v1118_v20 }
 0x5e4   :  { %5542 = vmatprep.mubr.msk.bf16.mxu1 %vm6452_vm1, %v8302_v4  ;;  %5552 = vmatprep.subr.bf16.mxu1 %v8302_v4 }
 0x5e5   :  { %v7110_v39 = vpop.eup %6011 }
 0x5e6   :  { %v1130_v42 = vsel %vm997_vm3, %v7110_v39, 0.0 }
 0x5e7   :  { %1131 = vadd.xlane.f32.xlu0 %v1130_v42 }
 0x5ea   :  { %5543 = vmatmul.mubr.msk.bf16.vlgmr.msra.gmra.mrb[60].mxu1 %vm599_vm2, %v1933_v11 }
 0x5eb   :  { %5554 = vmatprep.mubr.msk.bf16.mxu1 %vm6452_vm1, %v8302_v4 }
 0x5fb   :  { %v1003_v0 = vpop.xlane.xlu1 %1002 }
 0x5fc   :  { %v1047_v43 = vsub.f32 %v6955_v40, %v1003_v0 }
 0x5fd   :  { %1182 = vrot.lane.b32.xlu0 %v6847_v18, %s6447_s2 }
 0x5fe   :  { %v1064_v57 = vmul.f32 1.442695, %v1047_v43 }
 0x5ff   :  { %v1027_v37 = vpop.xlane.xlu1 %1026 }
 0x600   :  { %6013 = vpow2.f32 %v1064_v57  ;;  %v1055_v35 = vsub.f32 %v6965_v61, %v1027_v37 }
 0x601   :  { %1570 = vrot.lane.b32.xlu0 %v6847_v18, %s6454_s14  ;;  %6015 = vpow2.f32 %v1072_v52 }
 0x602   :  { %v1080_v50 = vmul.f32 1.442695, %v1055_v35 }
 0x603   :  { %v1039_v26 = vpop.xlane.xlu1 %1038 }
 0x604   :  { %v1059_v17 = vsub.f32 %v6970_v12, %v1039_v26  ;;  %6017 = vpow2.f32 %v1080_v50 }
 0x605   :  { %1674 = vrot.lane.b32.xlu0 %v6863_v1, %s6454_s14 }
 0x606   :  { %v1088_v40 = vmul.f32 1.442695, %v1059_v17 }
 0x608   :  { %6019 = vpow2.f32 %v1088_v40  ;;  %v7217_v40 = vld [vmem:[#allocation5 + $0x10] sm:$0xff] }
 0x609   :  { %1778 = vrot.lane.b32.xlu0 %v6879_v29, %s6454_s14 }
 0x60a   :  { %v7129_v59 = vpop.eup %6013 }
 0x60b   :  { %v1097_v61 = vsel %vm997_vm3, %v7129_v59, 0.0  ;;  %v7133_v24 = vpop.eup %6015 }
 0x60c   :  { %1098 = vadd.xlane.f32.xlu1 %v1097_v61  ;;  %v1109_v12 = vsel %vm997_vm3, %v7133_v24, 0.0 }
 0x60d   :  { %1882 = vrot.lane.b32.xlu0 %v6895_v3, %s6454_s14 }
 0x60e   :  { %v7139_v60 = vpop.eup %6017 }
 0x60f   :  { %v1121_v33 = vsel %vm997_vm3, %v7139_v60, 0.0 }
 0x610   :  { %1110 = vadd.xlane.f32.xlu1 %v1109_v12 }
 0x611   :  { %2214 = vrot.lane.b32.xlu0 %v6845_v13, %s6456_s19 }
 0x612   :  { %v7145_v62 = vpop.eup %6019 }
 0x613   :  { %v1133_v2 = vsel %vm997_vm3, %v7145_v62, 0.0 }
 0x614   :  { %1122 = vadd.xlane.f32.xlu1 %v1121_v33 }
 0x615   :  { %2804 = vrot.lane.b32.xlu0 %v6847_v18, %s6457_s20 }
 0x618   :  { %1134 = vadd.xlane.f32.xlu1 %v1133_v2 }
 0x619   :  { %2855 = vrot.lane.b32.xlu0 %v6845_v13, %s6457_s20 }
 0x61d   :  { %2906 = vrot.lane.b32.xlu0 %v6863_v1, %s6457_s20 }
 0x621   :  { %2957 = vrot.lane.b32.xlu0 %v6861_v38, %s6457_s20 }
 0x629   :  { %1276 = vrot.lane.b32.xlu1 %v6863_v1, %s6447_s2 }
 0x62b   :  { %v7159_v25 = vpop.f32.mrb[32].mxu1 }
 0x62c   :  { %8323 = vst [vmem:[#allocation26_spill] sm:$0xff] %v7159_v25  ;;  %v5460_v46 = vpop.f32.mrb[33].mxu1 }
 0x62d   :  { %v7161_v6 = vpop.f32.mrb[34].mxu1  ;;  %1370 = vrot.lane.b32.xlu1 %v6879_v29, %s6447_s2 }
 0x62e   :  { %v5461_v7 = vpop.f32.mrb[35].mxu1 }
 0x62f   :  { %v7221_v7 = vld [vmem:[#allocation5 + $0x18] sm:$0xff] }
 0x631   :  { %1464 = vrot.lane.b32.xlu1 %v6895_v3, %s6447_s2  ;;  %s6458_s2 = smov 112  }
 0x633   :  { %v7169_v48 = vpop.f32.mrb[36].mxu1 }
 0x634   :  { %8324 = vst [vmem:[#allocation27_spill] sm:$0xff] %v7169_v48  ;;  %v5472_v44 = vpop.f32.mrb[37].mxu1 }
 0x635   :  { %v7171_v34 = vpop.f32.mrb[38].mxu1  ;;  %1568 = vrot.lane.b32.xlu1 %v6853_v22, %s6455_s15 }
 0x636   :  { %8325 = vst [vmem:[#allocation28_spill] sm:$0xff] %v7171_v34  ;;  %v5473_v9 = vpop.f32.mrb[39].mxu1 }
 0x639   :  { %1672 = vrot.lane.b32.xlu1 %v6867_v10, %s6455_s15 }
 0x63d   :  { %1776 = vrot.lane.b32.xlu1 %v6885_v56, %s6455_s15 }
 0x641   :  { %1880 = vrot.lane.b32.xlu1 %v6901_v5, %s6455_s15 }
 0x645   :  { %2308 = vrot.lane.b32.xlu1 %v6861_v38, %s6456_s19 }
 0x649   :  { %2402 = vrot.lane.b32.xlu1 %v6877_v23, %s6456_s19 }
 0x64d   :  { %2496 = vrot.lane.b32.xlu1 %v6893_v21, %s6456_s19 }
 0x651   :  { %2802 = vrot.lane.b32.xlu1 %v6853_v22, %s6458_s2 }
 0x655   :  { %2853 = vrot.lane.b32.xlu1 %v6849_v19, %s6458_s2 }
 0x659   :  { %2904 = vrot.lane.b32.xlu1 %v6867_v10, %s6458_s2 }
 0x664   :  { %v1096_v54 = vpop.xlane.xlu0 %1095 }
 0x665   :  { %6021 = vrcp.f32 %v1096_v54 }
 0x668   :  { %v7195_v47 = vpop.f32.mrb[40].mxu1  ;;  %v1108_v58 = vpop.xlane.xlu0 %1107 }
 0x669   :  { %8326 = vst [vmem:[#allocation29_spill] sm:$0xff] %v7195_v47  ;;  %v5484_v55 = vpop.f32.mrb[41].mxu1 }
 0x66a   :  { %v7197_v31 = vpop.f32.mrb[42].mxu1 }
 0x66b   :  { %8327 = vst [vmem:[#allocation30_spill] sm:$0xff] %v7197_v31  ;;  %v5485_v63 = vpop.f32.mrb[43].mxu1 }
 0x66f   :  { %v6022_v17 = vpop.eup %6021 }
 0x670   :  { %v1120_v27 = vpop.xlane.xlu0 %1119  ;;  %v1158_v12 = vmul.f32 %v6022_v17, %v7087_v28 }
 0x674   :  { %v1132_v32 = vpop.xlane.xlu0 %1131 }
 0x678   :  { %v1183_v15 = vpop.permute.xlu0 %1182 }
 0x679   :  { %5451 = vmatpush3.bf16.msra.mxu0 %v1183_v15 }
 0x67a   :  { %5462 = vmatprep.subr.bf16.mxu0 %v8302_v4 }
 0x67c   :  { %v7202_v14 = vpop.permute.xlu0 %1570 }
 0x680   :  { %v7204_v20 = vpop.permute.xlu0 %1674 }
 0x684   :  { %v7206_v42 = vpop.permute.xlu0 %1778 }
 0x688   :  { %v7208_v11 = vpop.permute.xlu0 %1882 }
 0x68c   :  { %v2215_v51 = vpop.permute.xlu0 %2214 }
 0x68d   :  { %5553 = vmatpush3.bf16.msra.mxu1 %v2215_v51 }
 0x68e   :  { %5564 = vmatprep.subr.bf16.mxu1 %v8302_v4 }
 0x699   :  { %v1099_v0 = vpop.xlane.xlu1 %1098 }
 0x69a   :  { %6023 = vrcp.f32 %v1099_v0 }
 0x69d   :  { %v7211_v43 = vpop.f32.mrb[44].mxu1  ;;  %v1111_v52 = vpop.xlane.xlu1 %1110 }
 0x69e   :  { %8328 = vst [vmem:[#allocation31_spill] sm:$0xff] %v7211_v43  ;;  %6025 = vrcp.f32 %v1111_v52  ;;  %v5496_v57 = vpop.f32.mrb[45].mxu1 }
 0x69f   :  { %v7213_v37 = vpop.f32.mrb[46].mxu1  ;;  %6027 = vrcp.f32 %v1108_v58 }
 0x6a0   :  { %8329 = vst [vmem:[#allocation32_spill] sm:$0xff] %v7213_v37  ;;  %v5497_v50 = vpop.f32.mrb[47].mxu1 }
 0x6a1   :  { %v1123_v26 = vpop.xlane.xlu1 %1122 }
 0x6a2   :  { %6029 = vrcp.f32 %v1123_v26 }
 0x6a3   :  { %6031 = vrcp.f32 %v1120_v27 }
 0x6a4   :  { %v6024_v61 = vpop.eup %6023 }
 0x6a5   :  { %v1159_v33 = vmul.f32 %v6024_v61, %v7129_v59  ;;  %v1664_v2 = vpop.f32.mrb[48].mxu1  ;;  %v1135_v46 = vpop.xlane.xlu1 %1134 }
 0x6a6   :  { %v7224_v44 = vadd.f32 %v1664_v2, %v7217_v40  ;;  %v5508_v9 = vpop.f32.mrb[49].mxu1  ;;  %6033 = vrcp.f32 %v1135_v46 }
 0x6a7   :  { %v1667_v54 = vpop.f32.mrb[50].mxu1  ;;  %v1174_v55 = vpack.c.bf16 %v1159_v33, %v1158_v12  ;;  %6035 = vrcp.f32 %v1132_v32 }
 0x6a8   :  { %v6026_v63 = vpop.eup %6025  ;;  %v7227_v58 = vadd.f32 %v1667_v54, %v7221_v7  ;;  %v5509_v15 = vpop.f32.mrb[51].mxu1  ;;  %v1989_v28 = vsel %vm997_vm3, %v7224_v44, -inf }
 0x6a9   :  { %v1277_v59 = vpop.permute.xlu1 %1276  ;;  %1990 = vmax.xlane.f32.xlu0 %v1989_v28  ;;  %5453 = vmatmul.mubr.msk.bf16.vlgmr.msra.gmra.mrb[16].mxu0 %vm997_vm3, %v1174_v55  ;;  %v6028_v51 = vpop.eup %6027  ;;  %v1163_v27 = vmul.f32 %v6026_v63, %v7133_v24 }
 0x6aa   :  { %5463 = vmatpush3.bf16.msra.mxu0 %v1277_v59  ;;  %v1992_v0 = vsel %vm997_vm3, %v7227_v58, -inf  ;;  %5464 = vmatprep.mubr.msk.bf16.mxu0 %vm6452_vm1, %v8302_v4  ;;  %v1162_v52 = vmul.f32 %v6028_v51, %v7092_v30 }
 0x6ab   :  { %1993 = vmax.xlane.f32.xlu1 %v1992_v0  ;;  %5474 = vmatprep.subr.bf16.mxu0 %v8302_v4 }
 0x6ac   :  { %v1176_v17 = vpack.c.bf16 %v1163_v27, %v1162_v52  ;;  %v6030_v61 = vpop.eup %6029 }
 0x6ad   :  { %v1768_v57 = vpop.f32.mrb[52].mxu1  ;;  %v1371_v33 = vpop.permute.xlu1 %1370  ;;  %v1167_v24 = vmul.f32 %v6030_v61, %v7139_v60 }
 0x6ae   :  { %v5520_v50 = vpop.f32.mrb[53].mxu1  ;;  %v6032_v2 = vpop.eup %6031 }
 0x6af   :  { %v1771_v26 = vpop.f32.mrb[54].mxu1  ;;  %v1166_v30 = vmul.f32 %v6032_v2, %v7101_v36  ;;  %v1680_v50 = vsel %vm599_vm2, %v7204_v20, 0  ;;  %v7278_v20 = vadd.f32 %v1768_v57, %v7217_v40 }
 0x6b0   :  { %v5521_v12 = vpop.f32.mrb[55].mxu1  ;;  %v6034_v32 = vpop.eup %6033 }
 0x6b1   :  { %5465 = vmatmul.mubr.msk.bf16.vlgmr.msra.gmra.mrb[20].mxu0 %vm997_vm3, %v1176_v17  ;;  %v1178_v55 = vpack.c.bf16 %v1167_v24, %v1166_v30  ;;  %v1465_v15 = vpop.permute.xlu1 %1464  ;;  %v6036_v28 = vpop.eup %6035  ;;  %v1171_v60 = vmul.f32 %v6034_v32, %v7145_v62  ;;  %v1576_v62 = vsel %vm599_vm2, %v7202_v14, 0  ;;  %v1784_v14 = vsel %vm599_vm2, %v7206_v42, 0 }
 0x6b2   :  { %5475 = vmatpush3.bf16.msra.mxu0 %v1371_v33  ;;  %5476 = vmatprep.mubr.msk.bf16.mxu0 %vm6452_vm1, %v8302_v4  ;;  %v1170_v36 = vmul.f32 %v6036_v28, %v7110_v39  ;;  %v1888_v12 = vsel %vm599_vm2, %v7208_v11, 0  ;;  %v7290_v42 = vadd.f32 %v1771_v26, %v7221_v7  ;;  %v2001_v57 = vsel %vm997_vm3, %v7278_v20, -inf }
 0x6b3   :  { %5486 = vmatprep.subr.bf16.mxu0 %v8302_v4 }
 0x6b4   :  { %v1180_v27 = vpack.c.bf16 %v1171_v60, %v1170_v36  ;;  %v2004_v30 = vsel %vm997_vm3, %v7290_v42, -inf }
 0x6b5   :  { %v1872_v46 = vpop.f32.mrb[56].mxu1  ;;  %v1569_v39 = vpop.permute.xlu1 %1568 }
 0x6b6   :  { %v5532_v9 = vpop.f32.mrb[57].mxu1  ;;  %v7297_v2 = vadd.f32 %v1872_v46, %v7217_v40 }
 0x6b7   :  { %v1875_v54 = vpop.f32.mrb[58].mxu1 }
 0x6b8   :  { %v5533_v63 = vpop.f32.mrb[59].mxu1  ;;  %v7284_v33 = vadd.f32 %v1875_v54, %v7221_v7  ;;  %v2013_v26 = vsel %vm997_vm3, %v7297_v2, -inf }
 0x6b9   :  { %5477 = vmatmul.mubr.msk.bf16.vlgmr.msra.gmra.mrb[24].mxu0 %vm997_vm3, %v1178_v55  ;;  %v1673_v17 = vpop.permute.xlu1 %1672 }
 0x6ba   :  { %5487 = vmatpush3.bf16.msra.mxu0 %v1465_v15  ;;  %5488 = vmatprep.mubr.msk.bf16.mxu0 %vm6452_vm1, %v8302_v4  ;;  %v2016_v11 = vsel %vm997_vm3, %v7284_v33, -inf }
 0x6bb   :  { %5498 = vmatprep.subr.bf16.mxu0 %v8302_v4 }
 0x6bc   :  { %2955 = vrot.lane.b32.xlu1 %v6865_v41, %s6458_s2 }
 0x6bd   :  { %v7253_v59 = vpop.f32.mrb[60].mxu1  ;;  %v1777_v61 = vpop.permute.xlu1 %1776 }
 0x6be   :  { %v5544_v51 = vpop.f32.mrb[61].mxu1 }
 0x6bf   :  { %v7255_v0 = vpop.f32.mrb[62].mxu1  ;;  %3008 = vrot.lane.b32.xlu0 %v6879_v29, %s6457_s20 }
 0x6c0   :  { %v5545_v52 = vpop.f32.mrb[63].mxu1 }
 0x6c1   :  { %5489 = vmatmul.mubr.msk.bf16.vlgmr.msra.gmra.mrb[28].mxu0 %vm997_vm3, %v1180_v27  ;;  %v1881_v24 = vpop.permute.xlu1 %1880 }
 0x6c2   :  { %5500 = vmatprep.mubr.msk.bf16.mxu0 %vm6452_vm1, %v8302_v4 }
 0x6c3   :  { %5499 = vmatpush3.bf16.xpose.msra.mxu0 %v1576_v62 }
 0x6c4   :  { %5510 = vmatprep.subr.bf16.mxu0 %v8302_v4 }
 0x6ca   :  { %5501 = vmatmul.mubr.msk.bf16.vlgmr.msra.gmra.mrb[32].mxu0 %vm599_vm2, %v1569_v39 }
 0x6cb   :  { %5511 = vmatpush3.bf16.xpose.msra.mxu0 %v1680_v50  ;;  %5512 = vmatprep.mubr.msk.bf16.mxu0 %vm6452_vm1, %v8302_v4 }
 0x6cc   :  { %5522 = vmatprep.subr.bf16.mxu0 %v8302_v4 }
 0x6d2   :  { %5513 = vmatmul.mubr.msk.bf16.vlgmr.msra.gmra.mrb[36].mxu0 %vm599_vm2, %v1673_v17 }
 0x6d3   :  { %5523 = vmatpush3.bf16.xpose.msra.mxu0 %v1784_v14  ;;  %5524 = vmatprep.mubr.msk.bf16.mxu0 %vm6452_vm1, %v8302_v4 }
 0x6d4   :  { %5534 = vmatprep.subr.bf16.mxu0 %v8302_v4 }
 0x6da   :  { %5525 = vmatmul.mubr.msk.bf16.vlgmr.msra.gmra.mrb[40].mxu0 %vm599_vm2, %v1777_v61 }
 0x6db   :  { %5535 = vmatpush3.bf16.xpose.msra.mxu0 %v1888_v12  ;;  %5536 = vmatprep.mubr.msk.bf16.mxu0 %vm6452_vm1, %v8302_v4 }
 0x6dc   :  { %5546 = vmatprep.subr.bf16.mxu0 %v8302_v4 }
 0x6de   :  { %2002 = vmax.xlane.f32.xlu0 %v2001_v57 }
 0x6e0   :  { %2017 = vmax.xlane.f32.xlu1 %v2016_v11 }
 0x6e2   :  { %5537 = vmatmul.mubr.msk.bf16.vlgmr.msra.gmra.mrb[44].mxu0 %vm599_vm2, %v1881_v24  ;;  %2005 = vmax.xlane.f32.xlu0 %v2004_v30 }
 0x6e3   :  { %5548 = vmatprep.mubr.msk.bf16.mxu0 %vm6452_vm1, %v8302_v4 }
 0x6e6   :  { %2014 = vmax.xlane.f32.xlu0 %v2013_v26  ;;  %v7335_v26 = vadd.f32 %v7255_v0, %v7221_v7 }
 0x6e8   :  { %v2028_v0 = vsel %vm997_vm3, %v7335_v26, -inf }
 0x77c   :  { %v7306_v9 = vpop.f32.mrb[16].mxu0 }
 0x77d   :  { %v5454_v54 = vpop.f32.mrb[17].mxu0 }
 0x77e   :  { %v7308_v55 = vpop.f32.mrb[18].mxu0 }
 0x77f   :  { %v5455_v32 = vpop.f32.mrb[19].mxu0 }
 0x784   :  { %v7312_v63 = vpop.f32.mrb[20].mxu0 }
 0x785   :  { %8330 = vst [vmem:[#allocation33_spill] sm:$0xff] %v7312_v63  ;;  %v5466_v15 = vpop.f32.mrb[21].mxu0 }
 0x786   :  { %v7314_v28 = vpop.f32.mrb[22].mxu0 }
 0x787   :  { %8331 = vst [vmem:[#allocation34_spill] sm:$0xff] %v7314_v28  ;;  %v5467_v36 = vpop.f32.mrb[23].mxu0 }
 0x788   :  { %v7342_v36 = vpop.permute.xlu1 %2308 }
 0x78c   :  { %v7318_v51 = vpop.f32.mrb[24].mxu0 }
 0x78d   :  { %8332 = vst [vmem:[#allocation35_spill] sm:$0xff] %v7318_v51  ;;  %v5478_v27 = vpop.f32.mrb[25].mxu0 }
 0x78e   :  { %v7320_v52 = vpop.f32.mrb[26].mxu0  ;;  %v7346_v27 = vadd.f32 %v7253_v59, %v7217_v40 }
 0x78f   :  { %8333 = vst [vmem:[#allocation36_spill] sm:$0xff] %v7320_v52  ;;  %v5479_v39 = vpop.f32.mrb[27].mxu0 }
 0x794   :  { %v7324_v50 = vpop.f32.mrb[28].mxu0 }
 0x795   :  { %8334 = vst [vmem:[#allocation37_spill] sm:$0xff] %v7324_v50  ;;  %v5490_v17 = vpop.f32.mrb[29].mxu0 }
 0x796   :  { %v7326_v14 = vpop.f32.mrb[30].mxu0  ;;  %v7350_v17 = vpop.permute.xlu0 %2804 }
 0x797   :  { %8335 = vst [vmem:[#allocation38_spill] sm:$0xff] %v7326_v14  ;;  %v5491_v12 = vpop.f32.mrb[31].mxu0 }
 0x79d   :  { %v1612_v57 = vpop.f32.mrb[32].mxu0 }
 0x79e   :  { %v7331_v11 = vadd.f32 %v1612_v57, %v7217_v40  ;;  %v5502_v24 = vpop.f32.mrb[33].mxu0 }
 0x79f   :  { %v1615_v30 = vpop.f32.mrb[34].mxu0  ;;  %v2025_v24 = vsel %vm997_vm3, %v7346_v27, -inf }
 0x7a0   :  { %v7338_v54 = vadd.f32 %v1615_v30, %v7221_v7  ;;  %v5503_v32 = vpop.f32.mrb[35].mxu0  ;;  %v1983_v15 = vsel %vm997_vm3, %v7331_v11, -inf  ;;  %v7356_v30 = vpop.permute.xlu1 %2402 }
 0x7a1   :  { %1984 = vmax.xlane.f32.xlu1 %v1983_v15  ;;  %v7358_v15 = vpop.permute.xlu0 %2855 }
 0x7a2   :  { %v1986_v39 = vsel %vm997_vm3, %v7338_v54, -inf }
 0x7a3   :  { %1987 = vmax.xlane.f32.xlu0 %v1986_v39 }
 0x7a4   :  { %v7360_v35 = vpop.permute.xlu1 %2496 }
 0x7a5   :  { %2029 = vmax.xlane.f32.xlu1 %v2028_v0  ;;  %v1716_v12 = vpop.f32.mrb[36].mxu0  ;;  %v7364_v16 = vpop.permute.xlu0 %2906 }
 0x7a6   :  { %v5514_v57 = vpop.f32.mrb[37].mxu0 }
 0x7a7   :  { %2026 = vmax.xlane.f32.xlu0 %v2025_v24  ;;  %v1719_v59 = vpop.f32.mrb[38].mxu0 }
 0x7a8   :  { %v5515_v32 = vpop.f32.mrb[39].mxu0  ;;  %v7368_v62 = vpop.permute.xlu1 %2802 }
 0x7a9   :  { %v7370_v8 = vpop.permute.xlu0 %2957 }
 0x7ac   :  { %v7378_v46 = vpop.permute.xlu1 %2853 }
 0x7ad   :  { %v7362_v61 = vpop.f32.mrb[40].mxu0 }
 0x7ae   :  { %v5526_v39 = vpop.f32.mrb[41].mxu0 }
 0x7af   :  { %v7366_v0 = vpop.f32.mrb[42].mxu0  ;;  %v1991_v39 = vpop.xlane.xlu0 %1990 }
 0x7b0   :  { %v5527_v57 = vpop.f32.mrb[43].mxu0  ;;  %v2033_v47 = vsub.f32 %v7224_v44, %v1991_v39  ;;  %v7395_v44 = vadd.f32 %v1716_v12, %v7217_v40 }
 0x7b1   :  { %v7382_v57 = vpop.permute.xlu1 %2904 }
 0x7b2   :  { %v2051_v52 = vmul.f32 1.442695, %v2033_v47  ;;  %v7398_v47 = vadd.f32 %v1719_v59, %v7221_v7 }
 0x7b3   :  { %v7384_v4 = vpop.permute.xlu0 %3008 }
 0x7b5   :  { %v7372_v60 = vpop.f32.mrb[44].mxu0  ;;  %v1994_v43 = vpop.xlane.xlu1 %1993 }
 0x7b6   :  { %3059 = vrot.lane.b32.xlu1 %v6877_v23, %s6457_s20  ;;  %v5538_v24 = vpop.f32.mrb[45].mxu0  ;;  %v2034_v50 = vsub.f32 %v7227_v58, %v1994_v43 }
 0x7b7   :  { %v7376_v32 = vpop.f32.mrb[46].mxu0  ;;  %v2003_v37 = vpop.xlane.xlu0 %2002 }
 0x7b8   :  { %v5539_v49 = vpop.f32.mrb[47].mxu0  ;;  %v2037_v48 = vsub.f32 %v7278_v20, %v2003_v37  ;;  %v1995_v37 = vsel %vm997_vm3, %v7395_v44, -inf }
 0x7b9   :  { %v7387_v14 = vpop.permute.xlu1 %2955  ;;  %v2053_v49 = vmul.f32 1.442695, %v2034_v50 }
 0x7ba   :  { %v2059_v28 = vmul.f32 1.442695, %v2037_v48  ;;  %v1998_v48 = vsel %vm997_vm3, %v7398_v47, -inf }
 0x7bb   :  { %v2006_v24 = vpop.xlane.xlu0 %2005  ;;  %6037 = vpow2.f32 %v2053_v49 }
 0x7bc   :  { %v2038_v31 = vsub.f32 %v7290_v42, %v2006_v24  ;;  %6039 = vpow2.f32 %v2051_v52 }
 0x7bd   :  { %3006 = vrot.lane.b32.xlu0 %v6885_v56, %s6458_s2  ;;  %v2018_v51 = vpop.xlane.xlu1 %2017 }
 0x7be   :  { %v2042_v56 = vsub.f32 %v7284_v33, %v2018_v51  ;;  %v2061_v63 = vmul.f32 1.442695, %v2038_v31 }
 0x7bf   :  { %v2015_v34 = vpop.xlane.xlu0 %2014 }
 0x7c0   :  { %v2041_v43 = vsub.f32 %v7297_v2, %v2015_v34  ;;  %v2069_v58 = vmul.f32 1.442695, %v2042_v56  ;;  %6041 = vpow2.f32 %v2061_v63 }
 0x7c1   :  { %6043 = vpow2.f32 %v2059_v28 }
 0x7c2   :  { %v2067_v42 = vmul.f32 1.442695, %v2041_v43  ;;  %6045 = vpow2.f32 %v2069_v58 }
 0x7c4   :  { %6047 = vpow2.f32 %v2067_v42 }
 0x7c5   :  { %v6038_v20 = vpop.eup %6037 }
 0x7c6   :  { %v6040_v56 = vpop.eup %6039  ;;  %v2088_v34 = vsel %vm997_vm3, %v6038_v20, 0.0 }
 0x7c7   :  { %v2085_v33 = vsel %vm997_vm3, %v6040_v56, 0.0 }
 0x7ca   :  { %v7405_v31 = vpop.eup %6041 }
 0x7cb   :  { %v6044_v2 = vpop.eup %6043  ;;  %v2100_v63 = vsel %vm997_vm3, %v7405_v31, 0.0 }
 0x7cc   :  { %v7410_v28 = vpop.eup %6045  ;;  %v2097_v51 = vsel %vm997_vm3, %v6044_v2, 0.0 }
 0x7cd   :  { %v2112_v50 = vsel %vm997_vm3, %v7410_v28, 0.0 }
 0x7ce   :  { %v7413_v52 = vpop.eup %6047 }
 0x7cf   :  { %v2109_v12 = vsel %vm997_vm3, %v7413_v52, 0.0 }
 0x7da   :  { %1996 = vmax.xlane.f32.xlu1 %v1995_v37 }
 0x7dc   :  { %1999 = vmax.xlane.f32.xlu0 %v1998_v48 }
 0x7de   :  { %2089 = vadd.xlane.f32.xlu1 %v2088_v34 }
 0x7e0   :  { %2086 = vadd.xlane.f32.xlu0 %v2085_v33 }
 0x7e2   :  { %2101 = vadd.xlane.f32.xlu1 %v2100_v63 }
 0x7e4   :  { %2098 = vadd.xlane.f32.xlu0 %v2097_v51 }
 0x7e6   :  { %2113 = vadd.xlane.f32.xlu1 %v2112_v50 }
 0x7e8   :  { %2110 = vadd.xlane.f32.xlu0 %v2109_v12 }
 0x82e   :  { %v7419_v59 = vpop.xlane.xlu1 %1984 }
 0x830   :  { %v7421_v39 = vpop.xlane.xlu0 %1987 }
 0x832   :  { %v2030_v24 = vpop.xlane.xlu1 %2029 }
 0x833   :  { %v2046_v49 = vsub.f32 %v7335_v26, %v2030_v24 }
 0x834   :  { %v2027_v43 = vpop.xlane.xlu0 %2026 }
 0x835   :  { %v2077_v58 = vmul.f32 1.442695, %v2046_v49  ;;  %v2045_v42 = vsub.f32 %v7346_v27, %v2027_v43 }
 0x836   :  { %v7437_v26 = vpop.permute.xlu1 %3059 }
 0x837   :  { %6049 = vpow2.f32 %v2077_v58  ;;  %v2075_v37 = vmul.f32 1.442695, %v2045_v42  ;;  %v7443_v58 = vadd.f32 %v7362_v61, %v7217_v40  ;;  %v7447_v42 = vadd.f32 %v7366_v0, %v7221_v7 }
 0x838   :  { %v7439_v27 = vpop.permute.xlu0 %3006 }
 0x839   :  { %6051 = vpow2.f32 %v2075_v37 }
 0x841   :  { %v7425_v48 = vpop.eup %6049 }
 0x842   :  { %v2124_v34 = vsel %vm997_vm3, %v7425_v48, 0.0 }
 0x843   :  { %v7429_v33 = vpop.eup %6051  ;;  %2125 = vadd.xlane.f32.xlu1 %v2124_v34  ;;  %v2007_v34 = vsel %vm997_vm3, %v7443_v58, -inf }
 0x844   :  { %v2121_v63 = vsel %vm997_vm3, %v7429_v33, 0.0 }
 0x845   :  { %2122 = vadd.xlane.f32.xlu0 %v2121_v63 }
 0x854   :  { %3110 = vrot.lane.b32.xlu1 %v6895_v3, %s6457_s20 }
 0x85b   :  { %3057 = vrot.lane.b32.xlu0 %v6881_v53, %s6458_s2 }
 0x867   :  { %v1997_v51 = vpop.xlane.xlu1 %1996 }
 0x869   :  { %v2000_v50 = vpop.xlane.xlu0 %1999 }
 0x86b   :  { %v2090_v12 = vpop.xlane.xlu1 %2089 }
 0x86c   :  { %6053 = vrcp.f32 %v2090_v12 }
 0x86d   :  { %v2087_v24 = vpop.xlane.xlu0 %2086 }
 0x86e   :  { %6055 = vrcp.f32 %v2087_v24  ;;  %v2010_v24 = vsel %vm997_vm3, %v7447_v42, -inf }
 0x86f   :  { %v2102_v43 = vpop.xlane.xlu1 %2101 }
 0x871   :  { %v2099_v49 = vpop.xlane.xlu0 %2098 }
 0x872   :  { %6057 = vrcp.f32 %v2099_v49 }
 0x873   :  { %6059 = vrcp.f32 %v2102_v43  ;;  %v2114_v61 = vpop.xlane.xlu1 %2113  ;;  %v8336_v43 = vmov 0.0  }
 0x875   :  { %v2111_v63 = vpop.xlane.xlu0 %2110 }
 0x876   :  { %v6054_v37 = vpop.eup %6053  ;;  %6061 = vrcp.f32 %v2111_v63  ;;  %v2036_v63 = vsub.f32 %v7398_v47, %v2000_v50 }
 0x877   :  { %v2146_v53 = vmul.f32 %v6054_v37, %v6038_v20  ;;  %6063 = vrcp.f32 %v2114_v61 }
 0x878   :  { %2008 = vmax.xlane.f32.xlu1 %v2007_v34  ;;  %v6056_v12 = vpop.eup %6055 }
 0x879   :  { %v2145_v41 = vmul.f32 %v6056_v12, %v6040_v56  ;;  %v7483_v12 = vadd.f32 %v7372_v60, %v7217_v40 }
 0x87a   :  { %2011 = vmax.xlane.f32.xlu0 %v2010_v24  ;;  %v7487_v24 = vadd.f32 %v7376_v32, %v7221_v7 }
 0x87b   :  { %v2160_v49 = vpack.c.bf16 %v2146_v53, %v2145_v41 }
 0x87c   :  { %v6058_v25 = vpop.eup %6057 }
 0x87d   :  { %5555 = vmatmul.mubr.msk.bf16.vlgmr.msra.gmra.mrb[64].mxu1 %vm997_vm3, %v2160_v49  ;;  %v6060_v0 = vpop.eup %6059  ;;  %v2149_v34 = vmul.f32 %v6058_v25, %v6044_v2  ;;  %v2032_v2 = vsub.f32 %v7338_v54, %v7421_v39  ;;  %v2019_v54 = vsel %vm997_vm3, %v7483_v12, -inf }
 0x87e   :  { %5565 = vmatpush3.bf16.msra.mxu1 %v7342_v36  ;;  %5566 = vmatprep.mubr.msk.bf16.mxu1 %vm6452_vm1, %v8336_v43  ;;  %v2150_v20 = vmul.f32 %v6060_v0, %v7405_v31 }
 0x87f   :  { %5576 = vmatprep.subr.bf16.mxu1 %v8336_v43 }
 0x880   :  { %v2162_v56 = vpack.c.bf16 %v2150_v20, %v2149_v34  ;;  %v6062_v37 = vpop.eup %6061 }
 0x881   :  { %v6064_v41 = vpop.eup %6063  ;;  %v2153_v53 = vmul.f32 %v6062_v37, %v7413_v52  ;;  %v2035_v52 = vsub.f32 %v7395_v44, %v1997_v51  ;;  %v2022_v44 = vsel %vm997_vm3, %v7487_v24, -inf  ;;  %v2810_v37 = vsel %vm599_vm2, %v7350_v17, 0 }
 0x882   :  { %v2154_v25 = vmul.f32 %v6064_v41, %v7410_v28  ;;  %v2049_v28 = vmul.f32 1.442695, %v2032_v2  ;;  %v2861_v41 = vsel %vm599_vm2, %v7358_v15, 0  ;;  %v2912_v17 = vsel %vm599_vm2, %v7364_v16, 0 }
 0x884   :  { %v2164_v36 = vpack.c.bf16 %v2154_v25, %v2153_v53 }
 0x885   :  { %5567 = vmatmul.mubr.msk.bf16.vlgmr.msra.gmra.mrb[68].mxu1 %vm997_vm3, %v2162_v56 }
 0x886   :  { %5577 = vmatpush3.bf16.msra.mxu1 %v7356_v30  ;;  %5578 = vmatprep.mubr.msk.bf16.mxu1 %vm6452_vm1, %v8336_v43  ;;  %v2031_v30 = vsub.f32 %v7331_v11, %v7419_v59  ;;  %v2057_v11 = vmul.f32 1.442695, %v2036_v63 }
 0x887   :  { %5588 = vmatprep.subr.bf16.mxu1 %v8336_v43 }
 0x888   :  { %v2047_v31 = vmul.f32 1.442695, %v2031_v30 }
 0x889   :  { %3161 = vrot.lane.b32.xlu1 %v6893_v21, %s6457_s20 }
 0x88a   :  { %6065 = vpow2.f32 %v2047_v31 }
 0x88b   :  { %6067 = vpow2.f32 %v2049_v28 }
 0x88d   :  { %5579 = vmatmul.mubr.msk.bf16.vlgmr.msra.gmra.mrb[72].mxu1 %vm997_vm3, %v2164_v36 }
 0x88e   :  { %5589 = vmatpush3.bf16.msra.mxu1 %v7360_v35  ;;  %5590 = vmatprep.mubr.msk.bf16.mxu1 %vm6452_vm1, %v8336_v43  ;;  %v2055_v35 = vmul.f32 1.442695, %v2035_v52 }
 0x88f   :  { %5630 = vmatprep.subr.bf16.mxu1 %v8336_v43 }
 0x890   :  { %3108 = vrot.lane.b32.xlu0 %v6901_v5, %s6458_s2  ;;  %6069 = vpow2.f32 %v2055_v35 }
 0x891   :  { %6071 = vpow2.f32 %v2057_v11 }
 0x894   :  { %v7491_v59 = vpop.eup %6065 }
 0x895   :  { %v2079_v40 = vsel %vm997_vm3, %v7491_v59, 0.0  ;;  %v7497_v60 = vpop.eup %6067 }
 0x896   :  { %v2082_v7 = vsel %vm997_vm3, %v7497_v60, 0.0 }
 0x89a   :  { %v7501_v32 = vpop.eup %6069 }
 0x89b   :  { %v2091_v47 = vsel %vm997_vm3, %v7501_v32, 0.0  ;;  %v7505_v39 = vpop.eup %6071 }
 0x89c   :  { %v2094_v51 = vsel %vm997_vm3, %v7505_v39, 0.0 }
 0x8ad   :  { %2020 = vmax.xlane.f32.xlu1 %v2019_v54 }
 0x8af   :  { %2023 = vmax.xlane.f32.xlu0 %v2022_v44 }
 0x8b1   :  { %2080 = vadd.xlane.f32.xlu1 %v2079_v40 }
 0x8b5   :  { %2083 = vadd.xlane.f32.xlu1 %v2082_v7 }
 0x8b9   :  { %2092 = vadd.xlane.f32.xlu1 %v2091_v47 }
 0x8bd   :  { %2095 = vadd.xlane.f32.xlu1 %v2094_v51 }
 0x8c5   :  { %3159 = vrot.lane.b32.xlu0 %v6897_v45, %s6458_s2 }
 0x8d0   :  { %v2126_v50 = vpop.xlane.xlu1 %2125 }
 0x8d1   :  { %6073 = vrcp.f32 %v2126_v50 }
 0x8d2   :  { %v2123_v61 = vpop.xlane.xlu0 %2122 }
 0x8d3   :  { %6075 = vrcp.f32 %v2123_v61 }
 0x8d4   :  { %v3111_v16 = vpop.permute.xlu1 %3110 }
 0x8d6   :  { %v3058_v15 = vpop.permute.xlu0 %3057 }
 0x8db   :  { %v6074_v49 = vpop.eup %6073 }
 0x8dc   :  { %v2158_v34 = vmul.f32 %v6074_v49, %v7425_v48 }
 0x8dd   :  { %v6076_v0 = vpop.eup %6075 }
 0x8de   :  { %v2157_v20 = vmul.f32 %v6076_v0, %v7429_v33 }
 0x8e0   :  { %v2166_v56 = vpack.c.bf16 %v2158_v34, %v2157_v20 }
 0x8e2   :  { %5591 = vmatmul.mubr.msk.bf16.vlgmr.msra.gmra.mrb[76].mxu1 %vm997_vm3, %v2166_v56 }
 0x8e3   :  { %5631 = vmatpush3.bf16.xpose.msra.mxu1 %v2810_v37  ;;  %5632 = vmatprep.mubr.msk.bf16.mxu1 %vm6452_vm1, %v8336_v43 }
 0x8e4   :  { %5636 = vmatprep.subr.bf16.mxu1 %v8336_v43 }
 0x8ea   :  { %5633 = vmatmul.mubr.msk.bf16.vlgmr.msra.gmra.mrb[80].mxu1 %vm599_vm2, %v7368_v62  ;;  %v2963_v62 = vsel %vm599_vm2, %v7370_v8, 0 }
 0x8eb   :  { %5637 = vmatpush3.bf16.xpose.msra.mxu1 %v2861_v41  ;;  %5638 = vmatprep.mubr.msk.bf16.mxu1 %vm6452_vm1, %v8336_v43 }
 0x8ec   :  { %5642 = vmatprep.subr.bf16.mxu1 %v8336_v43 }
 0x8f2   :  { %5639 = vmatmul.mubr.msk.bf16.vlgmr.msra.gmra.mrb[84].mxu1 %vm599_vm2, %v7378_v46  ;;  %v3014_v46 = vsel %vm599_vm2, %v7384_v4, 0  ;;  %v3065_v4 = vsel %vm599_vm2, %v7437_v26, 0 }
 0x8f3   :  { %5643 = vmatpush3.bf16.xpose.msra.mxu1 %v2912_v17  ;;  %5644 = vmatprep.mubr.msk.bf16.mxu1 %vm6452_vm1, %v8336_v43 }
 0x8f4   :  { %5648 = vmatprep.subr.bf16.mxu1 %v8336_v43 }
 0x8fa   :  { %5645 = vmatmul.mubr.msk.bf16.vlgmr.msra.gmra.mrb[88].mxu1 %vm599_vm2, %v7382_v57 }
 0x8fb   :  { %5649 = vmatpush3.bf16.xpose.msra.mxu1 %v2963_v62  ;;  %5650 = vmatprep.mubr.msk.bf16.mxu1 %vm6452_vm1, %v8336_v43 }
 0x8fc   :  { %5654 = vmatprep.subr.bf16.mxu1 %v8336_v43 }
 0x902   :  { %5651 = vmatmul.mubr.msk.bf16.vlgmr.msra.gmra.mrb[92].mxu1 %vm599_vm2, %v7387_v14  ;;  %v3116_v14 = vsel %vm599_vm2, %v3111_v16, 0 }
 0x903   :  { %5655 = vmatpush3.bf16.xpose.msra.mxu1 %v3014_v46  ;;  %5656 = vmatprep.mubr.msk.bf16.mxu1 %vm6452_vm1, %v8336_v43 }
 0x904   :  { %5660 = vmatprep.subr.bf16.mxu1 %v8336_v43 }
 0x905   :  { %v2009_v8 = vpop.xlane.xlu1 %2008 }
 0x906   :  { %v2039_v57 = vsub.f32 %v7443_v58, %v2009_v8 }
 0x907   :  { %v2012_v48 = vpop.xlane.xlu0 %2011 }
 0x908   :  { %v2063_v33 = vmul.f32 1.442695, %v2039_v57  ;;  %v2040_v53 = vsub.f32 %v7447_v42, %v2012_v48 }
 0x909   :  { %v3162_v42 = vpop.permute.xlu1 %3161 }
 0x90a   :  { %6077 = vpow2.f32 %v2063_v33  ;;  %v2065_v25 = vmul.f32 1.442695, %v2040_v53  ;;  %5657 = vmatmul.mubr.msk.bf16.vlgmr.msra.gmra.mrb[96].mxu1 %vm599_vm2, %v7439_v27  ;;  %v3167_v31 = vsel %vm599_vm2, %v3162_v42, 0  ;;  %v7619_v33 = vld [vmem:[#allocation5 + $0x20] sm:$0xff] }
 0x90b   :  { %5661 = vmatpush3.bf16.xpose.msra.mxu1 %v3065_v4  ;;  %5662 = vmatprep.mubr.msk.bf16.mxu1 %vm6452_vm1, %v8336_v43  ;;  %v3109_v30 = vpop.permute.xlu0 %3108  ;;  %v7621_v4 = vld [vmem:[#allocation5 + $0x28] sm:$0xff] }
 0x90c   :  { %6079 = vpow2.f32 %v2065_v25  ;;  %5666 = vmatprep.subr.bf16.mxu1 %v8336_v43 }
 0x912   :  { %5663 = vmatmul.mubr.msk.bf16.vlgmr.msra.gmra.mrb[100].mxu1 %vm599_vm2, %v3058_v15 }
 0x913   :  { %5667 = vmatpush3.bf16.xpose.msra.mxu1 %v3116_v14  ;;  %5668 = vmatprep.mubr.msk.bf16.mxu1 %vm6452_vm1, %v8336_v43 }
 0x914   :  { %v7560_v26 = vpop.eup %6077  ;;  %5672 = vmatprep.subr.bf16.mxu1 %v8336_v43 }
 0x915   :  { %v2103_v27 = vsel %vm997_vm3, %v7560_v26, 0.0 }
 0x916   :  { %v7565_v58 = vpop.eup %6079  ;;  %2104 = vadd.xlane.f32.xlu1 %v2103_v27 }
 0x917   :  { %v2106_v36 = vsel %vm997_vm3, %v7565_v58, 0.0 }
 0x918   :  { %2107 = vadd.xlane.f32.xlu0 %v2106_v36 }
 0x91a   :  { %5669 = vmatmul.mubr.msk.bf16.vlgmr.msra.gmra.mrb[104].mxu1 %vm599_vm2, %v3109_v30 }
 0x91b   :  { %5673 = vmatpush3.bf16.xpose.msra.mxu1 %v3167_v31  ;;  %5674 = vmatprep.mubr.msk.bf16.mxu1 %vm6452_vm1, %v8336_v43 }
 0x91c   :  { %5684 = vmatprep.subr.bf16.mxu1 %v8336_v43 }
 0x92e   :  { %2355 = vrot.lane.b32.xlu0 %v6879_v29, %s6456_s19 }
 0x93a   :  { %v2021_v2 = vpop.xlane.xlu1 %2020 }
 0x93b   :  { %v2043_v28 = vsub.f32 %v7483_v12, %v2021_v2 }
 0x93c   :  { %v2024_v52 = vpop.xlane.xlu0 %2023 }
 0x93d   :  { %v2071_v35 = vmul.f32 1.442695, %v2043_v28  ;;  %v2044_v63 = vsub.f32 %v7487_v24, %v2024_v52 }
 0x93e   :  { %v2081_v25 = vpop.xlane.xlu1 %2080 }
 0x93f   :  { %6081 = vpow2.f32 %v2071_v35  ;;  %v2073_v11 = vmul.f32 1.442695, %v2044_v63 }
 0x940   :  { %v3160_v54 = vpop.permute.xlu0 %3159 }
 0x941   :  { %6083 = vpow2.f32 %v2073_v11  ;;  %5675 = vmatmul.mubr.msk.bf16.vlgmr.msra.gmra.mrb[108].mxu1 %vm599_vm2, %v3160_v54 }
 0x942   :  { %5686 = vmatprep.mubr.msk.bf16.mxu1 %vm6452_vm1, %v8336_v43  ;;  %v2084_v28 = vpop.xlane.xlu1 %2083 }
 0x943   :  { %6085 = vrcp.f32 %v2084_v28 }
 0x944   :  { %6087 = vrcp.f32 %v2081_v25 }
 0x946   :  { %v2093_v54 = vpop.xlane.xlu1 %2092 }
 0x949   :  { %v7581_v44 = vpop.eup %6081 }
 0x94a   :  { %v2115_v40 = vsel %vm997_vm3, %v7581_v44, 0.0 }
 0x94b   :  { %v7585_v7 = vpop.eup %6083  ;;  %2116 = vadd.xlane.f32.xlu1 %v2115_v40 }
 0x94c   :  { %v2118_v12 = vsel %vm997_vm3, %v7585_v7, 0.0 }
 0x94f   :  { %2119 = vadd.xlane.f32.xlu1 %v2118_v12 }
 0x950   :  { %v7589_v24 = vpop.f32.mrb[64].mxu1 }
 0x951   :  { %v5556_v47 = vpop.f32.mrb[65].mxu1 }
 0x952   :  { %v7591_v51 = vpop.f32.mrb[66].mxu1 }
 0x953   :  { %v2544_v50 = vpack.c.bf16 %v7591_v51, %v7589_v24  ;;  %v5557_v61 = vpop.f32.mrb[67].mxu1 }
 0x954   :  { %v2096_v61 = vpop.xlane.xlu1 %2095 }
 0x955   :  { %6089 = vrcp.f32 %v2096_v61 }
 0x956   :  { %6091 = vrcp.f32 %v2093_v54 }
 0x958   :  { %v7595_v49 = vpop.f32.mrb[68].mxu1 }
 0x959   :  { %v5568_v0 = vpop.f32.mrb[69].mxu1 }
 0x95a   :  { %v7597_v34 = vpop.f32.mrb[70].mxu1 }
 0x95b   :  { %v2546_v20 = vpack.c.bf16 %v7597_v34, %v7595_v49  ;;  %v5569_v56 = vpop.f32.mrb[71].mxu1 }
 0x960   :  { %2167 = vrot.lane.b32.xlu1 %v6847_v18, %s6456_s19  ;;  %v7603_v37 = vpop.f32.mrb[72].mxu1 }
 0x961   :  { %v5580_v41 = vpop.f32.mrb[73].mxu1 }
 0x962   :  { %v7605_v17 = vpop.f32.mrb[74].mxu1 }
 0x963   :  { %v2548_v62 = vpack.c.bf16 %v7605_v17, %v7603_v37  ;;  %v5581_v16 = vpop.f32.mrb[75].mxu1  ;;  %v8340_v17 = vld [vmem:[#allocation23_spill] sm:$0xff] }
 0x964   :  { %2261 = vrot.lane.b32.xlu1 %v6863_v1, %s6456_s19 }
 0x968   :  { %2449 = vrot.lane.b32.xlu1 %v6895_v3, %s6456_s19 }
 0x9a3   :  { %v2105_v56 = vpop.xlane.xlu1 %2104 }
 0x9b5   :  { %v7613_v46 = vpop.f32.mrb[76].mxu1 }
 0x9b6   :  { %v5592_v15 = vpop.f32.mrb[77].mxu1 }
 0x9b7   :  { %v7615_v8 = vpop.f32.mrb[78].mxu1 }
 0x9b8   :  { %v2550_v57 = vpack.c.bf16 %v7615_v8, %v7613_v46  ;;  %v5593_v48 = vpop.f32.mrb[79].mxu1  ;;  %v8346_v8 = vld [vmem:[#allocation27_spill] sm:$0xff] }
 0x9bd   :  { %v2846_v53 = vpop.f32.mrb[80].mxu1 }
 0x9be   :  { %v7624_v14 = vadd.f32 %v2846_v53, %v7619_v33  ;;  %v5634_v27 = vpop.f32.mrb[81].mxu1 }
 0x9bf   :  { %v2849_v42 = vpop.f32.mrb[82].mxu1  ;;  %v6086_v27 = vpop.eup %6085 }
 0x9c0   :  { %v7627_v36 = vadd.f32 %v2849_v42, %v7621_v4  ;;  %v5635_v30 = vpop.f32.mrb[83].mxu1  ;;  %v3210_v31 = vsel %vm997_vm3, %v7624_v14, -inf  ;;  %v2144_v25 = vmul.f32 %v6086_v27, %v7497_v60 }
 0x9c1   :  { %3211 = vmax.xlane.f32.xlu1 %v3210_v31  ;;  %v6088_v30 = vpop.eup %6087 }
 0x9c2   :  { %v3213_v2 = vsel %vm997_vm3, %v7627_v36, -inf }
 0x9c3   :  { %3214 = vmax.xlane.f32.xlu0 %v3213_v2  ;;  %v2108_v2 = vpop.xlane.xlu0 %2107 }
 0x9c4   :  { %6093 = vrcp.f32 %v2108_v2 }
 0x9c5   :  { %v7633_v52 = vpop.f32.mrb[84].mxu1  ;;  %6095 = vrcp.f32 %v2105_v56 }
 0x9c6   :  { %v5640_v35 = vpop.f32.mrb[85].mxu1 }
 0x9c7   :  { %v7635_v63 = vpop.f32.mrb[86].mxu1 }
 0x9c8   :  { %v5641_v11 = vpop.f32.mrb[87].mxu1 }
 0x9c9   :  { %v2143_v11 = vmul.f32 %v6088_v30, %v7491_v59 }
 0x9cb   :  { %v2159_v61 = vpack.c.bf16 %v2144_v25, %v2143_v11  ;;  %v2356_v11 = vpop.permute.xlu0 %2355 }
 0x9cd   :  { %v7637_v40 = vpop.f32.mrb[88].mxu1 }
 0x9ce   :  { %v5646_v12 = vpop.f32.mrb[89].mxu1 }
 0x9cf   :  { %v7639_v47 = vpop.f32.mrb[90].mxu1 }
 0x9d0   :  { %v5647_v0 = vpop.f32.mrb[91].mxu1 }
 0x9d2   :  { %3441 = vrot.lane.b32.xlu1 %v6845_v13, %s6459_s21 }
 0x9d5   :  { %v2999_v41 = vpop.f32.mrb[92].mxu1 }
 0x9d6   :  { %v5652_v16 = vpop.f32.mrb[93].mxu1  ;;  %3488 = vrot.lane.b32.xlu1 %v6863_v1, %s6459_s21 }
 0x9d7   :  { %v7645_v15 = vpop.f32.mrb[94].mxu1  ;;  %v6090_v16 = vpop.eup %6089 }
 0x9d8   :  { %v2117_v48 = vpop.xlane.xlu1 %2116  ;;  %v5653_v53 = vpop.f32.mrb[95].mxu1  ;;  %v2148_v59 = vmul.f32 %v6090_v16, %v7505_v39 }
 0x9d9   :  { %3394 = vrot.lane.b32.xlu0 %v6847_v18, %s6459_s21  ;;  %v6092_v53 = vpop.eup %6091 }
 0x9da   :  { %v2147_v25 = vmul.f32 %v6092_v53, %v7501_v32  ;;  %v7667_v53 = vadd.f32 %v2999_v41, %v7619_v33 }
 0x9dc   :  { %v2120_v42 = vpop.xlane.xlu1 %2119  ;;  %v2161_v56 = vpack.c.bf16 %v2148_v59, %v2147_v25  ;;  %v7672_v25 = vadd.f32 %v7633_v52, %v7619_v33  ;;  %v3228_v41 = vsel %vm997_vm3, %v7667_v53, -inf }
 0x9dd   :  { %v3050_v31 = vpop.f32.mrb[96].mxu1  ;;  %6097 = vrcp.f32 %v2120_v42 }
 0x9de   :  { %v5658_v28 = vpop.f32.mrb[97].mxu1  ;;  %6099 = vrcp.f32 %v2117_v48  ;;  %v3216_v52 = vsel %vm997_vm3, %v7672_v25, -inf }
 0x9df   :  { %v7650_v35 = vpop.f32.mrb[98].mxu1  ;;  %v6094_v28 = vpop.eup %6093 }
 0x9e0   :  { %v5659_v12 = vpop.f32.mrb[99].mxu1  ;;  %v2168_v0 = vpop.permute.xlu1 %2167  ;;  %v2152_v39 = vmul.f32 %v6094_v28, %v7565_v58  ;;  %v7678_v58 = vadd.f32 %v3050_v31, %v7619_v33 }
 0x9e1   :  { %5547 = vmatpush3.bf16.msra.mxu0 %v2168_v0  ;;  %v6096_v12 = vpop.eup %6095 }
 0x9e2   :  { %5558 = vmatprep.subr.bf16.mxu0 %v8336_v43  ;;  %v2151_v42 = vmul.f32 %v6096_v12, %v7560_v26  ;;  %v3234_v31 = vsel %vm997_vm3, %v7678_v58, -inf  ;;  %v7708_v12 = vadd.f32 %v7639_v47, %v7621_v4  ;;  %v7722_v47 = vadd.f32 %v7650_v35, %v7621_v4 }
 0x9e4   :  { %5549 = vmatmul.mubr.msk.bf16.vlgmr.msra.gmra.mrb[48].mxu0 %vm997_vm3, %v2159_v61  ;;  %v2262_v54 = vpop.permute.xlu1 %2261 }
 0x9e5   :  { %5559 = vmatpush3.bf16.msra.mxu0 %v2262_v54  ;;  %v3101_v60 = vpop.f32.mrb[100].mxu1  ;;  %5560 = vmatprep.mubr.msk.bf16.mxu0 %vm6452_vm1, %v8336_v43  ;;  %v2163_v54 = vpack.c.bf16 %v2152_v39, %v2151_v42 }
 0x9e6   :  { %v5664_v27 = vpop.f32.mrb[101].mxu1  ;;  %5570 = vmatprep.subr.bf16.mxu0 %v8336_v43 }
 0x9e7   :  { %v3104_v30 = vpop.f32.mrb[102].mxu1  ;;  %v6098_v48 = vpop.eup %6097 }
 0x9e8   :  { %v5665_v2 = vpop.f32.mrb[103].mxu1  ;;  %v2450_v59 = vpop.permute.xlu1 %2449  ;;  %v2156_v26 = vmul.f32 %v6098_v48, %v7585_v7  ;;  %v7690_v7 = vadd.f32 %v3101_v60, %v7619_v33 }
 0x9e9   :  { %v6100_v27 = vpop.eup %6099 }
 0x9ea   :  { %v2155_v2 = vmul.f32 %v6100_v27, %v7581_v44  ;;  %v7697_v44 = vadd.f32 %v7637_v40, %v7619_v33  ;;  %v3240_v60 = vsel %vm997_vm3, %v7690_v7, -inf }
 0x9ec   :  { %5561 = vmatmul.mubr.msk.bf16.vlgmr.msra.gmra.mrb[52].mxu0 %vm997_vm3, %v2161_v56  ;;  %v7685_v56 = vadd.f32 %v7635_v63, %v7621_v4  ;;  %v2165_v28 = vpack.c.bf16 %v2156_v26, %v2155_v2  ;;  %v3222_v39 = vsel %vm997_vm3, %v7697_v44, -inf }
 0x9ed   :  { %5571 = vmatpush3.bf16.msra.mxu0 %v2356_v11  ;;  %v3152_v0 = vpop.f32.mrb[104].mxu1  ;;  %5572 = vmatprep.mubr.msk.bf16.mxu0 %vm6452_vm1, %v8336_v43 }
 0x9ee   :  { %v5670_v61 = vpop.f32.mrb[105].mxu1  ;;  %5582 = vmatprep.subr.bf16.mxu0 %v8336_v43  ;;  %v3219_v63 = vsel %vm997_vm3, %v7685_v56, -inf  ;;  %v7702_v11 = vadd.f32 %v3152_v0, %v7619_v33  ;;  %v7716_v0 = vadd.f32 %v7645_v15, %v7621_v4 }
 0x9ef   :  { %v3155_v32 = vpop.f32.mrb[106].mxu1  ;;  %v3225_v61 = vsel %vm997_vm3, %v7708_v12, -inf }
 0x9f0   :  { %v5671_v16 = vpop.f32.mrb[107].mxu1  ;;  %v3246_v40 = vsel %vm997_vm3, %v7702_v11, -inf  ;;  %v3231_v42 = vsel %vm997_vm3, %v7716_v0, -inf  ;;  %v7732_v15 = vadd.f32 %v3155_v32, %v7621_v4 }
 0x9f1   :  { %v7727_v16 = vadd.f32 %v3104_v30, %v7621_v4 }
 0x9f2   :  { %v3249_v30 = vsel %vm997_vm3, %v7732_v15, -inf }
 0x9f3   :  { %v3243_v48 = vsel %vm997_vm3, %v7727_v16, -inf }
 0x9f4   :  { %5573 = vmatmul.mubr.msk.bf16.vlgmr.msra.gmra.mrb[56].mxu0 %vm997_vm3, %v2163_v54  ;;  %v3237_v54 = vsel %vm997_vm3, %v7722_v47, -inf }
 0x9f5   :  { %5583 = vmatpush3.bf16.msra.mxu0 %v2450_v59  ;;  %5584 = vmatprep.mubr.msk.bf16.mxu0 %vm6452_vm1, %v8336_v43 }
 0x9f8   :  { %3229 = vmax.xlane.f32.xlu0 %v3228_v41 }
 0x9fa   :  { %3217 = vmax.xlane.f32.xlu1 %v3216_v52 }
 0x9fc   :  { %3235 = vmax.xlane.f32.xlu0 %v3234_v31  ;;  %5585 = vmatmul.mubr.msk.bf16.vlgmr.msra.gmra.mrb[60].mxu0 %vm997_vm3, %v2165_v28 }
 0x9fe   :  { %3220 = vmax.xlane.f32.xlu1 %v3219_v63 }
 0xa00   :  { %3241 = vmax.xlane.f32.xlu0 %v3240_v60 }
 0xa02   :  { %3223 = vmax.xlane.f32.xlu1 %v3222_v39 }
 0xa04   :  { %3247 = vmax.xlane.f32.xlu0 %v3246_v40 }
 0xa06   :  { %3226 = vmax.xlane.f32.xlu1 %v3225_v61 }
 0xa0a   :  { %3232 = vmax.xlane.f32.xlu1 %v3231_v42  ;;  %v7759_v42 = vld [vmem:[#allocation13] sm:$0xf] }
 0xa0e   :  { %3238 = vmax.xlane.f32.xlu1 %v3237_v54 }
 0xa12   :  { %3244 = vmax.xlane.f32.xlu1 %v3243_v48 }
 0xa14   :  { %v3203_v35 = vpop.f32.mrb[108].mxu1 }
 0xa15   :  { %v7737_v59 = vadd.f32 %v3203_v35, %v7619_v33  ;;  %v5676_v27 = vpop.f32.mrb[109].mxu1  ;;  %v2552_v33 = vld [vmem:[#allocation13 + $0x4] sm:$0xf] }
 0xa16   :  { %3250 = vmax.xlane.f32.xlu1 %v3249_v30  ;;  %v3206_v26 = vpop.f32.mrb[110].mxu1  ;;  %5910 = vmatprep.subr.msk.bf16.mxu0 %vm2577_vm4, %v2552_v33 }
 0xa17   :  { %v7742_v41 = vadd.f32 %v3206_v26, %v7621_v4  ;;  %v5677_v2 = vpop.f32.mrb[111].mxu1  ;;  %v3252_v32 = vsel %vm997_vm3, %v7737_v59, -inf  ;;  %v2579_v4 = vsel %vm2577_vm4, %v2552_v33, 0 }
 0xa18   :  { %3253 = vmax.xlane.f32.xlu0 %v3252_v32  ;;  %5595 = vmatpush3.bf16.msra.mxu0 %v2579_v4 }
 0xa19   :  { %v3255_v52 = vsel %vm997_vm3, %v7742_v41, -inf  ;;  %5911 = vmatprep.subr.msk.bf16.mxu0 %vm2577_vm4, %v7759_v42 }
 0xa1a   :  { %3256 = vmax.xlane.f32.xlu1 %v3255_v52 }
 0xa2b   :  { %3582 = vrot.lane.b32.xlu1 %v6879_v29, %s6459_s21 }
 0xa2e   :  { %3535 = vrot.lane.b32.xlu0 %v6861_v38, %s6459_s21 }
 0xa32   :  { %3629 = vrot.lane.b32.xlu0 %v6877_v23, %s6459_s21 }
 0xa4e   :  { %v3212_v28 = vpop.xlane.xlu1 %3211 }
 0xa4f   :  { %v3258_v31 = vsub.f32 %v7624_v14, %v3212_v28 }
 0xa50   :  { %v3215_v63 = vpop.xlane.xlu0 %3214 }
 0xa51   :  { %v3274_v60 = vmul.f32 1.442695, %v3258_v31  ;;  %v3259_v39 = vsub.f32 %v7627_v36, %v3215_v63 }
 0xa52   :  { %v3442_v40 = vpop.permute.xlu1 %3441 }
 0xa53   :  { %6101 = vpow2.f32 %v3274_v60  ;;  %v3276_v61 = vmul.f32 1.442695, %v3259_v39  ;;  %5685 = vmatpush3.bf16.msra.mxu1 %v3442_v40 }
 0xa54   :  { %5696 = vmatprep.subr.bf16.mxu1 %v8336_v43  ;;  %v7771_v35 = vpop.permute.xlu0 %3394 }
 0xa55   :  { %6103 = vpow2.f32 %v3276_v61 }
 0xa56   :  { %v7773_v27 = vpop.permute.xlu1 %3488 }
 0xa5d   :  { %v7763_v54 = vpop.eup %6101 }
 0xa5e   :  { %v3306_v14 = vsel %vm997_vm3, %v7763_v54, 0.0 }
 0xa5f   :  { %v7767_v48 = vpop.eup %6103  ;;  %3307 = vadd.xlane.f32.xlu0 %v3306_v14 }
 0xa60   :  { %v3309_v36 = vsel %vm997_vm3, %v7767_v48, 0.0 }
 0xa61   :  { %3310 = vadd.xlane.f32.xlu1 %v3309_v36 }
 0xa85   :  { %v3230_v30 = vpop.xlane.xlu0 %3229 }
 0xa86   :  { %v3264_v28 = vsub.f32 %v7667_v53, %v3230_v30 }
 0xa87   :  { %v3218_v26 = vpop.xlane.xlu1 %3217 }
 0xa88   :  { %v3260_v2 = vsub.f32 %v7672_v25, %v3218_v26  ;;  %v3286_v40 = vmul.f32 1.442695, %v3264_v28 }
 0xa89   :  { %v3236_v52 = vpop.xlane.xlu0 %3235 }
 0xa8a   :  { %v3278_v32 = vmul.f32 1.442695, %v3260_v2  ;;  %v3266_v61 = vsub.f32 %v7678_v58, %v3236_v52 }
 0xa8b   :  { %v3221_v33 = vpop.xlane.xlu1 %3220 }
 0xa8c   :  { %6105 = vpow2.f32 %v3278_v32  ;;  %v3261_v4 = vsub.f32 %v7685_v56, %v3221_v33  ;;  %v3290_v56 = vmul.f32 1.442695, %v3266_v61 }
 0xa8d   :  { %v3242_v39 = vpop.xlane.xlu0 %3241 }
 0xa8e   :  { %v3280_v31 = vmul.f32 1.442695, %v3261_v4  ;;  %v3268_v53 = vsub.f32 %v7690_v7, %v3242_v39 }
 0xa8f   :  { %v3224_v63 = vpop.xlane.xlu1 %3223 }
 0xa90   :  { %6107 = vpow2.f32 %v3280_v31  ;;  %v3262_v60 = vsub.f32 %v7697_v44, %v3224_v63 }
 0xa91   :  { %v3248_v2 = vpop.xlane.xlu0 %3247 }
 0xa92   :  { %v3282_v14 = vmul.f32 1.442695, %v3262_v60  ;;  %v3270_v33 = vsub.f32 %v7702_v11, %v3248_v2 }
 0xa93   :  { %v3227_v36 = vpop.xlane.xlu1 %3226 }
 0xa94   :  { %6109 = vpow2.f32 %v3282_v14  ;;  %v3263_v25 = vsub.f32 %v7708_v12, %v3227_v36  ;;  %v3294_v12 = vmul.f32 1.442695, %v3268_v53 }
 0xa95   :  { %6111 = vpow2.f32 %v3286_v40 }
 0xa96   :  { %v7781_v26 = vpop.eup %6105  ;;  %v3284_v30 = vmul.f32 1.442695, %v3263_v25 }
 0xa97   :  { %v3233_v32 = vpop.xlane.xlu1 %3232  ;;  %v3312_v44 = vsel %vm997_vm3, %v7781_v26, 0.0 }
 0xa98   :  { %6113 = vpow2.f32 %v3284_v30  ;;  %v3265_v58 = vsub.f32 %v7716_v0, %v3233_v32  ;;  %3313 = vadd.xlane.f32.xlu0 %v3312_v44  ;;  %v3298_v0 = vmul.f32 1.442695, %v3270_v33 }
 0xa99   :  { %6115 = vpow2.f32 %v3290_v56 }
 0xa9a   :  { %v7787_v52 = vpop.eup %6107  ;;  %v3288_v4 = vmul.f32 1.442695, %v3265_v58 }
 0xa9b   :  { %v3239_v28 = vpop.xlane.xlu1 %3238  ;;  %v3315_v7 = vsel %vm997_vm3, %v7787_v52, 0.0 }
 0xa9c   :  { %6117 = vpow2.f32 %v3288_v4  ;;  %v3267_v31 = vsub.f32 %v7722_v47, %v3239_v28  ;;  %3316 = vadd.xlane.f32.xlu1 %v3315_v7 }
 0xa9d   :  { %6119 = vpow2.f32 %v3294_v12 }
 0xa9e   :  { %v7793_v63 = vpop.eup %6109  ;;  %v3292_v60 = vmul.f32 1.442695, %v3267_v31 }
 0xa9f   :  { %v3245_v39 = vpop.xlane.xlu1 %3244  ;;  %v3318_v40 = vsel %vm997_vm3, %v7793_v63, 0.0  ;;  %v7797_v61 = vpop.eup %6111 }
 0xaa0   :  { %6121 = vpow2.f32 %v3292_v60  ;;  %v3269_v11 = vsub.f32 %v7727_v16, %v3245_v39  ;;  %3319 = vadd.xlane.f32.xlu0 %v3318_v40  ;;  %v3324_v56 = vsel %vm997_vm3, %v7797_v61, 0.0 }
 0xaa1   :  { %6123 = vpow2.f32 %v3298_v0 }
 0xaa2   :  { %v7800_v14 = vpop.eup %6113  ;;  %v3296_v47 = vmul.f32 1.442695, %v3269_v11 }
 0xaa3   :  { %v3251_v36 = vpop.xlane.xlu1 %3250  ;;  %v3321_v25 = vsel %vm997_vm3, %v7800_v14, 0.0  ;;  %v7806_v53 = vpop.eup %6115 }
 0xaa4   :  { %6125 = vpow2.f32 %v3296_v47  ;;  %v3271_v30 = vsub.f32 %v7732_v15, %v3251_v36  ;;  %3322 = vadd.xlane.f32.xlu1 %v3321_v25  ;;  %3325 = vadd.xlane.f32.xlu0 %v3324_v56  ;;  %v3330_v33 = vsel %vm997_vm3, %v7806_v53, 0.0 }
 0xaa5   :  { %v3254_v16 = vpop.xlane.xlu0 %3253 }
 0xaa6   :  { %v7809_v2 = vpop.eup %6117  ;;  %v3300_v32 = vmul.f32 1.442695, %v3271_v30  ;;  %v3272_v44 = vsub.f32 %v7737_v59, %v3254_v16 }
 0xaa7   :  { %v3257_v58 = vpop.xlane.xlu1 %3256  ;;  %v3327_v12 = vsel %vm997_vm3, %v7809_v2, 0.0  ;;  %v7816_v4 = vpop.eup %6119 }
 0xaa8   :  { %6127 = vpow2.f32 %v3300_v32  ;;  %v3302_v28 = vmul.f32 1.442695, %v3272_v44  ;;  %v3273_v15 = vsub.f32 %v7742_v41, %v3257_v58  ;;  %3328 = vadd.xlane.f32.xlu1 %v3327_v12  ;;  %3331 = vadd.xlane.f32.xlu0 %v3330_v33  ;;  %v3336_v0 = vsel %vm997_vm3, %v7816_v4, 0.0 }
 0xaa9   :  { %v2703_v33 = vsel %vm2577_vm4, %v7759_v42, 0  ;;  %v3536_v46 = vpop.permute.xlu0 %3535 }
 0xaaa   :  { %v7819_v7 = vpop.eup %6121  ;;  %6129 = vpow2.f32 %v3302_v28  ;;  %v3304_v31 = vmul.f32 1.442695, %v3273_v15 }
 0xaab   :  { %v3333_v59 = vsel %vm997_vm3, %v7819_v7, 0.0  ;;  %v7825_v60 = vpop.eup %6123 }
 0xaac   :  { %6131 = vpow2.f32 %v3304_v31  ;;  %3334 = vadd.xlane.f32.xlu1 %v3333_v59  ;;  %3337 = vadd.xlane.f32.xlu0 %v3336_v0  ;;  %v3342_v40 = vsel %vm997_vm3, %v7825_v60, 0.0 }
 0xaae   :  { %v7827_v39 = vpop.eup %6125 }
 0xaaf   :  { %v3339_v41 = vsel %vm997_vm3, %v7827_v39, 0.0 }
 0xab0   :  { %3340 = vadd.xlane.f32.xlu1 %v3339_v41  ;;  %3343 = vadd.xlane.f32.xlu0 %v3342_v40 }
 0xab2   :  { %v7833_v11 = vpop.eup %6127 }
 0xab3   :  { %v3345_v47 = vsel %vm997_vm3, %v7833_v11, 0.0 }
 0xab4   :  { %v7837_v36 = vpop.eup %6129  ;;  %3346 = vadd.xlane.f32.xlu1 %v3345_v47 }
 0xab5   :  { %v3348_v25 = vsel %vm997_vm3, %v7837_v36, 0.0 }
 0xab6   :  { %v7841_v56 = vpop.eup %6131  ;;  %3349 = vadd.xlane.f32.xlu0 %v3348_v25  ;;  %v8349_v25 = vld [vmem:[#allocation36_spill] sm:$0xff] }
 0xab7   :  { %v2207_v30 = vpop.f32.mrb[48].mxu0  ;;  %v3351_v16 = vsel %vm997_vm3, %v7841_v56, 0.0 }
 0xab8   :  { %v5550_v32 = vpop.f32.mrb[49].mxu0  ;;  %3352 = vadd.xlane.f32.xlu1 %v3351_v16 }
 0xab9   :  { %v2210_v44 = vpop.f32.mrb[50].mxu0  ;;  %v7914_v32 = vpop.permute.xlu0 %3629 }
 0xaba   :  { %v2543_v58 = vpack.c.bf16 %v2210_v44, %v2207_v30  ;;  %v5551_v12 = vpop.f32.mrb[51].mxu0  ;;  %v8350_v30 = vld [vmem:[#allocation35_spill] sm:$0xff]  ;;  %v3583_v44 = vpop.permute.xlu1 %3582 }
 0xabb   :  { %v8351_v16 = vpack.c.bf16 %v8349_v25, %v8350_v30  ;;  %v8352_v12 = vld [vmem:[#allocation30_spill] sm:$0xff] }
 0xabc   :  { %5596 = vmatprep.mubr.msk.bf16.mxu0 %vm599_vm2, %v2543_v58 }
 0xabd   :  { %5597 = vmatmul.mubr.msk.bf16.vlgmr.msra.gmra.mrb[64].mxu0 %vm599_vm2, %v2544_v50 }
 0xabe   :  { %5613 = vmatpush3.bf16.msra.mxu0 %v2703_v33  ;;  %v8353_v33 = vld [vmem:[#allocation29_spill] sm:$0xff] }
 0xabf   :  { %v2301_v28 = vpop.f32.mrb[52].mxu0  ;;  %5678 = vmatprep.subr.bf16.mxu0 %v8336_v43 }
 0xac0   :  { %v5562_v15 = vpop.f32.mrb[53].mxu0 }
 0xac1   :  { %v2304_v31 = vpop.f32.mrb[54].mxu0  ;;  %v8355_v15 = vld [vmem:[#allocation38_spill] sm:$0xff] }
 0xac2   :  { %v2545_v59 = vpack.c.bf16 %v2304_v31, %v2301_v28  ;;  %v5563_v0 = vpop.f32.mrb[55].mxu0  ;;  %v8354_v28 = vpack.c.bf16 %v8352_v12, %v8353_v33  ;;  %v8356_v31 = vld [vmem:[#allocation37_spill] sm:$0xff] }
 0xac4   :  { %5600 = vmatprep.mubr.msk.bf16.mxu0 %vm599_vm2, %v2545_v59  ;;  %v8357_v59 = vpack.c.bf16 %v8355_v15, %v8356_v31 }
 0xac5   :  { %5601 = vmatmul.mubr.msk.bf16.gmra.mrb[68].mxu0 %vm599_vm2, %v2546_v20 }
 0xac7   :  { %v2395_v42 = vpop.f32.mrb[56].mxu0 }
 0xac8   :  { %v5574_v41 = vpop.f32.mrb[57].mxu0 }
 0xac9   :  { %v2398_v24 = vpop.f32.mrb[58].mxu0  ;;  %3676 = vrot.lane.b32.xlu1 %v6895_v3, %s6459_s21  ;;  %v8359_v41 = vld [vmem:[#allocation31_spill] sm:$0xff] }
 0xaca   :  { %v2547_v51 = vpack.c.bf16 %v2398_v24, %v2395_v42  ;;  %v5575_v50 = vpop.f32.mrb[59].mxu0  ;;  %v8358_v42 = vld [vmem:[#allocation32_spill] sm:$0xff] }
 0xacc   :  { %5604 = vmatprep.mubr.msk.bf16.mxu0 %vm599_vm2, %v2547_v51  ;;  %3723 = vrot.lane.b32.xlu0 %v6893_v21, %s6459_s21 }
 0xacd   :  { %5605 = vmatmul.mubr.msk.bf16.gmra.mrb[72].mxu0 %vm599_vm2, %v2548_v62  ;;  %3922 = vrot.lane.b32.xlu1 %v6847_v18, %s6460_s22 }
 0xacf   :  { %v2489_v49 = vpop.f32.mrb[60].mxu0 }
 0xad0   :  { %v5586_v34 = vpop.f32.mrb[61].mxu0  ;;  %3920 = vrot.lane.b32.xlu0 %v6853_v22, %s6461_s3  ;;  %v8337_v22 = vpack.c.bf16 %v7308_v55, %v7306_v9  ;;  %v8341_v9 = vld [vmem:[#allocation34_spill] sm:$0xff]  ;;  %v8342_v55 = vld [vmem:[#allocation33_spill] sm:$0xff] }
 0xad1   :  { %v2492_v20 = vpop.f32.mrb[62].mxu0  ;;  %3973 = vrot.lane.b32.xlu1 %v6845_v13, %s6460_s22  ;;  %v8343_v62 = vpack.c.bf16 %v8341_v9, %v8342_v55 }
 0xad2   :  { %v2549_v40 = vpack.c.bf16 %v2492_v20, %v2489_v49  ;;  %v5587_v47 = vpop.f32.mrb[63].mxu0 }
 0xad4   :  { %5608 = vmatprep.mubr.msk.bf16.mxu0 %vm599_vm2, %v2549_v40  ;;  %3971 = vrot.lane.b32.xlu0 %v6849_v19, %s6461_s3  ;;  %v8338_v19 = vld [vmem:[#allocation26_spill] sm:$0xff] }
 0xad5   :  { %5609 = vmatmul.mubr.msk.bf16.gmra.mrb[76].mxu0 %vm599_vm2, %v2550_v57  ;;  %4024 = vrot.lane.b32.xlu1 %v6863_v1, %s6460_s22  ;;  %v8339_v37 = vpack.c.bf16 %v7161_v6, %v8338_v19  ;;  %v8345_v6 = vld [vmem:[#allocation28_spill] sm:$0xff] }
 0xad6   :  { %5614 = vmatprep.mubr.msk.bf16.mxu0 %vm599_vm2, %v8337_v22  ;;  %v8347_v57 = vpack.c.bf16 %v8345_v6, %v8346_v8 }
 0xad8   :  { %4022 = vrot.lane.b32.xlu0 %v6867_v10, %s6461_s3  ;;  %v8344_v10 = vld [vmem:[#allocation25_spill] sm:$0xff] }
 0xad9   :  { %4075 = vrot.lane.b32.xlu1 %v6861_v38, %s6460_s22 }
 0xadc   :  { %4126 = vrot.lane.b32.xlu0 %v6879_v29, %s6460_s22 }
 0xadd   :  { %5615 = vmatmul.mubr.msk.bf16.vlgmr.msra.gmra.mrb[64].mxu0 %vm599_vm2, %v8339_v37  ;;  %4073 = vrot.lane.b32.xlu1 %v8340_v17, %s6461_s3 }
 0xade   :  { %5679 = vmatpush3.bf16.msra.mxu0 %v7771_v35  ;;  %5618 = vmatprep.mubr.msk.bf16.mxu0 %vm599_vm2, %v8343_v62  ;;  %v8348_v35 = vld [vmem:[#allocation24_spill] sm:$0xff] }
 0xadf   :  { %5690 = vmatprep.subr.bf16.mxu0 %v8336_v43 }
 0xae0   :  { %4177 = vrot.lane.b32.xlu0 %v6877_v23, %s6460_s22 }
 0xae1   :  { %4124 = vrot.lane.b32.xlu1 %v8344_v10, %s6461_s3 }
 0xae4   :  { %4228 = vrot.lane.b32.xlu0 %v6895_v3, %s6460_s22 }
 0xae5   :  { %5619 = vmatmul.mubr.msk.bf16.gmra.mrb[68].mxu0 %vm599_vm2, %v8347_v57  ;;  %4175 = vrot.lane.b32.xlu1 %v8348_v35, %s6461_s3 }
 0xae6   :  { %5622 = vmatprep.mubr.msk.bf16.mxu0 %vm599_vm2, %v8351_v16 }
 0xae8   :  { %4279 = vrot.lane.b32.xlu0 %v6893_v21, %s6460_s22 }
 0xae9   :  { %4226 = vrot.lane.b32.xlu1 %v6901_v5, %s6461_s3  ;;  %v8360_v5 = vpack.c.bf16 %v8358_v42, %v8359_v41 }
 0xaec   :  { %4277 = vrot.lane.b32.xlu0 %v6897_v45, %s6461_s3  ;;  %v3308_v58 = vpop.xlane.xlu0 %3307 }
 0xaed   :  { %6133 = vrcp.f32 %v3308_v58  ;;  %5623 = vmatmul.mubr.msk.bf16.gmra.mrb[72].mxu0 %vm599_vm2, %v8354_v28 }
 0xaee   :  { %5626 = vmatprep.mubr.msk.bf16.mxu0 %vm599_vm2, %v8357_v59  ;;  %v3311_v0 = vpop.xlane.xlu1 %3310 }
 0xaef   :  { %6135 = vrcp.f32 %v3311_v0 }
 0xaf5   :  { %5627 = vmatmul.mubr.msk.bf16.gmra.mrb[76].mxu0 %vm599_vm2, %v8360_v5 }
 0xaf6   :  { %5680 = vmatprep.mubr.msk.bf16.mxu0 %vm6452_vm1, %v8336_v43 }
 0xaf7   :  { %v6134_v45 = vpop.eup %6133 }
 0xaf8   :  { %v3370_v51 = vmul.f32 %v6134_v45, %v7763_v54 }
 0xaf9   :  { %v6136_v24 = vpop.eup %6135 }
 0xafa   :  { %v3371_v50 = vmul.f32 %v6136_v24, %v7767_v48 }
 0xafc   :  { %v3386_v49 = vpack.c.bf16 %v3371_v50, %v3370_v51 }
 0xafe   :  { %5681 = vmatmul.mubr.msk.bf16.vlgmr.msra.gmra.mrb[80].mxu0 %vm997_vm3, %v3386_v49 }
 0xaff   :  { %5691 = vmatpush3.bf16.msra.mxu0 %v7773_v27  ;;  %5692 = vmatprep.mubr.msk.bf16.mxu0 %vm6452_vm1, %v8336_v43 }
 0xb00   :  { %5702 = vmatprep.subr.bf16.mxu0 %v8336_v43 }
 0xb25   :  { %v3314_v34 = vpop.xlane.xlu0 %3313 }
 0xb26   :  { %6137 = vrcp.f32 %v3314_v34  ;;  %v3779_v34 = vld [vmem:[#allocation13 + $0x8] sm:$0xf] }
 0xb29   :  { %v3317_v20 = vpop.xlane.xlu1 %3316 }
 0xb2a   :  { %6139 = vrcp.f32 %v3317_v20 }
 0xb2d   :  { %v3320_v40 = vpop.xlane.xlu0 %3319 }
 0xb2e   :  { %6141 = vrcp.f32 %v3320_v40 }
 0xb30   :  { %v6138_v22 = vpop.eup %6137 }
 0xb31   :  { %v3323_v47 = vpop.xlane.xlu1 %3322  ;;  %v3326_v54 = vpop.xlane.xlu0 %3325  ;;  %v3372_v19 = vmul.f32 %v6138_v22, %v7781_v26 }
 0xb32   :  { %6143 = vrcp.f32 %v3323_v47 }
 0xb33   :  { %6145 = vrcp.f32 %v3326_v54 }
 0xb34   :  { %v6140_v48 = vpop.eup %6139 }
 0xb35   :  { %v3373_v27 = vmul.f32 %v6140_v48, %v7787_v52  ;;  %v3329_v37 = vpop.xlane.xlu1 %3328  ;;  %v3332_v17 = vpop.xlane.xlu0 %3331 }
 0xb36   :  { %6147 = vrcp.f32 %v3329_v37 }
 0xb37   :  { %v3387_v9 = vpack.c.bf16 %v3373_v27, %v3372_v19  ;;  %6149 = vrcp.f32 %v3332_v17 }
 0xb38   :  { %v6142_v10 = vpop.eup %6141 }
 0xb39   :  { %v3335_v55 = vpop.xlane.xlu1 %3334  ;;  %5687 = vmatmul.mubr.msk.bf16.vlgmr.msra.gmra.mrb[112].mxu1 %vm997_vm3, %v3387_v9  ;;  %v3338_v62 = vpop.xlane.xlu0 %3337  ;;  %v3374_v52 = vmul.f32 %v6142_v10, %v7793_v63 }
 0xb3a   :  { %6151 = vrcp.f32 %v3335_v55  ;;  %5697 = vmatpush3.bf16.msra.mxu1 %v3536_v46  ;;  %5698 = vmatprep.mubr.msk.bf16.mxu1 %vm6452_vm1, %v8336_v43 }
 0xb3b   :  { %5708 = vmatprep.subr.bf16.mxu1 %v8336_v43  ;;  %6153 = vrcp.f32 %v3338_v62 }
 0xb3c   :  { %v6144_v26 = vpop.eup %6143 }
 0xb3d   :  { %v3375_v6 = vmul.f32 %v6144_v26, %v7800_v14  ;;  %v3341_v8 = vpop.xlane.xlu1 %3340  ;;  %v3344_v57 = vpop.xlane.xlu0 %3343 }
 0xb3e   :  { %v6146_v35 = vpop.eup %6145  ;;  %6155 = vrcp.f32 %v3341_v8 }
 0xb3f   :  { %v3388_v25 = vpack.c.bf16 %v3375_v6, %v3374_v52  ;;  %6157 = vrcp.f32 %v3344_v57  ;;  %v3376_v46 = vmul.f32 %v6146_v35, %v7797_v61 }
 0xb40   :  { %v6148_v30 = vpop.eup %6147 }
 0xb41   :  { %v3377_v16 = vmul.f32 %v6148_v30, %v7809_v2  ;;  %v3347_v58 = vpop.xlane.xlu1 %3346  ;;  %5693 = vmatmul.mubr.msk.bf16.vlgmr.msra.gmra.mrb[84].mxu0 %vm997_vm3, %v3388_v25  ;;  %v6150_v12 = vpop.eup %6149 }
 0xb42   :  { %6159 = vrcp.f32 %v3347_v58  ;;  %5703 = vmatpush3.bf16.msra.mxu0 %v3583_v44  ;;  %5704 = vmatprep.mubr.msk.bf16.mxu0 %vm6452_vm1, %v8336_v43  ;;  %v3378_v28 = vmul.f32 %v6150_v12, %v7806_v53 }
 0xb43   :  { %v3350_v63 = vpop.xlane.xlu0 %3349  ;;  %v3389_v14 = vpack.c.bf16 %v3377_v16, %v3376_v46  ;;  %5714 = vmatprep.subr.bf16.mxu0 %v8336_v43 }
 0xb44   :  { %v6152_v33 = vpop.eup %6151  ;;  %6161 = vrcp.f32 %v3350_v63 }
 0xb45   :  { %v3379_v61 = vmul.f32 %v6152_v33, %v7819_v7  ;;  %v3353_v2 = vpop.xlane.xlu1 %3352  ;;  %5699 = vmatmul.mubr.msk.bf16.vlgmr.msra.gmra.mrb[116].mxu1 %vm997_vm3, %v3389_v14  ;;  %v6154_v15 = vpop.eup %6153 }
 0xb46   :  { %6163 = vrcp.f32 %v3353_v2  ;;  %5709 = vmatpush3.bf16.msra.mxu1 %v7914_v32  ;;  %5710 = vmatprep.mubr.msk.bf16.mxu1 %vm6452_vm1, %v8336_v43  ;;  %v3380_v59 = vmul.f32 %v6154_v15, %v7816_v4 }
 0xb47   :  { %v3390_v44 = vpack.c.bf16 %v3379_v61, %v3378_v28  ;;  %5720 = vmatprep.subr.bf16.mxu1 %v8336_v43  ;;  %v3724_v45 = vpop.permute.xlu0 %3723 }
 0xb48   :  { %v6156_v31 = vpop.eup %6155 }
 0xb49   :  { %v3381_v53 = vmul.f32 %v6156_v31, %v7827_v39  ;;  %v3677_v0 = vpop.permute.xlu1 %3676  ;;  %5705 = vmatmul.mubr.msk.bf16.vlgmr.msra.gmra.mrb[88].mxu0 %vm997_vm3, %v3390_v44  ;;  %v6158_v7 = vpop.eup %6157 }
 0xb4a   :  { %5715 = vmatpush3.bf16.msra.mxu0 %v3677_v0  ;;  %5716 = vmatprep.mubr.msk.bf16.mxu0 %vm6452_vm1, %v8336_v43  ;;  %v3382_v41 = vmul.f32 %v6158_v7, %v7825_v60 }
 0xb4b   :  { %v3391_v32 = vpack.c.bf16 %v3381_v53, %v3380_v59  ;;  %v3921_v20 = vpop.permute.xlu0 %3920  ;;  %5912 = vmatprep.subr.msk.bf16.mxu0 %vm2577_vm4, %v3779_v34 }
 0xb4c   :  { %v6160_v42 = vpop.eup %6159 }
 0xb4d   :  { %v3383_v5 = vmul.f32 %v6160_v42, %v7833_v11  ;;  %5711 = vmatmul.mubr.msk.bf16.vlgmr.msra.gmra.mrb[120].mxu1 %vm997_vm3, %v3391_v32  ;;  %v3923_v60 = vpop.permute.xlu1 %3922 }
 0xb4e   :  { %v6162_v4 = vpop.eup %6161  ;;  %5721 = vmatpush3.bf16.msra.mxu1 %v3724_v45  ;;  %5722 = vmatprep.mubr.msk.bf16.mxu1 %vm6452_vm1, %v8336_v43  ;;  %v3928_v49 = vsel %vm599_vm2, %v3923_v60, 0 }
 0xb4f   :  { %v3392_v39 = vpack.c.bf16 %v3383_v5, %v3382_v41  ;;  %5744 = vmatprep.subr.bf16.mxu1 %v8336_v43  ;;  %v3384_v51 = vmul.f32 %v6162_v4, %v7837_v36  ;;  %v3805_v36 = vsel %vm2577_vm4, %v3779_v34, 0  ;;  %v3972_v40 = vpop.permute.xlu0 %3971 }
 0xb50   :  { %v6164_v24 = vpop.eup %6163 }
 0xb51   :  { %v3385_v50 = vmul.f32 %v6164_v24, %v7841_v56  ;;  %5717 = vmatmul.mubr.msk.bf16.vlgmr.msra.gmra.mrb[92].mxu0 %vm997_vm3, %v3392_v39  ;;  %v3974_v56 = vpop.permute.xlu1 %3973 }
 0xb52   :  { %5727 = vmatpush3.bf16.msra.mxu0 %v3805_v36  ;;  %v3979_v47 = vsel %vm599_vm2, %v3974_v56, 0 }
 0xb53   :  { %v3393_v11 = vpack.c.bf16 %v3385_v50, %v3384_v51  ;;  %5768 = vmatprep.subr.bf16.mxu0 %v8336_v43  ;;  %v4023_v54 = vpop.permute.xlu0 %4022 }
 0xb55   :  { %5723 = vmatmul.mubr.msk.bf16.vlgmr.msra.gmra.mrb[124].mxu1 %vm997_vm3, %v3393_v11  ;;  %v4025_v22 = vpop.permute.xlu1 %4024 }
 0xb56   :  { %5746 = vmatprep.mubr.msk.bf16.mxu1 %vm6452_vm1, %v8336_v43  ;;  %v4030_v48 = vsel %vm599_vm2, %v4025_v22, 0  ;;  %v8028_v22 = vld [vmem:[#allocation5 + $0x30] sm:$0xff] }
 0xb57   :  { %5745 = vmatpush3.bf16.xpose.msra.mxu1 %v3928_v49  ;;  %v4127_v19 = vpop.permute.xlu0 %4126 }
 0xb58   :  { %5750 = vmatprep.subr.bf16.mxu1 %v8336_v43  ;;  %v4132_v33 = vsel %vm599_vm2, %v4127_v19, 0  ;;  %v8030_v19 = vld [vmem:[#allocation5 + $0x38] sm:$0xff] }
 0xb59   :  { %v4076_v27 = vpop.permute.xlu1 %4075 }
 0xb5a   :  { %v4081_v37 = vsel %vm599_vm2, %v4076_v27, 0 }
 0xb5b   :  { %v4178_v17 = vpop.permute.xlu0 %4177 }
 0xb5c   :  { %v4183_v62 = vsel %vm599_vm2, %v4178_v17, 0 }
 0xb5d   :  { %v4074_v9 = vpop.permute.xlu1 %4073 }
 0xb5e   :  { %5747 = vmatmul.mubr.msk.bf16.vlgmr.msra.gmra.mrb[128].mxu1 %vm599_vm2, %v3921_v20 }
 0xb5f   :  { %5751 = vmatpush3.bf16.xpose.msra.mxu1 %v3979_v47  ;;  %5752 = vmatprep.mubr.msk.bf16.mxu1 %vm6452_vm1, %v8336_v43  ;;  %v7999_v55 = vpop.permute.xlu0 %4228 }
 0xb60   :  { %5756 = vmatprep.subr.bf16.mxu1 %v8336_v43 }
 0xb61   :  { %v8003_v10 = vpop.permute.xlu1 %4124 }
 0xb63   :  { %v4280_v26 = vpop.permute.xlu0 %4279 }
 0xb64   :  { %v4285_v6 = vsel %vm599_vm2, %v4280_v26, 0 }
 0xb65   :  { %v4176_v52 = vpop.permute.xlu1 %4175 }
 0xb66   :  { %5753 = vmatmul.mubr.msk.bf16.vlgmr.msra.gmra.mrb[132].mxu1 %vm599_vm2, %v3972_v40 }
 0xb67   :  { %5757 = vmatpush3.bf16.xpose.msra.mxu1 %v4030_v48  ;;  %5758 = vmatprep.mubr.msk.bf16.mxu1 %vm6452_vm1, %v8336_v43  ;;  %v4278_v8 = vpop.permute.xlu0 %4277 }
 0xb68   :  { %5762 = vmatprep.subr.bf16.mxu1 %v8336_v43 }
 0xb6e   :  { %5759 = vmatmul.mubr.msk.bf16.vlgmr.msra.gmra.mrb[136].mxu1 %vm599_vm2, %v4023_v54 }
 0xb6f   :  { %5763 = vmatpush3.bf16.xpose.msra.mxu1 %v4081_v37  ;;  %5764 = vmatprep.mubr.msk.bf16.mxu1 %vm6452_vm1, %v8336_v43 }
 0xb70   :  { %5774 = vmatprep.subr.bf16.mxu1 %v8336_v43 }
 0xb76   :  { %5765 = vmatmul.mubr.msk.bf16.vlgmr.msra.gmra.mrb[140].mxu1 %vm599_vm2, %v4074_v9 }
 0xb77   :  { %5775 = vmatpush3.bf16.xpose.msra.mxu1 %v4183_v62  ;;  %5776 = vmatprep.mubr.msk.bf16.mxu1 %vm6452_vm1, %v8336_v43 }
 0xb78   :  { %5786 = vmatprep.subr.bf16.mxu1 %v8336_v43 }
 0xb7e   :  { %5777 = vmatmul.mubr.msk.bf16.vlgmr.msra.gmra.mrb[144].mxu1 %vm599_vm2, %v4176_v52  ;;  %v4234_v52 = vsel %vm599_vm2, %v7999_v55, 0 }
 0xb7f   :  { %5787 = vmatpush3.bf16.xpose.msra.mxu1 %v4285_v6  ;;  %5788 = vmatprep.mubr.msk.bf16.mxu1 %vm6452_vm1, %v8336_v43 }
 0xb80   :  { %5798 = vmatprep.subr.bf16.mxu1 %v8336_v43 }
 0xb86   :  { %5789 = vmatmul.mubr.msk.bf16.vlgmr.msra.gmra.mrb[148].mxu1 %vm599_vm2, %v4278_v8 }
 0xb87   :  { %5800 = vmatprep.mubr.msk.bf16.mxu1 %vm6452_vm1, %v8336_v43 }
 0xbd1   :  { %v3434_v57 = vpop.f32.mrb[80].mxu0 }
 0xbd2   :  { %v5682_v35 = vpop.f32.mrb[81].mxu0 }
 0xbd3   :  { %v3437_v25 = vpop.f32.mrb[82].mxu0 }
 0xbd4   :  { %v3770_v30 = vpack.c.bf16 %v3437_v25, %v3434_v57  ;;  %v5683_v46 = vpop.f32.mrb[83].mxu0  ;;  %v4227_v25 = vpop.permute.xlu1 %4226 }
 0xbd6   :  { %5728 = vmatprep.mubr.msk.bf16.mxu0 %vm599_vm2, %v3770_v30 }
 0xc0c   :  { %v3481_v16 = vpop.f32.mrb[112].mxu1 }
 0xc0d   :  { %v5688_v58 = vpop.f32.mrb[113].mxu1 }
 0xc0e   :  { %v3484_v12 = vpop.f32.mrb[114].mxu1 }
 0xc0f   :  { %v3771_v63 = vpack.c.bf16 %v3484_v12, %v3481_v16  ;;  %v5689_v14 = vpop.f32.mrb[115].mxu1 }
 0xc11   :  { %5729 = vmatmul.mubr.msk.bf16.vlgmr.msra.gmra.mrb[64].mxu0 %vm599_vm2, %v3771_v63 }
 0xc12   :  { %5769 = vmatpush3.bf16.xpose.msra.mxu0 %v4132_v33 }
 0xc13   :  { %5780 = vmatprep.subr.bf16.mxu0 %v8336_v43 }
 0xc14   :  { %v3528_v28 = vpop.f32.mrb[84].mxu0 }
 0xc15   :  { %v5694_v61 = vpop.f32.mrb[85].mxu0 }
 0xc16   :  { %v3531_v2 = vpop.f32.mrb[86].mxu0 }
 0xc17   :  { %v3772_v15 = vpack.c.bf16 %v3531_v2, %v3528_v28  ;;  %v5695_v44 = vpop.f32.mrb[87].mxu0 }
 0xc18   :  { %v3575_v31 = vpop.f32.mrb[116].mxu1 }
 0xc19   :  { %v5700_v59 = vpop.f32.mrb[117].mxu1  ;;  %5732 = vmatprep.mubr.msk.bf16.mxu0 %vm599_vm2, %v3772_v15 }
 0xc1a   :  { %v3578_v53 = vpop.f32.mrb[118].mxu1 }
 0xc1b   :  { %v3773_v0 = vpack.c.bf16 %v3578_v53, %v3575_v31  ;;  %v5701_v7 = vpop.f32.mrb[119].mxu1 }
 0xc1c   :  { %v3622_v32 = vpop.f32.mrb[88].mxu0 }
 0xc1d   :  { %v5706_v42 = vpop.f32.mrb[89].mxu0  ;;  %5733 = vmatmul.mubr.msk.bf16.gmra.mrb[68].mxu0 %vm599_vm2, %v3773_v0 }
 0xc1e   :  { %v3625_v41 = vpop.f32.mrb[90].mxu0 }
 0xc1f   :  { %v3774_v5 = vpack.c.bf16 %v3625_v41, %v3622_v32  ;;  %v5707_v45 = vpop.f32.mrb[91].mxu0 }
 0xc20   :  { %v3669_v4 = vpop.f32.mrb[120].mxu1 }
 0xc21   :  { %v5712_v39 = vpop.f32.mrb[121].mxu1  ;;  %5736 = vmatprep.mubr.msk.bf16.mxu0 %vm599_vm2, %v3774_v5 }
 0xc22   :  { %v3672_v24 = vpop.f32.mrb[122].mxu1 }
 0xc23   :  { %v3775_v51 = vpack.c.bf16 %v3672_v24, %v3669_v4  ;;  %v5713_v50 = vpop.f32.mrb[123].mxu1 }
 0xc24   :  { %v3716_v60 = vpop.f32.mrb[92].mxu0 }
 0xc25   :  { %v5718_v11 = vpop.f32.mrb[93].mxu0  ;;  %5737 = vmatmul.mubr.msk.bf16.gmra.mrb[72].mxu0 %vm599_vm2, %v3775_v51 }
 0xc26   :  { %v3719_v49 = vpop.f32.mrb[94].mxu0 }
 0xc27   :  { %v3776_v34 = vpack.c.bf16 %v3719_v49, %v3716_v60  ;;  %v5719_v20 = vpop.f32.mrb[95].mxu0 }
 0xc28   :  { %v3763_v36 = vpop.f32.mrb[124].mxu1 }
 0xc29   :  { %v5724_v56 = vpop.f32.mrb[125].mxu1  ;;  %5740 = vmatprep.mubr.msk.bf16.mxu0 %vm599_vm2, %v3776_v34 }
 0xc2a   :  { %v3766_v40 = vpop.f32.mrb[126].mxu1 }
 0xc2b   :  { %v3777_v47 = vpack.c.bf16 %v3766_v40, %v3763_v36  ;;  %v5725_v54 = vpop.f32.mrb[127].mxu1 }
 0xc2d   :  { %5741 = vmatmul.mubr.msk.bf16.gmra.mrb[76].mxu0 %vm599_vm2, %v3777_v47 }
 0xc2e   :  { %5770 = vmatprep.mubr.msk.bf16.mxu0 %vm6452_vm1, %v8336_v43 }
 0xc31   :  { %v3964_v48 = vpop.f32.mrb[128].mxu1 }
 0xc32   :  { %v8033_v27 = vadd.f32 %v3964_v48, %v8028_v22  ;;  %v5748_v37 = vpop.f32.mrb[129].mxu1 }
 0xc33   :  { %v3967_v17 = vpop.f32.mrb[130].mxu1 }
 0xc34   :  { %v8036_v9 = vadd.f32 %v3967_v17, %v8030_v19  ;;  %v5749_v62 = vpop.f32.mrb[131].mxu1  ;;  %v4328_v26 = vsel %vm997_vm3, %v8033_v27, -inf }
 0xc35   :  { %4329 = vmax.xlane.f32.xlu1 %v4328_v26  ;;  %5771 = vmatmul.mubr.msk.bf16.vlgmr.msra.gmra.mrb[96].mxu0 %vm599_vm2, %v8003_v10 }
 0xc36   :  { %5781 = vmatpush3.bf16.xpose.msra.mxu0 %v4234_v52  ;;  %v4331_v6 = vsel %vm997_vm3, %v8036_v9, -inf  ;;  %5782 = vmatprep.mubr.msk.bf16.mxu0 %vm6452_vm1, %v8336_v43 }
 0xc37   :  { %4332 = vmax.xlane.f32.xlu0 %v4331_v6  ;;  %5792 = vmatprep.subr.bf16.mxu0 %v8336_v43 }
 0xc39   :  { %v4015_v8 = vpop.f32.mrb[132].mxu1 }
 0xc3a   :  { %v8050_v57 = vadd.f32 %v4015_v8, %v8028_v22  ;;  %v5754_v35 = vpop.f32.mrb[133].mxu1 }
 0xc3b   :  { %v4018_v55 = vpop.f32.mrb[134].mxu1 }
 0xc3c   :  { %v4019_v30 = vadd.f32 %v4018_v55, %v8030_v19  ;;  %v5755_v10 = vpop.f32.mrb[135].mxu1  ;;  %v4334_v46 = vsel %vm997_vm3, %v8050_v57, -inf }
 0xc3d   :  { %4335 = vmax.xlane.f32.xlu0 %v4334_v46  ;;  %5783 = vmatmul.mubr.msk.bf16.vlgmr.msra.gmra.mrb[100].mxu0 %vm599_vm2, %v4227_v25 }
 0xc3e   :  { %v4337_v16 = vsel %vm997_vm3, %v4019_v30, -inf  ;;  %5794 = vmatprep.mubr.msk.bf16.mxu0 %vm6452_vm1, %v8336_v43 }
 0xc3f   :  { %4338 = vmax.xlane.f32.xlu1 %v4337_v16 }
 0xc41   :  { %v4066_v58 = vpop.f32.mrb[136].mxu1 }
 0xc42   :  { %v8060_v12 = vadd.f32 %v4066_v58, %v8028_v22  ;;  %v5760_v63 = vpop.f32.mrb[137].mxu1 }
 0xc43   :  { %v4069_v14 = vpop.f32.mrb[138].mxu1 }
 0xc44   :  { %v4070_v33 = vadd.f32 %v4069_v14, %v8030_v19  ;;  %v5761_v28 = vpop.f32.mrb[139].mxu1  ;;  %v4340_v61 = vsel %vm997_vm3, %v8060_v12, -inf }
 0xc45   :  { %4341 = vmax.xlane.f32.xlu0 %v4340_v61 }
 0xc46   :  { %v4343_v2 = vsel %vm997_vm3, %v4070_v33, -inf }
 0xc47   :  { %4344 = vmax.xlane.f32.xlu1 %v4343_v2 }
 0xc49   :  { %v4117_v15 = vpop.f32.mrb[140].mxu1 }
 0xc4a   :  { %v8067_v44 = vadd.f32 %v4117_v15, %v8028_v22  ;;  %v5766_v31 = vpop.f32.mrb[141].mxu1 }
 0xc4b   :  { %v4120_v59 = vpop.f32.mrb[142].mxu1 }
 0xc4c   :  { %v8070_v53 = vadd.f32 %v4120_v59, %v8030_v19  ;;  %v5767_v0 = vpop.f32.mrb[143].mxu1  ;;  %v4346_v7 = vsel %vm997_vm3, %v8067_v44, -inf }
 0xc4d   :  { %4347 = vmax.xlane.f32.xlu0 %v4346_v7 }
 0xc4e   :  { %v4349_v32 = vsel %vm997_vm3, %v8070_v53, -inf }
 0xc4f   :  { %4350 = vmax.xlane.f32.xlu1 %v4349_v32 }
 0xc51   :  { %v4219_v42 = vpop.f32.mrb[144].mxu1 }
 0xc52   :  { %v8077_v41 = vadd.f32 %v4219_v42, %v8028_v22  ;;  %v5778_v5 = vpop.f32.mrb[145].mxu1 }
 0xc53   :  { %v4222_v45 = vpop.f32.mrb[146].mxu1 }
 0xc54   :  { %v8080_v4 = vadd.f32 %v4222_v45, %v8030_v19  ;;  %v5779_v39 = vpop.f32.mrb[147].mxu1  ;;  %v4358_v24 = vsel %vm997_vm3, %v8077_v41, -inf }
 0xc55   :  { %4359 = vmax.xlane.f32.xlu0 %v4358_v24 }
 0xc56   :  { %v4361_v51 = vsel %vm997_vm3, %v8080_v4, -inf }
 0xc57   :  { %4362 = vmax.xlane.f32.xlu1 %v4361_v51 }
 0xc59   :  { %v4321_v50 = vpop.f32.mrb[148].mxu1 }
 0xc5a   :  { %v8087_v60 = vadd.f32 %v4321_v50, %v8028_v22  ;;  %v5790_v11 = vpop.f32.mrb[149].mxu1 }
 0xc5b   :  { %v4324_v49 = vpop.f32.mrb[150].mxu1 }
 0xc5c   :  { %v8090_v34 = vadd.f32 %v4324_v49, %v8030_v19  ;;  %v5791_v20 = vpop.f32.mrb[151].mxu1  ;;  %v4370_v36 = vsel %vm997_vm3, %v8087_v60, -inf }
 0xc5d   :  { %4371 = vmax.xlane.f32.xlu0 %v4370_v36 }
 0xc5e   :  { %v4373_v56 = vsel %vm997_vm3, %v8090_v34, -inf }
 0xc5f   :  { %4374 = vmax.xlane.f32.xlu1 %v4373_v56 }
 0xcc2   :  { %v4330_v17 = vpop.xlane.xlu1 %4329 }
 0xcc3   :  { %v4376_v26 = vsub.f32 %v8033_v27, %v4330_v17 }
 0xcc4   :  { %v4333_v40 = vpop.xlane.xlu0 %4332 }
 0xcc5   :  { %v4377_v47 = vsub.f32 %v8036_v9, %v4333_v40  ;;  %v4392_v6 = vmul.f32 1.442695, %v4376_v26 }
 0xcc7   :  { %v4394_v54 = vmul.f32 1.442695, %v4377_v47 }
 0xcc9   :  { %6165 = vpow2.f32 %v4394_v54 }
 0xcca   :  { %v4336_v8 = vpop.xlane.xlu0 %4335  ;;  %6167 = vpow2.f32 %v4392_v6 }
 0xccb   :  { %v4378_v9 = vsub.f32 %v8050_v57, %v4336_v8 }
 0xccc   :  { %v4339_v62 = vpop.xlane.xlu1 %4338 }
 0xccd   :  { %v4379_v52 = vsub.f32 %v4019_v30, %v4339_v62  ;;  %v4396_v16 = vmul.f32 1.442695, %v4378_v9 }
 0xccf   :  { %v4398_v35 = vmul.f32 1.442695, %v4379_v52 }
 0xcd1   :  { %6169 = vpow2.f32 %v4398_v35 }
 0xcd2   :  { %v4342_v25 = vpop.xlane.xlu0 %4341  ;;  %6171 = vpow2.f32 %v4396_v16 }
 0xcd3   :  { %v8097_v48 = vpop.eup %6165  ;;  %v4380_v58 = vsub.f32 %v8060_v12, %v4342_v25 }
 0xcd4   :  { %v4427_v37 = vsel %vm997_vm3, %v8097_v48, 0.0  ;;  %v4345_v55 = vpop.xlane.xlu1 %4344 }
 0xcd5   :  { %4428 = vadd.xlane.f32.xlu1 %v4427_v37  ;;  %v4381_v10 = vsub.f32 %v4070_v33, %v4345_v55  ;;  %v4400_v15 = vmul.f32 1.442695, %v4380_v58 }
 0xcd7   :  { %v4402_v14 = vmul.f32 1.442695, %v4381_v10 }
 0xcd9   :  { %6173 = vpow2.f32 %v4402_v14 }
 0xcda   :  { %v4348_v63 = vpop.xlane.xlu0 %4347  ;;  %6175 = vpow2.f32 %v4400_v15 }
 0xcdb   :  { %v4382_v57 = vsub.f32 %v8067_v44, %v4348_v63 }
 0xcdc   :  { %v4351_v46 = vpop.xlane.xlu1 %4350 }
 0xcdd   :  { %v4383_v28 = vsub.f32 %v8070_v53, %v4351_v46  ;;  %v8114_v53 = vpop.eup %6167  ;;  %v4404_v45 = vmul.f32 1.442695, %v4382_v57 }
 0xcde   :  { %v8119_v5 = vpop.eup %6169  ;;  %v4424_v51 = vsel %vm997_vm3, %v8114_v53, 0.0 }
 0xcdf   :  { %v4406_v7 = vmul.f32 1.442695, %v4383_v28  ;;  %v4433_v36 = vsel %vm997_vm3, %v8119_v5, 0.0  ;;  %v8136_v37 = vpop.eup %6171 }
 0xce1   :  { %6177 = vpow2.f32 %v4406_v7 }
 0xce2   :  { %v4360_v33 = vpop.xlane.xlu0 %4359  ;;  %6179 = vpow2.f32 %v4404_v45 }
 0xce3   :  { %v4386_v39 = vsub.f32 %v8077_v41, %v4360_v33  ;;  %v8140_v62 = vpop.eup %6173 }
 0xce4   :  { %v4363_v30 = vpop.xlane.xlu1 %4362  ;;  %v8144_v26 = vpop.eup %6175  ;;  %v4439_v52 = vsel %vm997_vm3, %v8140_v62, 0.0 }
 0xce5   :  { %v4387_v32 = vsub.f32 %v8080_v4, %v4363_v30  ;;  %v4412_v41 = vmul.f32 1.442695, %v4386_v39  ;;  %v4436_v8 = vsel %vm997_vm3, %v8144_v26, 0.0 }
 0xce7   :  { %v4414_v50 = vmul.f32 1.442695, %v4387_v32 }
 0xce9   :  { %6181 = vpow2.f32 %v4414_v50 }
 0xcea   :  { %v4372_v24 = vpop.xlane.xlu0 %4371  ;;  %6183 = vpow2.f32 %v4412_v41 }
 0xceb   :  { %v4390_v56 = vsub.f32 %v8087_v60, %v4372_v24  ;;  %v8148_v6 = vpop.eup %6177 }
 0xcec   :  { %v4375_v42 = vpop.xlane.xlu1 %4374  ;;  %v8152_v35 = vpop.eup %6179  ;;  %v4445_v55 = vsel %vm997_vm3, %v8148_v6, 0.0 }
 0xced   :  { %v4391_v4 = vsub.f32 %v8090_v34, %v4375_v42  ;;  %v4420_v60 = vmul.f32 1.442695, %v4390_v56  ;;  %v4442_v25 = vsel %vm997_vm3, %v8152_v35, 0.0 }
 0xcf3   :  { %v8156_v9 = vpop.eup %6181 }
 0xcf4   :  { %v8160_v10 = vpop.eup %6183  ;;  %v4457_v46 = vsel %vm997_vm3, %v8156_v9, 0.0 }
 0xcf5   :  { %v4454_v58 = vsel %vm997_vm3, %v8160_v10, 0.0 }
 0xd08   :  { %v4168_v27 = vpop.f32.mrb[96].mxu0 }
 0xd09   :  { %v8106_v61 = vadd.f32 %v4168_v27, %v8028_v22  ;;  %v5772_v2 = vpop.f32.mrb[97].mxu0 }
 0xd0a   :  { %v4171_v31 = vpop.f32.mrb[98].mxu0 }
 0xd0b   :  { %v8110_v59 = vadd.f32 %v4171_v31, %v8030_v19  ;;  %v5773_v12 = vpop.f32.mrb[99].mxu0  ;;  %v4352_v0 = vsel %vm997_vm3, %v8106_v61, -inf }
 0xd0c   :  { %4353 = vmax.xlane.f32.xlu0 %v4352_v0 }
 0xd0d   :  { %v4355_v44 = vsel %vm997_vm3, %v8110_v59, -inf }
 0xd0e   :  { %4356 = vmax.xlane.f32.xlu1 %v4355_v44 }
 0xd10   :  { %v4270_v11 = vpop.f32.mrb[100].mxu0  ;;  %4425 = vadd.xlane.f32.xlu0 %v4424_v51 }
 0xd11   :  { %v8126_v49 = vadd.f32 %v4270_v11, %v8028_v22  ;;  %v5784_v20 = vpop.f32.mrb[101].mxu0  ;;  %v4422_v22 = vmul.f32 1.442695, %v4391_v4 }
 0xd12   :  { %v4273_v40 = vpop.f32.mrb[102].mxu0  ;;  %4434 = vadd.xlane.f32.xlu1 %v4433_v36 }
 0xd13   :  { %v8132_v47 = vadd.f32 %v4273_v40, %v8030_v19  ;;  %v5785_v54 = vpop.f32.mrb[103].mxu0  ;;  %v4364_v34 = vsel %vm997_vm3, %v8126_v49, -inf  ;;  %v4430_v19 = vsel %vm997_vm3, %v8136_v37, 0.0  ;;  %6185 = vpow2.f32 %v4422_v22 }
 0xd14   :  { %4365 = vmax.xlane.f32.xlu0 %v4364_v34  ;;  %6187 = vpow2.f32 %v4420_v60 }
 0xd15   :  { %v4367_v17 = vsel %vm997_vm3, %v8132_v47, -inf }
 0xd16   :  { %4368 = vmax.xlane.f32.xlu1 %v4367_v17 }
 0xd18   :  { %4431 = vadd.xlane.f32.xlu0 %v4430_v19 }
 0xd1a   :  { %4440 = vadd.xlane.f32.xlu1 %v4439_v52 }
 0xd1c   :  { %4437 = vadd.xlane.f32.xlu0 %v4436_v8 }
 0xd1d   :  { %v8164_v16 = vpop.eup %6185 }
 0xd1e   :  { %4446 = vadd.xlane.f32.xlu1 %v4445_v55  ;;  %v8168_v63 = vpop.eup %6187  ;;  %v4469_v14 = vsel %vm997_vm3, %v8164_v16, 0.0 }
 0xd1f   :  { %v4466_v28 = vsel %vm997_vm3, %v8168_v63, 0.0 }
 0xd20   :  { %4443 = vadd.xlane.f32.xlu0 %v4442_v25 }
 0xd22   :  { %4458 = vadd.xlane.f32.xlu1 %v4457_v46 }
 0xd24   :  { %4455 = vadd.xlane.f32.xlu0 %v4454_v58 }
 0xd26   :  { %4470 = vadd.xlane.f32.xlu1 %v4469_v14 }
 0xd28   :  { %4467 = vadd.xlane.f32.xlu0 %v4466_v28 }
 0xd37   :  { %4559 = vrot.lane.b32.xlu1 %v6845_v13, %s6462_s30 }
 0xd3b   :  { %4606 = vrot.lane.b32.xlu1 %v6863_v1, %s6462_s30 }
 0xd3e   :  { %4512 = vrot.lane.b32.xlu0 %v6847_v18, %s6462_s30 }
 0xd3f   :  { %4700 = vrot.lane.b32.xlu1 %v6879_v29, %s6462_s30 }
 0xd42   :  { %4653 = vrot.lane.b32.xlu0 %v6861_v38, %s6462_s30 }
 0xd46   :  { %4747 = vrot.lane.b32.xlu0 %v6877_v23, %s6462_s30 }
 0xd62   :  { %v4429_v27 = vpop.xlane.xlu1 %4428 }
 0xd99   :  { %v4354_v30 = vpop.xlane.xlu0 %4353 }
 0xd9a   :  { %v4384_v2 = vsub.f32 %v8106_v61, %v4354_v30 }
 0xd9b   :  { %v4357_v13 = vpop.xlane.xlu1 %4356 }
 0xd9c   :  { %v4408_v15 = vmul.f32 1.442695, %v4384_v2  ;;  %v4385_v1 = vsub.f32 %v8110_v59, %v4357_v13 }
 0xd9d   :  { %v4426_v57 = vpop.xlane.xlu0 %4425 }
 0xd9e   :  { %6189 = vpow2.f32 %v4408_v15  ;;  %v4410_v18 = vmul.f32 1.442695, %v4385_v1 }
 0xd9f   :  { %v4435_v31 = vpop.xlane.xlu1 %4434 }
 0xda0   :  { %6191 = vpow2.f32 %v4410_v18 }
 0xda1   :  { %v4366_v29 = vpop.xlane.xlu0 %4365 }
 0xda2   :  { %v4388_v33 = vsub.f32 %v8126_v49, %v4366_v29 }
 0xda3   :  { %v4369_v38 = vpop.xlane.xlu1 %4368 }
 0xda4   :  { %v4416_v12 = vmul.f32 1.442695, %v4388_v33  ;;  %v4389_v23 = vsub.f32 %v8132_v47, %v4369_v38 }
 0xda5   :  { %v4432_v0 = vpop.xlane.xlu0 %4431 }
 0xda6   :  { %6193 = vpow2.f32 %v4416_v12  ;;  %v4418_v7 = vmul.f32 1.442695, %v4389_v23 }
 0xda7   :  { %6195 = vrcp.f32 %v4432_v0  ;;  %v4441_v61 = vpop.xlane.xlu1 %4440 }
 0xda8   :  { %v8190_v32 = vpop.eup %6189  ;;  %6197 = vpow2.f32 %v4418_v7  ;;  %v4897_v7 = vld [vmem:[#allocation13 + $0xc] sm:$0xf] }
 0xda9   :  { %6199 = vrcp.f32 %v4426_v57  ;;  %v4438_v59 = vpop.xlane.xlu0 %4437  ;;  %v4448_v42 = vsel %vm997_vm3, %v8190_v32, 0.0 }
 0xdaa   :  { %v8194_v44 = vpop.eup %6191  ;;  %6201 = vrcp.f32 %v4435_v31  ;;  %4449 = vadd.xlane.f32.xlu0 %v4448_v42 }
 0xdab   :  { %v4447_v45 = vpop.xlane.xlu1 %4446  ;;  %v4451_v39 = vsel %vm997_vm3, %v8194_v44, 0.0  ;;  %6203 = vrcp.f32 %v4429_v27 }
 0xdac   :  { %4452 = vadd.xlane.f32.xlu1 %v4451_v39  ;;  %v4923_v39 = vsel %vm2577_vm4, %v4897_v7, 0 }
 0xdad   :  { %v4444_v24 = vpop.xlane.xlu0 %4443 }
 0xdae   :  { %6205 = vrcp.f32 %v4444_v24 }
 0xdaf   :  { %v4459_v51 = vpop.xlane.xlu1 %4458  ;;  %6207 = vrcp.f32 %v4438_v59 }
 0xdb0   :  { %v8198_v50 = vpop.eup %6193  ;;  %6209 = vrcp.f32 %v4447_v45 }
 0xdb1   :  { %v6196_v4 = vpop.eup %6195  ;;  %v4456_v11 = vpop.xlane.xlu0 %4455  ;;  %v4460_v49 = vsel %vm997_vm3, %v8198_v50, 0.0  ;;  %6211 = vrcp.f32 %v4441_v61 }
 0xdb2   :  { %v8202_v20 = vpop.eup %6197  ;;  %4461 = vadd.xlane.f32.xlu0 %v4460_v49  ;;  %v4490_v47 = vmul.f32 %v6196_v4, %v8136_v37 }
 0xdb3   :  { %v6200_v36 = vpop.eup %6199  ;;  %v4471_v41 = vpop.xlane.xlu1 %4470  ;;  %v4463_v56 = vsel %vm997_vm3, %v8202_v20, 0.0 }
 0xdb4   :  { %v6202_v40 = vpop.eup %6201  ;;  %6213 = vrcp.f32 %v4471_v41  ;;  %4464 = vadd.xlane.f32.xlu1 %v4463_v56  ;;  %v4488_v22 = vmul.f32 %v6200_v36, %v8114_v53 }
 0xdb5   :  { %v4468_v54 = vpop.xlane.xlu0 %4467  ;;  %v6204_v34 = vpop.eup %6203  ;;  %v4491_v17 = vmul.f32 %v6202_v40, %v8119_v5 }
 0xdb6   :  { %6215 = vrcp.f32 %v4468_v54  ;;  %v4489_v19 = vmul.f32 %v6204_v34, %v8097_v48 }
 0xdb7   :  { %v4560_v60 = vpop.permute.xlu1 %4559  ;;  %6217 = vrcp.f32 %v4456_v11  ;;  %v4505_v8 = vpack.c.bf16 %v4491_v17, %v4490_v47 }
 0xdb8   :  { %5799 = vmatpush3.bf16.msra.mxu1 %v4560_v60  ;;  %v6206_v55 = vpop.eup %6205  ;;  %6219 = vrcp.f32 %v4459_v51  ;;  %v4504_v25 = vpack.c.bf16 %v4489_v19, %v4488_v22 }
 0xdb9   :  { %v4513_v52 = vpop.permute.xlu0 %4512  ;;  %5810 = vmatprep.subr.bf16.mxu1 %v8336_v43  ;;  %v6208_v37 = vpop.eup %6207  ;;  %v4494_v48 = vmul.f32 %v6206_v55, %v8152_v35 }
 0xdba   :  { %5793 = vmatpush3.bf16.msra.mxu0 %v4513_v52  ;;  %v6210_v53 = vpop.eup %6209  ;;  %v4492_v28 = vmul.f32 %v6208_v37, %v8144_v26 }
 0xdbb   :  { %5801 = vmatmul.mubr.msk.bf16.vlgmr.msra.gmra.mrb[152].mxu1 %vm997_vm3, %v4505_v8  ;;  %5804 = vmatprep.subr.bf16.mxu0 %v8336_v43  ;;  %v6212_v5 = vpop.eup %6211  ;;  %v4607_v46 = vpop.permute.xlu1 %4606  ;;  %v4495_v27 = vmul.f32 %v6210_v53, %v8148_v6 }
 0xdbc   :  { %5812 = vmatprep.mubr.msk.bf16.mxu1 %vm6452_vm1, %v8336_v43  ;;  %v4493_v35 = vmul.f32 %v6212_v5, %v8140_v62 }
 0xdbd   :  { %5795 = vmatmul.mubr.msk.bf16.vlgmr.msra.gmra.mrb[104].mxu0 %vm997_vm3, %v4504_v25  ;;  %v4654_v58 = vpop.permute.xlu0 %4653  ;;  %v4507_v1 = vpack.c.bf16 %v4495_v27, %v4494_v48 }
 0xdbe   :  { %v6214_v14 = vpop.eup %6213  ;;  %5805 = vmatpush3.bf16.msra.mxu0 %v4607_v46  ;;  %5811 = vmatpush3.bf16.msra.mxu1 %v4654_v58  ;;  %v4506_v26 = vpack.c.bf16 %v4493_v35, %v4492_v28 }
 0xdbf   :  { %5822 = vmatprep.subr.bf16.mxu1 %v8336_v43  ;;  %5806 = vmatprep.mubr.msk.bf16.mxu0 %vm6452_vm1, %v8336_v43  ;;  %v4503_v2 = vmul.f32 %v6214_v14, %v8164_v16  ;;  %v4701_v29 = vpop.permute.xlu1 %4700 }
 0xdc0   :  { %v6216_v30 = vpop.eup %6215  ;;  %5816 = vmatprep.subr.bf16.mxu0 %v8336_v43 }
 0xdc1   :  { %v4502_v13 = vmul.f32 %v6216_v30, %v8168_v63  ;;  %v4748_v15 = vpop.permute.xlu0 %4747  ;;  %v6218_v57 = vpop.eup %6217 }
 0xdc2   :  { %v6220_v18 = vpop.eup %6219  ;;  %v4498_v31 = vmul.f32 %v6218_v57, %v8160_v10 }
 0xdc3   :  { %5813 = vmatmul.mubr.msk.bf16.vlgmr.msra.gmra.mrb[156].mxu1 %vm997_vm3, %v4507_v1  ;;  %v4511_v6 = vpack.c.bf16 %v4503_v2, %v4502_v13  ;;  %v4499_v62 = vmul.f32 %v6220_v18, %v8156_v9 }
 0xdc4   :  { %5823 = vmatpush3.bf16.msra.mxu1 %v4748_v15  ;;  %5824 = vmatprep.mubr.msk.bf16.mxu1 %vm6452_vm1, %v8336_v43 }
 0xdc5   :  { %4794 = vrot.lane.b32.xlu1 %v6895_v3, %s6462_s30  ;;  %5807 = vmatmul.mubr.msk.bf16.vlgmr.msra.gmra.mrb[108].mxu0 %vm997_vm3, %v4506_v26  ;;  %v4509_v10 = vpack.c.bf16 %v4499_v62, %v4498_v31 }
 0xdc6   :  { %5817 = vmatpush3.bf16.msra.mxu0 %v4701_v29  ;;  %5834 = vmatprep.subr.bf16.mxu1 %v8336_v43 }
 0xdc7   :  { %5818 = vmatprep.mubr.msk.bf16.mxu0 %vm6452_vm1, %v8336_v43  ;;  %5828 = vmatprep.subr.bf16.mxu0 %v8336_v43 }
 0xdc8   :  { %4841 = vrot.lane.b32.xlu0 %v6893_v21, %s6462_s30 }
 0xdcb   :  { %5825 = vmatmul.mubr.msk.bf16.vlgmr.msra.gmra.mrb[160].mxu1 %vm997_vm3, %v4509_v10 }
 0xdcc   :  { %5836 = vmatprep.mubr.msk.bf16.mxu1 %vm6452_vm1, %v8336_v43 }
 0xe37   :  { %v4450_v3 = vpop.xlane.xlu0 %4449 }
 0xe38   :  { %6221 = vrcp.f32 %v4450_v3 }
 0xe39   :  { %v4453_v16 = vpop.xlane.xlu1 %4452 }
 0xe3a   :  { %6223 = vrcp.f32 %v4453_v16 }
 0xe3f   :  { %v4462_v63 = vpop.xlane.xlu0 %4461 }
 0xe40   :  { %6225 = vrcp.f32 %v4462_v63 }
 0xe41   :  { %v4465_v9 = vpop.xlane.xlu1 %4464 }
 0xe42   :  { %v6222_v33 = vpop.eup %6221  ;;  %6227 = vrcp.f32 %v4465_v9 }
 0xe43   :  { %v4842_v38 = vpop.permute.xlu0 %4841  ;;  %v4496_v21 = vmul.f32 %v6222_v33, %v8190_v32 }
 0xe44   :  { %v6224_v12 = vpop.eup %6223  ;;  %5835 = vmatpush3.bf16.msra.mxu1 %v4842_v38 }
 0xe45   :  { %v4497_v23 = vmul.f32 %v6224_v12, %v8194_v44  ;;  %v4795_v61 = vpop.permute.xlu1 %4794 }
 0xe47   :  { %5837 = vmatmul.mubr.msk.bf16.vlgmr.msra.gmra.mrb[164].mxu1 %vm997_vm3, %v4511_v6  ;;  %v4508_v0 = vpack.c.bf16 %v4497_v23, %v4496_v21  ;;  %v5207_v6 = vld [vmem:[#allocation14] ss:$0 sm:$0xff] }
 0xe49   :  { %5819 = vmatmul.mubr.msk.bf16.vlgmr.msra.gmra.mrb[112].mxu0 %vm997_vm3, %v4508_v0 }
 0xe4a   :  { %v6226_v59 = vpop.eup %6225  ;;  %5829 = vmatpush3.bf16.msra.mxu0 %v4795_v61  ;;  %5830 = vmatprep.mubr.msk.bf16.mxu0 %vm6452_vm1, %v8336_v43 }
 0xe4b   :  { %5913 = vmatprep.subr.msk.bf16.mxu0 %vm2577_vm4, %v4897_v7  ;;  %v4500_v45 = vmul.f32 %v6226_v59, %v8198_v50 }
 0xe4c   :  { %v6228_v42 = vpop.eup %6227 }
 0xe4d   :  { %v4501_v32 = vmul.f32 %v6228_v42, %v8202_v20 }
 0xe4f   :  { %v4510_v44 = vpack.c.bf16 %v4501_v32, %v4500_v45 }
 0xe51   :  { %5831 = vmatmul.mubr.msk.bf16.vlgmr.msra.gmra.mrb[116].mxu0 %vm997_vm3, %v4510_v44 }
 0xe52   :  { %5841 = vmatpush3.bf16.msra.mxu0 %v4923_v39 }
 0xe8e   :  { %v4599_v24 = vpop.f32.mrb[152].mxu1 }
 0xe8f   :  { %v5802_v51 = vpop.f32.mrb[153].mxu1 }
 0xe90   :  { %v4552_v4 = vpop.f32.mrb[104].mxu0  ;;  %v4602_v11 = vpop.f32.mrb[154].mxu1 }
 0xe91   :  { %v4889_v49 = vpack.c.bf16 %v4602_v11, %v4599_v24  ;;  %v5796_v36 = vpop.f32.mrb[105].mxu0  ;;  %v5803_v43 = vpop.f32.mrb[155].mxu1 }
 0xe92   :  { %v4555_v41 = vpop.f32.mrb[106].mxu0 }
 0xe93   :  { %v4888_v56 = vpack.c.bf16 %v4555_v41, %v4552_v4  ;;  %v5797_v40 = vpop.f32.mrb[107].mxu0 }
 0xe95   :  { %5842 = vmatprep.mubr.msk.bf16.mxu0 %vm599_vm2, %v4888_v56 }
 0xe96   :  { %v4693_v50 = vpop.f32.mrb[156].mxu1  ;;  %5843 = vmatmul.mubr.msk.bf16.vlgmr.msra.gmra.mrb[64].mxu0 %vm599_vm2, %v4889_v49 }
 0xe97   :  { %v5814_v20 = vpop.f32.mrb[157].mxu1 }
 0xe98   :  { %v4646_v47 = vpop.f32.mrb[108].mxu0  ;;  %v4696_v54 = vpop.f32.mrb[158].mxu1 }
 0xe99   :  { %v4891_v34 = vpack.c.bf16 %v4696_v54, %v4693_v50  ;;  %v5808_v22 = vpop.f32.mrb[109].mxu0  ;;  %v5815_v17 = vpop.f32.mrb[159].mxu1 }
 0xe9a   :  { %v4649_v60 = vpop.f32.mrb[110].mxu0 }
 0xe9b   :  { %v4890_v19 = vpack.c.bf16 %v4649_v60, %v4646_v47  ;;  %v5809_v52 = vpop.f32.mrb[111].mxu0 }
 0xe9d   :  { %5846 = vmatprep.mubr.msk.bf16.mxu0 %vm599_vm2, %v4890_v19 }
 0xe9e   :  { %v4787_v8 = vpop.f32.mrb[160].mxu1  ;;  %5847 = vmatmul.mubr.msk.bf16.gmra.mrb[68].mxu0 %vm599_vm2, %v4891_v34 }
 0xe9f   :  { %v5826_v55 = vpop.f32.mrb[161].mxu1 }
 0xea0   :  { %v4790_v37 = vpop.f32.mrb[162].mxu1 }
 0xea1   :  { %v4893_v25 = vpack.c.bf16 %v4790_v37, %v4787_v8  ;;  %v5827_v53 = vpop.f32.mrb[163].mxu1 }
 0xf1a   :  { %v4881_v5 = vpop.f32.mrb[164].mxu1 }
 0xf1b   :  { %v5838_v48 = vpop.f32.mrb[165].mxu1 }
 0xf1c   :  { %v4740_v46 = vpop.f32.mrb[112].mxu0  ;;  %v4884_v58 = vpop.f32.mrb[166].mxu1 }
 0xf1d   :  { %v4895_v14 = vpack.c.bf16 %v4884_v58, %v4881_v5  ;;  %v5820_v28 = vpop.f32.mrb[113].mxu0  ;;  %v5839_v27 = vpop.f32.mrb[167].mxu1 }
 0xf1e   :  { %v4743_v30 = vpop.f32.mrb[114].mxu0 }
 0xf1f   :  { %v4892_v35 = vpack.c.bf16 %v4743_v30, %v4740_v46  ;;  %v5821_v2 = vpop.f32.mrb[115].mxu0 }
 0xf21   :  { %5850 = vmatprep.mubr.msk.bf16.mxu0 %vm599_vm2, %v4892_v35 }
 0xf22   :  { %5851 = vmatmul.mubr.msk.bf16.gmra.mrb[72].mxu0 %vm599_vm2, %v4893_v25 }
 0xf24   :  { %v4834_v13 = vpop.f32.mrb[116].mxu0 }
 0xf25   :  { %v5832_v15 = vpop.f32.mrb[117].mxu0 }
 0xf26   :  { %v4837_v1 = vpop.f32.mrb[118].mxu0 }
 0xf27   :  { %v4894_v57 = vpack.c.bf16 %v4837_v1, %v4834_v13  ;;  %v5833_v26 = vpop.f32.mrb[119].mxu0 }
 0xf29   :  { %5854 = vmatprep.mubr.msk.bf16.mxu0 %vm599_vm2, %v4894_v57 }
 0xf2a   :  { %5855 = vmatmul.mubr.msk.bf16.gmra.mrb[76].mxu0 %vm599_vm2, %v4895_v14 }
 0xf69   :  { %v5844_v18 = vpop.f32.mrb[64].mxu0 }
 0xf6a   :  { %v5047_v31 = vadd.f32 %v5844_v18, %v5207_v6  ;;  %v4959_v29 = vpop.f32.mrb[65].mxu0 }
 0xf6b   :  { %v5045_v62 = vadd.f32 %v5207_v6, %v4959_v29  ;;  %v5845_v10 = vpop.f32.mrb[66].mxu0 }
 0xf6c   :  { %5063 = vst.msk [vmem:[#allocation16 + $0x10] sm:$0xff] %vm148_vm0, %v5047_v31  ;;  %v5048_v3 = vadd.f32 %v5845_v10, %v5207_v6  ;;  %v4962_v16 = vpop.f32.mrb[67].mxu0 }
 0xf6d   :  { %5061 = vst.msk [vmem:[#allocation16] sm:$0xff] %vm148_vm0, %v5045_v62  ;;  %v5046_v63 = vadd.f32 %v5207_v6, %v4962_v16 }
 0xf6e   :  { %5064 = vst.msk [vmem:[#allocation16 + $0x18] sm:$0xff] %vm148_vm0, %v5048_v3 }
 0xf6f   :  { %5062 = vst.msk [vmem:[#allocation16 + $0x8] sm:$0xff] %vm148_vm0, %v5046_v63 }
 0xf71   :  { %v5848_v9 = vpop.f32.mrb[68].mxu0 }
 0xf72   :  { %v5051_v33 = vadd.f32 %v5848_v9, %v5207_v6  ;;  %v4975_v38 = vpop.f32.mrb[69].mxu0 }
 0xf73   :  { %v5049_v12 = vadd.f32 %v5207_v6, %v4975_v38  ;;  %v5849_v21 = vpop.f32.mrb[70].mxu0 }
 0xf74   :  { %5067 = vst.msk [vmem:[#allocation16 + $0x30] sm:$0xff] %vm148_vm0, %v5051_v33  ;;  %v5052_v23 = vadd.f32 %v5849_v21, %v5207_v6  ;;  %v4978_v0 = vpop.f32.mrb[71].mxu0 }
 0xf75   :  { %5065 = vst.msk [vmem:[#allocation16 + $0x20] sm:$0xff] %vm148_vm0, %v5049_v12  ;;  %v5050_v7 = vadd.f32 %v5207_v6, %v4978_v0 }
 0xf76   :  { %5068 = vst.msk [vmem:[#allocation16 + $0x38] sm:$0xff] %vm148_vm0, %v5052_v23 }
 0xf77   :  { %5066 = vst.msk [vmem:[#allocation16 + $0x28] sm:$0xff] %vm148_vm0, %v5050_v7 }
 0xff5   :  { %v5852_v61 = vpop.f32.mrb[72].mxu0 }
 0xff6   :  { %v5055_v59 = vadd.f32 %v5852_v61, %v5207_v6  ;;  %v4991_v42 = vpop.f32.mrb[73].mxu0 }
 0xff7   :  { %v5053_v45 = vadd.f32 %v5207_v6, %v4991_v42  ;;  %v5853_v32 = vpop.f32.mrb[74].mxu0 }
 0xff8   :  { %5071 = vst.msk [vmem:[#allocation16 + $0x50] sm:$0xff] %vm148_vm0, %v5055_v59  ;;  %v5056_v44 = vadd.f32 %v5853_v32, %v5207_v6  ;;  %v4994_v39 = vpop.f32.mrb[75].mxu0 }
 0xff9   :  { %5069 = vst.msk [vmem:[#allocation16 + $0x40] sm:$0xff] %vm148_vm0, %v5053_v45  ;;  %v5054_v24 = vadd.f32 %v5207_v6, %v4994_v39 }
 0xffa   :  { %5072 = vst.msk [vmem:[#allocation16 + $0x58] sm:$0xff] %vm148_vm0, %v5056_v44 }
 0xffb   :  { %5070 = vst.msk [vmem:[#allocation16 + $0x48] sm:$0xff] %vm148_vm0, %v5054_v24 }
 0xffd   :  { %v5856_v51 = vpop.f32.mrb[76].mxu0 }
 0xffe   :  { %v5059_v4 = vadd.f32 %v5856_v51, %v5207_v6  ;;  %v5007_v11 = vpop.f32.mrb[77].mxu0 }
 0xfff   :  { %v5057_v49 = vadd.f32 %v5207_v6, %v5007_v11  ;;  %v5857_v36 = vpop.f32.mrb[78].mxu0 }
0x1000   :  { %5075 = vst.msk [vmem:[#allocation16 + $0x70] sm:$0xff] %vm148_vm0, %v5059_v4  ;;  %v5060_v43 = vadd.f32 %v5857_v36, %v5207_v6  ;;  %v5010_v41 = vpop.f32.mrb[79].mxu0 }
0x1001   :  { %5073 = vst.msk [vmem:[#allocation16 + $0x60] sm:$0xff] %vm148_vm0, %v5057_v49  ;;  %v5058_v56 = vadd.f32 %v5207_v6, %v5010_v41 }
0x1002   :  { %5076 = vst.msk [vmem:[#allocation16 + $0x78] sm:$0xff] %vm148_vm0, %v5060_v43 }
0x1003   :  { %5074 = vst.msk [vmem:[#allocation16 + $0x68] sm:$0xff] %vm148_vm0, %v5058_v56 }
0x1004   :  { %6416 = shalt.err (!%p6413_p12)
}
0x1005   :  { %s6417_s16 = scalar_lea.hbm %s8301_s8, 2048 }
0x1006   :  { %p6418_p13 = scmp.ne.s32.totalorder %s8301_s8, %s6417_s16  ;;  %p6421_p0 = scmp.lt.u32.totalorder %s6417_s16, %s8301_s8 }
0x1008   :  { %p6423_p1 = pnand %p6421_p0, %p6418_p13 }
0x100a   :  { %6426 = shalt.err (!%p6423_p1)
}
0x100b   :  { %5088 = dma.vmem_to_hbm [thread:$0]  %s5083_s0, 2048, %s8301_s8, [#allocation4], %s6441_s17, %s6441_s17, %s6442_s18  }
0x100c   :  { %6437 = dma.done.wait [#allocation4], 2048  }
0x100d   :  { %6438 = vsyncadd [#allocation4], 4294965248 }
0x100e   :  { %5092 = vsyncpa [#allocation3], 1 }
0x100f   :  { %5093 = vsyncpa [#allocation6], 1 }
0x1010   :  { %5094 = vsyncpa [#allocation9], 1 }
0x1011   :  { %5095 = vsyncpa [#allocation12], 1 }
0x1012   :  { %5096 = vsyncpa [#allocation15], 1 }
0x1013   :  { %5097 = vsyncpa [#allocation4], 1 }

</bundles_post_ra>
